<compile_context>
chip_gen: v7x
topology: tpu7x:2x2x1
jax: 0.10.0
libtpu: 0.0.40
codegen_flags: <defaults>
</compile_context>

<pallas_src>
import functools

import jax
import jax.numpy as jnp
from jax.experimental import pallas as pl
from jax.experimental.pallas import tpu as pltpu

FP = 128  # lane-padded feature width used for every layer
LAYER_DIMS = [(6, 16), (16, 32), (32, 32), (32, 32), (32, 32), (32, 16), (16, 6)]
FUSED_VMEM_BUDGET = 12 << 20  # stay well under the 16 MiB v5e scoped default


def _masked_log_softmax(z, out_dim):
    """log_softmax over the first `out_dim` lanes; padded lanes -> 0."""
    lane = jax.lax.broadcasted_iota(jnp.int32, z.shape, 1)
    valid = lane < out_dim
    zm = jnp.where(valid, z, -jnp.inf)
    m = jnp.max(zm, axis=1, keepdims=True)
    sh = zm - m
    lse = jnp.log(jnp.sum(jnp.exp(sh), axis=1, keepdims=True))
    return jnp.where(valid, sh - lse, 0.0)


# ---------------------------------------------------------------------------
# Fused small-N kernel: all 7 layers in one pallas_call
# ---------------------------------------------------------------------------
def _gcn_fused_kernel(a_ref, x_ref, w_ref, b_ref, o_ref, h_scr, *,
                      out_dim, row_block):
    n = a_ref.shape[0]
    n_layers = w_ref.shape[0]
    n_rb = n // row_block

    h_scr[0] = x_ref[...]  # layer-0 input (bf16)

    for layer in range(n_layers):          # static: 7 layers
        src = layer % 2
        dst = 1 - src
        w = w_ref[layer]                   # (FP, FP) bf16, hoisted out of loop
        b = b_ref[layer]                   # (1, FP) f32
        is_last = layer == n_layers - 1

        def body(rb, carry):
            start = pl.multiple_of(rb * row_block, row_block)
            rows = pl.ds(start, row_block)
            # Aggregate: bf16 x bf16 -> f32 accumulate (native MXU path).
            agg = jnp.dot(a_ref[rows, :], h_scr[src],
                          preferred_element_type=jnp.float32)
            z = jnp.dot(agg.astype(jnp.bfloat16), w,
                        preferred_element_type=jnp.float32) + b
            if not is_last:
                h_scr[dst, rows, :] = jnp.maximum(z, 0.0).astype(h_scr.dtype)
            else:
                o_ref[rows, :] = _masked_log_softmax(z, out_dim)
            return carry

        jax.lax.fori_loop(0, n_rb, body, 0)


def gcn_fused(a_bf16, x_bf16, params_pad):
    n = x_bf16.shape[0]
    w_stack = jnp.stack([w for (w, _, _) in params_pad])   # (7, FP, FP) bf16
    b_stack = jnp.stack([b for (_, b, _) in params_pad])   # (7, 1, FP) f32
    out_dim = params_pad[-1][2]
    row_block = _pick_tile(n, 512)
    kernel = functools.partial(_gcn_fused_kernel, out_dim=out_dim,
                               row_block=row_block)
    return pl.pallas_call(
        kernel,
        out_shape=jax.ShapeDtypeStruct((n, FP), jnp.float32),
        in_specs=[pl.BlockSpec(memory_space=pltpu.MemorySpace.VMEM)] * 4,
        out_specs=pl.BlockSpec(memory_space=pltpu.MemorySpace.VMEM),
        scratch_shapes=[pltpu.VMEM((2, n, FP), jnp.bfloat16)],
    )(a_bf16, x_bf16, w_stack, b_stack)


# ---------------------------------------------------------------------------
# Tiled large-N kernel: one GCNConv layer  out = act( (A_hat @ H) @ W + b )
# ---------------------------------------------------------------------------
def _gcn_layer_kernel(a_ref, h_ref, w_ref, b_ref, o_ref, acc_ref, *,
                      out_dim, activation, tk, h_resident):
    k = pl.program_id(1)

    @pl.when(k == 0)
    def _():
        acc_ref[...] = jnp.zeros_like(acc_ref)

    if h_resident:
        start = pl.multiple_of(k * tk, tk)
        h = h_ref[pl.ds(start, tk), :]
    else:
        h = h_ref[...]
    # bf16 x bf16 -> f32 accumulate on the MXU; no f32 upcast of the A tile.
    acc_ref[...] += jnp.dot(a_ref[...], h, preferred_element_type=jnp.float32)

    @pl.when(k == pl.num_programs(1) - 1)
    def _():
        z = jnp.dot(acc_ref[...].astype(jnp.bfloat16), w_ref[...],
                    preferred_element_type=jnp.float32) + b_ref[...]
        if activation == "relu":
            # Padded lanes of W/b are zero -> padded lanes of z stay zero.
            o_ref[...] = jnp.maximum(z, 0.0).astype(o_ref.dtype)
        else:
            o_ref[...] = _masked_log_softmax(z, out_dim)


def gcn_layer(a_bf16, h_bf16, w_bf16, b_f32, *, out_dim, activation, tm, tk):
    n = h_bf16.shape[0]
    assert n % tm == 0 and n % tk == 0, (n, tm, tk)

    out_dtype = jnp.bfloat16 if activation == "relu" else jnp.float32
    # Keep H fully VMEM-resident (single DMA, constant block index) when small
    # enough; otherwise stream (tk, FP) slabs as before.
    h_resident = (2 * n * FP * 2) <= (8 << 20)
    if h_resident:
        h_spec = pl.BlockSpec((n, FP), lambda i, k: (0, 0))
    else:
        h_spec = pl.BlockSpec((tk, FP), lambda i, k: (k, 0))

    # VMEM budget (double buffers where pipelined) -> optional raised limit,
    # capped at 48 MiB so a v6e tile plan still fits the v7x 64 MiB/TC.
    a_buf = 2 * tm * tk * 2
    h_buf = (2 * n * FP * 2) if h_resident else (2 * tk * FP * 2)
    o_buf = 2 * tm * FP * (2 if out_dtype == jnp.bfloat16 else 4)
    need = a_buf + h_buf + o_buf + tm * FP * 4 + 2 * (FP * FP * 2 + FP * 4)
    cp_kwargs = dict(dimension_semantics=("parallel", "arbitrary"))
    if need > (12 << 20):
        cp_kwargs["vmem_limit_bytes"] = int(min(need + (8 << 20), 48 << 20))

    kernel = functools.partial(_gcn_layer_kernel, out_dim=out_dim,
                               activation=activation, tk=tk,
                               h_resident=h_resident)
    return pl.pallas_call(
        kernel,
        out_shape=jax.ShapeDtypeStruct((n, FP), out_dtype),
        grid=(n // tm, n // tk),
        in_specs=[
            pl.BlockSpec((tm, tk), lambda i, k: (i, k)),   # A_hat tile (bf16)
            h_spec,                                        # H (bf16)
            pl.BlockSpec((FP, FP), lambda i, k: (0, 0)),   # W (bf16, padded)
            pl.BlockSpec((1, FP), lambda i, k: (0, 0)),    # bias (f32, padded)
        ],
        out_specs=pl.BlockSpec((tm, FP), lambda i, k: (i, 0)),
        scratch_shapes=[pltpu.VMEM((tm, FP), jnp.float32)],
        compiler_params=pltpu.CompilerParams(**cp_kwargs),
    )(a_bf16, h_bf16, w_bf16, b_f32)


# ---------------------------------------------------------------------------
# Driver
# ---------------------------------------------------------------------------
def _pick_tile(n, want):
    """Largest multiple of 128 that is <= want and divides n (n % 128 == 0)."""
    t = (min(want, n) // 128) * 128
    t = max(t, 128)
    while t > 128 and n % t != 0:
        t -= 128
    return t


def _fused_vmem_bytes(n, n_layers):
    return (n * n * 2            # A (bf16)
            + n * FP * 2         # X (bf16)
            + 2 * n * FP * 2     # H ping-pong scratch (bf16)
            + n * FP * 4         # output (f32)
            + n_layers * (FP * FP * 2 + FP * 4))  # weights + biases


def gcn_forward(a_bf16, x_bf16, params_pad, *, tm=512, tk=512,
                force_tiled=False):
    """7-layer GCN forward on padded inputs. Returns (N_pad, FP) f32 log-probs."""
    n = x_bf16.shape[0]
    assert n % 128 == 0, n

    if not force_tiled and _fused_vmem_bytes(n, len(params_pad)) <= FUSED_VMEM_BUDGET:
        return gcn_fused(a_bf16, x_bf16, params_pad)

    tm = _pick_tile(n, tm)
    tk = _pick_tile(n, tk)
    if n // tm < 2 and n >= 256:
        tm = _pick_tile(n, n // 2)   # v7x: give the 2nd TensorCore a row tile

    h = x_bf16
    n_layers = len(params_pad)
    for idx, (w, b, out_dim) in enumerate(params_pad):
        # F.dropout(x, training=self.training) before conv7 is identity in eval.
        # TODO(synk): training-mode dropout (pltpu.prng_random_bits mask) not wired in.
        activation = "relu" if idx < n_layers - 1 else "log_softmax"
        h = gcn_layer(a_bf16, h, w, b, out_dim=out_dim, activation=activation,
                      tm=tm, tk=tk)
    return h


# ---------------------------------------------------------------------------
# Plain-JAX glue: adjacency normalization, params, reference
# ---------------------------------------------------------------------------
def build_normalized_adjacency(edge_index, num_nodes):
    """Dense D^-1/2 (A + I) D^-1/2 matching PyG GCNConv default normalization."""
    src, dst = edge_index[0], edge_index[1]
    a = jnp.zeros((num_nodes, num_nodes), jnp.float32)
    a = a.at[dst, src].add(1.0)                        # message flows src -> dst
    a = a + jnp.eye(num_nodes, dtype=jnp.float32)      # self loops
    deg = jnp.sum(a, axis=1)
    dinv = jnp.where(deg > 0, jax.lax.rsqrt(deg), 0.0)
    return dinv[:, None] * a * dinv[None, :]


def init_params(key):
    """Glorot-uniform weights + zero biases at the true GCNConv shapes."""
    keys = jax.random.split(key, len(LAYER_DIMS))
    params = []
    for k, (fi, fo) in zip(keys, LAYER_DIMS):
        lim = jnp.sqrt(6.0 / (fi + fo))
        w = jax.random.uniform(k, (fi, fo), jnp.float32, -lim, lim)
        b = jnp.zeros((fo,), jnp.float32)
        params.append((w, b))
    return params


def gcn_reference(a_bf16, x, params):
    """Pure-JAX reference with the same bf16 quantization as the kernels."""
    h = x.astype(jnp.bfloat16)
    n_layers = len(params)
    for idx, (w, b) in enumerate(params):
        agg = jnp.dot(a_bf16, h, preferred_element_type=jnp.float32)
        z = jnp.dot(agg.astype(jnp.bfloat16), w.astype(jnp.bfloat16),
                    preferred_element_type=jnp.float32) + b[None, :]
        if idx < n_layers - 1:
            h = jnp.maximum(z, 0.0).astype(jnp.bfloat16)
        else:
            return jax.nn.log_softmax(z, axis=1)


# ---------------------------------------------------------------------------
if __name__ == "__main__":
    key = jax.random.PRNGKey(0)
    k_x, k_e, k_p = jax.random.split(key, 3)

    num_nodes, num_edges = 500, 2000
    f_in, f_out = LAYER_DIMS[0][0], LAYER_DIMS[-1][1]

    x = jax.random.normal(k_x, (num_nodes, f_in), jnp.float32)
    edge_index = jax.random.randint(k_e, (2, num_edges), 0, num_nodes,
                                    dtype=jnp.int32)

    a_hat = build_normalized_adjacency(edge_index, num_nodes)
    params = init_params(k_p)

    # --- pad to TPU-friendly shapes (rows -> multiple of 128, lanes -> 128) ---
    n_pad = ((num_nodes + 127) // 128) * 128
    a_pad = jnp.zeros((n_pad, n_pad), jnp.float32).at[:num_nodes, :num_nodes].set(a_hat)
    a_bf16 = a_pad.astype(jnp.bfloat16)          # bf16 halves O(N^2) HBM traffic
    x_pad = (jnp.zeros((n_pad, FP), jnp.bfloat16)
             .at[:num_nodes, :f_in].set(x.astype(jnp.bfloat16)))

    params_pad = []
    for (fi, fo), (w, b) in zip(LAYER_DIMS, params):
        w_p = jnp.zeros((FP, FP), jnp.bfloat16).at[:fi, :fo].set(w.astype(jnp.bfloat16))
        b_p = jnp.zeros((1, FP), jnp.float32).at[0, :fo].set(b)
        params_pad.append((w_p, b_p, fo))

    # Fused single-launch path (auto-selected at this size).
    out_fused = jax.block_until_ready(gcn_forward(a_bf16, x_pad, params_pad))
    # Tiled per-layer path (forced, to exercise the large-N code path too).
    out_tiled = jax.block_until_ready(
        gcn_forward(a_bf16, x_pad, params_pad, tm=256, tk=256, force_tiled=True))

    out_f = out_fused[:num_nodes, :f_out]
    out_t = out_tiled[:num_nodes, :f_out]

    # --- checks ---
    assert out_f.shape == (num_nodes, f_out)
    assert jnp.allclose(jnp.sum(jnp.exp(out_f), axis=1), 1.0, atol=1e-4)
    assert jnp.allclose(jnp.sum(jnp.exp(out_t), axis=1), 1.0, atol=1e-4)

    ref = gcn_reference(a_bf16[:num_nodes, :num_nodes], x, params)
    err_f = float(jnp.max(jnp.abs(out_f - ref)))
    err_t = float(jnp.max(jnp.abs(out_t - ref)))
    err_ft = float(jnp.max(jnp.abs(out_f - out_t)))
    assert jnp.allclose(out_f, ref, atol=2e-2, rtol=2e-2), err_f
    assert jnp.allclose(out_t, ref, atol=2e-2, rtol=2e-2), err_t
    assert jnp.allclose(out_f, out_t, atol=2e-2, rtol=2e-2), err_ft
    print("KERNEL_OK")
</pallas_src>

<mosaic_0001>
module attributes {stable_mosaic.version = 11 : i64} {
  func.func @_gcn_fused_kernel(%arg0: memref<512x512xbf16, #tpu.memory_space<vmem>>, %arg1: memref<512x128xbf16, #tpu.memory_space<vmem>>, %arg2: memref<7x128x128xbf16, #tpu.memory_space<vmem>>, %arg3: memref<7x1x128xf32, #tpu.memory_space<vmem>>, %arg4: memref<512x128xf32, #tpu.memory_space<vmem>>, %arg5: memref<2x512x128xbf16, #tpu.memory_space<vmem>>) attributes {dimension_semantics = [], scalar_prefetch = 0 : i64, scratch_operands = 1 : i64, tpu.core_type = #tpu.core_type<tc>} {
    %c0 = arith.constant 0 : index
    %c0_0 = arith.constant 0 : index
    %0 = vector.load %arg1[%c0, %c0_0] : memref<512x128xbf16, #tpu.memory_space<vmem>>, vector<512x128xbf16>
    %c0_1 = arith.constant 0 : index
    %c0_2 = arith.constant 0 : index
    %c0_3 = arith.constant 0 : index
    %1 = vector.load %arg5[%c0_1, %c0_2, %c0_3] : memref<2x512x128xbf16, #tpu.memory_space<vmem>>, vector<1x512x128xbf16>
    %2 = vector.shape_cast %1 : vector<1x512x128xbf16> to vector<512x128xbf16>
    %3 = vector.shape_cast %0 : vector<512x128xbf16> to vector<1x512x128xbf16>
    tpu.vector_store %arg5[%c0_1, %c0_2, %c0_3], %3 {strides = array<i32>} : memref<2x512x128xbf16, #tpu.memory_space<vmem>>, vector<1x512x128xbf16>,
    %c0_4 = arith.constant 0 : index
    %c0_5 = arith.constant 0 : index
    %c0_6 = arith.constant 0 : index
    %4 = vector.load %arg2[%c0_4, %c0_5, %c0_6] : memref<7x128x128xbf16, #tpu.memory_space<vmem>>, vector<1x128x128xbf16>
    %5 = vector.shape_cast %4 : vector<1x128x128xbf16> to vector<128x128xbf16>
    %c0_7 = arith.constant 0 : index
    %c0_8 = arith.constant 0 : index
    %c0_9 = arith.constant 0 : index
    %6 = vector.load %arg3[%c0_7, %c0_8, %c0_9] : memref<7x1x128xf32, #tpu.memory_space<vmem>>, vector<1x1x128xf32>
    %7 = vector.shape_cast %6 : vector<1x1x128xf32> to vector<1x128xf32>
    %c0_i32 = arith.constant 0 : i32
    %c512_i32 = arith.constant 512 : i32
    %8 = arith.muli %c0_i32, %c512_i32 : i32
    %9 = tpu.assume_multiple %8, 512 : i32
    %10 = arith.index_cast %9 : i32 to index
    %c0_10 = arith.constant 0 : index
    %11 = vector.load %arg0[%10, %c0_10] : memref<512x512xbf16, #tpu.memory_space<vmem>>, vector<512x512xbf16>
    %c0_11 = arith.constant 0 : index
    %c0_12 = arith.constant 0 : index
    %c0_13 = arith.constant 0 : index
    %12 = vector.load %arg5[%c0_11, %c0_12, %c0_13] : memref<2x512x128xbf16, #tpu.memory_space<vmem>>, vector<1x512x128xbf16>
    %13 = vector.shape_cast %12 : vector<1x512x128xbf16> to vector<512x128xbf16>
    %cst = arith.constant dense<0.000000e+00> : vector<512x128xf32>
    %14 = tpu.matmul %11, %13, %cst {dimension_numbers = #tpu.dot_dimension_numbers<[1], [0], [0], [1], [0, 0, 1, 1], [], []>} : vector<512x512xbf16>, vector<512x128xbf16>, vector<512x128xf32> -> vector<512x128xf32>
    %15 = arith.truncf %14 : vector<512x128xf32> to vector<512x128xbf16>
    %cst_14 = arith.constant dense<0.000000e+00> : vector<512x128xf32>
    %16 = tpu.matmul %15, %5, %cst_14 {dimension_numbers = #tpu.dot_dimension_numbers<[1], [0], [0], [1], [0, 0, 1, 1], [], []>} : vector<512x128xbf16>, vector<128x128xbf16>, vector<512x128xf32> -> vector<512x128xf32>
    %17 = vector.broadcast %7 : vector<1x128xf32> to vector<512x128xf32>
    %18 = arith.addf %16, %17 : vector<512x128xf32>
    %cst_15 = arith.constant 0.000000e+00 : f32
    %19 = vector.broadcast %cst_15 : f32 to vector<512x128xf32>
    %20 = arith.maximumf %18, %19 : vector<512x128xf32>
    %21 = arith.truncf %20 : vector<512x128xf32> to vector<512x128xbf16>
    %c1 = arith.constant 1 : index
    %22 = arith.index_cast %9 : i32 to index
    %c0_16 = arith.constant 0 : index
    %23 = vector.load %arg5[%c1, %22, %c0_16] : memref<2x512x128xbf16, #tpu.memory_space<vmem>>, vector<1x512x128xbf16>
    %24 = vector.shape_cast %23 : vector<1x512x128xbf16> to vector<512x128xbf16>
    %25 = vector.shape_cast %21 : vector<512x128xbf16> to vector<1x512x128xbf16>
    tpu.vector_store %arg5[%c1, %22, %c0_16], %25 {strides = array<i32>} : memref<2x512x128xbf16, #tpu.memory_space<vmem>>, vector<1x512x128xbf16>,
    %c1_i32 = arith.constant 1 : i32
    %c1_17 = arith.constant 1 : index
    %c0_18 = arith.constant 0 : index
    %c0_19 = arith.constant 0 : index
    %26 = vector.load %arg2[%c1_17, %c0_18, %c0_19] : memref<7x128x128xbf16, #tpu.memory_space<vmem>>, vector<1x128x128xbf16>
    %27 = vector.shape_cast %26 : vector<1x128x128xbf16> to vector<128x128xbf16>
    %c1_20 = arith.constant 1 : index
    %c0_21 = arith.constant 0 : index
    %c0_22 = arith.constant 0 : index
    %28 = vector.load %arg3[%c1_20, %c0_21, %c0_22] : memref<7x1x128xf32, #tpu.memory_space<vmem>>, vector<1x1x128xf32>
    %29 = vector.shape_cast %28 : vector<1x1x128xf32> to vector<1x128xf32>
    %c0_i32_23 = arith.constant 0 : i32
    %c512_i32_24 = arith.constant 512 : i32
    %30 = arith.muli %c0_i32_23, %c512_i32_24 : i32
    %31 = tpu.assume_multiple %30, 512 : i32
    %32 = arith.index_cast %31 : i32 to index
    %c0_25 = arith.constant 0 : index
    %33 = vector.load %arg0[%32, %c0_25] : memref<512x512xbf16, #tpu.memory_space<vmem>>, vector<512x512xbf16>
    %c1_26 = arith.constant 1 : index
    %c0_27 = arith.constant 0 : index
    %c0_28 = arith.constant 0 : index
    %34 = vector.load %arg5[%c1_26, %c0_27, %c0_28] : memref<2x512x128xbf16, #tpu.memory_space<vmem>>, vector<1x512x128xbf16>
    %35 = vector.shape_cast %34 : vector<1x512x128xbf16> to vector<512x128xbf16>
    %cst_29 = arith.constant dense<0.000000e+00> : vector<512x128xf32>
    %36 = tpu.matmul %33, %35, %cst_29 {dimension_numbers = #tpu.dot_dimension_numbers<[1], [0], [0], [1], [0, 0, 1, 1], [], []>} : vector<512x512xbf16>, vector<512x128xbf16>, vector<512x128xf32> -> vector<512x128xf32>
    %37 = arith.truncf %36 : vector<512x128xf32> to vector<512x128xbf16>
    %cst_30 = arith.constant dense<0.000000e+00> : vector<512x128xf32>
    %38 = tpu.matmul %37, %27, %cst_30 {dimension_numbers = #tpu.dot_dimension_numbers<[1], [0], [0], [1], [0, 0, 1, 1], [], []>} : vector<512x128xbf16>, vector<128x128xbf16>, vector<512x128xf32> -> vector<512x128xf32>
    %39 = vector.broadcast %29 : vector<1x128xf32> to vector<512x128xf32>
    %40 = arith.addf %38, %39 : vector<512x128xf32>
    %cst_31 = arith.constant 0.000000e+00 : f32
    %41 = vector.broadcast %cst_31 : f32 to vector<512x128xf32>
    %42 = arith.maximumf %40, %41 : vector<512x128xf32>
    %43 = arith.truncf %42 : vector<512x128xf32> to vector<512x128xbf16>
    %c0_32 = arith.constant 0 : index
    %44 = arith.index_cast %31 : i32 to index
    %c0_33 = arith.constant 0 : index
    %45 = vector.load %arg5[%c0_32, %44, %c0_33] : memref<2x512x128xbf16, #tpu.memory_space<vmem>>, vector<1x512x128xbf16>
    %46 = vector.shape_cast %45 : vector<1x512x128xbf16> to vector<512x128xbf16>
    %47 = vector.shape_cast %43 : vector<512x128xbf16> to vector<1x512x128xbf16>
    tpu.vector_store %arg5[%c0_32, %44, %c0_33], %47 {strides = array<i32>} : memref<2x512x128xbf16, #tpu.memory_space<vmem>>, vector<1x512x128xbf16>,
    %c1_i32_34 = arith.constant 1 : i32
    %c2 = arith.constant 2 : index
    %c0_35 = arith.constant 0 : index
    %c0_36 = arith.constant 0 : index
    %48 = vector.load %arg2[%c2, %c0_35, %c0_36] : memref<7x128x128xbf16, #tpu.memory_space<vmem>>, vector<1x128x128xbf16>
    %49 = vector.shape_cast %48 : vector<1x128x128xbf16> to vector<128x128xbf16>
    %c2_37 = arith.constant 2 : index
    %c0_38 = arith.constant 0 : index
    %c0_39 = arith.constant 0 : index
    %50 = vector.load %arg3[%c2_37, %c0_38, %c0_39] : memref<7x1x128xf32, #tpu.memory_space<vmem>>, vector<1x1x128xf32>
    %51 = vector.shape_cast %50 : vector<1x1x128xf32> to vector<1x128xf32>
    %c0_i32_40 = arith.constant 0 : i32
    %c512_i32_41 = arith.constant 512 : i32
    %52 = arith.muli %c0_i32_40, %c512_i32_41 : i32
    %53 = tpu.assume_multiple %52, 512 : i32
    %54 = arith.index_cast %53 : i32 to index
    %c0_42 = arith.constant 0 : index
    %55 = vector.load %arg0[%54, %c0_42] : memref<512x512xbf16, #tpu.memory_space<vmem>>, vector<512x512xbf16>
    %c0_43 = arith.constant 0 : index
    %c0_44 = arith.constant 0 : index
    %c0_45 = arith.constant 0 : index
    %56 = vector.load %arg5[%c0_43, %c0_44, %c0_45] : memref<2x512x128xbf16, #tpu.memory_space<vmem>>, vector<1x512x128xbf16>
    %57 = vector.shape_cast %56 : vector<1x512x128xbf16> to vector<512x128xbf16>
    %cst_46 = arith.constant dense<0.000000e+00> : vector<512x128xf32>
    %58 = tpu.matmul %55, %57, %cst_46 {dimension_numbers = #tpu.dot_dimension_numbers<[1], [0], [0], [1], [0, 0, 1, 1], [], []>} : vector<512x512xbf16>, vector<512x128xbf16>, vector<512x128xf32> -> vector<512x128xf32>
    %59 = arith.truncf %58 : vector<512x128xf32> to vector<512x128xbf16>
    %cst_47 = arith.constant dense<0.000000e+00> : vector<512x128xf32>
    %60 = tpu.matmul %59, %49, %cst_47 {dimension_numbers = #tpu.dot_dimension_numbers<[1], [0], [0], [1], [0, 0, 1, 1], [], []>} : vector<512x128xbf16>, vector<128x128xbf16>, vector<512x128xf32> -> vector<512x128xf32>
    %61 = vector.broadcast %51 : vector<1x128xf32> to vector<512x128xf32>
    %62 = arith.addf %60, %61 : vector<512x128xf32>
    %cst_48 = arith.constant 0.000000e+00 : f32
    %63 = vector.broadcast %cst_48 : f32 to vector<512x128xf32>
    %64 = arith.maximumf %62, %63 : vector<512x128xf32>
    %65 = arith.truncf %64 : vector<512x128xf32> to vector<512x128xbf16>
    %c1_49 = arith.constant 1 : index
    %66 = arith.index_cast %53 : i32 to index
    %c0_50 = arith.constant 0 : index
    %67 = vector.load %arg5[%c1_49, %66, %c0_50] : memref<2x512x128xbf16, #tpu.memory_space<vmem>>, vector<1x512x128xbf16>
    %68 = vector.shape_cast %67 : vector<1x512x128xbf16> to vector<512x128xbf16>
    %69 = vector.shape_cast %65 : vector<512x128xbf16> to vector<1x512x128xbf16>
    tpu.vector_store %arg5[%c1_49, %66, %c0_50], %69 {strides = array<i32>} : memref<2x512x128xbf16, #tpu.memory_space<vmem>>, vector<1x512x128xbf16>,
    %c1_i32_51 = arith.constant 1 : i32
    %c3 = arith.constant 3 : index
    %c0_52 = arith.constant 0 : index
    %c0_53 = arith.constant 0 : index
    %70 = vector.load %arg2[%c3, %c0_52, %c0_53] : memref<7x128x128xbf16, #tpu.memory_space<vmem>>, vector<1x128x128xbf16>
    %71 = vector.shape_cast %70 : vector<1x128x128xbf16> to vector<128x128xbf16>
    %c3_54 = arith.constant 3 : index
    %c0_55 = arith.constant 0 : index
    %c0_56 = arith.constant 0 : index
    %72 = vector.load %arg3[%c3_54, %c0_55, %c0_56] : memref<7x1x128xf32, #tpu.memory_space<vmem>>, vector<1x1x128xf32>
    %73 = vector.shape_cast %72 : vector<1x1x128xf32> to vector<1x128xf32>
    %c0_i32_57 = arith.constant 0 : i32
    %c512_i32_58 = arith.constant 512 : i32
    %74 = arith.muli %c0_i32_57, %c512_i32_58 : i32
    %75 = tpu.assume_multiple %74, 512 : i32
    %76 = arith.index_cast %75 : i32 to index
    %c0_59 = arith.constant 0 : index
    %77 = vector.load %arg0[%76, %c0_59] : memref<512x512xbf16, #tpu.memory_space<vmem>>, vector<512x512xbf16>
    %c1_60 = arith.constant 1 : index
    %c0_61 = arith.constant 0 : index
    %c0_62 = arith.constant 0 : index
    %78 = vector.load %arg5[%c1_60, %c0_61, %c0_62] : memref<2x512x128xbf16, #tpu.memory_space<vmem>>, vector<1x512x128xbf16>
    %79 = vector.shape_cast %78 : vector<1x512x128xbf16> to vector<512x128xbf16>
    %cst_63 = arith.constant dense<0.000000e+00> : vector<512x128xf32>
    %80 = tpu.matmul %77, %79, %cst_63 {dimension_numbers = #tpu.dot_dimension_numbers<[1], [0], [0], [1], [0, 0, 1, 1], [], []>} : vector<512x512xbf16>, vector<512x128xbf16>, vector<512x128xf32> -> vector<512x128xf32>
    %81 = arith.truncf %80 : vector<512x128xf32> to vector<512x128xbf16>
    %cst_64 = arith.constant dense<0.000000e+00> : vector<512x128xf32>
    %82 = tpu.matmul %81, %71, %cst_64 {dimension_numbers = #tpu.dot_dimension_numbers<[1], [0], [0], [1], [0, 0, 1, 1], [], []>} : vector<512x128xbf16>, vector<128x128xbf16>, vector<512x128xf32> -> vector<512x128xf32>
    %83 = vector.broadcast %73 : vector<1x128xf32> to vector<512x128xf32>
    %84 = arith.addf %82, %83 : vector<512x128xf32>
    %cst_65 = arith.constant 0.000000e+00 : f32
    %85 = vector.broadcast %cst_65 : f32 to vector<512x128xf32>
    %86 = arith.maximumf %84, %85 : vector<512x128xf32>
    %87 = arith.truncf %86 : vector<512x128xf32> to vector<512x128xbf16>
    %c0_66 = arith.constant 0 : index
    %88 = arith.index_cast %75 : i32 to index
    %c0_67 = arith.constant 0 : index
    %89 = vector.load %arg5[%c0_66, %88, %c0_67] : memref<2x512x128xbf16, #tpu.memory_space<vmem>>, vector<1x512x128xbf16>
    %90 = vector.shape_cast %89 : vector<1x512x128xbf16> to vector<512x128xbf16>
    %91 = vector.shape_cast %87 : vector<512x128xbf16> to vector<1x512x128xbf16>
    tpu.vector_store %arg5[%c0_66, %88, %c0_67], %91 {strides = array<i32>} : memref<2x512x128xbf16, #tpu.memory_space<vmem>>, vector<1x512x128xbf16>,
    %c1_i32_68 = arith.constant 1 : i32
    %c4 = arith.constant 4 : index
    %c0_69 = arith.constant 0 : index
    %c0_70 = arith.constant 0 : index
    %92 = vector.load %arg2[%c4, %c0_69, %c0_70] : memref<7x128x128xbf16, #tpu.memory_space<vmem>>, vector<1x128x128xbf16>
    %93 = vector.shape_cast %92 : vector<1x128x128xbf16> to vector<128x128xbf16>
    %c4_71 = arith.constant 4 : index
    %c0_72 = arith.constant 0 : index
    %c0_73 = arith.constant 0 : index
    %94 = vector.load %arg3[%c4_71, %c0_72, %c0_73] : memref<7x1x128xf32, #tpu.memory_space<vmem>>, vector<1x1x128xf32>
    %95 = vector.shape_cast %94 : vector<1x1x128xf32> to vector<1x128xf32>
    %c0_i32_74 = arith.constant 0 : i32
    %c512_i32_75 = arith.constant 512 : i32
    %96 = arith.muli %c0_i32_74, %c512_i32_75 : i32
    %97 = tpu.assume_multiple %96, 512 : i32
    %98 = arith.index_cast %97 : i32 to index
    %c0_76 = arith.constant 0 : index
    %99 = vector.load %arg0[%98, %c0_76] : memref<512x512xbf16, #tpu.memory_space<vmem>>, vector<512x512xbf16>
    %c0_77 = arith.constant 0 : index
    %c0_78 = arith.constant 0 : index
    %c0_79 = arith.constant 0 : index
    %100 = vector.load %arg5[%c0_77, %c0_78, %c0_79] : memref<2x512x128xbf16, #tpu.memory_space<vmem>>, vector<1x512x128xbf16>
    %101 = vector.shape_cast %100 : vector<1x512x128xbf16> to vector<512x128xbf16>
    %cst_80 = arith.constant dense<0.000000e+00> : vector<512x128xf32>
    %102 = tpu.matmul %99, %101, %cst_80 {dimension_numbers = #tpu.dot_dimension_numbers<[1], [0], [0], [1], [0, 0, 1, 1], [], []>} : vector<512x512xbf16>, vector<512x128xbf16>, vector<512x128xf32> -> vector<512x128xf32>
    %103 = arith.truncf %102 : vector<512x128xf32> to vector<512x128xbf16>
    %cst_81 = arith.constant dense<0.000000e+00> : vector<512x128xf32>
    %104 = tpu.matmul %103, %93, %cst_81 {dimension_numbers = #tpu.dot_dimension_numbers<[1], [0], [0], [1], [0, 0, 1, 1], [], []>} : vector<512x128xbf16>, vector<128x128xbf16>, vector<512x128xf32> -> vector<512x128xf32>
    %105 = vector.broadcast %95 : vector<1x128xf32> to vector<512x128xf32>
    %106 = arith.addf %104, %105 : vector<512x128xf32>
    %cst_82 = arith.constant 0.000000e+00 : f32
    %107 = vector.broadcast %cst_82 : f32 to vector<512x128xf32>
    %108 = arith.maximumf %106, %107 : vector<512x128xf32>
    %109 = arith.truncf %108 : vector<512x128xf32> to vector<512x128xbf16>
    %c1_83 = arith.constant 1 : index
    %110 = arith.index_cast %97 : i32 to index
    %c0_84 = arith.constant 0 : index
    %111 = vector.load %arg5[%c1_83, %110, %c0_84] : memref<2x512x128xbf16, #tpu.memory_space<vmem>>, vector<1x512x128xbf16>
    %112 = vector.shape_cast %111 : vector<1x512x128xbf16> to vector<512x128xbf16>
    %113 = vector.shape_cast %109 : vector<512x128xbf16> to vector<1x512x128xbf16>
    tpu.vector_store %arg5[%c1_83, %110, %c0_84], %113 {strides = array<i32>} : memref<2x512x128xbf16, #tpu.memory_space<vmem>>, vector<1x512x128xbf16>,
    %c1_i32_85 = arith.constant 1 : i32
    %c5 = arith.constant 5 : index
    %c0_86 = arith.constant 0 : index
    %c0_87 = arith.constant 0 : index
    %114 = vector.load %arg2[%c5, %c0_86, %c0_87] : memref<7x128x128xbf16, #tpu.memory_space<vmem>>, vector<1x128x128xbf16>
    %115 = vector.shape_cast %114 : vector<1x128x128xbf16> to vector<128x128xbf16>
    %c5_88 = arith.constant 5 : index
    %c0_89 = arith.constant 0 : index
    %c0_90 = arith.constant 0 : index
    %116 = vector.load %arg3[%c5_88, %c0_89, %c0_90] : memref<7x1x128xf32, #tpu.memory_space<vmem>>, vector<1x1x128xf32>
    %117 = vector.shape_cast %116 : vector<1x1x128xf32> to vector<1x128xf32>
    %c0_i32_91 = arith.constant 0 : i32
    %c512_i32_92 = arith.constant 512 : i32
    %118 = arith.muli %c0_i32_91, %c512_i32_92 : i32
    %119 = tpu.assume_multiple %118, 512 : i32
    %120 = arith.index_cast %119 : i32 to index
    %c0_93 = arith.constant 0 : index
    %121 = vector.load %arg0[%120, %c0_93] : memref<512x512xbf16, #tpu.memory_space<vmem>>, vector<512x512xbf16>
    %c1_94 = arith.constant 1 : index
    %c0_95 = arith.constant 0 : index
    %c0_96 = arith.constant 0 : index
    %122 = vector.load %arg5[%c1_94, %c0_95, %c0_96] : memref<2x512x128xbf16, #tpu.memory_space<vmem>>, vector<1x512x128xbf16>
    %123 = vector.shape_cast %122 : vector<1x512x128xbf16> to vector<512x128xbf16>
    %cst_97 = arith.constant dense<0.000000e+00> : vector<512x128xf32>
    %124 = tpu.matmul %121, %123, %cst_97 {dimension_numbers = #tpu.dot_dimension_numbers<[1], [0], [0], [1], [0, 0, 1, 1], [], []>} : vector<512x512xbf16>, vector<512x128xbf16>, vector<512x128xf32> -> vector<512x128xf32>
    %125 = arith.truncf %124 : vector<512x128xf32> to vector<512x128xbf16>
    %cst_98 = arith.constant dense<0.000000e+00> : vector<512x128xf32>
    %126 = tpu.matmul %125, %115, %cst_98 {dimension_numbers = #tpu.dot_dimension_numbers<[1], [0], [0], [1], [0, 0, 1, 1], [], []>} : vector<512x128xbf16>, vector<128x128xbf16>, vector<512x128xf32> -> vector<512x128xf32>
    %127 = vector.broadcast %117 : vector<1x128xf32> to vector<512x128xf32>
    %128 = arith.addf %126, %127 : vector<512x128xf32>
    %cst_99 = arith.constant 0.000000e+00 : f32
    %129 = vector.broadcast %cst_99 : f32 to vector<512x128xf32>
    %130 = arith.maximumf %128, %129 : vector<512x128xf32>
    %131 = arith.truncf %130 : vector<512x128xf32> to vector<512x128xbf16>
    %c0_100 = arith.constant 0 : index
    %132 = arith.index_cast %119 : i32 to index
    %c0_101 = arith.constant 0 : index
    %133 = vector.load %arg5[%c0_100, %132, %c0_101] : memref<2x512x128xbf16, #tpu.memory_space<vmem>>, vector<1x512x128xbf16>
    %134 = vector.shape_cast %133 : vector<1x512x128xbf16> to vector<512x128xbf16>
    %135 = vector.shape_cast %131 : vector<512x128xbf16> to vector<1x512x128xbf16>
    tpu.vector_store %arg5[%c0_100, %132, %c0_101], %135 {strides = array<i32>} : memref<2x512x128xbf16, #tpu.memory_space<vmem>>, vector<1x512x128xbf16>,
    %c1_i32_102 = arith.constant 1 : i32
    %c6 = arith.constant 6 : index
    %c0_103 = arith.constant 0 : index
    %c0_104 = arith.constant 0 : index
    %136 = vector.load %arg2[%c6, %c0_103, %c0_104] : memref<7x128x128xbf16, #tpu.memory_space<vmem>>, vector<1x128x128xbf16>
    %137 = vector.shape_cast %136 : vector<1x128x128xbf16> to vector<128x128xbf16>
    %c6_105 = arith.constant 6 : index
    %c0_106 = arith.constant 0 : index
    %c0_107 = arith.constant 0 : index
    %138 = vector.load %arg3[%c6_105, %c0_106, %c0_107] : memref<7x1x128xf32, #tpu.memory_space<vmem>>, vector<1x1x128xf32>
    %139 = vector.shape_cast %138 : vector<1x1x128xf32> to vector<1x128xf32>
    %c0_i32_108 = arith.constant 0 : i32
    %c512_i32_109 = arith.constant 512 : i32
    %140 = arith.muli %c0_i32_108, %c512_i32_109 : i32
    %141 = tpu.assume_multiple %140, 512 : i32
    %142 = arith.index_cast %141 : i32 to index
    %c0_110 = arith.constant 0 : index
    %143 = vector.load %arg0[%142, %c0_110] : memref<512x512xbf16, #tpu.memory_space<vmem>>, vector<512x512xbf16>
    %c0_111 = arith.constant 0 : index
    %c0_112 = arith.constant 0 : index
    %c0_113 = arith.constant 0 : index
    %144 = vector.load %arg5[%c0_111, %c0_112, %c0_113] : memref<2x512x128xbf16, #tpu.memory_space<vmem>>, vector<1x512x128xbf16>
    %145 = vector.shape_cast %144 : vector<1x512x128xbf16> to vector<512x128xbf16>
    %cst_114 = arith.constant dense<0.000000e+00> : vector<512x128xf32>
    %146 = tpu.matmul %143, %145, %cst_114 {dimension_numbers = #tpu.dot_dimension_numbers<[1], [0], [0], [1], [0, 0, 1, 1], [], []>} : vector<512x512xbf16>, vector<512x128xbf16>, vector<512x128xf32> -> vector<512x128xf32>
    %147 = arith.truncf %146 : vector<512x128xf32> to vector<512x128xbf16>
    %cst_115 = arith.constant dense<0.000000e+00> : vector<512x128xf32>
    %148 = tpu.matmul %147, %137, %cst_115 {dimension_numbers = #tpu.dot_dimension_numbers<[1], [0], [0], [1], [0, 0, 1, 1], [], []>} : vector<512x128xbf16>, vector<128x128xbf16>, vector<512x128xf32> -> vector<512x128xf32>
    %149 = vector.broadcast %139 : vector<1x128xf32> to vector<512x128xf32>
    %150 = arith.addf %148, %149 : vector<512x128xf32>
    %151 = tpu.iota {dimensions = array<i32: 1>} : vector<512x128xi32>
    %c6_i32 = arith.constant 6 : i32
    %152 = vector.broadcast %c6_i32 : i32 to vector<512x128xi32>
    %153 = arith.cmpi slt, %151, %152 : vector<512x128xi32>
    %cst_116 = arith.constant 0xFF800000 : f32
    %154 = vector.broadcast %cst_116 : f32 to vector<512x128xf32>
    %155 = arith.select %153, %150, %154 : vector<512x128xi1>, vector<512x128xf32>
    %cst_117 = arith.constant dense<0xFF800000> : vector<512xf32>
    %156 = vector.multi_reduction <maximumf>, %155, %cst_117 [1] : vector<512x128xf32> to vector<512xf32>
    %157 = vector.shape_cast %156 : vector<512xf32> to vector<512x1xf32>
    %158 = vector.broadcast %157 : vector<512x1xf32> to vector<512x128xf32>
    %159 = arith.subf %155, %158 : vector<512x128xf32>
    %160 = math.exp %159 : vector<512x128xf32>
    %cst_118 = arith.constant dense<0.000000e+00> : vector<512xf32>
    %161 = vector.multi_reduction <add>, %160, %cst_118 [1] : vector<512x128xf32> to vector<512xf32>
    %162 = vector.shape_cast %161 : vector<512xf32> to vector<512x1xf32>
    %163 = math.log %162 : vector<512x1xf32>
    %164 = vector.broadcast %163 : vector<512x1xf32> to vector<512x128xf32>
    %165 = arith.subf %159, %164 : vector<512x128xf32>
    %cst_119 = arith.constant 0.000000e+00 : f32
    %166 = vector.broadcast %cst_119 : f32 to vector<512x128xf32>
    %167 = arith.select %153, %165, %166 : vector<512x128xi1>, vector<512x128xf32>
    %168 = arith.index_cast %141 : i32 to index
    %c0_120 = arith.constant 0 : index
    %169 = vector.load %arg4[%168, %c0_120] : memref<512x128xf32, #tpu.memory_space<vmem>>, vector<512x128xf32>
    tpu.vector_store %arg4[%168, %c0_120], %167 {strides = array<i32>} : memref<512x128xf32, #tpu.memory_space<vmem>>, vector<512x128xf32>,
    %c1_i32_121 = arith.constant 1 : i32
    return
  }
}

</mosaic_0001>

<bundles_post_ra>
// kernel: tpu_custom_call.1
= control target key start
LH: loop header
LB: loop body
LE: loop exit
PB: predicated region body
PF: predicated region fallthrough
CT: control target
= control target key end

     0   :  { %9 = vsyncpa [#allocation4], 0  ;;  %s20609_s0 = inlined_call_operand.hbm [shape: bf16[512,512], index: 0, kind: input, shape index: {}]   ;;  %s20610_s1 = inlined_call_operand.hbm [shape: bf16[512,128], index: 1, kind: input, shape index: {}]   ;;  %s20611_s2 = inlined_call_operand.hbm [shape: bf16[7,128,128], index: 2, kind: input, shape index: {}]   ;;  %s20612_s3 = inlined_call_operand.vmem [shape: f32[7,1,128], index: 3, kind: input, shape index: {}]   ;;  %s20613_s4 = inlined_call_operand.hbm [shape: f32[512,128], index: 4, kind: output, shape index: {}]  }
   0x1   :  { %10 = vsyncpa [#allocation7], 0 }
   0x2   :  { %11 = vsyncpa [#allocation5], 0  ;;  %s18893_s15 = smov [#allocation6]   ;;  %s18799_s19 = scalar_lea.hbm %s20610_s1, 4096 }
   0x3   :  { %s29_s16 = sshll.u32 %s18893_s15, 4  ;;  %p18800_p0 = scmp.ne.s32.totalorder %s20610_s1, %s18799_s19  ;;  %s30_s16 = int_to_ptr.vmem [resolvable:$true] %s29_s16 }
   0x4   :  { %p18803_p1 = scmp.lt.u32.totalorder %s18799_s19, %s20610_s1 }
   0x6   :  { %p18805_p2 = pnand %p18803_p1, %p18800_p0 }
   0x8   :  { %18808 = shalt.err (!%p18805_p2)
}
   0x9   :  { %s18809_s24 = scalar_lea.vmem %s30_s16, 4096  ;;  %p18814_p4 = scmp.lt.s32.totalorder %s30_s16, %s30_s16 }
   0xa   :  { %p18810_p3 = scmp.ne.s32.totalorder %s30_s16, %s18809_s24  ;;  %p18815_p5 = scmp.lt.s32.totalorder %s18809_s24, %s18809_s24 }
   0xc   :  { %p18816_p6 = por %p18815_p5, %p18814_p4 }
   0xe   :  { %p18817_p7 = pnand %p18816_p6, %p18810_p3 }
  0x10   :  { %18820 = shalt.err (!%p18817_p7)
}
  0x11   :  { %s18894_s25 = smov 64   ;;  %s18895_s26 = smov 4  }
  0x12   :  { %35 = dma.hbm_to_vmem [thread:$0]  %s20610_s1, 4096, %s30_s16, [#allocation7], %s18894_s25, %s18894_s25, %s18895_s26  }
  0x13   :  { %s18896_s29 = smov [#allocation3]   ;;  %s18821_s7 = scalar_lea.hbm %s20609_s0, 16384 }
  0x14   :  { %s17_s30 = sshll.u32 %s18896_s29, 4  ;;  %p18822_p8 = scmp.ne.s32.totalorder %s20609_s0, %s18821_s7  ;;  %s18_s30 = int_to_ptr.vmem [resolvable:$true] %s17_s30 }
  0x15   :  { %p18825_p9 = scmp.lt.u32.totalorder %s18821_s7, %s20609_s0 }
  0x17   :  { %p18827_p10 = pnand %p18825_p9, %p18822_p8 }
  0x19   :  { %18830 = shalt.err (!%p18827_p10)
}
  0x1a   :  { %s18831_s12 = scalar_lea.vmem %s18_s30, 16384  ;;  %p18836_p12 = scmp.lt.s32.totalorder %s18_s30, %s18_s30 }
  0x1b   :  { %p18832_p11 = scmp.ne.s32.totalorder %s18_s30, %s18831_s12  ;;  %p18837_p13 = scmp.lt.s32.totalorder %s18831_s12, %s18831_s12 }
  0x1d   :  { %p18838_p0 = por %p18837_p13, %p18836_p12 }
  0x1f   :  { %p18839_p1 = pnand %p18838_p0, %p18832_p11 }
  0x21   :  { %18842 = shalt.err (!%p18839_p1)
}
  0x22   :  { %s18897_s1 = smov 256   ;;  %s18898_s13 = smov 16  }
  0x23   :  { %23 = dma.hbm_to_vmem [thread:$0]  %s20609_s0, 16384, %s18_s30, [#allocation4], %s18897_s1, %s18897_s1, %s18898_s13  }
  0x24   :  { %s18899_s16 = smov [#allocation8]   ;;  %s18843_s20 = scalar_lea.hbm %s20611_s2, 7168 }
  0x25   :  { %s41_s17 = sshll.u32 %s18899_s16, 4  ;;  %p18844_p2 = scmp.ne.s32.totalorder %s20611_s2, %s18843_s20  ;;  %s42_s17 = int_to_ptr.vmem [resolvable:$true] %s41_s17 }
  0x26   :  { %p18847_p3 = scmp.lt.u32.totalorder %s18843_s20, %s20611_s2 }
  0x28   :  { %p18849_p4 = pnand %p18847_p3, %p18844_p2 }
  0x2a   :  { %18852 = shalt.err (!%p18849_p4)
}
  0x2b   :  { %s18853_s27 = scalar_lea.vmem %s42_s17, 7168  ;;  %p18858_p6 = scmp.lt.s32.totalorder %s42_s17, %s42_s17 }
  0x2c   :  { %p18854_p5 = scmp.ne.s32.totalorder %s42_s17, %s18853_s27  ;;  %p18859_p7 = scmp.lt.s32.totalorder %s18853_s27, %s18853_s27 }
  0x2e   :  { %p18860_p8 = por %p18859_p7, %p18858_p6 }
  0x30   :  { %p18861_p9 = pnand %p18860_p8, %p18854_p5 }
  0x32   :  { %18864 = shalt.err (!%p18861_p9)
}
  0x33   :  { %47 = dma.hbm_to_vmem [thread:$0]  %s20611_s2, 7168, %s42_s17, [#allocation7], %s18894_s25, %s18894_s25, %s18895_s26  }
  0x34   :  { %18887 = dma.done.wait [#allocation4], 16384  }
  0x35   :  { %18888 = vsyncadd [#allocation4], 4294950912 }
  0x36   :  { %18889 = dma.done.wait [#allocation7], 11264  }
  0x37   :  { %18890 = vsyncadd [#allocation7], 4294956032  ;;  %v18900_v0 = vmov 0   ;;  %v17111_v1 = vld [vmem:[#allocation6] sm:$0xff]   ;;  %v17112_v2 = vld [vmem:[#allocation6 + $0x8] sm:$0xff]  }
  0x38   :  { %1168 = vmatprep.subr.bf16.mxu0 %v18900_v0  ;;  %v17113_v3 = vld [vmem:[#allocation6 + $0x10] sm:$0xff]   ;;  %v17114_v4 = vld [vmem:[#allocation6 + $0x18] sm:$0xff]   ;;  %v17115_v5 = vld [vmem:[#allocation6 + $0x20] sm:$0xff]  }
  0x39   :  { %1169 = vmatpush1.bf16.msra.mxu0 %v17111_v1  ;;  %v17129_v6 = vld [vmem:[#allocation3 + $0x4] ss:$16 sps:$4 sm:$0xff]   ;;  %v17116_v7 = vld [vmem:[#allocation6 + $0x28] sm:$0xff]   ;;  %v17118_v9 = vld [vmem:[#allocation6 + $0x38] sm:$0xff]  }
  0x3a   :  { %1170 = vmatprep.subr.bf16.mxu0 %v18900_v0  ;;  %1200 = vmatprep.mubr.bf16.mxu0 %v17129_v6  ;;  %v17117_v8 = vld [vmem:[#allocation6 + $0x30] sm:$0xff]   ;;  %v17119_v10 = vld [vmem:[#allocation6 + $0x40] sm:$0xff]   ;;  %v17120_v11 = vld [vmem:[#allocation6 + $0x48] sm:$0xff]  }
  0x3b   :  { %v17121_v12 = vld [vmem:[#allocation6 + $0x50] sm:$0xff]   ;;  %v17122_v13 = vld [vmem:[#allocation6 + $0x58] sm:$0xff]   ;;  %v17123_v14 = vld [vmem:[#allocation6 + $0x60] sm:$0xff]  }
  0x3c   :  { %v17124_v15 = vld [vmem:[#allocation6 + $0x68] sm:$0xff]   ;;  %v17125_v16 = vld [vmem:[#allocation6 + $0x70] sm:$0xff]   ;;  %v17126_v17 = vld [vmem:[#allocation6 + $0x78] sm:$0xff]  }
  0x3d   :  { %1171 = vmatpush1.bf16.msra.mxu0 %v17112_v2  ;;  %v17127_v18 = vld [vmem:[#allocation3] ss:$16 sps:$4 sm:$0xff]   ;;  %v17130_v19 = vld [vmem:[#allocation3 + $0x24] ss:$16 sps:$4 sm:$0xff]   ;;  %v17188_v27 = vld [vmem:[#allocation6 + $0x88] sm:$0xff]  }
  0x3e   :  { %1172 = vmatprep.subr.bf16.mxu0 %v18900_v0  ;;  %v17132_v20 = vld [vmem:[#allocation3 + $0x20] ss:$16 sps:$4 sm:$0xff]   ;;  %v17133_v21 = vld [vmem:[#allocation3 + $0x44] ss:$16 sps:$4 sm:$0xff]   ;;  %v17202_v37 = vld [vmem:[#allocation6 + $0x98] sm:$0xff]  }
  0x3f   :  { %v17181_v22 = vld [vmem:[#allocation6 + $0x80] sm:$0xff]   ;;  %v17195_v32 = vld [vmem:[#allocation6 + $0x90] sm:$0xff]   ;;  %v17213_v45 = vld [vmem:[#allocation6 + $0xa8] sm:$0xff]  }
  0x40   :  { %v17135_v23 = vld [vmem:[#allocation3 + $0x40] ss:$16 sps:$4 sm:$0xff]   ;;  %v17136_v24 = vld [vmem:[#allocation3 + $0x64] ss:$16 sps:$4 sm:$0xff]   ;;  %v17218_v49 = vld [vmem:[#allocation6 + $0xb8] sm:$0xff]  }
  0x41   :  { %1173 = vmatpush1.bf16.msra.mxu0 %v17113_v3  ;;  %v17138_v25 = vld [vmem:[#allocation3 + $0x60] ss:$16 sps:$4 sm:$0xff]   ;;  %v17139_v26 = vld [vmem:[#allocation3 + $0x84] ss:$16 sps:$4 sm:$0xff]   ;;  %v17223_v53 = vld [vmem:[#allocation6 + $0xc8] sm:$0xff]  }
  0x42   :  { %1174 = vmatprep.subr.bf16.mxu0 %v18900_v0  ;;  %v17141_v28 = vld [vmem:[#allocation3 + $0x80] ss:$16 sps:$4 sm:$0xff]   ;;  %v17142_v29 = vld [vmem:[#allocation3 + $0xa4] ss:$16 sps:$4 sm:$0xff]   ;;  %v17228_v57 = vld [vmem:[#allocation6 + $0xd8] sm:$0xff]  }
  0x43   :  { %v17144_v30 = vld [vmem:[#allocation3 + $0xa0] ss:$16 sps:$4 sm:$0xff]   ;;  %v17145_v31 = vld [vmem:[#allocation3 + $0xc4] ss:$16 sps:$4 sm:$0xff]   ;;  %v17233_v61 = vld [vmem:[#allocation6 + $0xe8] sm:$0xff]  }
  0x44   :  { %v17147_v33 = vld [vmem:[#allocation3 + $0xc0] ss:$16 sps:$4 sm:$0xff]   ;;  %v17148_v34 = vld [vmem:[#allocation3 + $0xe4] ss:$16 sps:$4 sm:$0xff]   ;;  %v17238_v2 = vld [vmem:[#allocation6 + $0xf8] sm:$0xff]  }
  0x45   :  { %1175 = vmatpush1.bf16.msra.mxu0 %v17114_v4  ;;  %v17150_v35 = vld [vmem:[#allocation3 + $0xe0] ss:$16 sps:$4 sm:$0xff]   ;;  %v17151_v36 = vld [vmem:[#allocation3 + $0x104] ss:$16 sps:$4 sm:$0xff]  }
  0x46   :  { %1176 = vmatprep.subr.bf16.mxu0 %v18900_v0  ;;  %v17153_v38 = vld [vmem:[#allocation3 + $0x100] ss:$16 sps:$4 sm:$0xff]   ;;  %v17154_v39 = vld [vmem:[#allocation3 + $0x124] ss:$16 sps:$4 sm:$0xff]  }
  0x47   :  { %v17156_v40 = vld [vmem:[#allocation3 + $0x120] ss:$16 sps:$4 sm:$0xff]   ;;  %v17157_v41 = vld [vmem:[#allocation3 + $0x144] ss:$16 sps:$4 sm:$0xff]  }
  0x48   :  { %v17209_v42 = vld [vmem:[#allocation6 + $0xa0] sm:$0xff]   ;;  %v17217_v48 = vld [vmem:[#allocation6 + $0xb0] sm:$0xff]  }
  0x49   :  { %1177 = vmatpush1.bf16.msra.mxu0 %v17115_v5  ;;  %v17159_v43 = vld [vmem:[#allocation3 + $0x140] ss:$16 sps:$4 sm:$0xff]   ;;  %v17160_v44 = vld [vmem:[#allocation3 + $0x164] ss:$16 sps:$4 sm:$0xff]  }
  0x4a   :  { %1178 = vmatprep.subr.bf16.mxu0 %v18900_v0  ;;  %v17162_v46 = vld [vmem:[#allocation3 + $0x160] ss:$16 sps:$4 sm:$0xff]   ;;  %v17163_v47 = vld [vmem:[#allocation3 + $0x184] ss:$16 sps:$4 sm:$0xff]  }
  0x4b   :  { %v17165_v50 = vld [vmem:[#allocation3 + $0x180] ss:$16 sps:$4 sm:$0xff]   ;;  %v17166_v51 = vld [vmem:[#allocation3 + $0x1a4] ss:$16 sps:$4 sm:$0xff]  }
  0x4c   :  { %v17222_v52 = vld [vmem:[#allocation6 + $0xc0] sm:$0xff]   ;;  %v17227_v56 = vld [vmem:[#allocation6 + $0xd0] sm:$0xff]  }
  0x4d   :  { %1179 = vmatpush1.bf16.msra.mxu0 %v17116_v7  ;;  %v17168_v54 = vld [vmem:[#allocation3 + $0x1a0] ss:$16 sps:$4 sm:$0xff]   ;;  %v17169_v55 = vld [vmem:[#allocation3 + $0x1c4] ss:$16 sps:$4 sm:$0xff]  }
  0x4e   :  { %1180 = vmatprep.subr.bf16.mxu0 %v18900_v0  ;;  %v17171_v58 = vld [vmem:[#allocation3 + $0x1c0] ss:$16 sps:$4 sm:$0xff]   ;;  %v17172_v59 = vld [vmem:[#allocation3 + $0x1e4] ss:$16 sps:$4 sm:$0xff]  }
  0x4f   :  { %v17232_v60 = vld [vmem:[#allocation6 + $0xe0] sm:$0xff]   ;;  %v17237_v1 = vld [vmem:[#allocation6 + $0xf0] sm:$0xff]  }
  0x50   :  { %v17174_v62 = vld [vmem:[#allocation3 + $0x1e0] ss:$16 sps:$4 sm:$0xff]   ;;  %v17175_v63 = vld [vmem:[#allocation3 + $0x204] ss:$16 sps:$4 sm:$0xff]  }
  0x51   :  { %1181 = vmatpush1.bf16.msra.mxu0 %v17117_v8  ;;  %v17177_v3 = vld [vmem:[#allocation3 + $0x200] ss:$16 sps:$4 sm:$0xff]   ;;  %v17178_v4 = vld [vmem:[#allocation3 + $0x224] ss:$16 sps:$4 sm:$0xff]  }
  0x52   :  { %1182 = vmatprep.subr.bf16.mxu0 %v18900_v0  ;;  %v17180_v5 = vld [vmem:[#allocation3 + $0x220] ss:$16 sps:$4 sm:$0xff]   ;;  %v17182_v6 = vld [vmem:[#allocation3 + $0x244] ss:$16 sps:$4 sm:$0xff]  }
  0x53   :  { %v17184_v7 = vld [vmem:[#allocation3 + $0x240] ss:$16 sps:$4 sm:$0xff]   ;;  %v17185_v8 = vld [vmem:[#allocation3 + $0x264] ss:$16 sps:$4 sm:$0xff]  }
  0x55   :  { %1183 = vmatpush1.bf16.msra.mxu0 %v17118_v9  ;;  %v17187_v9 = vld [vmem:[#allocation3 + $0x260] ss:$16 sps:$4 sm:$0xff]  }
  0x56   :  { %1184 = vmatprep.subr.bf16.mxu0 %v18900_v0 }
  0x59   :  { %1185 = vmatpush1.bf16.msra.mxu0 %v17119_v10  ;;  %v17189_v10 = vld [vmem:[#allocation3 + $0x284] ss:$16 sps:$4 sm:$0xff]  }
  0x5a   :  { %1186 = vmatprep.subr.bf16.mxu0 %v18900_v0 }
  0x5d   :  { %1187 = vmatpush1.bf16.msra.mxu0 %v17120_v11  ;;  %v17191_v11 = vld [vmem:[#allocation3 + $0x280] ss:$16 sps:$4 sm:$0xff]  }
  0x5e   :  { %1188 = vmatprep.subr.bf16.mxu0 %v18900_v0 }
  0x61   :  { %1189 = vmatpush1.bf16.msra.mxu0 %v17121_v12  ;;  %v17192_v12 = vld [vmem:[#allocation3 + $0x2a4] ss:$16 sps:$4 sm:$0xff]  }
  0x62   :  { %1190 = vmatprep.subr.bf16.mxu0 %v18900_v0 }
  0x65   :  { %1191 = vmatpush1.bf16.msra.mxu0 %v17122_v13  ;;  %v17194_v13 = vld [vmem:[#allocation3 + $0x2a0] ss:$16 sps:$4 sm:$0xff]  }
  0x66   :  { %1192 = vmatprep.subr.bf16.mxu0 %v18900_v0 }
  0x69   :  { %1193 = vmatpush1.bf16.msra.mxu0 %v17123_v14  ;;  %v17196_v14 = vld [vmem:[#allocation3 + $0x2c4] ss:$16 sps:$4 sm:$0xff]  }
  0x6a   :  { %1194 = vmatprep.subr.bf16.mxu0 %v18900_v0 }
  0x6d   :  { %1195 = vmatpush1.bf16.msra.mxu0 %v17124_v15  ;;  %v17198_v15 = vld [vmem:[#allocation3 + $0x2c0] ss:$16 sps:$4 sm:$0xff]  }
  0x6e   :  { %1196 = vmatprep.subr.bf16.mxu0 %v18900_v0 }
  0x71   :  { %1197 = vmatpush1.bf16.msra.mxu0 %v17125_v16  ;;  %v17199_v16 = vld [vmem:[#allocation3 + $0x2e4] ss:$16 sps:$4 sm:$0xff]  }
  0x72   :  { %1198 = vmatprep.subr.bf16.mxu0 %v18900_v0 }
  0x75   :  { %1199 = vmatpush1.bf16.msra.mxu0 %v17126_v17  ;;  %v17201_v17 = vld [vmem:[#allocation3 + $0x2e0] ss:$16 sps:$4 sm:$0xff]  }
  0x76   :  { %1457 = vmatprep.subr.bf16.mxu0 %v18900_v0 }
  0x78   :  { %1201 = vmatmul.mubr.bf16.vlgmr.msra.gmra.mrb[0].mxu0 %v17127_v18  ;;  %v17203_v18 = vld [vmem:[#allocation3 + $0x304] ss:$16 sps:$4 sm:$0xff]  }
  0x79   :  { %1208 = vmatprep.mubr.bf16.mxu0 %v17130_v19  ;;  %1458 = vmatpush1.bf16.msra.mxu0 %v17181_v22  ;;  %v17205_v19 = vld [vmem:[#allocation3 + $0x300] ss:$16 sps:$4 sm:$0xff]   ;;  %v17210_v22 = vld [vmem:[#allocation3 + $0x344] ss:$16 sps:$4 sm:$0xff]  }
  0x7a   :  { %1459 = vmatprep.subr.bf16.mxu0 %v18900_v0 }
  0x7d   :  { %1460 = vmatpush1.bf16.msra.mxu0 %v17188_v27  ;;  %v17221_v27 = vld [vmem:[#allocation3 + $0x380] ss:$16 sps:$4 sm:$0xff]  }
  0x7e   :  { %1461 = vmatprep.subr.bf16.mxu0 %v18900_v0 }
  0x80   :  { %1209 = vmatmul.mubr.bf16.gmra.mrb[4].mxu0 %v17132_v20  ;;  %v17206_v20 = vld [vmem:[#allocation3 + $0x324] ss:$16 sps:$4 sm:$0xff]  }
  0x81   :  { %1216 = vmatprep.mubr.bf16.mxu0 %v17133_v21  ;;  %1462 = vmatpush1.bf16.msra.mxu0 %v17195_v32  ;;  %v17208_v21 = vld [vmem:[#allocation3 + $0x320] ss:$16 sps:$4 sm:$0xff]   ;;  %v17234_v32 = vld [vmem:[#allocation3 + $0x3e4] ss:$16 sps:$4 sm:$0xff]  }
  0x82   :  { %1463 = vmatprep.subr.bf16.mxu0 %v18900_v0 }
  0x85   :  { %1464 = vmatpush1.bf16.msra.mxu0 %v17202_v37  ;;  %v17244_v37 = vld [vmem:[#allocation3 + $0x28] ss:$16 sps:$4 sm:$0xff]  }
  0x86   :  { %1465 = vmatprep.subr.bf16.mxu0 %v18900_v0 }
  0x88   :  { %1217 = vmatmul.mubr.bf16.gmra.mrb[8].mxu0 %v17135_v23  ;;  %v17212_v23 = vld [vmem:[#allocation3 + $0x340] ss:$16 sps:$4 sm:$0xff]  }
  0x89   :  { %1224 = vmatprep.mubr.bf16.mxu0 %v17136_v24  ;;  %1466 = vmatpush1.bf16.msra.mxu0 %v17209_v42  ;;  %v17214_v24 = vld [vmem:[#allocation3 + $0x364] ss:$16 sps:$4 sm:$0xff]   ;;  %v17251_v42 = vld [vmem:[#allocation3 + $0x8c] ss:$16 sps:$4 sm:$0xff]  }
  0x8a   :  { %1467 = vmatprep.subr.bf16.mxu0 %v18900_v0 }
  0x8d   :  { %1468 = vmatpush1.bf16.msra.mxu0 %v17213_v45  ;;  %v17256_v45 = vld [vmem:[#allocation3 + $0xa8] ss:$16 sps:$4 sm:$0xff]  }
  0x8e   :  { %1469 = vmatprep.subr.bf16.mxu0 %v18900_v0 }
  0x90   :  { %1225 = vmatmul.mubr.bf16.gmra.mrb[12].mxu0 %v17138_v25  ;;  %v17216_v25 = vld [vmem:[#allocation3 + $0x360] ss:$16 sps:$4 sm:$0xff]  }
  0x91   :  { %1232 = vmatprep.mubr.bf16.mxu0 %v17139_v26  ;;  %1470 = vmatpush1.bf16.msra.mxu0 %v17217_v48  ;;  %v17219_v26 = vld [vmem:[#allocation3 + $0x384] ss:$16 sps:$4 sm:$0xff]   ;;  %v17260_v48 = vld [vmem:[#allocation3 + $0xec] ss:$16 sps:$4 sm:$0xff]  }
  0x92   :  { %1471 = vmatprep.subr.bf16.mxu0 %v18900_v0 }
  0x95   :  { %1472 = vmatpush1.bf16.msra.mxu0 %v17218_v49  ;;  %v17262_v49 = vld [vmem:[#allocation3 + $0xe8] ss:$16 sps:$4 sm:$0xff]  }
  0x96   :  { %1473 = vmatprep.subr.bf16.mxu0 %v18900_v0 }
  0x98   :  { %1233 = vmatmul.mubr.bf16.gmra.mrb[16].mxu0 %v17141_v28  ;;  %v17224_v28 = vld [vmem:[#allocation3 + $0x3a4] ss:$16 sps:$4 sm:$0xff]  }
  0x99   :  { %1240 = vmatprep.mubr.bf16.mxu0 %v17142_v29  ;;  %1474 = vmatpush1.bf16.msra.mxu0 %v17222_v52  ;;  %v17226_v29 = vld [vmem:[#allocation3 + $0x3a0] ss:$16 sps:$4 sm:$0xff]   ;;  %v17266_v52 = vld [vmem:[#allocation3 + $0x12c] ss:$16 sps:$4 sm:$0xff]  }
  0x9a   :  { %1475 = vmatprep.subr.bf16.mxu0 %v18900_v0 }
  0x9d   :  { %1476 = vmatpush1.bf16.msra.mxu0 %v17223_v53  ;;  %v17314_v53 = vld [vmem:[#allocation8] sm:$0xff]  }
  0x9e   :  { %1477 = vmatprep.subr.bf16.mxu0 %v18900_v0  ;;  %15656 = vmatprep.subr.bf16.mxu1 %v17314_v53 }
  0x9f   :  { %15657 = vmatpush3.bf16.msra.mxu1 %v17314_v53 }
  0xa0   :  { %1241 = vmatmul.mubr.bf16.gmra.mrb[20].mxu0 %v17144_v30  ;;  %v17229_v30 = vld [vmem:[#allocation3 + $0x3c4] ss:$16 sps:$4 sm:$0xff]  }
  0xa1   :  { %1248 = vmatprep.mubr.bf16.mxu0 %v17145_v31  ;;  %1478 = vmatpush1.bf16.msra.mxu0 %v17227_v56  ;;  %v17231_v31 = vld [vmem:[#allocation3 + $0x3c0] ss:$16 sps:$4 sm:$0xff]   ;;  %v17269_v56 = vld [vmem:[#allocation3 + $0x14c] ss:$16 sps:$4 sm:$0xff]  }
  0xa2   :  { %1479 = vmatprep.subr.bf16.mxu0 %v18900_v0 }
  0xa5   :  { %1480 = vmatpush1.bf16.msra.mxu0 %v17228_v57  ;;  %v17319_v57 = vld [vmem:[#allocation8 + $0x10] sm:$0xff]  }
  0xa6   :  { %1481 = vmatprep.subr.bf16.mxu0 %v18900_v0 }
  0xa8   :  { %1249 = vmatmul.mubr.bf16.gmra.mrb[24].mxu0 %v17147_v33  ;;  %v17236_v33 = vld [vmem:[#allocation3 + $0x3e0] ss:$16 sps:$4 sm:$0xff]  }
  0xa9   :  { %1256 = vmatprep.mubr.bf16.mxu0 %v17148_v34  ;;  %1482 = vmatpush1.bf16.msra.mxu0 %v17232_v60  ;;  %v17241_v34 = vld [vmem:[#allocation3 + $0xc] ss:$16 sps:$4 sm:$0xff]  }
  0xaa   :  { %1483 = vmatprep.subr.bf16.mxu0 %v18900_v0  ;;  %v17272_v60 = vld [vmem:[#allocation3 + $0x16c] ss:$16 sps:$4 sm:$0xff]  }
  0xad   :  { %1484 = vmatpush1.bf16.msra.mxu0 %v17233_v61  ;;  %v17324_v61 = vld [vmem:[#allocation8 + $0x20] sm:$0xff]  }
  0xae   :  { %1485 = vmatprep.subr.bf16.mxu0 %v18900_v0 }
  0xb0   :  { %1257 = vmatmul.mubr.bf16.gmra.mrb[28].mxu0 %v17150_v35  ;;  %v17239_v35 = vld [vmem:[#allocation3 + $0x8] ss:$16 sps:$4 sm:$0xff]  }
  0xb1   :  { %1264 = vmatprep.mubr.bf16.mxu0 %v17151_v36  ;;  %1486 = vmatpush1.bf16.msra.mxu0 %v17237_v1  ;;  %v17242_v36 = vld [vmem:[#allocation3 + $0x2c] ss:$16 sps:$4 sm:$0xff]  }
  0xb2   :  { %1487 = vmatprep.subr.bf16.mxu0 %v18900_v0  ;;  %v17275_v1 = vld [vmem:[#allocation3 + $0x18c] ss:$16 sps:$4 sm:$0xff]  }
  0xb5   :  { %1488 = vmatpush1.bf16.msra.mxu0 %v17238_v2  ;;  %v17329_v2 = vld [vmem:[#allocation8 + $0x30] sm:$0xff]  }
  0xb6   :  { %3072 = vmatprep.subr.bf16.mxu0 %v18900_v0 }
  0xb8   :  { %1265 = vmatmul.mubr.bf16.gmra.mrb[32].mxu0 %v17153_v38  ;;  %v17245_v38 = vld [vmem:[#allocation3 + $0x4c] ss:$16 sps:$4 sm:$0xff]  }
  0xb9   :  { %1272 = vmatprep.mubr.bf16.mxu0 %v17154_v39  ;;  %v17247_v39 = vld [vmem:[#allocation3 + $0x48] ss:$16 sps:$4 sm:$0xff]  }
  0xc0   :  { %1273 = vmatmul.mubr.bf16.gmra.mrb[36].mxu0 %v17156_v40  ;;  %v17248_v40 = vld [vmem:[#allocation3 + $0x6c] ss:$16 sps:$4 sm:$0xff]  }
  0xc1   :  { %1280 = vmatprep.mubr.bf16.mxu0 %v17157_v41  ;;  %v17250_v41 = vld [vmem:[#allocation3 + $0x68] ss:$16 sps:$4 sm:$0xff]  }
  0xc8   :  { %1281 = vmatmul.mubr.bf16.gmra.mrb[40].mxu0 %v17159_v43  ;;  %v17253_v43 = vld [vmem:[#allocation3 + $0x88] ss:$16 sps:$4 sm:$0xff]  }
  0xc9   :  { %1288 = vmatprep.mubr.bf16.mxu0 %v17160_v44  ;;  %v17254_v44 = vld [vmem:[#allocation3 + $0xac] ss:$16 sps:$4 sm:$0xff]  }
  0xd0   :  { %1289 = vmatmul.mubr.bf16.gmra.mrb[44].mxu0 %v17162_v46  ;;  %v17257_v46 = vld [vmem:[#allocation3 + $0xcc] ss:$16 sps:$4 sm:$0xff]  }
  0xd1   :  { %1296 = vmatprep.mubr.bf16.mxu0 %v17163_v47  ;;  %v17259_v47 = vld [vmem:[#allocation3 + $0xc8] ss:$16 sps:$4 sm:$0xff]  }
  0xd8   :  { %1297 = vmatmul.mubr.bf16.gmra.mrb[48].mxu0 %v17165_v50  ;;  %v17263_v50 = vld [vmem:[#allocation3 + $0x10c] ss:$16 sps:$4 sm:$0xff]  }
  0xd9   :  { %1304 = vmatprep.mubr.bf16.mxu0 %v17166_v51  ;;  %v17265_v51 = vld [vmem:[#allocation3 + $0x108] ss:$16 sps:$4 sm:$0xff]  }
  0xe0   :  { %1305 = vmatmul.mubr.bf16.gmra.mrb[52].mxu0 %v17168_v54  ;;  %v17315_v54 = vld [vmem:[#allocation8 + $0x8] sm:$0xff]  }
  0xe1   :  { %1312 = vmatprep.mubr.bf16.mxu0 %v17169_v55  ;;  %v17268_v55 = vld [vmem:[#allocation3 + $0x128] ss:$16 sps:$4 sm:$0xff]   ;;  %15658 = vmatprep.subr.bf16.mxu1 %v17315_v54 }
  0xe2   :  { %15659 = vmatpush3.bf16.msra.mxu1 %v17315_v54 }
  0xe3   :  { %15660 = vmatprep.subr.bf16.mxu1 %v17319_v57 }
  0xe6   :  { %15661 = vmatpush3.bf16.msra.mxu1 %v17319_v57  ;;  %v17339_v57 = vld [vmem:[#allocation3 + $0x3c8] ss:$16 sps:$4 sm:$0xff]  }
  0xe8   :  { %1313 = vmatmul.mubr.bf16.gmra.mrb[56].mxu0 %v17171_v58  ;;  %v17320_v58 = vld [vmem:[#allocation8 + $0x18] sm:$0xff]  }
  0xe9   :  { %1320 = vmatprep.mubr.bf16.mxu0 %v17172_v59  ;;  %v17271_v59 = vld [vmem:[#allocation3 + $0x148] ss:$16 sps:$4 sm:$0xff]   ;;  %15662 = vmatprep.subr.bf16.mxu1 %v17320_v58 }
  0xea   :  { %15663 = vmatpush3.bf16.msra.mxu1 %v17320_v58 }
  0xeb   :  { %15664 = vmatprep.subr.bf16.mxu1 %v17324_v61 }
  0xee   :  { %15665 = vmatpush3.bf16.msra.mxu1 %v17324_v61 }
  0xf0   :  { %1321 = vmatmul.mubr.bf16.gmra.mrb[60].mxu0 %v17174_v62  ;;  %v17274_v62 = vld [vmem:[#allocation3 + $0x168] ss:$16 sps:$4 sm:$0xff]  }
  0xf1   :  { %1328 = vmatprep.mubr.bf16.mxu0 %v17175_v63  ;;  %v17325_v63 = vld [vmem:[#allocation8 + $0x28] sm:$0xff]  }
  0xf2   :  { %15666 = vmatprep.subr.bf16.mxu1 %v17325_v63 }
  0xf3   :  { %15667 = vmatpush3.bf16.msra.mxu1 %v17325_v63 }
  0xf4   :  { %15668 = vmatprep.subr.bf16.mxu1 %v17329_v2 }
  0xf7   :  { %15669 = vmatpush3.bf16.msra.mxu1 %v17329_v2 }
  0xf8   :  { %1329 = vmatmul.mubr.bf16.gmra.mrb[64].mxu0 %v17177_v3  ;;  %v17330_v3 = vld [vmem:[#allocation8 + $0x38] sm:$0xff]  }
  0xf9   :  { %1336 = vmatprep.mubr.bf16.mxu0 %v17178_v4  ;;  %v17277_v4 = vld [vmem:[#allocation3 + $0x188] ss:$16 sps:$4 sm:$0xff]   ;;  %15670 = vmatprep.subr.bf16.mxu1 %v17330_v3 }
  0xfb   :  { %15671 = vmatpush3.bf16.msra.mxu1 %v17330_v3 }
  0xfc   :  { %16216 = vmatprep.subr.bf16.mxu1 %v18900_v0 }
 0x100   :  { %1337 = vmatmul.mubr.bf16.gmra.mrb[68].mxu0 %v17180_v5  ;;  %v17278_v5 = vld [vmem:[#allocation3 + $0x1ac] ss:$16 sps:$4 sm:$0xff]  }
 0x101   :  { %1344 = vmatprep.mubr.bf16.mxu0 %v17182_v6  ;;  %v17280_v6 = vld [vmem:[#allocation3 + $0x1a8] ss:$16 sps:$4 sm:$0xff]  }
 0x108   :  { %1345 = vmatmul.mubr.bf16.gmra.mrb[72].mxu0 %v17184_v7  ;;  %v17281_v7 = vld [vmem:[#allocation3 + $0x1cc] ss:$16 sps:$4 sm:$0xff]  }
 0x109   :  { %1352 = vmatprep.mubr.bf16.mxu0 %v17185_v8  ;;  %v17283_v8 = vld [vmem:[#allocation3 + $0x1c8] ss:$16 sps:$4 sm:$0xff]  }
 0x110   :  { %1353 = vmatmul.mubr.bf16.gmra.mrb[76].mxu0 %v17187_v9  ;;  %v17284_v9 = vld [vmem:[#allocation3 + $0x1ec] ss:$16 sps:$4 sm:$0xff]  }
 0x111   :  { %1360 = vmatprep.mubr.bf16.mxu0 %v17189_v10  ;;  %v17286_v10 = vld [vmem:[#allocation3 + $0x1e8] ss:$16 sps:$4 sm:$0xff]  }
 0x118   :  { %1361 = vmatmul.mubr.bf16.gmra.mrb[80].mxu0 %v17191_v11  ;;  %v17287_v11 = vld [vmem:[#allocation3 + $0x20c] ss:$16 sps:$4 sm:$0xff]  }
 0x119   :  { %1368 = vmatprep.mubr.bf16.mxu0 %v17192_v12  ;;  %v17289_v12 = vld [vmem:[#allocation3 + $0x208] ss:$16 sps:$4 sm:$0xff]  }
 0x120   :  { %1369 = vmatmul.mubr.bf16.gmra.mrb[84].mxu0 %v17194_v13  ;;  %v17290_v13 = vld [vmem:[#allocation3 + $0x22c] ss:$16 sps:$4 sm:$0xff]  }
 0x121   :  { %1376 = vmatprep.mubr.bf16.mxu0 %v17196_v14  ;;  %v17292_v14 = vld [vmem:[#allocation3 + $0x228] ss:$16 sps:$4 sm:$0xff]  }
 0x128   :  { %1377 = vmatmul.mubr.bf16.gmra.mrb[88].mxu0 %v17198_v15  ;;  %v17293_v15 = vld [vmem:[#allocation3 + $0x24c] ss:$16 sps:$4 sm:$0xff]  }
 0x129   :  { %1384 = vmatprep.mubr.bf16.mxu0 %v17199_v16  ;;  %v17295_v16 = vld [vmem:[#allocation3 + $0x248] ss:$16 sps:$4 sm:$0xff]  }
 0x130   :  { %1385 = vmatmul.mubr.bf16.gmra.mrb[92].mxu0 %v17201_v17  ;;  %v17296_v17 = vld [vmem:[#allocation3 + $0x26c] ss:$16 sps:$4 sm:$0xff]  }
 0x131   :  { %1392 = vmatprep.mubr.bf16.mxu0 %v17203_v18  ;;  %v17298_v18 = vld [vmem:[#allocation3 + $0x268] ss:$16 sps:$4 sm:$0xff]  }
 0x138   :  { %1393 = vmatmul.mubr.bf16.gmra.mrb[96].mxu0 %v17205_v19  ;;  %v17299_v19 = vld [vmem:[#allocation3 + $0x28c] ss:$16 sps:$4 sm:$0xff]  }
 0x139   :  { %1400 = vmatprep.mubr.bf16.mxu0 %v17206_v20  ;;  %v17301_v20 = vld [vmem:[#allocation3 + $0x288] ss:$16 sps:$4 sm:$0xff]  }
 0x140   :  { %1401 = vmatmul.mubr.bf16.gmra.mrb[100].mxu0 %v17208_v21  ;;  %v17302_v21 = vld [vmem:[#allocation3 + $0x2ac] ss:$16 sps:$4 sm:$0xff]  }
 0x141   :  { %1408 = vmatprep.mubr.bf16.mxu0 %v17210_v22  ;;  %v17304_v22 = vld [vmem:[#allocation3 + $0x2a8] ss:$16 sps:$4 sm:$0xff]  }
 0x148   :  { %1409 = vmatmul.mubr.bf16.gmra.mrb[104].mxu0 %v17212_v23  ;;  %v17305_v23 = vld [vmem:[#allocation3 + $0x2cc] ss:$16 sps:$4 sm:$0xff]  }
 0x149   :  { %1416 = vmatprep.mubr.bf16.mxu0 %v17214_v24  ;;  %v17307_v24 = vld [vmem:[#allocation3 + $0x2c8] ss:$16 sps:$4 sm:$0xff]  }
 0x150   :  { %1417 = vmatmul.mubr.bf16.gmra.mrb[108].mxu0 %v17216_v25  ;;  %v17308_v25 = vld [vmem:[#allocation3 + $0x2ec] ss:$16 sps:$4 sm:$0xff]  }
 0x151   :  { %1424 = vmatprep.mubr.bf16.mxu0 %v17219_v26  ;;  %v17310_v26 = vld [vmem:[#allocation3 + $0x2e8] ss:$16 sps:$4 sm:$0xff]  }
 0x158   :  { %1425 = vmatmul.mubr.bf16.gmra.mrb[112].mxu0 %v17221_v27  ;;  %v17311_v27 = vld [vmem:[#allocation3 + $0x30c] ss:$16 sps:$4 sm:$0xff]  }
 0x159   :  { %1432 = vmatprep.mubr.bf16.mxu0 %v17224_v28  ;;  %v17313_v28 = vld [vmem:[#allocation3 + $0x308] ss:$16 sps:$4 sm:$0xff]  }
 0x160   :  { %1433 = vmatmul.mubr.bf16.gmra.mrb[116].mxu0 %v17226_v29  ;;  %v17316_v29 = vld [vmem:[#allocation3 + $0x32c] ss:$16 sps:$4 sm:$0xff]  }
 0x161   :  { %1440 = vmatprep.mubr.bf16.mxu0 %v17229_v30  ;;  %v17318_v30 = vld [vmem:[#allocation3 + $0x328] ss:$16 sps:$4 sm:$0xff]  }
 0x168   :  { %1441 = vmatmul.mubr.bf16.gmra.mrb[120].mxu0 %v17231_v31  ;;  %v17321_v31 = vld [vmem:[#allocation3 + $0x34c] ss:$16 sps:$4 sm:$0xff]  }
 0x169   :  { %1448 = vmatprep.mubr.bf16.mxu0 %v17234_v32  ;;  %v17323_v32 = vld [vmem:[#allocation3 + $0x348] ss:$16 sps:$4 sm:$0xff]  }
 0x170   :  { %1449 = vmatmul.mubr.bf16.gmra.mrb[124].mxu0 %v17236_v33  ;;  %v17326_v33 = vld [vmem:[#allocation3 + $0x36c] ss:$16 sps:$4 sm:$0xff]  }
 0x171   :  { %1489 = vmatprep.mubr.bf16.mxu0 %v17241_v34 }
 0x178   :  { %1490 = vmatmul.mubr.bf16.vlgmr.msra.gmra.mrb[0].mxu0 %v17239_v35 }
 0x179   :  { %1497 = vmatprep.mubr.bf16.mxu0 %v17242_v36  ;;  %v17328_v36 = vld [vmem:[#allocation3 + $0x368] ss:$16 sps:$4 sm:$0xff]  }
 0x180   :  { %1498 = vmatmul.mubr.bf16.gmra.mrb[4].mxu0 %v17244_v37 }
 0x181   :  { %1505 = vmatprep.mubr.bf16.mxu0 %v17245_v38  ;;  %v17331_v38 = vld [vmem:[#allocation3 + $0x38c] ss:$16 sps:$4 sm:$0xff]  }
 0x188   :  { %1506 = vmatmul.mubr.bf16.gmra.mrb[8].mxu0 %v17247_v39 }
 0x189   :  { %1513 = vmatprep.mubr.bf16.mxu0 %v17248_v40 }
 0x190   :  { %1514 = vmatmul.mubr.bf16.gmra.mrb[12].mxu0 %v17250_v41 }
 0x191   :  { %1521 = vmatprep.mubr.bf16.mxu0 %v17251_v42 }
 0x198   :  { %1522 = vmatmul.mubr.bf16.gmra.mrb[16].mxu0 %v17253_v43  ;;  %v17333_v43 = vld [vmem:[#allocation3 + $0x388] ss:$16 sps:$4 sm:$0xff]  }
 0x199   :  { %1529 = vmatprep.mubr.bf16.mxu0 %v17254_v44 }
 0x1a0   :  { %1530 = vmatmul.mubr.bf16.gmra.mrb[20].mxu0 %v17256_v45  ;;  %v17334_v45 = vld [vmem:[#allocation3 + $0x3ac] ss:$16 sps:$4 sm:$0xff]  }
 0x1a1   :  { %1537 = vmatprep.mubr.bf16.mxu0 %v17257_v46 }
 0x1a8   :  { %1538 = vmatmul.mubr.bf16.gmra.mrb[24].mxu0 %v17259_v47 }
 0x1a9   :  { %1545 = vmatprep.mubr.bf16.mxu0 %v17260_v48 }
 0x1b0   :  { %1546 = vmatmul.mubr.bf16.gmra.mrb[28].mxu0 %v17262_v49 }
 0x1b1   :  { %1553 = vmatprep.mubr.bf16.mxu0 %v17263_v50  ;;  %v17336_v50 = vld [vmem:[#allocation3 + $0x3a8] ss:$16 sps:$4 sm:$0xff]  }
 0x1b8   :  { %1554 = vmatmul.mubr.bf16.gmra.mrb[32].mxu0 %v17265_v51 }
 0x1b9   :  { %1561 = vmatprep.mubr.bf16.mxu0 %v17266_v52  ;;  %v17337_v52 = vld [vmem:[#allocation3 + $0x3cc] ss:$16 sps:$4 sm:$0xff]  }
 0x1c0   :  { %1562 = vmatmul.mubr.bf16.gmra.mrb[36].mxu0 %v17268_v55 }
 0x1c1   :  { %1569 = vmatprep.mubr.bf16.mxu0 %v17269_v56 }
 0x1c8   :  { %1570 = vmatmul.mubr.bf16.gmra.mrb[40].mxu0 %v17271_v59  ;;  %v17340_v59 = vld [vmem:[#allocation3 + $0x3ec] ss:$16 sps:$4 sm:$0xff]  }
 0x1c9   :  { %1577 = vmatprep.mubr.bf16.mxu0 %v17272_v60 }
 0x1d0   :  { %1578 = vmatmul.mubr.bf16.gmra.mrb[44].mxu0 %v17274_v62 }
 0x1d1   :  { %1585 = vmatprep.mubr.bf16.mxu0 %v17275_v1  ;;  %v17342_v1 = vld [vmem:[#allocation3 + $0x3e8] ss:$16 sps:$4 sm:$0xff]  }
 0x1d8   :  { %1586 = vmatmul.mubr.bf16.gmra.mrb[48].mxu0 %v17277_v4 }
 0x1d9   :  { %1593 = vmatprep.mubr.bf16.mxu0 %v17278_v5 }
 0x1e0   :  { %1594 = vmatmul.mubr.bf16.gmra.mrb[52].mxu0 %v17280_v6 }
 0x1e1   :  { %1601 = vmatprep.mubr.bf16.mxu0 %v17281_v7 }
 0x1e8   :  { %1602 = vmatmul.mubr.bf16.gmra.mrb[56].mxu0 %v17283_v8 }
 0x1e9   :  { %1609 = vmatprep.mubr.bf16.mxu0 %v17284_v9 }
 0x1f0   :  { %1610 = vmatmul.mubr.bf16.gmra.mrb[60].mxu0 %v17286_v10 }
 0x1f1   :  { %1617 = vmatprep.mubr.bf16.mxu0 %v17287_v11 }
 0x1f8   :  { %1618 = vmatmul.mubr.bf16.gmra.mrb[64].mxu0 %v17289_v12 }
 0x1f9   :  { %1625 = vmatprep.mubr.bf16.mxu0 %v17290_v13 }
 0x200   :  { %1626 = vmatmul.mubr.bf16.gmra.mrb[68].mxu0 %v17292_v14 }
 0x201   :  { %1633 = vmatprep.mubr.bf16.mxu0 %v17293_v15 }
 0x208   :  { %1634 = vmatmul.mubr.bf16.gmra.mrb[72].mxu0 %v17295_v16 }
 0x209   :  { %1641 = vmatprep.mubr.bf16.mxu0 %v17296_v17 }
 0x210   :  { %1642 = vmatmul.mubr.bf16.gmra.mrb[76].mxu0 %v17298_v18 }
 0x211   :  { %1649 = vmatprep.mubr.bf16.mxu0 %v17299_v19 }
 0x218   :  { %1650 = vmatmul.mubr.bf16.gmra.mrb[80].mxu0 %v17301_v20 }
 0x219   :  { %1657 = vmatprep.mubr.bf16.mxu0 %v17302_v21 }
 0x220   :  { %1658 = vmatmul.mubr.bf16.gmra.mrb[84].mxu0 %v17304_v22 }
 0x221   :  { %1665 = vmatprep.mubr.bf16.mxu0 %v17305_v23 }
 0x228   :  { %1666 = vmatmul.mubr.bf16.gmra.mrb[88].mxu0 %v17307_v24 }
 0x229   :  { %1673 = vmatprep.mubr.bf16.mxu0 %v17308_v25 }
 0x230   :  { %1674 = vmatmul.mubr.bf16.gmra.mrb[92].mxu0 %v17310_v26 }
 0x231   :  { %1681 = vmatprep.mubr.bf16.mxu0 %v17311_v27 }
 0x238   :  { %1682 = vmatmul.mubr.bf16.gmra.mrb[96].mxu0 %v17313_v28 }
 0x239   :  { %1689 = vmatprep.mubr.bf16.mxu0 %v17316_v29 }
 0x240   :  { %1690 = vmatmul.mubr.bf16.gmra.mrb[100].mxu0 %v17318_v30 }
 0x241   :  { %1697 = vmatprep.mubr.bf16.mxu0 %v17321_v31 }
 0x248   :  { %1698 = vmatmul.mubr.bf16.gmra.mrb[104].mxu0 %v17323_v32 }
 0x249   :  { %1705 = vmatprep.mubr.bf16.mxu0 %v17326_v33 }
 0x24b   :  { %v1491_v34 = vpop.f32.mrb[0].mxu0 }
 0x24c   :  { %v1493_v35 = vpop.f32.mrb[1].mxu0 }
 0x24d   :  { %v1494_v37 = vpop.f32.mrb[2].mxu0 }
 0x24e   :  { %v1496_v39 = vpop.f32.mrb[3].mxu0  ;;  %v1746_v40 = vpack.c.bf16 %v1494_v37, %v1491_v34 }
 0x250   :  { %1706 = vmatmul.mubr.bf16.gmra.mrb[108].mxu0 %v17328_v36  ;;  %15672 = vmatprep.mubr.bf16.mxu1 %v1746_v40 }
 0x251   :  { %1713 = vmatprep.mubr.bf16.mxu0 %v17331_v38 }
 0x253   :  { %v1499_v41 = vpop.f32.mrb[4].mxu0 }
 0x254   :  { %v1501_v42 = vpop.f32.mrb[5].mxu0 }
 0x255   :  { %v1502_v44 = vpop.f32.mrb[6].mxu0 }
 0x256   :  { %v1747_v46 = vpack.c.bf16 %v1502_v44, %v1499_v41  ;;  %v1504_v47 = vpop.f32.mrb[7].mxu0 }
 0x258   :  { %1714 = vmatmul.mubr.bf16.gmra.mrb[112].mxu0 %v17333_v43  ;;  %15673 = vmatmul.mubr.bf16.vlgmr.msra.gmra.mrb[0].mxu1 %v1747_v46 }
 0x259   :  { %1721 = vmatprep.mubr.bf16.mxu0 %v17334_v45 }
 0x25b   :  { %v1507_v48 = vpop.f32.mrb[8].mxu0 }
 0x25c   :  { %v1509_v49 = vpop.f32.mrb[9].mxu0 }
 0x25d   :  { %v1510_v51 = vpop.f32.mrb[10].mxu0 }
 0x25e   :  { %v1748_v53 = vpack.c.bf16 %v1510_v51, %v1507_v48  ;;  %v1512_v54 = vpop.f32.mrb[11].mxu0 }
 0x260   :  { %1722 = vmatmul.mubr.bf16.gmra.mrb[116].mxu0 %v17336_v50  ;;  %15676 = vmatprep.mubr.bf16.mxu1 %v1748_v53 }
 0x261   :  { %1729 = vmatprep.mubr.bf16.mxu0 %v17337_v52 }
 0x263   :  { %v1515_v55 = vpop.f32.mrb[12].mxu0 }
 0x264   :  { %v1517_v56 = vpop.f32.mrb[13].mxu0 }
 0x265   :  { %v1518_v58 = vpop.f32.mrb[14].mxu0 }
 0x266   :  { %v1749_v60 = vpack.c.bf16 %v1518_v58, %v1515_v55  ;;  %v1520_v61 = vpop.f32.mrb[15].mxu0 }
 0x268   :  { %1730 = vmatmul.mubr.bf16.gmra.mrb[120].mxu0 %v17339_v57  ;;  %15677 = vmatmul.mubr.bf16.gmra.mrb[4].mxu1 %v1749_v60 }
 0x269   :  { %1737 = vmatprep.mubr.bf16.mxu0 %v17340_v59 }
 0x26b   :  { %v1523_v62 = vpop.f32.mrb[16].mxu0 }
 0x26c   :  { %v1525_v63 = vpop.f32.mrb[17].mxu0 }
 0x26d   :  { %v1526_v2 = vpop.f32.mrb[18].mxu0 }
 0x26e   :  { %v1750_v3 = vpack.c.bf16 %v1526_v2, %v1523_v62  ;;  %v1528_v4 = vpop.f32.mrb[19].mxu0 }
 0x270   :  { %1738 = vmatmul.mubr.bf16.gmra.mrb[124].mxu0 %v17342_v1  ;;  %15680 = vmatprep.mubr.bf16.mxu1 %v1750_v3 }
 0x273   :  { %v1531_v5 = vpop.f32.mrb[20].mxu0 }
 0x274   :  { %v1533_v6 = vpop.f32.mrb[21].mxu0 }
 0x275   :  { %v1534_v7 = vpop.f32.mrb[22].mxu0 }
 0x276   :  { %v1751_v8 = vpack.c.bf16 %v1534_v7, %v1531_v5  ;;  %v1536_v9 = vpop.f32.mrb[23].mxu0 }
 0x278   :  { %15681 = vmatmul.mubr.bf16.gmra.mrb[8].mxu1 %v1751_v8 }
 0x27b   :  { %v1539_v10 = vpop.f32.mrb[24].mxu0 }
 0x27c   :  { %v1541_v11 = vpop.f32.mrb[25].mxu0 }
 0x27d   :  { %v1542_v12 = vpop.f32.mrb[26].mxu0 }
 0x27e   :  { %v1752_v13 = vpack.c.bf16 %v1542_v12, %v1539_v10  ;;  %v1544_v14 = vpop.f32.mrb[27].mxu0 }
 0x280   :  { %15684 = vmatprep.mubr.bf16.mxu1 %v1752_v13 }
 0x283   :  { %v1547_v15 = vpop.f32.mrb[28].mxu0 }
 0x284   :  { %v1549_v16 = vpop.f32.mrb[29].mxu0 }
 0x285   :  { %v1550_v17 = vpop.f32.mrb[30].mxu0 }
 0x286   :  { %v1753_v18 = vpack.c.bf16 %v1550_v17, %v1547_v15  ;;  %v1552_v19 = vpop.f32.mrb[31].mxu0 }
 0x288   :  { %15685 = vmatmul.mubr.bf16.gmra.mrb[12].mxu1 %v1753_v18 }
 0x28b   :  { %v1555_v20 = vpop.f32.mrb[32].mxu0 }
 0x28c   :  { %v1557_v21 = vpop.f32.mrb[33].mxu0 }
 0x28d   :  { %v1558_v22 = vpop.f32.mrb[34].mxu0 }
 0x28e   :  { %v1754_v23 = vpack.c.bf16 %v1558_v22, %v1555_v20  ;;  %v1560_v24 = vpop.f32.mrb[35].mxu0 }
 0x290   :  { %15688 = vmatprep.mubr.bf16.mxu1 %v1754_v23 }
 0x293   :  { %v1563_v25 = vpop.f32.mrb[36].mxu0 }
 0x294   :  { %v1565_v26 = vpop.f32.mrb[37].mxu0 }
 0x295   :  { %v1566_v27 = vpop.f32.mrb[38].mxu0 }
 0x296   :  { %v1755_v28 = vpack.c.bf16 %v1566_v27, %v1563_v25  ;;  %v1568_v29 = vpop.f32.mrb[39].mxu0 }
 0x298   :  { %15689 = vmatmul.mubr.bf16.gmra.mrb[16].mxu1 %v1755_v28 }
 0x29b   :  { %v1571_v30 = vpop.f32.mrb[40].mxu0 }
 0x29c   :  { %v1573_v31 = vpop.f32.mrb[41].mxu0 }
 0x29d   :  { %v1574_v32 = vpop.f32.mrb[42].mxu0 }
 0x29e   :  { %v1756_v33 = vpack.c.bf16 %v1574_v32, %v1571_v30  ;;  %v1576_v34 = vpop.f32.mrb[43].mxu0 }
 0x2a0   :  { %15692 = vmatprep.mubr.bf16.mxu1 %v1756_v33 }
 0x2a3   :  { %v1579_v35 = vpop.f32.mrb[44].mxu0 }
 0x2a4   :  { %v1581_v36 = vpop.f32.mrb[45].mxu0 }
 0x2a5   :  { %v1582_v37 = vpop.f32.mrb[46].mxu0 }
 0x2a6   :  { %v1757_v38 = vpack.c.bf16 %v1582_v37, %v1579_v35  ;;  %v1584_v39 = vpop.f32.mrb[47].mxu0 }
 0x2a8   :  { %15693 = vmatmul.mubr.bf16.gmra.mrb[20].mxu1 %v1757_v38 }
 0x2ab   :  { %v1587_v40 = vpop.f32.mrb[48].mxu0 }
 0x2ac   :  { %v1589_v41 = vpop.f32.mrb[49].mxu0 }
 0x2ad   :  { %v1590_v42 = vpop.f32.mrb[50].mxu0 }
 0x2ae   :  { %v1758_v43 = vpack.c.bf16 %v1590_v42, %v1587_v40  ;;  %v1592_v44 = vpop.f32.mrb[51].mxu0 }
 0x2b0   :  { %15696 = vmatprep.mubr.bf16.mxu1 %v1758_v43 }
 0x2b3   :  { %v1595_v45 = vpop.f32.mrb[52].mxu0 }
 0x2b4   :  { %v1597_v46 = vpop.f32.mrb[53].mxu0 }
 0x2b5   :  { %v1598_v47 = vpop.f32.mrb[54].mxu0 }
 0x2b6   :  { %v1759_v48 = vpack.c.bf16 %v1598_v47, %v1595_v45  ;;  %v1600_v49 = vpop.f32.mrb[55].mxu0 }
 0x2b8   :  { %15697 = vmatmul.mubr.bf16.gmra.mrb[24].mxu1 %v1759_v48 }
 0x2bb   :  { %v1603_v50 = vpop.f32.mrb[56].mxu0 }
 0x2bc   :  { %v1605_v51 = vpop.f32.mrb[57].mxu0 }
 0x2bd   :  { %v1606_v52 = vpop.f32.mrb[58].mxu0 }
 0x2be   :  { %v1760_v53 = vpack.c.bf16 %v1606_v52, %v1603_v50  ;;  %v1608_v54 = vpop.f32.mrb[59].mxu0 }
 0x2c0   :  { %15700 = vmatprep.mubr.bf16.mxu1 %v1760_v53 }
 0x2c3   :  { %v1611_v55 = vpop.f32.mrb[60].mxu0 }
 0x2c4   :  { %v1613_v56 = vpop.f32.mrb[61].mxu0 }
 0x2c5   :  { %v1614_v57 = vpop.f32.mrb[62].mxu0 }
 0x2c6   :  { %v1761_v58 = vpack.c.bf16 %v1614_v57, %v1611_v55  ;;  %v1616_v59 = vpop.f32.mrb[63].mxu0  ;;  %v19008_v57 = vld [vmem:[%s20612_s3] ss:$0 sm:$0xff] }
 0x2c8   :  { %15701 = vmatmul.mubr.bf16.gmra.mrb[28].mxu1 %v1761_v58 }
 0x2cb   :  { %v1619_v60 = vpop.f32.mrb[64].mxu0 }
 0x2cc   :  { %v1621_v61 = vpop.f32.mrb[65].mxu0 }
 0x2cd   :  { %v1622_v62 = vpop.f32.mrb[66].mxu0 }
 0x2ce   :  { %v1762_v63 = vpack.c.bf16 %v1622_v62, %v1619_v60  ;;  %v1624_v1 = vpop.f32.mrb[67].mxu0 }
 0x2d0   :  { %15704 = vmatprep.mubr.bf16.mxu1 %v1762_v63 }
 0x2d3   :  { %v1627_v2 = vpop.f32.mrb[68].mxu0 }
 0x2d4   :  { %v1629_v3 = vpop.f32.mrb[69].mxu0 }
 0x2d5   :  { %v1630_v4 = vpop.f32.mrb[70].mxu0 }
 0x2d6   :  { %v1763_v5 = vpack.c.bf16 %v1630_v4, %v1627_v2  ;;  %v1632_v6 = vpop.f32.mrb[71].mxu0 }
 0x2d8   :  { %15705 = vmatmul.mubr.bf16.gmra.mrb[32].mxu1 %v1763_v5 }
 0x2db   :  { %v1635_v7 = vpop.f32.mrb[72].mxu0 }
 0x2dc   :  { %v1637_v8 = vpop.f32.mrb[73].mxu0 }
 0x2dd   :  { %v1638_v9 = vpop.f32.mrb[74].mxu0 }
 0x2de   :  { %v1764_v10 = vpack.c.bf16 %v1638_v9, %v1635_v7  ;;  %v1640_v11 = vpop.f32.mrb[75].mxu0 }
 0x2e0   :  { %15708 = vmatprep.mubr.bf16.mxu1 %v1764_v10 }
 0x2e3   :  { %v1643_v12 = vpop.f32.mrb[76].mxu0 }
 0x2e4   :  { %v1645_v13 = vpop.f32.mrb[77].mxu0 }
 0x2e5   :  { %v1646_v14 = vpop.f32.mrb[78].mxu0 }
 0x2e6   :  { %v1765_v15 = vpack.c.bf16 %v1646_v14, %v1643_v12  ;;  %v1648_v16 = vpop.f32.mrb[79].mxu0 }
 0x2e8   :  { %15709 = vmatmul.mubr.bf16.gmra.mrb[36].mxu1 %v1765_v15 }
 0x2eb   :  { %v1651_v17 = vpop.f32.mrb[80].mxu0 }
 0x2ec   :  { %v1653_v18 = vpop.f32.mrb[81].mxu0 }
 0x2ed   :  { %v1654_v19 = vpop.f32.mrb[82].mxu0 }
 0x2ee   :  { %v1766_v20 = vpack.c.bf16 %v1654_v19, %v1651_v17  ;;  %v1656_v21 = vpop.f32.mrb[83].mxu0 }
 0x2f0   :  { %15712 = vmatprep.mubr.bf16.mxu1 %v1766_v20 }
 0x2f3   :  { %v1659_v22 = vpop.f32.mrb[84].mxu0 }
 0x2f4   :  { %v1661_v23 = vpop.f32.mrb[85].mxu0 }
 0x2f5   :  { %v1662_v24 = vpop.f32.mrb[86].mxu0 }
 0x2f6   :  { %v1767_v25 = vpack.c.bf16 %v1662_v24, %v1659_v22  ;;  %v1664_v26 = vpop.f32.mrb[87].mxu0 }
 0x2f8   :  { %15713 = vmatmul.mubr.bf16.gmra.mrb[40].mxu1 %v1767_v25 }
 0x2fb   :  { %v1667_v27 = vpop.f32.mrb[88].mxu0 }
 0x2fc   :  { %v1669_v28 = vpop.f32.mrb[89].mxu0 }
 0x2fd   :  { %v1670_v29 = vpop.f32.mrb[90].mxu0 }
 0x2fe   :  { %v1672_v30 = vpop.f32.mrb[91].mxu0  ;;  %v1768_v31 = vpack.c.bf16 %v1670_v29, %v1667_v27 }
 0x300   :  { %15716 = vmatprep.mubr.bf16.mxu1 %v1768_v31 }
 0x303   :  { %v1675_v32 = vpop.f32.mrb[92].mxu0 }
 0x304   :  { %v1677_v33 = vpop.f32.mrb[93].mxu0 }
 0x305   :  { %v1678_v34 = vpop.f32.mrb[94].mxu0 }
 0x306   :  { %v1680_v35 = vpop.f32.mrb[95].mxu0  ;;  %v1769_v36 = vpack.c.bf16 %v1678_v34, %v1675_v32 }
 0x308   :  { %15717 = vmatmul.mubr.bf16.gmra.mrb[44].mxu1 %v1769_v36 }
 0x30b   :  { %v1683_v37 = vpop.f32.mrb[96].mxu0 }
 0x30c   :  { %v1685_v38 = vpop.f32.mrb[97].mxu0 }
 0x30d   :  { %v1686_v39 = vpop.f32.mrb[98].mxu0 }
 0x30e   :  { %v1688_v40 = vpop.f32.mrb[99].mxu0  ;;  %v1770_v41 = vpack.c.bf16 %v1686_v39, %v1683_v37 }
 0x310   :  { %15720 = vmatprep.mubr.bf16.mxu1 %v1770_v41 }
 0x313   :  { %v1691_v42 = vpop.f32.mrb[100].mxu0 }
 0x314   :  { %v1693_v43 = vpop.f32.mrb[101].mxu0 }
 0x315   :  { %v1694_v44 = vpop.f32.mrb[102].mxu0  ;;  %v17345_v43 = vld [vmem:[#allocation3 + $0x2c4] ss:$16 sps:$4 sm:$0xff]  }
 0x316   :  { %v1696_v45 = vpop.f32.mrb[103].mxu0  ;;  %v1771_v46 = vpack.c.bf16 %v1694_v44, %v1691_v42 }
 0x318   :  { %15721 = vmatmul.mubr.bf16.gmra.mrb[48].mxu1 %v1771_v46 }
 0x31b   :  { %v1699_v47 = vpop.f32.mrb[104].mxu0 }
 0x31c   :  { %v1701_v48 = vpop.f32.mrb[105].mxu0 }
 0x31d   :  { %v1702_v49 = vpop.f32.mrb[106].mxu0 }
 0x31e   :  { %v1704_v50 = vpop.f32.mrb[107].mxu0  ;;  %v1772_v51 = vpack.c.bf16 %v1702_v49, %v1699_v47 }
 0x320   :  { %15724 = vmatprep.mubr.bf16.mxu1 %v1772_v51 }
 0x323   :  { %v1707_v52 = vpop.f32.mrb[108].mxu0 }
 0x324   :  { %v1709_v53 = vpop.f32.mrb[109].mxu0 }
 0x325   :  { %v1710_v54 = vpop.f32.mrb[110].mxu0 }
 0x326   :  { %v1712_v55 = vpop.f32.mrb[111].mxu0  ;;  %v1773_v56 = vpack.c.bf16 %v1710_v54, %v1707_v52 }
 0x328   :  { %15725 = vmatmul.mubr.bf16.gmra.mrb[52].mxu1 %v1773_v56 }
 0x32b   :  { %v1715_v58 = vpop.f32.mrb[112].mxu0  ;;  %v15674_v59 = vpop.f32.mrb[0].mxu1 }
 0x32c   :  { %v1875_v60 = vadd.f32 %v15674_v59, %v19008_v57  ;;  %v1717_v61 = vpop.f32.mrb[113].mxu0  ;;  %v1866_v62 = vpop.f32.mrb[1].mxu1 }
 0x32d   :  { %v1867_v63 = vadd.f32 %v19008_v57, %v1866_v62  ;;  %v1718_v1 = vpop.f32.mrb[114].mxu0  ;;  %v15675_v2 = vpop.f32.mrb[2].mxu1 }
 0x32e   :  { %v1878_v3 = vadd.f32 %v15675_v2, %v19008_v57  ;;  %v1720_v4 = vpop.f32.mrb[115].mxu0  ;;  %v1869_v5 = vpop.f32.mrb[3].mxu1  ;;  %v1774_v6 = vpack.c.bf16 %v1718_v1, %v1715_v58  ;;  %v2123_v8 = vmax.f32 %v1875_v60, 0.0 }
 0x32f   :  { %v1870_v7 = vadd.f32 %v19008_v57, %v1869_v5  ;;  %v2121_v10 = vmax.f32 %v1867_v63, 0.0 }
 0x330   :  { %v2124_v9 = vmax.f32 %v1878_v3, 0.0  ;;  %15728 = vmatprep.mubr.bf16.mxu1 %v1774_v6 }
 0x331   :  { %v2122_v11 = vmax.f32 %v1870_v7, 0.0 }
 0x332   :  { %v2186_v12 = vpack.c.bf16 %v2124_v9, %v2123_v8 }
 0x333   :  { %v1723_v13 = vpop.f32.mrb[116].mxu0  ;;  %v2185_v14 = vpack.c.bf16 %v2122_v11, %v2121_v10 }
 0x334   :  { %v1725_v15 = vpop.f32.mrb[117].mxu0 }
 0x335   :  { %v1726_v16 = vpop.f32.mrb[118].mxu0  ;;  %3073 = vmatpush1.bf16.msra.mxu0 %v2185_v14  ;;  %16232 = vmatpush1.bf16.msra.mxu1 %v2185_v14 }
 0x336   :  { %v1728_v17 = vpop.f32.mrb[119].mxu0  ;;  %v1775_v18 = vpack.c.bf16 %v1726_v16, %v1723_v13  ;;  %3074 = vmatprep.subr.bf16.mxu0 %v18900_v0  ;;  %16217 = vmatprep.subr.bf16.mxu1 %v18900_v0 }
 0x338   :  { %15729 = vmatmul.mubr.bf16.gmra.mrb[56].mxu1 %v1775_v18 }
 0x339   :  { %3075 = vmatpush1.bf16.msra.mxu0 %v2186_v12  ;;  %16233 = vmatpush1.bf16.msra.mxu1 %v2186_v12 }
 0x33a   :  { %3076 = vmatprep.subr.bf16.mxu0 %v18900_v0  ;;  %16218 = vmatprep.subr.bf16.mxu1 %v18900_v0 }
 0x33b   :  { %v1731_v19 = vpop.f32.mrb[120].mxu0  ;;  %v15678_v20 = vpop.f32.mrb[4].mxu1 }
 0x33c   :  { %v1891_v21 = vadd.f32 %v15678_v20, %v19008_v57  ;;  %v1733_v22 = vpop.f32.mrb[121].mxu0  ;;  %v1882_v23 = vpop.f32.mrb[5].mxu1 }
 0x33d   :  { %v1883_v24 = vadd.f32 %v19008_v57, %v1882_v23  ;;  %v1734_v25 = vpop.f32.mrb[122].mxu0  ;;  %v15679_v26 = vpop.f32.mrb[6].mxu1 }
 0x33e   :  { %v1894_v27 = vadd.f32 %v15679_v26, %v19008_v57  ;;  %v1736_v28 = vpop.f32.mrb[123].mxu0  ;;  %v1885_v29 = vpop.f32.mrb[7].mxu1  ;;  %v1776_v30 = vpack.c.bf16 %v1734_v25, %v1731_v19  ;;  %v2127_v32 = vmax.f32 %v1891_v21, 0.0 }
 0x33f   :  { %v1886_v31 = vadd.f32 %v19008_v57, %v1885_v29  ;;  %v2125_v34 = vmax.f32 %v1883_v24, 0.0 }
 0x340   :  { %v2128_v33 = vmax.f32 %v1894_v27, 0.0  ;;  %15732 = vmatprep.mubr.bf16.mxu1 %v1776_v30 }
 0x341   :  { %v2126_v35 = vmax.f32 %v1886_v31, 0.0 }
 0x342   :  { %v2188_v36 = vpack.c.bf16 %v2128_v33, %v2127_v32 }
 0x343   :  { %v1739_v37 = vpop.f32.mrb[124].mxu0  ;;  %v2187_v38 = vpack.c.bf16 %v2126_v35, %v2125_v34 }
 0x344   :  { %v1741_v39 = vpop.f32.mrb[125].mxu0 }
 0x345   :  { %v1742_v40 = vpop.f32.mrb[126].mxu0  ;;  %3077 = vmatpush1.bf16.msra.mxu0 %v2187_v38  ;;  %16234 = vmatpush1.bf16.msra.mxu1 %v2187_v38 }
 0x346   :  { %v1744_v41 = vpop.f32.mrb[127].mxu0  ;;  %v1777_v42 = vpack.c.bf16 %v1742_v40, %v1739_v37  ;;  %3078 = vmatprep.subr.bf16.mxu0 %v18900_v0  ;;  %16219 = vmatprep.subr.bf16.mxu1 %v18900_v0 }
 0x348   :  { %15733 = vmatmul.mubr.bf16.gmra.mrb[60].mxu1 %v1777_v42 }
 0x349   :  { %3079 = vmatpush1.bf16.msra.mxu0 %v2188_v36  ;;  %16235 = vmatpush1.bf16.msra.mxu1 %v2188_v36 }
 0x34a   :  { %3080 = vmatprep.subr.bf16.mxu0 %v18900_v0  ;;  %16220 = vmatprep.subr.bf16.mxu1 %v18900_v0 }
 0x34b   :  { %v15682_v44 = vpop.f32.mrb[8].mxu1  ;;  %3280 = vmatprep.mubr.bf16.mxu1 %v17345_v43 }
 0x34c   :  { %v1907_v45 = vadd.f32 %v15682_v44, %v19008_v57  ;;  %v1898_v46 = vpop.f32.mrb[9].mxu1 }
 0x34d   :  { %v1899_v47 = vadd.f32 %v19008_v57, %v1898_v46  ;;  %v15683_v48 = vpop.f32.mrb[10].mxu1 }
 0x34e   :  { %v1910_v49 = vadd.f32 %v15683_v48, %v19008_v57  ;;  %v1901_v50 = vpop.f32.mrb[11].mxu1  ;;  %v2131_v52 = vmax.f32 %v1907_v45, 0.0 }
 0x34f   :  { %v1902_v51 = vadd.f32 %v19008_v57, %v1901_v50  ;;  %v2129_v54 = vmax.f32 %v1899_v47, 0.0 }
 0x350   :  { %v2132_v53 = vmax.f32 %v1910_v49, 0.0 }
 0x351   :  { %v2130_v55 = vmax.f32 %v1902_v51, 0.0 }
 0x352   :  { %v2190_v56 = vpack.c.bf16 %v2132_v53, %v2131_v52 }
 0x353   :  { %v2189_v58 = vpack.c.bf16 %v2130_v55, %v2129_v54 }
 0x355   :  { %3081 = vmatpush1.bf16.msra.mxu0 %v2189_v58  ;;  %16236 = vmatpush1.bf16.msra.mxu1 %v2189_v58 }
 0x356   :  { %3082 = vmatprep.subr.bf16.mxu0 %v18900_v0  ;;  %16221 = vmatprep.subr.bf16.mxu1 %v18900_v0 }
 0x359   :  { %3083 = vmatpush1.bf16.msra.mxu0 %v2190_v56  ;;  %16237 = vmatpush1.bf16.msra.mxu1 %v2190_v56 }
 0x35a   :  { %3084 = vmatprep.subr.bf16.mxu0 %v18900_v0  ;;  %16222 = vmatprep.subr.bf16.mxu1 %v18900_v0 }
 0x35b   :  { %v15686_v59 = vpop.f32.mrb[12].mxu1 }
 0x35c   :  { %v1923_v60 = vadd.f32 %v15686_v59, %v19008_v57  ;;  %v1914_v61 = vpop.f32.mrb[13].mxu1 }
 0x35d   :  { %v1915_v62 = vadd.f32 %v19008_v57, %v1914_v61  ;;  %v15687_v63 = vpop.f32.mrb[14].mxu1 }
 0x35e   :  { %v1926_v1 = vadd.f32 %v15687_v63, %v19008_v57  ;;  %v1917_v2 = vpop.f32.mrb[15].mxu1  ;;  %v2135_v4 = vmax.f32 %v1923_v60, 0.0 }
 0x35f   :  { %v1918_v3 = vadd.f32 %v19008_v57, %v1917_v2  ;;  %v2133_v6 = vmax.f32 %v1915_v62, 0.0 }
 0x360   :  { %v2136_v5 = vmax.f32 %v1926_v1, 0.0 }
 0x361   :  { %v2134_v7 = vmax.f32 %v1918_v3, 0.0 }
 0x362   :  { %v2192_v8 = vpack.c.bf16 %v2136_v5, %v2135_v4  ;;  %v17375_v4 = vld [vmem:[#allocation3 + $0x4] ss:$16 sps:$4 sm:$0xff]   ;;  %v17343_v5 = vld [vmem:[#allocation3 + $0x2c0] ss:$16 sps:$4 sm:$0xff]  }
 0x363   :  { %v2191_v9 = vpack.c.bf16 %v2134_v7, %v2133_v6  ;;  %3104 = vmatprep.mubr.bf16.mxu0 %v17375_v4  ;;  %v17373_v6 = vld [vmem:[#allocation3] ss:$16 sps:$4 sm:$0xff]   ;;  %v17346_v7 = vld [vmem:[#allocation3 + $0x2e4] ss:$16 sps:$4 sm:$0xff]  }
 0x365   :  { %3085 = vmatpush1.bf16.msra.mxu0 %v2191_v9  ;;  %16238 = vmatpush1.bf16.msra.mxu1 %v2191_v9 }
 0x366   :  { %3086 = vmatprep.subr.bf16.mxu0 %v18900_v0  ;;  %16223 = vmatprep.subr.bf16.mxu1 %v18900_v0 }
 0x369   :  { %3087 = vmatpush1.bf16.msra.mxu0 %v2192_v8  ;;  %16239 = vmatpush1.bf16.msra.mxu1 %v2192_v8 }
 0x36a   :  { %3088 = vmatprep.subr.bf16.mxu0 %v18900_v0  ;;  %16224 = vmatprep.subr.bf16.mxu1 %v18900_v0 }
 0x36b   :  { %v15690_v10 = vpop.f32.mrb[16].mxu1 }
 0x36c   :  { %v1939_v11 = vadd.f32 %v15690_v10, %v19008_v57  ;;  %v1930_v12 = vpop.f32.mrb[17].mxu1 }
 0x36d   :  { %v1931_v13 = vadd.f32 %v19008_v57, %v1930_v12  ;;  %v15691_v14 = vpop.f32.mrb[18].mxu1 }
 0x36e   :  { %v1942_v15 = vadd.f32 %v15691_v14, %v19008_v57  ;;  %v1933_v16 = vpop.f32.mrb[19].mxu1  ;;  %v2139_v18 = vmax.f32 %v1939_v11, 0.0  ;;  %v17379_v11 = vld [vmem:[#allocation3 + $0x24] ss:$16 sps:$4 sm:$0xff]  }
 0x36f   :  { %v1934_v17 = vadd.f32 %v19008_v57, %v1933_v16  ;;  %v2137_v20 = vmax.f32 %v1931_v13, 0.0 }
 0x370   :  { %v2140_v19 = vmax.f32 %v1942_v15, 0.0 }
 0x371   :  { %v2138_v21 = vmax.f32 %v1934_v17, 0.0 }
 0x372   :  { %v2194_v22 = vpack.c.bf16 %v2140_v19, %v2139_v18  ;;  %v17348_v19 = vld [vmem:[#allocation3 + $0x2e0] ss:$16 sps:$4 sm:$0xff]  }
 0x373   :  { %v2193_v23 = vpack.c.bf16 %v2138_v21, %v2137_v20  ;;  %v17381_v20 = vld [vmem:[#allocation3 + $0x20] ss:$16 sps:$4 sm:$0xff]  }
 0x375   :  { %3089 = vmatpush1.bf16.msra.mxu0 %v2193_v23  ;;  %16240 = vmatpush1.bf16.msra.mxu1 %v2193_v23  ;;  %v17349_v23 = vld [vmem:[#allocation3 + $0x304] ss:$16 sps:$4 sm:$0xff]  }
 0x376   :  { %3090 = vmatprep.subr.bf16.mxu0 %v18900_v0  ;;  %16225 = vmatprep.subr.bf16.mxu1 %v18900_v0 }
 0x379   :  { %3091 = vmatpush1.bf16.msra.mxu0 %v2194_v22  ;;  %16241 = vmatpush1.bf16.msra.mxu1 %v2194_v22 }
 0x37a   :  { %3092 = vmatprep.subr.bf16.mxu0 %v18900_v0  ;;  %16226 = vmatprep.subr.bf16.mxu1 %v18900_v0 }
 0x37b   :  { %v15694_v24 = vpop.f32.mrb[20].mxu1 }
 0x37c   :  { %v1955_v25 = vadd.f32 %v15694_v24, %v19008_v57  ;;  %v1946_v26 = vpop.f32.mrb[21].mxu1 }
 0x37d   :  { %v1947_v27 = vadd.f32 %v19008_v57, %v1946_v26  ;;  %v15695_v28 = vpop.f32.mrb[22].mxu1  ;;  %v17385_v26 = vld [vmem:[#allocation3 + $0x44] ss:$16 sps:$4 sm:$0xff]  }
 0x37e   :  { %v1958_v29 = vadd.f32 %v15695_v28, %v19008_v57  ;;  %v1949_v30 = vpop.f32.mrb[23].mxu1  ;;  %v2143_v32 = vmax.f32 %v1955_v25, 0.0  ;;  %v17389_v28 = vld [vmem:[#allocation3 + $0x40] ss:$16 sps:$4 sm:$0xff]  }
 0x37f   :  { %v1950_v31 = vadd.f32 %v19008_v57, %v1949_v30  ;;  %v2141_v34 = vmax.f32 %v1947_v27, 0.0  ;;  %v17351_v27 = vld [vmem:[#allocation3 + $0x300] ss:$16 sps:$4 sm:$0xff]  }
 0x380   :  { %v2144_v33 = vmax.f32 %v1958_v29, 0.0  ;;  %v17352_v29 = vld [vmem:[#allocation3 + $0x324] ss:$16 sps:$4 sm:$0xff]  }
 0x381   :  { %v2142_v35 = vmax.f32 %v1950_v31, 0.0 }
 0x382   :  { %v2196_v36 = vpack.c.bf16 %v2144_v33, %v2143_v32  ;;  %v17391_v33 = vld [vmem:[#allocation3 + $0x64] ss:$16 sps:$4 sm:$0xff]  }
 0x383   :  { %v2195_v37 = vpack.c.bf16 %v2142_v35, %v2141_v34 }
 0x385   :  { %3093 = vmatpush1.bf16.msra.mxu0 %v2195_v37  ;;  %16242 = vmatpush1.bf16.msra.mxu1 %v2195_v37 }
 0x386   :  { %3094 = vmatprep.subr.bf16.mxu0 %v18900_v0  ;;  %16227 = vmatprep.subr.bf16.mxu1 %v18900_v0 }
 0x389   :  { %3095 = vmatpush1.bf16.msra.mxu0 %v2196_v36  ;;  %16243 = vmatpush1.bf16.msra.mxu1 %v2196_v36 }
 0x38a   :  { %3096 = vmatprep.subr.bf16.mxu0 %v18900_v0  ;;  %16228 = vmatprep.subr.bf16.mxu1 %v18900_v0 }
 0x38b   :  { %v15698_v38 = vpop.f32.mrb[24].mxu1 }
 0x38c   :  { %v1971_v39 = vadd.f32 %v15698_v38, %v19008_v57  ;;  %v1962_v40 = vpop.f32.mrb[25].mxu1 }
 0x38d   :  { %v1963_v41 = vadd.f32 %v19008_v57, %v1962_v40  ;;  %v15699_v42 = vpop.f32.mrb[26].mxu1 }
 0x38e   :  { %v1974_v43 = vadd.f32 %v15699_v42, %v19008_v57  ;;  %v1965_v44 = vpop.f32.mrb[27].mxu1  ;;  %v2147_v46 = vmax.f32 %v1971_v39, 0.0  ;;  %v17395_v42 = vld [vmem:[#allocation3 + $0x60] ss:$16 sps:$4 sm:$0xff]  }
 0x38f   :  { %v1966_v45 = vadd.f32 %v19008_v57, %v1965_v44  ;;  %v2145_v48 = vmax.f32 %v1963_v41, 0.0  ;;  %v17354_v41 = vld [vmem:[#allocation3 + $0x320] ss:$16 sps:$4 sm:$0xff]  }
 0x390   :  { %v2148_v47 = vmax.f32 %v1974_v43, 0.0 }
 0x391   :  { %v2146_v49 = vmax.f32 %v1966_v45, 0.0  ;;  %v17355_v45 = vld [vmem:[#allocation3 + $0x344] ss:$16 sps:$4 sm:$0xff]  }
 0x392   :  { %v2198_v50 = vpack.c.bf16 %v2148_v47, %v2147_v46 }
 0x393   :  { %v2197_v51 = vpack.c.bf16 %v2146_v49, %v2145_v48  ;;  %v17397_v48 = vld [vmem:[#allocation3 + $0x84] ss:$16 sps:$4 sm:$0xff]   ;;  %v17357_v49 = vld [vmem:[#allocation3 + $0x340] ss:$16 sps:$4 sm:$0xff]  }
 0x395   :  { %3097 = vmatpush1.bf16.msra.mxu0 %v2197_v51  ;;  %16244 = vmatpush1.bf16.msra.mxu1 %v2197_v51  ;;  %v17358_v51 = vld [vmem:[#allocation3 + $0x364] ss:$16 sps:$4 sm:$0xff]  }
 0x396   :  { %3098 = vmatprep.subr.bf16.mxu0 %v18900_v0  ;;  %16229 = vmatprep.subr.bf16.mxu1 %v18900_v0 }
 0x399   :  { %3099 = vmatpush1.bf16.msra.mxu0 %v2198_v50  ;;  %16245 = vmatpush1.bf16.msra.mxu1 %v2198_v50  ;;  %v17401_v50 = vld [vmem:[#allocation3 + $0x80] ss:$16 sps:$4 sm:$0xff]  }
 0x39a   :  { %3100 = vmatprep.subr.bf16.mxu0 %v18900_v0  ;;  %16230 = vmatprep.subr.bf16.mxu1 %v18900_v0 }
 0x39b   :  { %v15702_v52 = vpop.f32.mrb[28].mxu1 }
 0x39c   :  { %v1987_v53 = vadd.f32 %v15702_v52, %v19008_v57  ;;  %v1978_v54 = vpop.f32.mrb[29].mxu1 }
 0x39d   :  { %v1979_v55 = vadd.f32 %v19008_v57, %v1978_v54  ;;  %v15703_v56 = vpop.f32.mrb[30].mxu1 }
 0x39e   :  { %v1990_v58 = vadd.f32 %v15703_v56, %v19008_v57  ;;  %v1981_v59 = vpop.f32.mrb[31].mxu1  ;;  %v2151_v61 = vmax.f32 %v1987_v53, 0.0 }
 0x39f   :  { %v1982_v60 = vadd.f32 %v19008_v57, %v1981_v59  ;;  %v2149_v63 = vmax.f32 %v1979_v55, 0.0  ;;  %v17403_v55 = vld [vmem:[#allocation3 + $0xa4] ss:$16 sps:$4 sm:$0xff]  }
 0x3a0   :  { %v2152_v62 = vmax.f32 %v1990_v58, 0.0 }
 0x3a1   :  { %v2150_v1 = vmax.f32 %v1982_v60, 0.0 }
 0x3a2   :  { %v2200_v2 = vpack.c.bf16 %v2152_v62, %v2151_v61 }
 0x3a3   :  { %v2199_v3 = vpack.c.bf16 %v2150_v1, %v2149_v63  ;;  %v17360_v1 = vld [vmem:[#allocation3 + $0x360] ss:$16 sps:$4 sm:$0xff]  }
 0x3a5   :  { %3101 = vmatpush1.bf16.msra.mxu0 %v2199_v3  ;;  %16246 = vmatpush1.bf16.msra.mxu1 %v2199_v3 }
 0x3a6   :  { %3102 = vmatprep.subr.bf16.mxu0 %v18900_v0  ;;  %16231 = vmatprep.subr.bf16.mxu1 %v18900_v0 }
 0x3a9   :  { %3103 = vmatpush1.bf16.msra.mxu0 %v2200_v2  ;;  %16247 = vmatpush1.bf16.msra.mxu1 %v2200_v2  ;;  %v17407_v2 = vld [vmem:[#allocation3 + $0xa0] ss:$16 sps:$4 sm:$0xff]  }
 0x3aa   :  { %3361 = vmatprep.subr.bf16.mxu1 %v18900_v0 }
 0x3ab   :  { %v15706_v8 = vpop.f32.mrb[32].mxu1 }
 0x3ac   :  { %v2003_v9 = vadd.f32 %v15706_v8, %v19008_v57  ;;  %v1994_v10 = vpop.f32.mrb[33].mxu1  ;;  %3281 = vmatmul.mubr.bf16.vlgmr.msra.gmra.mrb[64].mxu1 %v17343_v5  ;;  %3105 = vmatmul.mubr.bf16.vlgmr.msra.gmra.mrb[128].mxu0 %v17373_v6  ;;  %v17361_v5 = vld [vmem:[#allocation3 + $0x384] ss:$16 sps:$4 sm:$0xff]  }
 0x3ad   :  { %v1995_v12 = vadd.f32 %v19008_v57, %v1994_v10  ;;  %v15707_v13 = vpop.f32.mrb[34].mxu1  ;;  %3288 = vmatprep.mubr.bf16.mxu1 %v17346_v7  ;;  %3112 = vmatprep.mubr.bf16.mxu0 %v17379_v11  ;;  %v17409_v8 = vld [vmem:[#allocation3 + $0xc4] ss:$16 sps:$4 sm:$0xff]   ;;  %v17413_v10 = vld [vmem:[#allocation3 + $0xc0] ss:$16 sps:$4 sm:$0xff]  }
 0x3ae   :  { %v2006_v14 = vadd.f32 %v15707_v13, %v19008_v57  ;;  %v1997_v15 = vpop.f32.mrb[35].mxu1  ;;  %v2155_v17 = vmax.f32 %v2003_v9, 0.0  ;;  %v17363_v9 = vld [vmem:[#allocation3 + $0x380] ss:$16 sps:$4 sm:$0xff]   ;;  %v17364_v11 = vld [vmem:[#allocation3 + $0x3a4] ss:$16 sps:$4 sm:$0xff]  }
 0x3af   :  { %v1998_v16 = vadd.f32 %v19008_v57, %v1997_v15  ;;  %v2153_v21 = vmax.f32 %v1995_v12, 0.0  ;;  %v17415_v15 = vld [vmem:[#allocation3 + $0xe4] ss:$16 sps:$4 sm:$0xff]  }
 0x3b0   :  { %v2156_v18 = vmax.f32 %v2006_v14, 0.0 }
 0x3b1   :  { %v2154_v22 = vmax.f32 %v1998_v16, 0.0 }
 0x3b2   :  { %v2202_v24 = vpack.c.bf16 %v2156_v18, %v2155_v17 }
 0x3b3   :  { %v2201_v25 = vpack.c.bf16 %v2154_v22, %v2153_v21 }
 0x3b4   :  { %3289 = vmatmul.mubr.bf16.gmra.mrb[68].mxu1 %v17348_v19  ;;  %3113 = vmatmul.mubr.bf16.gmra.mrb[132].mxu0 %v17381_v20 }
 0x3b5   :  { %3362 = vmatpush1.bf16.msra.mxu1 %v2201_v25  ;;  %3296 = vmatprep.mubr.bf16.mxu1 %v17349_v23  ;;  %v17366_v23 = vld [vmem:[#allocation3 + $0x3a0] ss:$16 sps:$4 sm:$0xff]  }
 0x3b6   :  { %3363 = vmatprep.subr.bf16.mxu1 %v18900_v0  ;;  %3120 = vmatprep.mubr.bf16.mxu0 %v17385_v26 }
 0x3b9   :  { %3364 = vmatpush1.bf16.msra.mxu1 %v2202_v24  ;;  %v17419_v24 = vld [vmem:[#allocation3 + $0xe0] ss:$16 sps:$4 sm:$0xff]  }
 0x3ba   :  { %3365 = vmatprep.subr.bf16.mxu1 %v18900_v0 }
 0x3bb   :  { %v15710_v30 = vpop.f32.mrb[36].mxu1 }
 0x3bc   :  { %v2019_v31 = vadd.f32 %v15710_v30, %v19008_v57  ;;  %v2010_v32 = vpop.f32.mrb[37].mxu1  ;;  %3297 = vmatmul.mubr.bf16.gmra.mrb[72].mxu1 %v17351_v27  ;;  %3121 = vmatmul.mubr.bf16.gmra.mrb[136].mxu0 %v17389_v28  ;;  %v17367_v27 = vld [vmem:[#allocation3 + $0x3c4] ss:$16 sps:$4 sm:$0xff]  }
 0x3bd   :  { %v2011_v34 = vadd.f32 %v19008_v57, %v2010_v32  ;;  %v15711_v35 = vpop.f32.mrb[38].mxu1  ;;  %3304 = vmatprep.mubr.bf16.mxu1 %v17352_v29  ;;  %3128 = vmatprep.mubr.bf16.mxu0 %v17391_v33  ;;  %v17421_v30 = vld [vmem:[#allocation3 + $0x104] ss:$16 sps:$4 sm:$0xff]   ;;  %v17425_v32 = vld [vmem:[#allocation3 + $0x100] ss:$16 sps:$4 sm:$0xff]  }
 0x3be   :  { %v2022_v36 = vadd.f32 %v15711_v35, %v19008_v57  ;;  %v2013_v37 = vpop.f32.mrb[39].mxu1  ;;  %v2159_v39 = vmax.f32 %v2019_v31, 0.0  ;;  %v17369_v31 = vld [vmem:[#allocation3 + $0x3c0] ss:$16 sps:$4 sm:$0xff]   ;;  %v17370_v33 = vld [vmem:[#allocation3 + $0x3e4] ss:$16 sps:$4 sm:$0xff]  }
 0x3bf   :  { %v2014_v38 = vadd.f32 %v19008_v57, %v2013_v37  ;;  %v2157_v43 = vmax.f32 %v2011_v34, 0.0  ;;  %v17427_v37 = vld [vmem:[#allocation3 + $0x124] ss:$16 sps:$4 sm:$0xff]  }
 0x3c0   :  { %v2160_v40 = vmax.f32 %v2022_v36, 0.0 }
 0x3c1   :  { %v2158_v44 = vmax.f32 %v2014_v38, 0.0 }
 0x3c2   :  { %v2204_v46 = vpack.c.bf16 %v2160_v40, %v2159_v39 }
 0x3c3   :  { %v2203_v47 = vpack.c.bf16 %v2158_v44, %v2157_v43 }
 0x3c4   :  { %3305 = vmatmul.mubr.bf16.gmra.mrb[76].mxu1 %v17354_v41  ;;  %3129 = vmatmul.mubr.bf16.gmra.mrb[140].mxu0 %v17395_v42 }
 0x3c5   :  { %3366 = vmatpush1.bf16.msra.mxu1 %v2203_v47  ;;  %3312 = vmatprep.mubr.bf16.mxu1 %v17355_v45  ;;  %v17372_v45 = vld [vmem:[#allocation3 + $0x3e0] ss:$16 sps:$4 sm:$0xff]  }
 0x3c6   :  { %3367 = vmatprep.subr.bf16.mxu1 %v18900_v0  ;;  %3136 = vmatprep.mubr.bf16.mxu0 %v17397_v48 }
 0x3c9   :  { %3368 = vmatpush1.bf16.msra.mxu1 %v2204_v46  ;;  %v17431_v46 = vld [vmem:[#allocation3 + $0x120] ss:$16 sps:$4 sm:$0xff]  }
 0x3ca   :  { %3369 = vmatprep.subr.bf16.mxu1 %v18900_v0 }
 0x3cb   :  { %v15714_v52 = vpop.f32.mrb[40].mxu1 }
 0x3cc   :  { %v2035_v53 = vadd.f32 %v15714_v52, %v19008_v57  ;;  %v2026_v54 = vpop.f32.mrb[41].mxu1  ;;  %3313 = vmatmul.mubr.bf16.gmra.mrb[80].mxu1 %v17357_v49  ;;  %3137 = vmatmul.mubr.bf16.gmra.mrb[144].mxu0 %v17401_v50  ;;  %v17378_v49 = vld [vmem:[#allocation3 + $0xc] ss:$16 sps:$4 sm:$0xff]   ;;  %v17433_v52 = vld [vmem:[#allocation3 + $0x144] ss:$16 sps:$4 sm:$0xff]  }
 0x3cd   :  { %v2027_v56 = vadd.f32 %v19008_v57, %v2026_v54  ;;  %v15715_v58 = vpop.f32.mrb[42].mxu1  ;;  %3320 = vmatprep.mubr.bf16.mxu1 %v17358_v51  ;;  %3144 = vmatprep.mubr.bf16.mxu0 %v17403_v55 }
 0x3ce   :  { %v2038_v59 = vadd.f32 %v15715_v58, %v19008_v57  ;;  %v2029_v60 = vpop.f32.mrb[43].mxu1  ;;  %v2163_v62 = vmax.f32 %v2035_v53, 0.0  ;;  %v17437_v53 = vld [vmem:[#allocation3 + $0x140] ss:$16 sps:$4 sm:$0xff]   ;;  %v17439_v58 = vld [vmem:[#allocation3 + $0x164] ss:$16 sps:$4 sm:$0xff]  }
 0x3cf   :  { %v2030_v61 = vadd.f32 %v19008_v57, %v2029_v60  ;;  %v2161_v3 = vmax.f32 %v2027_v56, 0.0 }
 0x3d0   :  { %v2164_v63 = vmax.f32 %v2038_v59, 0.0 }
 0x3d1   :  { %v2162_v4 = vmax.f32 %v2030_v61, 0.0 }
 0x3d2   :  { %v2206_v6 = vpack.c.bf16 %v2164_v63, %v2163_v62 }
 0x3d3   :  { %v2205_v7 = vpack.c.bf16 %v2162_v4, %v2161_v3  ;;  %v17443_v3 = vld [vmem:[#allocation3 + $0x160] ss:$16 sps:$4 sm:$0xff]  }
 0x3d4   :  { %3321 = vmatmul.mubr.bf16.gmra.mrb[84].mxu1 %v17360_v1  ;;  %3145 = vmatmul.mubr.bf16.gmra.mrb[148].mxu0 %v17407_v2 }
 0x3d5   :  { %3370 = vmatpush1.bf16.msra.mxu1 %v2205_v7  ;;  %3328 = vmatprep.mubr.bf16.mxu1 %v17361_v5 }
 0x3d6   :  { %3371 = vmatprep.subr.bf16.mxu1 %v18900_v0  ;;  %3152 = vmatprep.mubr.bf16.mxu0 %v17409_v8  ;;  %v17445_v8 = vld [vmem:[#allocation3 + $0x184] ss:$16 sps:$4 sm:$0xff]  }
 0x3d9   :  { %3372 = vmatpush1.bf16.msra.mxu1 %v2206_v6 }
 0x3da   :  { %3373 = vmatprep.subr.bf16.mxu1 %v18900_v0 }
 0x3db   :  { %v15718_v12 = vpop.f32.mrb[44].mxu1 }
 0x3dc   :  { %v2051_v13 = vadd.f32 %v15718_v12, %v19008_v57  ;;  %v2042_v14 = vpop.f32.mrb[45].mxu1  ;;  %3329 = vmatmul.mubr.bf16.gmra.mrb[88].mxu1 %v17363_v9  ;;  %3153 = vmatmul.mubr.bf16.gmra.mrb[152].mxu0 %v17413_v10  ;;  %v17449_v9 = vld [vmem:[#allocation3 + $0x180] ss:$16 sps:$4 sm:$0xff]  }
 0x3dd   :  { %v2043_v16 = vadd.f32 %v19008_v57, %v2042_v14  ;;  %v15719_v17 = vpop.f32.mrb[46].mxu1  ;;  %3336 = vmatprep.mubr.bf16.mxu1 %v17364_v11  ;;  %3160 = vmatprep.mubr.bf16.mxu0 %v17415_v15 }
 0x3de   :  { %v2054_v18 = vadd.f32 %v15719_v17, %v19008_v57  ;;  %v2045_v19 = vpop.f32.mrb[47].mxu1  ;;  %v2167_v21 = vmax.f32 %v2051_v13, 0.0  ;;  %v17451_v13 = vld [vmem:[#allocation3 + $0x1a4] ss:$16 sps:$4 sm:$0xff]  }
 0x3df   :  { %v2046_v20 = vadd.f32 %v19008_v57, %v2045_v19  ;;  %v2165_v25 = vmax.f32 %v2043_v16, 0.0 }
 0x3e0   :  { %v2168_v22 = vmax.f32 %v2054_v18, 0.0 }
 0x3e1   :  { %v2166_v26 = vmax.f32 %v2046_v20, 0.0 }
 0x3e2   :  { %v2208_v28 = vpack.c.bf16 %v2168_v22, %v2167_v21  ;;  %v17455_v21 = vld [vmem:[#allocation3 + $0x1a0] ss:$16 sps:$4 sm:$0xff]  }
 0x3e3   :  { %v2207_v29 = vpack.c.bf16 %v2166_v26, %v2165_v25  ;;  %v17457_v26 = vld [vmem:[#allocation3 + $0x1c4] ss:$16 sps:$4 sm:$0xff]  }
 0x3e4   :  { %3337 = vmatmul.mubr.bf16.gmra.mrb[92].mxu1 %v17366_v23  ;;  %3161 = vmatmul.mubr.bf16.gmra.mrb[156].mxu0 %v17419_v24 }
 0x3e5   :  { %3374 = vmatpush1.bf16.msra.mxu1 %v2207_v29  ;;  %3344 = vmatprep.mubr.bf16.mxu1 %v17367_v27  ;;  %v17461_v27 = vld [vmem:[#allocation3 + $0x1c0] ss:$16 sps:$4 sm:$0xff]  }
 0x3e6   :  { %3375 = vmatprep.subr.bf16.mxu1 %v18900_v0  ;;  %3168 = vmatprep.mubr.bf16.mxu0 %v17421_v30 }
 0x3e9   :  { %3376 = vmatpush1.bf16.msra.mxu1 %v2208_v28 }
 0x3ea   :  { %3377 = vmatprep.subr.bf16.mxu1 %v18900_v0 }
 0x3eb   :  { %v15722_v34 = vpop.f32.mrb[48].mxu1 }
 0x3ec   :  { %v2067_v35 = vadd.f32 %v15722_v34, %v19008_v57  ;;  %v2058_v36 = vpop.f32.mrb[49].mxu1  ;;  %3345 = vmatmul.mubr.bf16.gmra.mrb[96].mxu1 %v17369_v31  ;;  %3169 = vmatmul.mubr.bf16.gmra.mrb[160].mxu0 %v17425_v32  ;;  %v17463_v31 = vld [vmem:[#allocation3 + $0x1e4] ss:$16 sps:$4 sm:$0xff]  }
 0x3ed   :  { %v2059_v38 = vadd.f32 %v19008_v57, %v2058_v36  ;;  %v15723_v39 = vpop.f32.mrb[50].mxu1  ;;  %3352 = vmatprep.mubr.bf16.mxu1 %v17370_v33  ;;  %3176 = vmatprep.mubr.bf16.mxu0 %v17427_v37 }
 0x3ee   :  { %v2070_v40 = vadd.f32 %v15723_v39, %v19008_v57  ;;  %v2061_v41 = vpop.f32.mrb[51].mxu1  ;;  %v2171_v43 = vmax.f32 %v2067_v35, 0.0  ;;  %v17467_v39 = vld [vmem:[#allocation3 + $0x1e0] ss:$16 sps:$4 sm:$0xff]  }
 0x3ef   :  { %v2062_v42 = vadd.f32 %v19008_v57, %v2061_v41  ;;  %v2169_v47 = vmax.f32 %v2059_v38, 0.0 }
 0x3f0   :  { %v2172_v44 = vmax.f32 %v2070_v40, 0.0 }
 0x3f1   :  { %v2170_v48 = vmax.f32 %v2062_v42, 0.0 }
 0x3f2   :  { %v2210_v50 = vpack.c.bf16 %v2172_v44, %v2171_v43  ;;  %v17376_v44 = vld [vmem:[#allocation3 + $0x8] ss:$16 sps:$4 sm:$0xff]  }
 0x3f3   :  { %v2209_v51 = vpack.c.bf16 %v2170_v48, %v2169_v47  ;;  %v17474_v47 = vld [vmem:[#allocation3 + $0x200] ss:$16 sps:$4 sm:$0xff]   ;;  %v17387_v48 = vld [vmem:[#allocation3 + $0x4c] ss:$16 sps:$4 sm:$0xff]  }
 0x3f4   :  { %3353 = vmatmul.mubr.bf16.gmra.mrb[100].mxu1 %v17372_v45  ;;  %3177 = vmatmul.mubr.bf16.gmra.mrb[164].mxu0 %v17431_v46  ;;  %v17382_v45 = vld [vmem:[#allocation3 + $0x2c] ss:$16 sps:$4 sm:$0xff]   ;;  %v17472_v46 = vld [vmem:[#allocation3 + $0x204] ss:$16 sps:$4 sm:$0xff]  }
 0x3f5   :  { %3378 = vmatpush1.bf16.msra.mxu1 %v2209_v51  ;;  %3393 = vmatprep.mubr.bf16.mxu1 %v17378_v49  ;;  %v17478_v49 = vld [vmem:[#allocation3 + $0x224] ss:$16 sps:$4 sm:$0xff]   ;;  %v17390_v51 = vld [vmem:[#allocation3 + $0x48] ss:$16 sps:$4 sm:$0xff]  }
 0x3f6   :  { %3379 = vmatprep.subr.bf16.mxu1 %v18900_v0  ;;  %3184 = vmatprep.mubr.bf16.mxu0 %v17433_v52  ;;  %v17393_v52 = vld [vmem:[#allocation3 + $0x6c] ss:$16 sps:$4 sm:$0xff]  }
 0x3f9   :  { %3380 = vmatpush1.bf16.msra.mxu1 %v2210_v50  ;;  %v17480_v50 = vld [vmem:[#allocation3 + $0x220] ss:$16 sps:$4 sm:$0xff]  }
 0x3fa   :  { %3381 = vmatprep.subr.bf16.mxu1 %v18900_v0 }
 0x3fb   :  { %v15726_v54 = vpop.f32.mrb[52].mxu1 }
 0x3fc   :  { %v2083_v55 = vadd.f32 %v15726_v54, %v19008_v57  ;;  %v2074_v56 = vpop.f32.mrb[53].mxu1  ;;  %3185 = vmatmul.mubr.bf16.gmra.mrb[168].mxu0 %v17437_v53  ;;  %v17484_v53 = vld [vmem:[#allocation3 + $0x244] ss:$16 sps:$4 sm:$0xff]   ;;  %v17486_v54 = vld [vmem:[#allocation3 + $0x240] ss:$16 sps:$4 sm:$0xff]  }
 0x3fd   :  { %v2075_v59 = vadd.f32 %v19008_v57, %v2074_v56  ;;  %v15727_v60 = vpop.f32.mrb[54].mxu1  ;;  %3192 = vmatprep.mubr.bf16.mxu0 %v17439_v58  ;;  %v17399_v56 = vld [vmem:[#allocation3 + $0x8c] ss:$16 sps:$4 sm:$0xff]   ;;  %v17490_v58 = vld [vmem:[#allocation3 + $0x264] ss:$16 sps:$4 sm:$0xff]  }
 0x3fe   :  { %v2086_v61 = vadd.f32 %v15727_v60, %v19008_v57  ;;  %v2077_v62 = vpop.f32.mrb[55].mxu1  ;;  %v2175_v1 = vmax.f32 %v2083_v55, 0.0  ;;  %v17396_v55 = vld [vmem:[#allocation3 + $0x68] ss:$16 sps:$4 sm:$0xff]  }
 0x3ff   :  { %v2078_v63 = vadd.f32 %v19008_v57, %v2077_v62  ;;  %v2173_v4 = vmax.f32 %v2075_v59, 0.0  ;;  %v17492_v59 = vld [vmem:[#allocation3 + $0x260] ss:$16 sps:$4 sm:$0xff]   ;;  %v17402_v60 = vld [vmem:[#allocation3 + $0x88] ss:$16 sps:$4 sm:$0xff]  }
 0x400   :  { %v2176_v2 = vmax.f32 %v2086_v61, 0.0  ;;  %v17405_v61 = vld [vmem:[#allocation3 + $0xac] ss:$16 sps:$4 sm:$0xff]   ;;  %v17496_v62 = vld [vmem:[#allocation3 + $0x284] ss:$16 sps:$4 sm:$0xff]  }
 0x401   :  { %v2174_v5 = vmax.f32 %v2078_v63, 0.0  ;;  %v17498_v63 = vld [vmem:[#allocation3 + $0x280] ss:$16 sps:$4 sm:$0xff]  }
 0x402   :  { %v2212_v6 = vpack.c.bf16 %v2176_v2, %v2175_v1  ;;  %v17408_v1 = vld [vmem:[#allocation3 + $0xa8] ss:$16 sps:$4 sm:$0xff]   ;;  %v17411_v2 = vld [vmem:[#allocation3 + $0xcc] ss:$16 sps:$4 sm:$0xff]  }
 0x403   :  { %v2211_v7 = vpack.c.bf16 %v2174_v5, %v2173_v4  ;;  %v17504_v4 = vld [vmem:[#allocation3 + $0x2a0] ss:$16 sps:$4 sm:$0xff]   ;;  %v17414_v5 = vld [vmem:[#allocation3 + $0xc8] ss:$16 sps:$4 sm:$0xff]  }
 0x404   :  { %3193 = vmatmul.mubr.bf16.gmra.mrb[172].mxu0 %v17443_v3  ;;  %v17502_v3 = vld [vmem:[#allocation3 + $0x2a4] ss:$16 sps:$4 sm:$0xff]  }
 0x405   :  { %3382 = vmatpush1.bf16.msra.mxu1 %v2211_v7  ;;  %3200 = vmatprep.mubr.bf16.mxu0 %v17445_v8  ;;  %v17420_v7 = vld [vmem:[#allocation3 + $0xe8] ss:$16 sps:$4 sm:$0xff]   ;;  %v17423_v8 = vld [vmem:[#allocation3 + $0x10c] ss:$16 sps:$4 sm:$0xff]  }
 0x406   :  { %3383 = vmatprep.subr.bf16.mxu1 %v18900_v0 }
 0x409   :  { %3384 = vmatpush1.bf16.msra.mxu1 %v2212_v6  ;;  %v17417_v6 = vld [vmem:[#allocation3 + $0xec] ss:$16 sps:$4 sm:$0xff]  }
 0x40a   :  { %3385 = vmatprep.subr.bf16.mxu1 %v18900_v0 }
 0x40b   :  { %v15730_v10 = vpop.f32.mrb[56].mxu1 }
 0x40c   :  { %v2099_v11 = vadd.f32 %v15730_v10, %v19008_v57  ;;  %v2090_v12 = vpop.f32.mrb[57].mxu1  ;;  %3201 = vmatmul.mubr.bf16.gmra.mrb[176].mxu0 %v17449_v9  ;;  %v17426_v9 = vld [vmem:[#allocation3 + $0x108] ss:$16 sps:$4 sm:$0xff]   ;;  %v17429_v10 = vld [vmem:[#allocation3 + $0x12c] ss:$16 sps:$4 sm:$0xff]  }
 0x40d   :  { %v2091_v14 = vadd.f32 %v19008_v57, %v2090_v12  ;;  %v15731_v15 = vpop.f32.mrb[58].mxu1  ;;  %3208 = vmatprep.mubr.bf16.mxu0 %v17451_v13  ;;  %v17515_v12 = vld [vmem:[#allocation8 + $0x48] sm:$0xff]  }
 0x40e   :  { %v2102_v16 = vadd.f32 %v15731_v15, %v19008_v57  ;;  %v2093_v17 = vpop.f32.mrb[59].mxu1  ;;  %v2179_v19 = vmax.f32 %v2099_v11, 0.0  ;;  %v17514_v11 = vld [vmem:[#allocation8 + $0x40] sm:$0xff]   ;;  %v17432_v13 = vld [vmem:[#allocation3 + $0x128] ss:$16 sps:$4 sm:$0xff]   ;;  %v17519_v15 = vld [vmem:[#allocation8 + $0x50] sm:$0xff]  }
 0x40f   :  { %v2094_v18 = vadd.f32 %v19008_v57, %v2093_v17  ;;  %v2177_v22 = vmax.f32 %v2091_v14, 0.0  ;;  %15736 = vmatprep.subr.bf16.mxu0 %v17514_v11  ;;  %v17435_v14 = vld [vmem:[#allocation3 + $0x14c] ss:$16 sps:$4 sm:$0xff]   ;;  %v17438_v17 = vld [vmem:[#allocation3 + $0x148] ss:$16 sps:$4 sm:$0xff]  }
 0x410   :  { %v2180_v20 = vmax.f32 %v2102_v16, 0.0  ;;  %15737 = vmatpush3.bf16.msra.mxu0 %v17514_v11  ;;  %v17520_v16 = vld [vmem:[#allocation8 + $0x58] sm:$0xff]  }
 0x411   :  { %v2178_v23 = vmax.f32 %v2094_v18, 0.0  ;;  %15738 = vmatprep.subr.bf16.mxu0 %v17515_v12  ;;  %v17441_v18 = vld [vmem:[#allocation3 + $0x16c] ss:$16 sps:$4 sm:$0xff]  }
 0x412   :  { %v2214_v24 = vpack.c.bf16 %v2180_v20, %v2179_v19  ;;  %v17524_v19 = vld [vmem:[#allocation8 + $0x60] sm:$0xff]   ;;  %v17493_v11 = vld [vmem:[#allocation3 + $0x28c] ss:$16 sps:$4 sm:$0xff]  }
 0x413   :  { %v2213_v25 = vpack.c.bf16 %v2178_v23, %v2177_v22  ;;  %v17525_v23 = vld [vmem:[#allocation8 + $0x68] sm:$0xff]  }
 0x414   :  { %3209 = vmatmul.mubr.bf16.gmra.mrb[180].mxu0 %v17455_v21  ;;  %v17444_v21 = vld [vmem:[#allocation3 + $0x168] ss:$16 sps:$4 sm:$0xff]  }
 0x415   :  { %3386 = vmatpush1.bf16.msra.mxu1 %v2213_v25  ;;  %3216 = vmatprep.mubr.bf16.mxu0 %v17457_v26 }
 0x416   :  { %3387 = vmatprep.subr.bf16.mxu1 %v18900_v0  ;;  %15739 = vmatpush3.bf16.msra.mxu0 %v17515_v12 }
 0x417   :  { %15740 = vmatprep.subr.bf16.mxu0 %v17519_v15 }
 0x419   :  { %3388 = vmatpush1.bf16.msra.mxu1 %v2214_v24  ;;  %v17447_v24 = vld [vmem:[#allocation3 + $0x18c] ss:$16 sps:$4 sm:$0xff]  }
 0x41a   :  { %3389 = vmatprep.subr.bf16.mxu1 %v18900_v0  ;;  %15741 = vmatpush3.bf16.msra.mxu0 %v17519_v15  ;;  %v17495_v15 = vld [vmem:[#allocation3 + $0x288] ss:$16 sps:$4 sm:$0xff]  }
 0x41b   :  { %v15734_v28 = vpop.f32.mrb[60].mxu1  ;;  %15742 = vmatprep.subr.bf16.mxu0 %v17520_v16 }
 0x41c   :  { %v2115_v29 = vadd.f32 %v15734_v28, %v19008_v57  ;;  %v2106_v30 = vpop.f32.mrb[61].mxu1  ;;  %3217 = vmatmul.mubr.bf16.gmra.mrb[184].mxu0 %v17461_v27  ;;  %v17529_v27 = vld [vmem:[#allocation8 + $0x70] sm:$0xff]  }
 0x41d   :  { %v2107_v32 = vadd.f32 %v19008_v57, %v2106_v30  ;;  %v15735_v33 = vpop.f32.mrb[62].mxu1  ;;  %3224 = vmatprep.mubr.bf16.mxu0 %v17463_v31  ;;  %v17530_v31 = vld [vmem:[#allocation8 + $0x78] sm:$0xff]  }
 0x41e   :  { %v2118_v34 = vadd.f32 %v15735_v33, %v19008_v57  ;;  %v2109_v35 = vpop.f32.mrb[63].mxu1  ;;  %v2183_v37 = vmax.f32 %v2115_v29, 0.0  ;;  %15743 = vmatpush3.bf16.msra.mxu0 %v17520_v16  ;;  %v17450_v29 = vld [vmem:[#allocation3 + $0x188] ss:$16 sps:$4 sm:$0xff]  }
 0x41f   :  { %v2110_v36 = vadd.f32 %v19008_v57, %v2109_v35  ;;  %v2181_v40 = vmax.f32 %v2107_v32, 0.0  ;;  %v17384_v57 = vld [vmem:[#allocation3 + $0x28] ss:$16 sps:$4 sm:$0xff]   ;;  %15744 = vmatprep.subr.bf16.mxu0 %v17524_v19  ;;  %v17453_v32 = vld [vmem:[#allocation3 + $0x1ac] ss:$16 sps:$4 sm:$0xff]  }
 0x420   :  { %v2184_v38 = vmax.f32 %v2118_v34, 0.0 }
 0x421   :  { %v2182_v41 = vmax.f32 %v2110_v36, 0.0  ;;  %v17456_v36 = vld [vmem:[#allocation3 + $0x1a8] ss:$16 sps:$4 sm:$0xff]  }
 0x422   :  { %v2216_v42 = vpack.c.bf16 %v2184_v38, %v2183_v37  ;;  %15745 = vmatpush3.bf16.msra.mxu0 %v17524_v19  ;;  %v17459_v38 = vld [vmem:[#allocation3 + $0x1cc] ss:$16 sps:$4 sm:$0xff]  }
 0x423   :  { %v2215_v43 = vpack.c.bf16 %v2182_v41, %v2181_v40  ;;  %15746 = vmatprep.subr.bf16.mxu0 %v17525_v23 }
 0x424   :  { %3225 = vmatmul.mubr.bf16.gmra.mrb[188].mxu0 %v17467_v39 }
 0x425   :  { %3390 = vmatpush1.bf16.msra.mxu1 %v2215_v43  ;;  %3232 = vmatprep.mubr.bf16.mxu0 %v17472_v46 }
 0x426   :  { %3391 = vmatprep.subr.bf16.mxu1 %v18900_v0  ;;  %15747 = vmatpush3.bf16.msra.mxu0 %v17525_v23 }
 0x427   :  { %15748 = vmatprep.subr.bf16.mxu0 %v17529_v27 }
 0x429   :  { %3392 = vmatpush1.bf16.msra.mxu1 %v2216_v42  ;;  %v17462_v42 = vld [vmem:[#allocation3 + $0x1c8] ss:$16 sps:$4 sm:$0xff]  }
 0x42a   :  { %4972 = vmatprep.subr.bf16.mxu1 %v18900_v0  ;;  %15749 = vmatpush3.bf16.msra.mxu0 %v17529_v27 }
 0x42b   :  { %15750 = vmatprep.subr.bf16.mxu0 %v17530_v31 }
 0x42c   :  { %3394 = vmatmul.mubr.bf16.vlgmr.msra.gmra.mrb[104].mxu1 %v17376_v44  ;;  %3233 = vmatmul.mubr.bf16.gmra.mrb[192].mxu0 %v17474_v47  ;;  %v17465_v44 = vld [vmem:[#allocation3 + $0x1ec] ss:$16 sps:$4 sm:$0xff]  }
 0x42d   :  { %3401 = vmatprep.mubr.bf16.mxu1 %v17382_v45  ;;  %3240 = vmatprep.mubr.bf16.mxu0 %v17478_v49  ;;  %v17469_v49 = vld [vmem:[#allocation3 + $0x20c] ss:$16 sps:$4 sm:$0xff]  }
 0x42e   :  { %15751 = vmatpush3.bf16.msra.mxu0 %v17530_v31 }
 0x434   :  { %3402 = vmatmul.mubr.bf16.gmra.mrb[108].mxu1 %v17384_v57  ;;  %3241 = vmatmul.mubr.bf16.gmra.mrb[196].mxu0 %v17480_v50  ;;  %v17468_v57 = vld [vmem:[#allocation3 + $0x1e8] ss:$16 sps:$4 sm:$0xff]  }
 0x435   :  { %3409 = vmatprep.mubr.bf16.mxu1 %v17387_v48  ;;  %3248 = vmatprep.mubr.bf16.mxu0 %v17484_v53  ;;  %v17471_v53 = vld [vmem:[#allocation3 + $0x208] ss:$16 sps:$4 sm:$0xff]  }
 0x43c   :  { %3410 = vmatmul.mubr.bf16.gmra.mrb[112].mxu1 %v17390_v51  ;;  %3249 = vmatmul.mubr.bf16.gmra.mrb[200].mxu0 %v17486_v54 }
 0x43d   :  { %3417 = vmatprep.mubr.bf16.mxu1 %v17393_v52  ;;  %3256 = vmatprep.mubr.bf16.mxu0 %v17490_v58 }
 0x444   :  { %3418 = vmatmul.mubr.bf16.gmra.mrb[116].mxu1 %v17396_v55  ;;  %3257 = vmatmul.mubr.bf16.gmra.mrb[204].mxu0 %v17492_v59  ;;  %v17475_v55 = vld [vmem:[#allocation3 + $0x22c] ss:$16 sps:$4 sm:$0xff]  }
 0x445   :  { %3425 = vmatprep.mubr.bf16.mxu1 %v17399_v56  ;;  %3264 = vmatprep.mubr.bf16.mxu0 %v17496_v62  ;;  %v17481_v62 = vld [vmem:[#allocation3 + $0x24c] ss:$16 sps:$4 sm:$0xff]  }
 0x44c   :  { %3426 = vmatmul.mubr.bf16.gmra.mrb[120].mxu1 %v17402_v60  ;;  %3265 = vmatmul.mubr.bf16.gmra.mrb[208].mxu0 %v17498_v63  ;;  %v17477_v60 = vld [vmem:[#allocation3 + $0x228] ss:$16 sps:$4 sm:$0xff]  }
 0x44d   :  { %3433 = vmatprep.mubr.bf16.mxu1 %v17405_v61  ;;  %3272 = vmatprep.mubr.bf16.mxu0 %v17502_v3  ;;  %v17483_v3 = vld [vmem:[#allocation3 + $0x248] ss:$16 sps:$4 sm:$0xff]  }
 0x454   :  { %3434 = vmatmul.mubr.bf16.gmra.mrb[124].mxu1 %v17408_v1  ;;  %3273 = vmatmul.mubr.bf16.gmra.mrb[212].mxu0 %v17504_v4 }
 0x455   :  { %3441 = vmatprep.mubr.bf16.mxu1 %v17411_v2 }
 0x45c   :  { %3442 = vmatmul.mubr.bf16.gmra.mrb[128].mxu1 %v17414_v5  ;;  %v17487_v5 = vld [vmem:[#allocation3 + $0x26c] ss:$16 sps:$4 sm:$0xff]  }
 0x45d   :  { %3449 = vmatprep.mubr.bf16.mxu1 %v17417_v6 }
 0x464   :  { %3450 = vmatmul.mubr.bf16.gmra.mrb[132].mxu1 %v17420_v7 }
 0x465   :  { %3457 = vmatprep.mubr.bf16.mxu1 %v17423_v8 }
 0x46c   :  { %3458 = vmatmul.mubr.bf16.gmra.mrb[136].mxu1 %v17426_v9  ;;  %v17489_v9 = vld [vmem:[#allocation3 + $0x268] ss:$16 sps:$4 sm:$0xff]  }
 0x46d   :  { %3465 = vmatprep.mubr.bf16.mxu1 %v17429_v10 }
 0x474   :  { %3466 = vmatmul.mubr.bf16.gmra.mrb[140].mxu1 %v17432_v13 }
 0x475   :  { %3473 = vmatprep.mubr.bf16.mxu1 %v17435_v14 }
 0x47c   :  { %3474 = vmatmul.mubr.bf16.gmra.mrb[144].mxu1 %v17438_v17  ;;  %v17499_v17 = vld [vmem:[#allocation3 + $0x2ac] ss:$16 sps:$4 sm:$0xff]  }
 0x47d   :  { %3481 = vmatprep.mubr.bf16.mxu1 %v17441_v18 }
 0x47f   :  { %v19121_v20 = vpop.f32.mrb[128].mxu0 }
 0x480   :  { %v3108_v22 = vpop.f32.mrb[129].mxu0 }
 0x481   :  { %v19123_v25 = vpop.f32.mrb[130].mxu0  ;;  %v17501_v22 = vld [vmem:[#allocation3 + $0x2a8] ss:$16 sps:$4 sm:$0xff]  }
 0x482   :  { %v3111_v26 = vpop.f32.mrb[131].mxu0 }
 0x484   :  { %3482 = vmatmul.mubr.bf16.gmra.mrb[148].mxu1 %v17444_v21 }
 0x485   :  { %3489 = vmatprep.mubr.bf16.mxu1 %v17447_v24  ;;  %v17505_v24 = vld [vmem:[#allocation3 + $0x2cc] ss:$16 sps:$4 sm:$0xff]  }
 0x487   :  { %v19125_v28 = vpop.f32.mrb[132].mxu0 }
 0x488   :  { %v3116_v30 = vpop.f32.mrb[133].mxu0 }
 0x489   :  { %v19127_v33 = vpop.f32.mrb[134].mxu0  ;;  %v17507_v30 = vld [vmem:[#allocation3 + $0x2c8] ss:$16 sps:$4 sm:$0xff]  }
 0x48a   :  { %v3119_v34 = vpop.f32.mrb[135].mxu0 }
 0x48c   :  { %3490 = vmatmul.mubr.bf16.gmra.mrb[152].mxu1 %v17450_v29 }
 0x48d   :  { %3497 = vmatprep.mubr.bf16.mxu1 %v17453_v32  ;;  %v17508_v32 = vld [vmem:[#allocation3 + $0x2ec] ss:$16 sps:$4 sm:$0xff]  }
 0x48f   :  { %v19129_v35 = vpop.f32.mrb[136].mxu0 }
 0x490   :  { %v3124_v37 = vpop.f32.mrb[137].mxu0 }
 0x491   :  { %v19131_v39 = vpop.f32.mrb[138].mxu0 }
 0x492   :  { %v3127_v40 = vpop.f32.mrb[139].mxu0 }
 0x494   :  { %3498 = vmatmul.mubr.bf16.gmra.mrb[156].mxu1 %v17456_v36 }
 0x495   :  { %3505 = vmatprep.mubr.bf16.mxu1 %v17459_v38  ;;  %v17510_v38 = vld [vmem:[#allocation3 + $0x2e8] ss:$16 sps:$4 sm:$0xff]  }
 0x497   :  { %v19133_v41 = vpop.f32.mrb[140].mxu0 }
 0x498   :  { %v3132_v43 = vpop.f32.mrb[141].mxu0 }
 0x499   :  { %v19135_v45 = vpop.f32.mrb[142].mxu0 }
 0x49a   :  { %v3135_v46 = vpop.f32.mrb[143].mxu0 }
 0x49c   :  { %3506 = vmatmul.mubr.bf16.gmra.mrb[160].mxu1 %v17462_v42  ;;  %v17511_v42 = vld [vmem:[#allocation3 + $0x30c] ss:$16 sps:$4 sm:$0xff]  }
 0x49d   :  { %3513 = vmatprep.mubr.bf16.mxu1 %v17465_v44 }
 0x49f   :  { %v19137_v47 = vpop.f32.mrb[144].mxu0 }
 0x4a0   :  { %v3140_v48 = vpop.f32.mrb[145].mxu0 }
 0x4a1   :  { %v19139_v50 = vpop.f32.mrb[146].mxu0 }
 0x4a2   :  { %v3143_v51 = vpop.f32.mrb[147].mxu0 }
 0x4a4   :  { %3514 = vmatmul.mubr.bf16.gmra.mrb[164].mxu1 %v17468_v57  ;;  %v17513_v57 = vld [vmem:[#allocation3 + $0x308] ss:$16 sps:$4 sm:$0xff]  }
 0x4a5   :  { %3521 = vmatprep.mubr.bf16.mxu1 %v17469_v49  ;;  %v17516_v49 = vld [vmem:[#allocation3 + $0x32c] ss:$16 sps:$4 sm:$0xff]  }
 0x4a7   :  { %v19141_v52 = vpop.f32.mrb[148].mxu0 }
 0x4a8   :  { %v3148_v54 = vpop.f32.mrb[149].mxu0 }
 0x4a9   :  { %v19143_v56 = vpop.f32.mrb[150].mxu0 }
 0x4aa   :  { %v3151_v58 = vpop.f32.mrb[151].mxu0 }
 0x4ac   :  { %3522 = vmatmul.mubr.bf16.gmra.mrb[168].mxu1 %v17471_v53 }
 0x4ad   :  { %3529 = vmatprep.mubr.bf16.mxu1 %v17475_v55  ;;  %v17518_v55 = vld [vmem:[#allocation3 + $0x328] ss:$16 sps:$4 sm:$0xff]  }
 0x4af   :  { %v19145_v59 = vpop.f32.mrb[152].mxu0 }
 0x4b0   :  { %v3156_v61 = vpop.f32.mrb[153].mxu0 }
 0x4b1   :  { %v19147_v63 = vpop.f32.mrb[154].mxu0 }
 0x4b2   :  { %v3159_v1 = vpop.f32.mrb[155].mxu0 }
 0x4b4   :  { %3530 = vmatmul.mubr.bf16.gmra.mrb[172].mxu1 %v17477_v60  ;;  %v17521_v60 = vld [vmem:[#allocation3 + $0x34c] ss:$16 sps:$4 sm:$0xff]  }
 0x4b5   :  { %3537 = vmatprep.mubr.bf16.mxu1 %v17481_v62 }
 0x4b7   :  { %v19149_v2 = vpop.f32.mrb[156].mxu0 }
 0x4b8   :  { %v3164_v4 = vpop.f32.mrb[157].mxu0 }
 0x4b9   :  { %v19151_v6 = vpop.f32.mrb[158].mxu0 }
 0x4ba   :  { %v3167_v7 = vpop.f32.mrb[159].mxu0 }
 0x4bc   :  { %3538 = vmatmul.mubr.bf16.gmra.mrb[176].mxu1 %v17483_v3  ;;  %v17523_v3 = vld [vmem:[#allocation3 + $0x348] ss:$16 sps:$4 sm:$0xff]  }
 0x4bd   :  { %3545 = vmatprep.mubr.bf16.mxu1 %v17487_v5  ;;  %v17526_v5 = vld [vmem:[#allocation3 + $0x36c] ss:$16 sps:$4 sm:$0xff]  }
 0x4bf   :  { %v19153_v8 = vpop.f32.mrb[160].mxu0 }
 0x4c0   :  { %v3172_v10 = vpop.f32.mrb[161].mxu0 }
 0x4c1   :  { %v19155_v12 = vpop.f32.mrb[162].mxu0 }
 0x4c2   :  { %v3175_v13 = vpop.f32.mrb[163].mxu0 }
 0x4c4   :  { %3546 = vmatmul.mubr.bf16.gmra.mrb[180].mxu1 %v17489_v9 }
 0x4c5   :  { %3553 = vmatprep.mubr.bf16.mxu1 %v17493_v11 }
 0x4c7   :  { %v19157_v14 = vpop.f32.mrb[164].mxu0 }
 0x4c8   :  { %v3180_v16 = vpop.f32.mrb[165].mxu0 }
 0x4c9   :  { %v19159_v18 = vpop.f32.mrb[166].mxu0 }
 0x4ca   :  { %v3183_v19 = vpop.f32.mrb[167].mxu0 }
 0x4cc   :  { %3554 = vmatmul.mubr.bf16.gmra.mrb[184].mxu1 %v17495_v15  ;;  %v17528_v15 = vld [vmem:[#allocation3 + $0x368] ss:$16 sps:$4 sm:$0xff]  }
 0x4cd   :  { %3561 = vmatprep.mubr.bf16.mxu1 %v17499_v17  ;;  %v17531_v17 = vld [vmem:[#allocation3 + $0x38c] ss:$16 sps:$4 sm:$0xff]  }
 0x4cf   :  { %v19161_v21 = vpop.f32.mrb[168].mxu0 }
 0x4d0   :  { %v3188_v23 = vpop.f32.mrb[169].mxu0 }
 0x4d1   :  { %v19163_v26 = vpop.f32.mrb[170].mxu0 }
 0x4d2   :  { %v3191_v27 = vpop.f32.mrb[171].mxu0 }
 0x4d4   :  { %3562 = vmatmul.mubr.bf16.gmra.mrb[188].mxu1 %v17501_v22 }
 0x4d5   :  { %3569 = vmatprep.mubr.bf16.mxu1 %v17505_v24 }
 0x4d7   :  { %v19165_v29 = vpop.f32.mrb[172].mxu0 }
 0x4d8   :  { %v3196_v31 = vpop.f32.mrb[173].mxu0 }
 0x4d9   :  { %v19167_v34 = vpop.f32.mrb[174].mxu0 }
 0x4da   :  { %v3199_v36 = vpop.f32.mrb[175].mxu0 }
 0x4dc   :  { %3570 = vmatmul.mubr.bf16.gmra.mrb[64].mxu1 %v17507_v30 }
 0x4dd   :  { %3577 = vmatprep.mubr.bf16.mxu1 %v17508_v32 }
 0x4df   :  { %v19169_v37 = vpop.f32.mrb[176].mxu0 }
 0x4e0   :  { %v3204_v40 = vpop.f32.mrb[177].mxu0 }
 0x4e1   :  { %v19171_v43 = vpop.f32.mrb[178].mxu0 }
 0x4e2   :  { %v3207_v44 = vpop.f32.mrb[179].mxu0 }
 0x4e4   :  { %3578 = vmatmul.mubr.bf16.gmra.mrb[68].mxu1 %v17510_v38  ;;  %v17533_v38 = vld [vmem:[#allocation3 + $0x388] ss:$16 sps:$4 sm:$0xff]  }
 0x4e5   :  { %3585 = vmatprep.mubr.bf16.mxu1 %v17511_v42  ;;  %v17534_v42 = vld [vmem:[#allocation3 + $0x3ac] ss:$16 sps:$4 sm:$0xff]  }
 0x4e7   :  { %v19173_v46 = vpop.f32.mrb[180].mxu0 }
 0x4e8   :  { %v3212_v48 = vpop.f32.mrb[181].mxu0 }
 0x4e9   :  { %v19175_v51 = vpop.f32.mrb[182].mxu0 }
 0x4ea   :  { %v3215_v53 = vpop.f32.mrb[183].mxu0 }
 0x4ec   :  { %3586 = vmatmul.mubr.bf16.gmra.mrb[72].mxu1 %v17513_v57 }
 0x4ed   :  { %3593 = vmatprep.mubr.bf16.mxu1 %v17516_v49 }
 0x4ef   :  { %v19177_v54 = vpop.f32.mrb[184].mxu0 }
 0x4f0   :  { %v3220_v58 = vpop.f32.mrb[185].mxu0 }
 0x4f1   :  { %v19179_v61 = vpop.f32.mrb[186].mxu0 }
 0x4f2   :  { %v3223_v62 = vpop.f32.mrb[187].mxu0 }
 0x4f4   :  { %3594 = vmatmul.mubr.bf16.gmra.mrb[76].mxu1 %v17518_v55 }
 0x4f5   :  { %3601 = vmatprep.mubr.bf16.mxu1 %v17521_v60  ;;  %v17536_v60 = vld [vmem:[#allocation3 + $0x3a8] ss:$16 sps:$4 sm:$0xff]  }
 0x4f7   :  { %v19181_v1 = vpop.f32.mrb[188].mxu0 }
 0x4f8   :  { %v3228_v4 = vpop.f32.mrb[189].mxu0 }
 0x4f9   :  { %v19183_v7 = vpop.f32.mrb[190].mxu0 }
 0x4fa   :  { %v3231_v9 = vpop.f32.mrb[191].mxu0 }
 0x4fc   :  { %3602 = vmatmul.mubr.bf16.gmra.mrb[80].mxu1 %v17523_v3  ;;  %v17537_v3 = vld [vmem:[#allocation3 + $0x3cc] ss:$16 sps:$4 sm:$0xff]  }
 0x4fd   :  { %3609 = vmatprep.mubr.bf16.mxu1 %v17526_v5 }
 0x4ff   :  { %v3395_v10 = vpop.f32.mrb[104].mxu1  ;;  %v19187_v23 = vpop.f32.mrb[192].mxu0 }
 0x500   :  { %v3396_v11 = vadd.f32 %v3395_v10, %v19121_v20  ;;  %v3397_v13 = vpop.f32.mrb[105].mxu1  ;;  %v3236_v24 = vpop.f32.mrb[193].mxu0 }
 0x501   :  { %v3398_v16 = vpop.f32.mrb[106].mxu1  ;;  %v19189_v30 = vpop.f32.mrb[194].mxu0  ;;  %v17540_v24 = vld [vmem:[#allocation3 + $0x3ec] ss:$16 sps:$4 sm:$0xff]  }
 0x502   :  { %v3399_v19 = vadd.f32 %v3398_v16, %v19123_v25  ;;  %v3400_v22 = vpop.f32.mrb[107].mxu1  ;;  %v3239_v31 = vpop.f32.mrb[195].mxu0 }
 0x504   :  { %3610 = vmatmul.mubr.bf16.gmra.mrb[84].mxu1 %v17528_v15  ;;  %v3650_v27 = vpack.c.bf16 %v3399_v19, %v3396_v11 }
 0x505   :  { %3617 = vmatprep.mubr.bf16.mxu1 %v17531_v17  ;;  %v17539_v17 = vld [vmem:[#allocation3 + $0x3c8] ss:$16 sps:$4 sm:$0xff]  }
 0x506   :  { %15752 = vmatprep.mubr.bf16.mxu0 %v3650_v27 }
 0x507   :  { %v3403_v32 = vpop.f32.mrb[108].mxu1  ;;  %v19193_v57 = vpop.f32.mrb[196].mxu0 }
 0x508   :  { %v3404_v20 = vadd.f32 %v3403_v32, %v19125_v28  ;;  %v3405_v36 = vpop.f32.mrb[109].mxu1  ;;  %v3244_v48 = vpop.f32.mrb[197].mxu0 }
 0x509   :  { %v3406_v40 = vpop.f32.mrb[110].mxu1  ;;  %v19195_v53 = vpop.f32.mrb[198].mxu0 }
 0x50a   :  { %v3407_v25 = vadd.f32 %v3406_v40, %v19127_v33  ;;  %v3408_v44 = vpop.f32.mrb[111].mxu1  ;;  %v3247_v55 = vpop.f32.mrb[199].mxu0 }
 0x50c   :  { %v3651_v49 = vpack.c.bf16 %v3407_v25, %v3404_v20  ;;  %3618 = vmatmul.mubr.bf16.gmra.mrb[88].mxu1 %v17533_v38 }
 0x50d   :  { %3625 = vmatprep.mubr.bf16.mxu1 %v17534_v42  ;;  %v17542_v42 = vld [vmem:[#allocation3 + $0x3e8] ss:$16 sps:$4 sm:$0xff]  }
 0x50e   :  { %15753 = vmatmul.mubr.bf16.vlgmr.msra.gmra.mrb[216].mxu0 %v3651_v49 }
 0x50f   :  { %v3411_v58 = vpop.f32.mrb[112].mxu1  ;;  %v19199_v9 = vpop.f32.mrb[200].mxu0 }
 0x510   :  { %v3412_v28 = vadd.f32 %v3411_v58, %v19129_v35  ;;  %v3413_v62 = vpop.f32.mrb[113].mxu1  ;;  %v3252_v10 = vpop.f32.mrb[201].mxu0 }
 0x511   :  { %v3414_v4 = vpop.f32.mrb[114].mxu1  ;;  %v19201_v13 = vpop.f32.mrb[202].mxu0 }
 0x512   :  { %v3415_v33 = vadd.f32 %v3414_v4, %v19131_v39  ;;  %v3416_v5 = vpop.f32.mrb[115].mxu1  ;;  %v3255_v15 = vpop.f32.mrb[203].mxu0 }
 0x514   :  { %3626 = vmatmul.mubr.bf16.gmra.mrb[92].mxu1 %v17536_v60  ;;  %v3652_v11 = vpack.c.bf16 %v3415_v33, %v3412_v28 }
 0x515   :  { %3633 = vmatprep.mubr.bf16.mxu1 %v17537_v3 }
 0x516   :  { %15756 = vmatprep.mubr.bf16.mxu0 %v3652_v11 }
 0x517   :  { %v3419_v16 = vpop.f32.mrb[116].mxu1  ;;  %v19205_v31 = vpop.f32.mrb[204].mxu0 }
 0x518   :  { %v3420_v35 = vadd.f32 %v3419_v16, %v19133_v41  ;;  %v3421_v19 = vpop.f32.mrb[117].mxu1  ;;  %v3260_v32 = vpop.f32.mrb[205].mxu0 }
 0x519   :  { %v3422_v22 = vpop.f32.mrb[118].mxu1  ;;  %v19207_v36 = vpop.f32.mrb[206].mxu0 }
 0x51a   :  { %v3423_v39 = vadd.f32 %v3422_v22, %v19135_v45  ;;  %v3424_v27 = vpop.f32.mrb[119].mxu1  ;;  %v3263_v38 = vpop.f32.mrb[207].mxu0 }
 0x51c   :  { %3634 = vmatmul.mubr.bf16.gmra.mrb[96].mxu1 %v17539_v17  ;;  %v3653_v20 = vpack.c.bf16 %v3423_v39, %v3420_v35 }
 0x51d   :  { %3641 = vmatprep.mubr.bf16.mxu1 %v17540_v24 }
 0x51e   :  { %15757 = vmatmul.mubr.bf16.gmra.mrb[220].mxu0 %v3653_v20 }
 0x51f   :  { %v3427_v40 = vpop.f32.mrb[120].mxu1  ;;  %v19211_v49 = vpop.f32.mrb[208].mxu0 }
 0x520   :  { %v3428_v41 = vadd.f32 %v3427_v40, %v19137_v47  ;;  %v3429_v25 = vpop.f32.mrb[121].mxu1  ;;  %v3268_v55 = vpop.f32.mrb[209].mxu0 }
 0x521   :  { %v3430_v44 = vpop.f32.mrb[122].mxu1  ;;  %v19213_v60 = vpop.f32.mrb[210].mxu0 }
 0x522   :  { %v3431_v48 = vadd.f32 %v3430_v44, %v19139_v50  ;;  %v3432_v45 = vpop.f32.mrb[123].mxu1  ;;  %v3271_v28 = vpop.f32.mrb[211].mxu0 }
 0x524   :  { %3642 = vmatmul.mubr.bf16.gmra.mrb[100].mxu1 %v17542_v42  ;;  %v3654_v58 = vpack.c.bf16 %v3431_v48, %v3428_v41 }
 0x526   :  { %15760 = vmatprep.mubr.bf16.mxu0 %v3654_v58 }
 0x527   :  { %v3435_v62 = vpop.f32.mrb[124].mxu1  ;;  %v19217_v10 = vpop.f32.mrb[212].mxu0 }
 0x528   :  { %v3436_v3 = vadd.f32 %v3435_v62, %v19141_v52  ;;  %v3437_v4 = vpop.f32.mrb[125].mxu1  ;;  %v3276_v50 = vpop.f32.mrb[213].mxu0 }
 0x529   :  { %v3438_v33 = vpop.f32.mrb[126].mxu1  ;;  %v19219_v15 = vpop.f32.mrb[214].mxu0 }
 0x52a   :  { %v3439_v47 = vadd.f32 %v3438_v33, %v19143_v56  ;;  %v3440_v5 = vpop.f32.mrb[127].mxu1  ;;  %v3279_v16 = vpop.f32.mrb[215].mxu0 }
 0x52c   :  { %v3655_v11 = vpack.c.bf16 %v3439_v47, %v3436_v3 }
 0x52e   :  { %15761 = vmatmul.mubr.bf16.gmra.mrb[224].mxu0 %v3655_v11 }
 0x52f   :  { %v3443_v17 = vpop.f32.mrb[128].mxu1 }
 0x530   :  { %v3444_v35 = vadd.f32 %v3443_v17, %v19145_v59  ;;  %v3445_v19 = vpop.f32.mrb[129].mxu1 }
 0x531   :  { %v3446_v22 = vpop.f32.mrb[130].mxu1 }
 0x532   :  { %v3447_v52 = vadd.f32 %v3446_v22, %v19147_v63  ;;  %v3448_v24 = vpop.f32.mrb[131].mxu1 }
 0x534   :  { %v3656_v39 = vpack.c.bf16 %v3447_v52, %v3444_v35 }
 0x536   :  { %15764 = vmatprep.mubr.bf16.mxu0 %v3656_v39 }
 0x537   :  { %v3451_v56 = vpop.f32.mrb[132].mxu1 }
 0x538   :  { %v3452_v27 = vadd.f32 %v3451_v56, %v19149_v2  ;;  %v3453_v32 = vpop.f32.mrb[133].mxu1 }
 0x539   :  { %v3454_v20 = vpop.f32.mrb[134].mxu1 }
 0x53a   :  { %v3455_v38 = vadd.f32 %v3454_v20, %v19151_v6  ;;  %v3456_v40 = vpop.f32.mrb[135].mxu1 }
 0x53c   :  { %v3657_v42 = vpack.c.bf16 %v3455_v38, %v3452_v27 }
 0x53e   :  { %15765 = vmatmul.mubr.bf16.gmra.mrb[228].mxu0 %v3657_v42 }
 0x53f   :  { %v3459_v41 = vpop.f32.mrb[136].mxu1 }
 0x540   :  { %v3460_v59 = vadd.f32 %v3459_v41, %v19153_v8  ;;  %v3461_v25 = vpop.f32.mrb[137].mxu1 }
 0x541   :  { %v3462_v44 = vpop.f32.mrb[138].mxu1 }
 0x542   :  { %v3463_v63 = vadd.f32 %v3462_v44, %v19155_v12  ;;  %v3464_v48 = vpop.f32.mrb[139].mxu1 }
 0x544   :  { %v3658_v45 = vpack.c.bf16 %v3463_v63, %v3460_v59 }
 0x546   :  { %15768 = vmatprep.mubr.bf16.mxu0 %v3658_v45 }
 0x547   :  { %v3467_v55 = vpop.f32.mrb[140].mxu1 }
 0x548   :  { %v3468_v2 = vadd.f32 %v3467_v55, %v19157_v14  ;;  %v3469_v58 = vpop.f32.mrb[141].mxu1 }
 0x549   :  { %v3470_v28 = vpop.f32.mrb[142].mxu1 }
 0x54a   :  { %v3471_v6 = vadd.f32 %v3470_v28, %v19159_v18  ;;  %v3472_v62 = vpop.f32.mrb[143].mxu1 }
 0x54c   :  { %v3659_v3 = vpack.c.bf16 %v3471_v6, %v3468_v2 }
 0x54e   :  { %15769 = vmatmul.mubr.bf16.gmra.mrb[232].mxu0 %v3659_v3 }
 0x54f   :  { %v3475_v4 = vpop.f32.mrb[144].mxu1 }
 0x550   :  { %v3476_v8 = vadd.f32 %v3475_v4, %v19161_v21  ;;  %v3477_v33 = vpop.f32.mrb[145].mxu1 }
 0x551   :  { %v3478_v47 = vpop.f32.mrb[146].mxu1 }
 0x552   :  { %v3479_v12 = vadd.f32 %v3478_v47, %v19163_v26  ;;  %v3480_v5 = vpop.f32.mrb[147].mxu1 }
 0x554   :  { %v3660_v50 = vpack.c.bf16 %v3479_v12, %v3476_v8 }
 0x556   :  { %15772 = vmatprep.mubr.bf16.mxu0 %v3660_v50 }
 0x557   :  { %v3483_v11 = vpop.f32.mrb[148].mxu1 }
 0x558   :  { %v3484_v14 = vadd.f32 %v3483_v11, %v19165_v29  ;;  %v3485_v16 = vpop.f32.mrb[149].mxu1 }
 0x559   :  { %v3486_v17 = vpop.f32.mrb[150].mxu1 }
 0x55a   :  { %v3487_v18 = vadd.f32 %v3486_v17, %v19167_v34  ;;  %v3488_v35 = vpop.f32.mrb[151].mxu1 }
 0x55c   :  { %v3661_v19 = vpack.c.bf16 %v3487_v18, %v3484_v14 }
 0x55e   :  { %15773 = vmatmul.mubr.bf16.gmra.mrb[236].mxu0 %v3661_v19 }
 0x55f   :  { %v3491_v22 = vpop.f32.mrb[152].mxu1 }
 0x560   :  { %v3492_v21 = vadd.f32 %v3491_v22, %v19169_v37  ;;  %v3493_v52 = vpop.f32.mrb[153].mxu1 }
 0x561   :  { %v3494_v24 = vpop.f32.mrb[154].mxu1 }
 0x562   :  { %v3495_v26 = vadd.f32 %v3494_v24, %v19171_v43  ;;  %v3496_v39 = vpop.f32.mrb[155].mxu1 }
 0x564   :  { %v3662_v56 = vpack.c.bf16 %v3495_v26, %v3492_v21 }
 0x566   :  { %15776 = vmatprep.mubr.bf16.mxu0 %v3662_v56 }
 0x567   :  { %v3499_v27 = vpop.f32.mrb[156].mxu1 }
 0x568   :  { %v3500_v29 = vadd.f32 %v3499_v27, %v19173_v46  ;;  %v3501_v32 = vpop.f32.mrb[157].mxu1 }
 0x569   :  { %v3502_v20 = vpop.f32.mrb[158].mxu1 }
 0x56a   :  { %v3503_v34 = vadd.f32 %v3502_v20, %v19175_v51  ;;  %v3504_v38 = vpop.f32.mrb[159].mxu1 }
 0x56c   :  { %v3663_v40 = vpack.c.bf16 %v3503_v34, %v3500_v29 }
 0x56e   :  { %15777 = vmatmul.mubr.bf16.gmra.mrb[240].mxu0 %v3663_v40 }
 0x56f   :  { %v3507_v42 = vpop.f32.mrb[160].mxu1 }
 0x570   :  { %v3508_v37 = vadd.f32 %v3507_v42, %v19177_v54  ;;  %v3509_v41 = vpop.f32.mrb[161].mxu1 }
 0x571   :  { %v3510_v59 = vpop.f32.mrb[162].mxu1 }
 0x572   :  { %v3511_v43 = vadd.f32 %v3510_v59, %v19179_v61  ;;  %v3512_v25 = vpop.f32.mrb[163].mxu1 }
 0x574   :  { %v3664_v44 = vpack.c.bf16 %v3511_v43, %v3508_v37 }
 0x576   :  { %15780 = vmatprep.mubr.bf16.mxu0 %v3664_v44 }
 0x577   :  { %v3515_v63 = vpop.f32.mrb[164].mxu1 }
 0x578   :  { %v3516_v46 = vadd.f32 %v3515_v63, %v19181_v1  ;;  %v3517_v48 = vpop.f32.mrb[165].mxu1 }
 0x579   :  { %v3518_v45 = vpop.f32.mrb[166].mxu1 }
 0x57a   :  { %v3519_v51 = vadd.f32 %v3518_v45, %v19183_v7  ;;  %v3520_v55 = vpop.f32.mrb[167].mxu1 }
 0x57c   :  { %v3665_v2 = vpack.c.bf16 %v3519_v51, %v3516_v46 }
 0x57e   :  { %15781 = vmatmul.mubr.bf16.gmra.mrb[244].mxu0 %v3665_v2 }
 0x57f   :  { %v3523_v58 = vpop.f32.mrb[168].mxu1 }
 0x580   :  { %v3524_v54 = vadd.f32 %v3523_v58, %v19187_v23  ;;  %v3525_v28 = vpop.f32.mrb[169].mxu1 }
 0x581   :  { %v3526_v6 = vpop.f32.mrb[170].mxu1 }
 0x582   :  { %v3527_v61 = vadd.f32 %v3526_v6, %v19189_v30  ;;  %v3528_v62 = vpop.f32.mrb[171].mxu1 }
 0x584   :  { %v3666_v3 = vpack.c.bf16 %v3527_v61, %v3524_v54 }
 0x586   :  { %15784 = vmatprep.mubr.bf16.mxu0 %v3666_v3 }
 0x587   :  { %v3531_v4 = vpop.f32.mrb[172].mxu1 }
 0x588   :  { %v3532_v1 = vadd.f32 %v3531_v4, %v19193_v57  ;;  %v3533_v8 = vpop.f32.mrb[173].mxu1 }
 0x589   :  { %v3534_v33 = vpop.f32.mrb[174].mxu1 }
 0x58a   :  { %v3535_v7 = vadd.f32 %v3534_v33, %v19195_v53  ;;  %v3536_v47 = vpop.f32.mrb[175].mxu1  ;;  %v19256_v33 = vld [vmem:[%s20612_s3 + $0x1] ss:$0 sm:$0xff] }
 0x58c   :  { %v3667_v12 = vpack.c.bf16 %v3535_v7, %v3532_v1  ;;  %v17545_v7 = vld [vmem:[#allocation3 + $0x4] ss:$16 sps:$4 sm:$0xff]  }
 0x58d   :  { %5004 = vmatprep.mubr.bf16.mxu1 %v17545_v7 }
 0x58e   :  { %15785 = vmatmul.mubr.bf16.gmra.mrb[248].mxu0 %v3667_v12 }
 0x58f   :  { %v3539_v5 = vpop.f32.mrb[176].mxu1 }
 0x590   :  { %v3540_v23 = vadd.f32 %v3539_v5, %v19199_v9  ;;  %v3541_v50 = vpop.f32.mrb[177].mxu1 }
 0x591   :  { %v3542_v11 = vpop.f32.mrb[178].mxu1 }
 0x592   :  { %v3543_v30 = vadd.f32 %v3542_v11, %v19201_v13  ;;  %v3544_v14 = vpop.f32.mrb[179].mxu1 }
 0x594   :  { %v3668_v16 = vpack.c.bf16 %v3543_v30, %v3540_v23 }
 0x596   :  { %15788 = vmatprep.mubr.bf16.mxu0 %v3668_v16 }
 0x597   :  { %v3547_v17 = vpop.f32.mrb[180].mxu1 }
 0x598   :  { %v3548_v57 = vadd.f32 %v3547_v17, %v19205_v31  ;;  %v3549_v18 = vpop.f32.mrb[181].mxu1 }
 0x599   :  { %v3550_v35 = vpop.f32.mrb[182].mxu1 }
 0x59a   :  { %v3551_v53 = vadd.f32 %v3550_v35, %v19207_v36  ;;  %v3552_v19 = vpop.f32.mrb[183].mxu1 }
 0x59c   :  { %v3669_v22 = vpack.c.bf16 %v3551_v53, %v3548_v57 }
 0x59e   :  { %15789 = vmatmul.mubr.bf16.gmra.mrb[252].mxu0 %v3669_v22 }
 0x59f   :  { %v3555_v21 = vpop.f32.mrb[184].mxu1 }
 0x5a0   :  { %v3556_v9 = vadd.f32 %v3555_v21, %v19211_v49  ;;  %v3557_v52 = vpop.f32.mrb[185].mxu1 }
 0x5a1   :  { %v3558_v24 = vpop.f32.mrb[186].mxu1 }
 0x5a2   :  { %v3559_v13 = vadd.f32 %v3558_v24, %v19213_v60  ;;  %v3560_v26 = vpop.f32.mrb[187].mxu1 }
 0x5a4   :  { %v3670_v39 = vpack.c.bf16 %v3559_v13, %v3556_v9 }
 0x5a6   :  { %15792 = vmatprep.mubr.bf16.mxu0 %v3670_v39 }
 0x5a7   :  { %v3563_v56 = vpop.f32.mrb[188].mxu1 }
 0x5a8   :  { %v3564_v31 = vadd.f32 %v3563_v56, %v19217_v10  ;;  %v3565_v27 = vpop.f32.mrb[189].mxu1 }
 0x5a9   :  { %v3566_v29 = vpop.f32.mrb[190].mxu1 }
 0x5aa   :  { %v3567_v36 = vadd.f32 %v3566_v29, %v19219_v15  ;;  %v3568_v32 = vpop.f32.mrb[191].mxu1 }
 0x5ac   :  { %v3671_v20 = vpack.c.bf16 %v3567_v36, %v3564_v31 }
 0x5ae   :  { %15793 = vmatmul.mubr.bf16.gmra.mrb[0].mxu0 %v3671_v20 }
 0x5af   :  { %v3571_v34 = vpop.f32.mrb[64].mxu1 }
 0x5b0   :  { %v3573_v38 = vpop.f32.mrb[65].mxu1 }
 0x5b1   :  { %v3574_v49 = vpop.f32.mrb[66].mxu1 }
 0x5b2   :  { %v3576_v40 = vpop.f32.mrb[67].mxu1  ;;  %v3672_v42 = vpack.c.bf16 %v3574_v49, %v3571_v34 }
 0x5b4   :  { %15796 = vmatprep.mubr.bf16.mxu0 %v3672_v42 }
 0x5b7   :  { %v3579_v60 = vpop.f32.mrb[68].mxu1 }
 0x5b8   :  { %v3581_v37 = vpop.f32.mrb[69].mxu1 }
 0x5b9   :  { %v3582_v41 = vpop.f32.mrb[70].mxu1 }
 0x5ba   :  { %v3673_v59 = vpack.c.bf16 %v3582_v41, %v3579_v60  ;;  %v3584_v43 = vpop.f32.mrb[71].mxu1 }
 0x5bc   :  { %15797 = vmatmul.mubr.bf16.gmra.mrb[4].mxu0 %v3673_v59 }
 0x5bf   :  { %v3587_v10 = vpop.f32.mrb[72].mxu1 }
 0x5c0   :  { %v3589_v25 = vpop.f32.mrb[73].mxu1 }
 0x5c1   :  { %v3590_v44 = vpop.f32.mrb[74].mxu1 }
 0x5c2   :  { %v3592_v63 = vpop.f32.mrb[75].mxu1  ;;  %v3674_v15 = vpack.c.bf16 %v3590_v44, %v3587_v10 }
 0x5c4   :  { %15800 = vmatprep.mubr.bf16.mxu0 %v3674_v15 }
 0x5c7   :  { %v3595_v46 = vpop.f32.mrb[76].mxu1 }
 0x5c8   :  { %v3597_v48 = vpop.f32.mrb[77].mxu1 }
 0x5c9   :  { %v3598_v45 = vpop.f32.mrb[78].mxu1 }
 0x5ca   :  { %v3675_v51 = vpack.c.bf16 %v3598_v45, %v3595_v46  ;;  %v3600_v55 = vpop.f32.mrb[79].mxu1 }
 0x5cc   :  { %15801 = vmatmul.mubr.bf16.gmra.mrb[8].mxu0 %v3675_v51 }
 0x5cf   :  { %v3603_v2 = vpop.f32.mrb[80].mxu1 }
 0x5d0   :  { %v3605_v58 = vpop.f32.mrb[81].mxu1 }
 0x5d1   :  { %v3606_v54 = vpop.f32.mrb[82].mxu1 }
 0x5d2   :  { %v3608_v28 = vpop.f32.mrb[83].mxu1  ;;  %v3676_v6 = vpack.c.bf16 %v3606_v54, %v3603_v2 }
 0x5d4   :  { %15804 = vmatprep.mubr.bf16.mxu0 %v3676_v6 }
 0x5d7   :  { %v3611_v61 = vpop.f32.mrb[84].mxu1 }
 0x5d8   :  { %v3613_v62 = vpop.f32.mrb[85].mxu1 }
 0x5d9   :  { %v3614_v3 = vpop.f32.mrb[86].mxu1 }
 0x5da   :  { %v3677_v4 = vpack.c.bf16 %v3614_v3, %v3611_v61  ;;  %v3616_v1 = vpop.f32.mrb[87].mxu1 }
 0x5dc   :  { %15805 = vmatmul.mubr.bf16.gmra.mrb[12].mxu0 %v3677_v4 }
 0x5df   :  { %v3619_v8 = vpop.f32.mrb[88].mxu1 }
 0x5e0   :  { %v3621_v47 = vpop.f32.mrb[89].mxu1 }
 0x5e1   :  { %v3622_v12 = vpop.f32.mrb[90].mxu1  ;;  %v15754_v5 = vpop.f32.mrb[216].mxu0 }
 0x5e2   :  { %v3779_v23 = vadd.f32 %v15754_v5, %v19256_v33  ;;  %v3624_v50 = vpop.f32.mrb[91].mxu1  ;;  %v3770_v11 = vpop.f32.mrb[217].mxu0  ;;  %v3678_v30 = vpack.c.bf16 %v3622_v12, %v3619_v8 }
 0x5e3   :  { %v3771_v14 = vadd.f32 %v19256_v33, %v3770_v11  ;;  %v15755_v16 = vpop.f32.mrb[218].mxu0 }
 0x5e4   :  { %v3782_v17 = vadd.f32 %v15755_v16, %v19256_v33  ;;  %v3773_v57 = vpop.f32.mrb[219].mxu0  ;;  %15808 = vmatprep.mubr.bf16.mxu0 %v3678_v30  ;;  %v4027_v35 = vmax.f32 %v3779_v23, 0.0 }
 0x5e5   :  { %v3774_v18 = vadd.f32 %v19256_v33, %v3773_v57  ;;  %v4025_v19 = vmax.f32 %v3771_v14, 0.0 }
 0x5e6   :  { %v4028_v53 = vmax.f32 %v3782_v17, 0.0 }
 0x5e7   :  { %v4026_v22 = vmax.f32 %v3774_v18, 0.0  ;;  %v3627_v21 = vpop.f32.mrb[92].mxu1 }
 0x5e8   :  { %v4090_v9 = vpack.c.bf16 %v4028_v53, %v4027_v35  ;;  %v3629_v52 = vpop.f32.mrb[93].mxu1 }
 0x5e9   :  { %v4089_v24 = vpack.c.bf16 %v4026_v22, %v4025_v19  ;;  %v3630_v13 = vpop.f32.mrb[94].mxu1 }
 0x5ea   :  { %v3679_v26 = vpack.c.bf16 %v3630_v13, %v3627_v21  ;;  %v3632_v39 = vpop.f32.mrb[95].mxu1 }
 0x5eb   :  { %4973 = vmatpush1.bf16.msra.mxu1 %v4089_v24 }
 0x5ec   :  { %15809 = vmatmul.mubr.bf16.gmra.mrb[16].mxu0 %v3679_v26  ;;  %4974 = vmatprep.subr.bf16.mxu1 %v18900_v0 }
 0x5ef   :  { %v3635_v56 = vpop.f32.mrb[96].mxu1  ;;  %4975 = vmatpush1.bf16.msra.mxu1 %v4090_v9 }
 0x5f0   :  { %v3637_v31 = vpop.f32.mrb[97].mxu1  ;;  %4976 = vmatprep.subr.bf16.mxu1 %v18900_v0 }
 0x5f1   :  { %v3638_v27 = vpop.f32.mrb[98].mxu1  ;;  %v15758_v29 = vpop.f32.mrb[220].mxu0 }
 0x5f2   :  { %v3640_v36 = vpop.f32.mrb[99].mxu1  ;;  %v3680_v32 = vpack.c.bf16 %v3638_v27, %v3635_v56  ;;  %v3795_v20 = vadd.f32 %v15758_v29, %v19256_v33  ;;  %v3786_v34 = vpop.f32.mrb[221].mxu0 }
 0x5f3   :  { %v3787_v38 = vadd.f32 %v19256_v33, %v3786_v34  ;;  %v15759_v49 = vpop.f32.mrb[222].mxu0 }
 0x5f4   :  { %15812 = vmatprep.mubr.bf16.mxu0 %v3680_v32  ;;  %v3798_v40 = vadd.f32 %v15759_v49, %v19256_v33  ;;  %v3789_v42 = vpop.f32.mrb[223].mxu0  ;;  %v4031_v37 = vmax.f32 %v3795_v20, 0.0 }
 0x5f5   :  { %v3790_v60 = vadd.f32 %v19256_v33, %v3789_v42  ;;  %v4029_v43 = vmax.f32 %v3787_v38, 0.0 }
 0x5f6   :  { %v4032_v41 = vmax.f32 %v3798_v40, 0.0 }
 0x5f7   :  { %v3643_v59 = vpop.f32.mrb[100].mxu1  ;;  %v4030_v10 = vmax.f32 %v3790_v60, 0.0 }
 0x5f8   :  { %v3645_v25 = vpop.f32.mrb[101].mxu1  ;;  %v4092_v44 = vpack.c.bf16 %v4032_v41, %v4031_v37 }
 0x5f9   :  { %v3646_v63 = vpop.f32.mrb[102].mxu1  ;;  %v4091_v15 = vpack.c.bf16 %v4030_v10, %v4029_v43 }
 0x5fa   :  { %v3681_v46 = vpack.c.bf16 %v3646_v63, %v3643_v59  ;;  %v3648_v48 = vpop.f32.mrb[103].mxu1 }
 0x5fb   :  { %4977 = vmatpush1.bf16.msra.mxu1 %v4091_v15 }
 0x5fc   :  { %15813 = vmatmul.mubr.bf16.gmra.mrb[20].mxu0 %v3681_v46  ;;  %4978 = vmatprep.subr.bf16.mxu1 %v18900_v0 }
 0x5ff   :  { %4979 = vmatpush1.bf16.msra.mxu1 %v4092_v44 }
 0x600   :  { %4980 = vmatprep.subr.bf16.mxu1 %v18900_v0 }
 0x601   :  { %v15762_v45 = vpop.f32.mrb[224].mxu0 }
 0x602   :  { %v3811_v51 = vadd.f32 %v15762_v45, %v19256_v33  ;;  %v3802_v55 = vpop.f32.mrb[225].mxu0 }
 0x603   :  { %v3803_v2 = vadd.f32 %v19256_v33, %v3802_v55  ;;  %v15763_v58 = vpop.f32.mrb[226].mxu0 }
 0x604   :  { %v3814_v54 = vadd.f32 %v15763_v58, %v19256_v33  ;;  %v3805_v28 = vpop.f32.mrb[227].mxu0  ;;  %v4035_v61 = vmax.f32 %v3811_v51, 0.0 }
 0x605   :  { %v3806_v6 = vadd.f32 %v19256_v33, %v3805_v28  ;;  %v4033_v3 = vmax.f32 %v3803_v2, 0.0 }
 0x606   :  { %v4036_v62 = vmax.f32 %v3814_v54, 0.0 }
 0x607   :  { %v4034_v4 = vmax.f32 %v3806_v6, 0.0 }
 0x608   :  { %v4094_v1 = vpack.c.bf16 %v4036_v62, %v4035_v61 }
 0x609   :  { %v4093_v8 = vpack.c.bf16 %v4034_v4, %v4033_v3 }
 0x60b   :  { %4981 = vmatpush1.bf16.msra.mxu1 %v4093_v8 }
 0x60c   :  { %4982 = vmatprep.subr.bf16.mxu1 %v18900_v0 }
 0x60f   :  { %4983 = vmatpush1.bf16.msra.mxu1 %v4094_v1 }
 0x610   :  { %4984 = vmatprep.subr.bf16.mxu1 %v18900_v0 }
 0x611   :  { %v15766_v7 = vpop.f32.mrb[228].mxu0 }
 0x612   :  { %v3827_v47 = vadd.f32 %v15766_v7, %v19256_v33  ;;  %v3818_v12 = vpop.f32.mrb[229].mxu0 }
 0x613   :  { %v3819_v5 = vadd.f32 %v19256_v33, %v3818_v12  ;;  %v15767_v23 = vpop.f32.mrb[230].mxu0 }
 0x614   :  { %v3830_v50 = vadd.f32 %v15767_v23, %v19256_v33  ;;  %v3821_v11 = vpop.f32.mrb[231].mxu0  ;;  %v4039_v14 = vmax.f32 %v3827_v47, 0.0 }
 0x615   :  { %v3822_v30 = vadd.f32 %v19256_v33, %v3821_v11  ;;  %v4037_v17 = vmax.f32 %v3819_v5, 0.0 }
 0x616   :  { %v4040_v16 = vmax.f32 %v3830_v50, 0.0 }
 0x617   :  { %v4038_v57 = vmax.f32 %v3822_v30, 0.0 }
 0x618   :  { %v4096_v18 = vpack.c.bf16 %v4040_v16, %v4039_v14  ;;  %v17543_v14 = vld [vmem:[#allocation3] ss:$16 sps:$4 sm:$0xff]   ;;  %v17546_v16 = vld [vmem:[#allocation3 + $0x24] ss:$16 sps:$4 sm:$0xff]  }
 0x619   :  { %v4095_v35 = vpack.c.bf16 %v4038_v57, %v4037_v17 }
 0x61b   :  { %4985 = vmatpush1.bf16.msra.mxu1 %v4095_v35 }
 0x61c   :  { %4986 = vmatprep.subr.bf16.mxu1 %v18900_v0 }
 0x61f   :  { %4987 = vmatpush1.bf16.msra.mxu1 %v4096_v18 }
 0x620   :  { %4988 = vmatprep.subr.bf16.mxu1 %v18900_v0 }
 0x621   :  { %v15770_v53 = vpop.f32.mrb[232].mxu0 }
 0x622   :  { %v3843_v19 = vadd.f32 %v15770_v53, %v19256_v33  ;;  %v3834_v22 = vpop.f32.mrb[233].mxu0 }
 0x623   :  { %v3835_v21 = vadd.f32 %v19256_v33, %v3834_v22  ;;  %v15771_v9 = vpop.f32.mrb[234].mxu0 }
 0x624   :  { %v3846_v52 = vadd.f32 %v15771_v9, %v19256_v33  ;;  %v3837_v24 = vpop.f32.mrb[235].mxu0  ;;  %v4043_v26 = vmax.f32 %v3843_v19, 0.0 }
 0x625   :  { %v3838_v13 = vadd.f32 %v19256_v33, %v3837_v24  ;;  %v4041_v56 = vmax.f32 %v3835_v21, 0.0  ;;  %v17548_v24 = vld [vmem:[#allocation3 + $0x20] ss:$16 sps:$4 sm:$0xff]  }
 0x626   :  { %v4044_v39 = vmax.f32 %v3846_v52, 0.0 }
 0x627   :  { %v4042_v31 = vmax.f32 %v3838_v13, 0.0 }
 0x628   :  { %v4098_v27 = vpack.c.bf16 %v4044_v39, %v4043_v26  ;;  %v17549_v26 = vld [vmem:[#allocation3 + $0x44] ss:$16 sps:$4 sm:$0xff]  }
 0x629   :  { %v4097_v29 = vpack.c.bf16 %v4042_v31, %v4041_v56 }
 0x62b   :  { %4989 = vmatpush1.bf16.msra.mxu1 %v4097_v29  ;;  %v17552_v29 = vld [vmem:[#allocation3 + $0x64] ss:$16 sps:$4 sm:$0xff]  }
 0x62c   :  { %4990 = vmatprep.subr.bf16.mxu1 %v18900_v0 }
 0x62f   :  { %4991 = vmatpush1.bf16.msra.mxu1 %v4098_v27  ;;  %v17551_v27 = vld [vmem:[#allocation3 + $0x40] ss:$16 sps:$4 sm:$0xff]  }
 0x630   :  { %4992 = vmatprep.subr.bf16.mxu1 %v18900_v0 }
 0x631   :  { %v15774_v36 = vpop.f32.mrb[236].mxu0 }
 0x632   :  { %v3859_v32 = vadd.f32 %v15774_v36, %v19256_v33  ;;  %v3850_v20 = vpop.f32.mrb[237].mxu0 }
 0x633   :  { %v3851_v34 = vadd.f32 %v19256_v33, %v3850_v20  ;;  %v15775_v38 = vpop.f32.mrb[238].mxu0 }
 0x634   :  { %v3862_v49 = vadd.f32 %v15775_v38, %v19256_v33  ;;  %v3853_v40 = vpop.f32.mrb[239].mxu0  ;;  %v4047_v60 = vmax.f32 %v3859_v32, 0.0 }
 0x635   :  { %v3854_v42 = vadd.f32 %v19256_v33, %v3853_v40  ;;  %v4045_v41 = vmax.f32 %v3851_v34, 0.0 }
 0x636   :  { %v4048_v37 = vmax.f32 %v3862_v49, 0.0 }
 0x637   :  { %v4046_v59 = vmax.f32 %v3854_v42, 0.0 }
 0x638   :  { %v4100_v43 = vpack.c.bf16 %v4048_v37, %v4047_v60 }
 0x639   :  { %v4099_v10 = vpack.c.bf16 %v4046_v59, %v4045_v41  ;;  %v17554_v41 = vld [vmem:[#allocation3 + $0x60] ss:$16 sps:$4 sm:$0xff]  }
 0x63b   :  { %4993 = vmatpush1.bf16.msra.mxu1 %v4099_v10 }
 0x63c   :  { %4994 = vmatprep.subr.bf16.mxu1 %v18900_v0 }
 0x63f   :  { %4995 = vmatpush1.bf16.msra.mxu1 %v4100_v43  ;;  %v17555_v43 = vld [vmem:[#allocation3 + $0x84] ss:$16 sps:$4 sm:$0xff]  }
 0x640   :  { %4996 = vmatprep.subr.bf16.mxu1 %v18900_v0 }
 0x641   :  { %v15778_v25 = vpop.f32.mrb[240].mxu0 }
 0x642   :  { %v3875_v44 = vadd.f32 %v15778_v25, %v19256_v33  ;;  %v3866_v63 = vpop.f32.mrb[241].mxu0 }
 0x643   :  { %v3867_v15 = vadd.f32 %v19256_v33, %v3866_v63  ;;  %v15779_v46 = vpop.f32.mrb[242].mxu0  ;;  %v17557_v63 = vld [vmem:[#allocation3 + $0x80] ss:$16 sps:$4 sm:$0xff]  }
 0x644   :  { %v3878_v48 = vadd.f32 %v15779_v46, %v19256_v33  ;;  %v3869_v45 = vpop.f32.mrb[243].mxu0  ;;  %v4051_v55 = vmax.f32 %v3875_v44, 0.0 }
 0x645   :  { %v3870_v51 = vadd.f32 %v19256_v33, %v3869_v45  ;;  %v4049_v58 = vmax.f32 %v3867_v15, 0.0  ;;  %v17558_v15 = vld [vmem:[#allocation3 + $0xa4] ss:$16 sps:$4 sm:$0xff]  }
 0x646   :  { %v4052_v2 = vmax.f32 %v3878_v48, 0.0 }
 0x647   :  { %v4050_v54 = vmax.f32 %v3870_v51, 0.0 }
 0x648   :  { %v4102_v28 = vpack.c.bf16 %v4052_v2, %v4051_v55 }
 0x649   :  { %v4101_v6 = vpack.c.bf16 %v4050_v54, %v4049_v58 }
 0x64b   :  { %4997 = vmatpush1.bf16.msra.mxu1 %v4101_v6 }
 0x64c   :  { %4998 = vmatprep.subr.bf16.mxu1 %v18900_v0 }
 0x64f   :  { %4999 = vmatpush1.bf16.msra.mxu1 %v4102_v28 }
 0x650   :  { %5000 = vmatprep.subr.bf16.mxu1 %v18900_v0 }
 0x651   :  { %v15782_v61 = vpop.f32.mrb[244].mxu0 }
 0x652   :  { %v3891_v62 = vadd.f32 %v15782_v61, %v19256_v33  ;;  %v3882_v3 = vpop.f32.mrb[245].mxu0 }
 0x653   :  { %v3883_v4 = vadd.f32 %v19256_v33, %v3882_v3  ;;  %v15783_v1 = vpop.f32.mrb[246].mxu0 }
 0x654   :  { %v3894_v8 = vadd.f32 %v15783_v1, %v19256_v33  ;;  %v3885_v7 = vpop.f32.mrb[247].mxu0  ;;  %v4055_v12 = vmax.f32 %v3891_v62, 0.0  ;;  %v17560_v62 = vld [vmem:[#allocation3 + $0xa0] ss:$16 sps:$4 sm:$0xff]  }
 0x655   :  { %v3886_v47 = vadd.f32 %v19256_v33, %v3885_v7  ;;  %v4053_v23 = vmax.f32 %v3883_v4, 0.0  ;;  %v17561_v4 = vld [vmem:[#allocation3 + $0xc4] ss:$16 sps:$4 sm:$0xff]   ;;  %v17563_v7 = vld [vmem:[#allocation3 + $0xc0] ss:$16 sps:$4 sm:$0xff]  }
 0x656   :  { %v4056_v5 = vmax.f32 %v3894_v8, 0.0 }
 0x657   :  { %v4054_v50 = vmax.f32 %v3886_v47, 0.0 }
 0x658   :  { %v4104_v11 = vpack.c.bf16 %v4056_v5, %v4055_v12  ;;  %v17564_v12 = vld [vmem:[#allocation3 + $0xe4] ss:$16 sps:$4 sm:$0xff]  }
 0x659   :  { %v4103_v30 = vpack.c.bf16 %v4054_v50, %v4053_v23 }
 0x65b   :  { %5001 = vmatpush1.bf16.msra.mxu1 %v4103_v30 }
 0x65c   :  { %5002 = vmatprep.subr.bf16.mxu1 %v18900_v0 }
 0x65f   :  { %5003 = vmatpush1.bf16.msra.mxu1 %v4104_v11 }
 0x660   :  { %5261 = vmatprep.subr.bf16.mxu1 %v18900_v0 }
 0x661   :  { %v15786_v17 = vpop.f32.mrb[248].mxu0 }
 0x662   :  { %5005 = vmatmul.mubr.bf16.vlgmr.msra.gmra.mrb[192].mxu1 %v17543_v14  ;;  %v3907_v57 = vadd.f32 %v15786_v17, %v19256_v33  ;;  %v3898_v18 = vpop.f32.mrb[249].mxu0 }
 0x663   :  { %5012 = vmatprep.mubr.bf16.mxu1 %v17546_v16  ;;  %v3899_v35 = vadd.f32 %v19256_v33, %v3898_v18  ;;  %v15787_v53 = vpop.f32.mrb[250].mxu0 }
 0x664   :  { %v4059_v19 = vmax.f32 %v3907_v57, 0.0  ;;  %v3910_v22 = vadd.f32 %v15787_v53, %v19256_v33  ;;  %v3901_v21 = vpop.f32.mrb[251].mxu0 }
 0x665   :  { %v4057_v9 = vmax.f32 %v3899_v35, 0.0  ;;  %v3902_v52 = vadd.f32 %v19256_v33, %v3901_v21  ;;  %v17567_v21 = vld [vmem:[#allocation3 + $0x104] ss:$16 sps:$4 sm:$0xff]  }
 0x666   :  { %v4060_v13 = vmax.f32 %v3910_v22, 0.0 }
 0x667   :  { %v4058_v39 = vmax.f32 %v3902_v52, 0.0 }
 0x668   :  { %v4106_v56 = vpack.c.bf16 %v4060_v13, %v4059_v19  ;;  %v17566_v19 = vld [vmem:[#allocation3 + $0xe0] ss:$16 sps:$4 sm:$0xff]  }
 0x669   :  { %v4105_v31 = vpack.c.bf16 %v4058_v39, %v4057_v9  ;;  %v17569_v9 = vld [vmem:[#allocation3 + $0x100] ss:$16 sps:$4 sm:$0xff]  }
 0x66a   :  { %5013 = vmatmul.mubr.bf16.gmra.mrb[196].mxu1 %v17548_v24  ;;  %v17570_v24 = vld [vmem:[#allocation3 + $0x124] ss:$16 sps:$4 sm:$0xff]  }
 0x66b   :  { %5020 = vmatprep.mubr.bf16.mxu1 %v17549_v26  ;;  %5262 = vmatpush1.bf16.msra.mxu1 %v4105_v31 }
 0x66c   :  { %5263 = vmatprep.subr.bf16.mxu1 %v18900_v0 }
 0x66f   :  { %5264 = vmatpush1.bf16.msra.mxu1 %v4106_v56 }
 0x670   :  { %5265 = vmatprep.subr.bf16.mxu1 %v18900_v0 }
 0x671   :  { %v15790_v36 = vpop.f32.mrb[252].mxu0 }
 0x672   :  { %5021 = vmatmul.mubr.bf16.gmra.mrb[200].mxu1 %v17551_v27  ;;  %v3923_v32 = vadd.f32 %v15790_v36, %v19256_v33  ;;  %v3914_v20 = vpop.f32.mrb[253].mxu0 }
 0x673   :  { %5028 = vmatprep.mubr.bf16.mxu1 %v17552_v29  ;;  %v3915_v34 = vadd.f32 %v19256_v33, %v3914_v20  ;;  %v15791_v38 = vpop.f32.mrb[254].mxu0 }
 0x674   :  { %v4063_v49 = vmax.f32 %v3923_v32, 0.0  ;;  %v3926_v40 = vadd.f32 %v15791_v38, %v19256_v33  ;;  %v3917_v42 = vpop.f32.mrb[255].mxu0 }
 0x675   :  { %v4061_v60 = vmax.f32 %v3915_v34, 0.0  ;;  %v3918_v37 = vadd.f32 %v19256_v33, %v3917_v42  ;;  %v17573_v42 = vld [vmem:[#allocation3 + $0x144] ss:$16 sps:$4 sm:$0xff]  }
 0x676   :  { %v4064_v59 = vmax.f32 %v3926_v40, 0.0 }
 0x677   :  { %v4062_v10 = vmax.f32 %v3918_v37, 0.0 }
 0x678   :  { %v4108_v25 = vpack.c.bf16 %v4064_v59, %v4063_v49  ;;  %v17572_v49 = vld [vmem:[#allocation3 + $0x120] ss:$16 sps:$4 sm:$0xff]  }
 0x679   :  { %v4107_v44 = vpack.c.bf16 %v4062_v10, %v4061_v60  ;;  %v17575_v60 = vld [vmem:[#allocation3 + $0x140] ss:$16 sps:$4 sm:$0xff]  }
 0x67a   :  { %5029 = vmatmul.mubr.bf16.gmra.mrb[204].mxu1 %v17554_v41  ;;  %v17576_v41 = vld [vmem:[#allocation3 + $0x164] ss:$16 sps:$4 sm:$0xff]  }
 0x67b   :  { %5036 = vmatprep.mubr.bf16.mxu1 %v17555_v43  ;;  %5266 = vmatpush1.bf16.msra.mxu1 %v4107_v44 }
 0x67c   :  { %5267 = vmatprep.subr.bf16.mxu1 %v18900_v0 }
 0x67f   :  { %5268 = vmatpush1.bf16.msra.mxu1 %v4108_v25 }
 0x680   :  { %5269 = vmatprep.subr.bf16.mxu1 %v18900_v0 }
 0x681   :  { %v15794_v46 = vpop.f32.mrb[0].mxu0 }
 0x682   :  { %5037 = vmatmul.mubr.bf16.gmra.mrb[208].mxu1 %v17557_v63  ;;  %v3939_v48 = vadd.f32 %v15794_v46, %v19256_v33  ;;  %v3930_v45 = vpop.f32.mrb[1].mxu0 }
 0x683   :  { %v3931_v51 = vadd.f32 %v19256_v33, %v3930_v45  ;;  %v15795_v55 = vpop.f32.mrb[2].mxu0  ;;  %5044 = vmatprep.mubr.bf16.mxu1 %v17558_v15 }
 0x684   :  { %v4067_v2 = vmax.f32 %v3939_v48, 0.0  ;;  %v3942_v58 = vadd.f32 %v15795_v55, %v19256_v33  ;;  %v3933_v54 = vpop.f32.mrb[3].mxu0 }
 0x685   :  { %v4065_v28 = vmax.f32 %v3931_v51, 0.0  ;;  %v3934_v6 = vadd.f32 %v19256_v33, %v3933_v54  ;;  %v17579_v54 = vld [vmem:[#allocation3 + $0x184] ss:$16 sps:$4 sm:$0xff]  }
 0x686   :  { %v4068_v61 = vmax.f32 %v3942_v58, 0.0 }
 0x687   :  { %v4066_v3 = vmax.f32 %v3934_v6, 0.0 }
 0x688   :  { %v4110_v1 = vpack.c.bf16 %v4068_v61, %v4067_v2  ;;  %v17578_v2 = vld [vmem:[#allocation3 + $0x160] ss:$16 sps:$4 sm:$0xff]   ;;  %v17582_v61 = vld [vmem:[#allocation3 + $0x1a4] ss:$16 sps:$4 sm:$0xff]  }
 0x689   :  { %v4109_v8 = vpack.c.bf16 %v4066_v3, %v4065_v28  ;;  %v17581_v28 = vld [vmem:[#allocation3 + $0x180] ss:$16 sps:$4 sm:$0xff]  }
 0x68a   :  { %5045 = vmatmul.mubr.bf16.gmra.mrb[212].mxu1 %v17560_v62 }
 0x68b   :  { %5052 = vmatprep.mubr.bf16.mxu1 %v17561_v4  ;;  %5270 = vmatpush1.bf16.msra.mxu1 %v4109_v8 }
 0x68c   :  { %5271 = vmatprep.subr.bf16.mxu1 %v18900_v0 }
 0x68f   :  { %v15798_v47 = vpop.f32.mrb[4].mxu0  ;;  %5272 = vmatpush1.bf16.msra.mxu1 %v4110_v1 }
 0x690   :  { %v3955_v5 = vadd.f32 %v15798_v47, %v19256_v33  ;;  %v3946_v23 = vpop.f32.mrb[5].mxu0  ;;  %5273 = vmatprep.subr.bf16.mxu1 %v18900_v0 }
 0x691   :  { %v3947_v50 = vadd.f32 %v19256_v33, %v3946_v23  ;;  %v15799_v11 = vpop.f32.mrb[6].mxu0 }
 0x692   :  { %v3958_v30 = vadd.f32 %v15799_v11, %v19256_v33  ;;  %v3949_v14 = vpop.f32.mrb[7].mxu0  ;;  %5053 = vmatmul.mubr.bf16.gmra.mrb[216].mxu1 %v17563_v7  ;;  %v4071_v17 = vmax.f32 %v3955_v5, 0.0 }
 0x693   :  { %v3950_v16 = vadd.f32 %v19256_v33, %v3949_v14  ;;  %5060 = vmatprep.mubr.bf16.mxu1 %v17564_v12  ;;  %v4069_v18 = vmax.f32 %v3947_v50, 0.0 }
 0x694   :  { %v4072_v57 = vmax.f32 %v3958_v30, 0.0  ;;  %v17584_v30 = vld [vmem:[#allocation3 + $0x1a0] ss:$16 sps:$4 sm:$0xff]  }
 0x695   :  { %v4070_v35 = vmax.f32 %v3950_v16, 0.0  ;;  %v17585_v16 = vld [vmem:[#allocation3 + $0x1c4] ss:$16 sps:$4 sm:$0xff]  }
 0x696   :  { %v4112_v53 = vpack.c.bf16 %v4072_v57, %v4071_v17  ;;  %v17587_v17 = vld [vmem:[#allocation3 + $0x1c0] ss:$16 sps:$4 sm:$0xff]  }
 0x697   :  { %v4111_v22 = vpack.c.bf16 %v4070_v35, %v4069_v18  ;;  %v17588_v18 = vld [vmem:[#allocation3 + $0x1e4] ss:$16 sps:$4 sm:$0xff]  }
 0x699   :  { %5274 = vmatpush1.bf16.msra.mxu1 %v4111_v22 }
 0x69a   :  { %5061 = vmatmul.mubr.bf16.gmra.mrb[220].mxu1 %v17566_v19  ;;  %5275 = vmatprep.subr.bf16.mxu1 %v18900_v0 }
 0x69b   :  { %5068 = vmatprep.mubr.bf16.mxu1 %v17567_v21 }
 0x69d   :  { %5276 = vmatpush1.bf16.msra.mxu1 %v4112_v53 }
 0x69e   :  { %5277 = vmatprep.subr.bf16.mxu1 %v18900_v0 }
 0x69f   :  { %v15802_v52 = vpop.f32.mrb[8].mxu0 }
 0x6a0   :  { %v3971_v13 = vadd.f32 %v15802_v52, %v19256_v33  ;;  %v3962_v26 = vpop.f32.mrb[9].mxu0 }
 0x6a1   :  { %v3963_v39 = vadd.f32 %v19256_v33, %v3962_v26  ;;  %v15803_v56 = vpop.f32.mrb[10].mxu0 }
 0x6a2   :  { %v3974_v31 = vadd.f32 %v15803_v56, %v19256_v33  ;;  %v3965_v27 = vpop.f32.mrb[11].mxu0  ;;  %5069 = vmatmul.mubr.bf16.gmra.mrb[224].mxu1 %v17569_v9  ;;  %v4075_v36 = vmax.f32 %v3971_v13, 0.0 }
 0x6a3   :  { %v3966_v29 = vadd.f32 %v19256_v33, %v3965_v27  ;;  %5076 = vmatprep.mubr.bf16.mxu1 %v17570_v24  ;;  %v4073_v20 = vmax.f32 %v3963_v39, 0.0 }
 0x6a4   :  { %v4076_v32 = vmax.f32 %v3974_v31, 0.0  ;;  %v17590_v31 = vld [vmem:[#allocation3 + $0x1e0] ss:$16 sps:$4 sm:$0xff]  }
 0x6a5   :  { %v4074_v34 = vmax.f32 %v3966_v29, 0.0  ;;  %v17593_v29 = vld [vmem:[#allocation3 + $0x204] ss:$16 sps:$4 sm:$0xff]  }
 0x6a6   :  { %v4114_v38 = vpack.c.bf16 %v4076_v32, %v4075_v36  ;;  %v17591_v36 = vld [vmem:[#allocation3 + $0x200] ss:$16 sps:$4 sm:$0xff]   ;;  %v17596_v32 = vld [vmem:[#allocation3 + $0x224] ss:$16 sps:$4 sm:$0xff]  }
 0x6a7   :  { %v4113_v40 = vpack.c.bf16 %v4074_v34, %v4073_v20  ;;  %v17599_v20 = vld [vmem:[#allocation3 + $0x244] ss:$16 sps:$4 sm:$0xff]   ;;  %v17597_v34 = vld [vmem:[#allocation3 + $0x240] ss:$16 sps:$4 sm:$0xff]  }
 0x6a9   :  { %5278 = vmatpush1.bf16.msra.mxu1 %v4113_v40  ;;  %v17605_v40 = vld [vmem:[#allocation3 + $0x284] ss:$16 sps:$4 sm:$0xff]  }
 0x6aa   :  { %5077 = vmatmul.mubr.bf16.gmra.mrb[228].mxu1 %v17572_v49  ;;  %5279 = vmatprep.subr.bf16.mxu1 %v18900_v0  ;;  %v17600_v49 = vld [vmem:[#allocation3 + $0x260] ss:$16 sps:$4 sm:$0xff]  }
 0x6ab   :  { %5084 = vmatprep.mubr.bf16.mxu1 %v17573_v42  ;;  %v17603_v42 = vld [vmem:[#allocation3 + $0x280] ss:$16 sps:$4 sm:$0xff]  }
 0x6ad   :  { %5280 = vmatpush1.bf16.msra.mxu1 %v4114_v38  ;;  %v17602_v38 = vld [vmem:[#allocation3 + $0x264] ss:$16 sps:$4 sm:$0xff]  }
 0x6ae   :  { %5281 = vmatprep.subr.bf16.mxu1 %v18900_v0 }
 0x6af   :  { %v15806_v37 = vpop.f32.mrb[12].mxu0 }
 0x6b0   :  { %v3987_v59 = vadd.f32 %v15806_v37, %v19256_v33  ;;  %v3978_v43 = vpop.f32.mrb[13].mxu0  ;;  %v17606_v37 = vld [vmem:[#allocation3 + $0x2a0] ss:$16 sps:$4 sm:$0xff]  }
 0x6b1   :  { %v3979_v10 = vadd.f32 %v19256_v33, %v3978_v43  ;;  %v15807_v25 = vpop.f32.mrb[14].mxu0  ;;  %v17614_v43 = vld [vmem:[#allocation3 + $0x2e4] ss:$16 sps:$4 sm:$0xff]  }
 0x6b2   :  { %v3990_v44 = vadd.f32 %v15807_v25, %v19256_v33  ;;  %v3981_v63 = vpop.f32.mrb[15].mxu0  ;;  %5085 = vmatmul.mubr.bf16.gmra.mrb[232].mxu1 %v17575_v60  ;;  %v4079_v46 = vmax.f32 %v3987_v59, 0.0  ;;  %v17608_v60 = vld [vmem:[#allocation3 + $0x2a4] ss:$16 sps:$4 sm:$0xff]   ;;  %v17609_v59 = vld [vmem:[#allocation3 + $0x2c0] ss:$16 sps:$4 sm:$0xff]  }
 0x6b3   :  { %v3982_v15 = vadd.f32 %v19256_v33, %v3981_v63  ;;  %5092 = vmatprep.mubr.bf16.mxu1 %v17576_v41  ;;  %v4077_v45 = vmax.f32 %v3979_v10, 0.0  ;;  %v17611_v41 = vld [vmem:[#allocation3 + $0x2c4] ss:$16 sps:$4 sm:$0xff]   ;;  %v17612_v10 = vld [vmem:[#allocation3 + $0x2e0] ss:$16 sps:$4 sm:$0xff]  }
 0x6b4   :  { %v4080_v48 = vmax.f32 %v3990_v44, 0.0  ;;  %v17617_v25 = vld [vmem:[#allocation3 + $0x304] ss:$16 sps:$4 sm:$0xff]   ;;  %v17615_v44 = vld [vmem:[#allocation3 + $0x300] ss:$16 sps:$4 sm:$0xff]  }
 0x6b5   :  { %v4078_v51 = vmax.f32 %v3982_v15, 0.0  ;;  %v17620_v63 = vld [vmem:[#allocation3 + $0x324] ss:$16 sps:$4 sm:$0xff]   ;;  %v17618_v15 = vld [vmem:[#allocation3 + $0x320] ss:$16 sps:$4 sm:$0xff]  }
 0x6b6   :  { %v4116_v55 = vpack.c.bf16 %v4080_v48, %v4079_v46  ;;  %v17623_v46 = vld [vmem:[#allocation3 + $0x344] ss:$16 sps:$4 sm:$0xff]   ;;  %v17621_v48 = vld [vmem:[#allocation3 + $0x340] ss:$16 sps:$4 sm:$0xff]  }
 0x6b7   :  { %v4115_v58 = vpack.c.bf16 %v4078_v51, %v4077_v45  ;;  %v17626_v45 = vld [vmem:[#allocation3 + $0x364] ss:$16 sps:$4 sm:$0xff]   ;;  %v17624_v51 = vld [vmem:[#allocation3 + $0x360] ss:$16 sps:$4 sm:$0xff]  }
 0x6b9   :  { %5282 = vmatpush1.bf16.msra.mxu1 %v4115_v58  ;;  %v17632_v58 = vld [vmem:[#allocation3 + $0x3a4] ss:$16 sps:$4 sm:$0xff]  }
 0x6ba   :  { %5093 = vmatmul.mubr.bf16.gmra.mrb[236].mxu1 %v17578_v2  ;;  %5283 = vmatprep.subr.bf16.mxu1 %v18900_v0  ;;  %v17627_v2 = vld [vmem:[#allocation3 + $0x380] ss:$16 sps:$4 sm:$0xff]  }
 0x6bb   :  { %5100 = vmatprep.mubr.bf16.mxu1 %v17579_v54  ;;  %v17630_v54 = vld [vmem:[#allocation3 + $0x3a0] ss:$16 sps:$4 sm:$0xff]  }
 0x6bd   :  { %5284 = vmatpush1.bf16.msra.mxu1 %v4116_v55  ;;  %v17629_v55 = vld [vmem:[#allocation3 + $0x384] ss:$16 sps:$4 sm:$0xff]  }
 0x6be   :  { %5285 = vmatprep.subr.bf16.mxu1 %v18900_v0 }
 0x6bf   :  { %v15810_v6 = vpop.f32.mrb[16].mxu0 }
 0x6c0   :  { %v4003_v62 = vadd.f32 %v15810_v6, %v19256_v33  ;;  %v3994_v3 = vpop.f32.mrb[17].mxu0  ;;  %v17633_v6 = vld [vmem:[#allocation3 + $0x3c0] ss:$16 sps:$4 sm:$0xff]  }
 0x6c1   :  { %v3995_v4 = vadd.f32 %v19256_v33, %v3994_v3  ;;  %v15811_v1 = vpop.f32.mrb[18].mxu0  ;;  %v17641_v3 = vld [vmem:[#allocation3 + $0xc] ss:$16 sps:$4 sm:$0xff]  }
 0x6c2   :  { %v4006_v8 = vadd.f32 %v15811_v1, %v19256_v33  ;;  %v3997_v7 = vpop.f32.mrb[19].mxu0  ;;  %5101 = vmatmul.mubr.bf16.gmra.mrb[240].mxu1 %v17581_v28  ;;  %v4083_v12 = vmax.f32 %v4003_v62, 0.0  ;;  %v17635_v28 = vld [vmem:[#allocation3 + $0x3c4] ss:$16 sps:$4 sm:$0xff]   ;;  %v17636_v62 = vld [vmem:[#allocation3 + $0x3e0] ss:$16 sps:$4 sm:$0xff]  }
 0x6c3   :  { %v3998_v47 = vadd.f32 %v19256_v33, %v3997_v7  ;;  %5108 = vmatprep.mubr.bf16.mxu1 %v17582_v61  ;;  %v4081_v23 = vmax.f32 %v3995_v4, 0.0  ;;  %v17638_v61 = vld [vmem:[#allocation3 + $0x3e4] ss:$16 sps:$4 sm:$0xff]   ;;  %v17639_v4 = vld [vmem:[#allocation3 + $0x8] ss:$16 sps:$4 sm:$0xff]  }
 0x6c4   :  { %v4084_v5 = vmax.f32 %v4006_v8, 0.0  ;;  %v17642_v1 = vld [vmem:[#allocation3 + $0x2c] ss:$16 sps:$4 sm:$0xff]   ;;  %v17644_v8 = vld [vmem:[#allocation3 + $0x28] ss:$16 sps:$4 sm:$0xff]  }
 0x6c5   :  { %v4082_v50 = vmax.f32 %v3998_v47, 0.0  ;;  %v17645_v7 = vld [vmem:[#allocation3 + $0x4c] ss:$16 sps:$4 sm:$0xff]   ;;  %v17647_v47 = vld [vmem:[#allocation3 + $0x48] ss:$16 sps:$4 sm:$0xff]  }
 0x6c6   :  { %v4118_v11 = vpack.c.bf16 %v4084_v5, %v4083_v12  ;;  %v17648_v12 = vld [vmem:[#allocation3 + $0x6c] ss:$16 sps:$4 sm:$0xff]   ;;  %v17650_v5 = vld [vmem:[#allocation3 + $0x68] ss:$16 sps:$4 sm:$0xff]  }
 0x6c7   :  { %v4117_v14 = vpack.c.bf16 %v4082_v50, %v4081_v23  ;;  %v17651_v23 = vld [vmem:[#allocation3 + $0x8c] ss:$16 sps:$4 sm:$0xff]   ;;  %v17653_v50 = vld [vmem:[#allocation3 + $0x88] ss:$16 sps:$4 sm:$0xff]  }
 0x6c9   :  { %5286 = vmatpush1.bf16.msra.mxu1 %v4117_v14  ;;  %v17657_v14 = vld [vmem:[#allocation3 + $0xcc] ss:$16 sps:$4 sm:$0xff]  }
 0x6ca   :  { %5109 = vmatmul.mubr.bf16.gmra.mrb[244].mxu1 %v17584_v30  ;;  %5287 = vmatprep.subr.bf16.mxu1 %v18900_v0  ;;  %v17656_v30 = vld [vmem:[#allocation3 + $0xa8] ss:$16 sps:$4 sm:$0xff]  }
 0x6cb   :  { %5116 = vmatprep.mubr.bf16.mxu1 %v17585_v16  ;;  %v17659_v16 = vld [vmem:[#allocation3 + $0xc8] ss:$16 sps:$4 sm:$0xff]  }
 0x6cd   :  { %5288 = vmatpush1.bf16.msra.mxu1 %v4118_v11  ;;  %v17654_v11 = vld [vmem:[#allocation3 + $0xac] ss:$16 sps:$4 sm:$0xff]  }
 0x6ce   :  { %5289 = vmatprep.subr.bf16.mxu1 %v18900_v0 }
 0x6cf   :  { %v15814_v57 = vpop.f32.mrb[20].mxu0 }
 0x6d0   :  { %v4019_v35 = vadd.f32 %v15814_v57, %v19256_v33  ;;  %v4010_v53 = vpop.f32.mrb[21].mxu0  ;;  %v17662_v57 = vld [vmem:[#allocation3 + $0xe8] ss:$16 sps:$4 sm:$0xff]  }
 0x6d1   :  { %v4011_v19 = vadd.f32 %v19256_v33, %v4010_v53  ;;  %v15815_v22 = vpop.f32.mrb[22].mxu0  ;;  %v17666_v53 = vld [vmem:[#allocation3 + $0x12c] ss:$16 sps:$4 sm:$0xff]  }
 0x6d2   :  { %v4022_v21 = vadd.f32 %v15815_v22, %v19256_v33  ;;  %v4013_v9 = vpop.f32.mrb[23].mxu0  ;;  %5117 = vmatmul.mubr.bf16.gmra.mrb[248].mxu1 %v17587_v17  ;;  %v4087_v24 = vmax.f32 %v4019_v35, 0.0  ;;  %v17660_v17 = vld [vmem:[#allocation3 + $0xec] ss:$16 sps:$4 sm:$0xff]   ;;  %v17665_v35 = vld [vmem:[#allocation3 + $0x108] ss:$16 sps:$4 sm:$0xff]  }
 0x6d3   :  { %v4014_v52 = vadd.f32 %v19256_v33, %v4013_v9  ;;  %5124 = vmatprep.mubr.bf16.mxu1 %v17588_v18  ;;  %v4085_v26 = vmax.f32 %v4011_v19, 0.0  ;;  %v17594_v33 = vld [vmem:[#allocation3 + $0x220] ss:$16 sps:$4 sm:$0xff]   ;;  %v17663_v18 = vld [vmem:[#allocation3 + $0x10c] ss:$16 sps:$4 sm:$0xff]  }
 0x6d4   :  { %v4088_v13 = vmax.f32 %v4022_v21, 0.0  ;;  %v17714_v19 = vld [vmem:[#allocation8 + $0x80] sm:$0xff]   ;;  %v17715_v22 = vld [vmem:[#allocation8 + $0x88] sm:$0xff]  }
 0x6d5   :  { %v4086_v39 = vmax.f32 %v4014_v52, 0.0  ;;  %15816 = vmatprep.subr.bf16.mxu0 %v17714_v19  ;;  %v17668_v21 = vld [vmem:[#allocation3 + $0x128] ss:$16 sps:$4 sm:$0xff]   ;;  %v17669_v9 = vld [vmem:[#allocation3 + $0x14c] ss:$16 sps:$4 sm:$0xff]   ;;  %v17719_v52 = vld [vmem:[#allocation8 + $0x90] sm:$0xff]  }
 0x6d6   :  { %v4120_v56 = vpack.c.bf16 %v4088_v13, %v4087_v24  ;;  %15817 = vmatpush3.bf16.msra.mxu0 %v17714_v19  ;;  %v17720_v24 = vld [vmem:[#allocation8 + $0x98] sm:$0xff]  }
 0x6d7   :  { %v4119_v27 = vpack.c.bf16 %v4086_v39, %v4085_v26  ;;  %15818 = vmatprep.subr.bf16.mxu0 %v17715_v22  ;;  %v17671_v13 = vld [vmem:[#allocation3 + $0x148] ss:$16 sps:$4 sm:$0xff]   ;;  %v17672_v26 = vld [vmem:[#allocation3 + $0x16c] ss:$16 sps:$4 sm:$0xff]   ;;  %v17724_v39 = vld [vmem:[#allocation8 + $0xa0] sm:$0xff]  }
 0x6d9   :  { %5290 = vmatpush1.bf16.msra.mxu1 %v4119_v27  ;;  %v17675_v27 = vld [vmem:[#allocation3 + $0x18c] ss:$16 sps:$4 sm:$0xff]  }
 0x6da   :  { %5125 = vmatmul.mubr.bf16.gmra.mrb[252].mxu1 %v17590_v31  ;;  %5291 = vmatprep.subr.bf16.mxu1 %v18900_v0  ;;  %v17674_v31 = vld [vmem:[#allocation3 + $0x168] ss:$16 sps:$4 sm:$0xff]  }
 0x6db   :  { %5132 = vmatprep.mubr.bf16.mxu1 %v17593_v29  ;;  %15819 = vmatpush3.bf16.msra.mxu0 %v17715_v22  ;;  %v17729_v29 = vld [vmem:[#allocation8 + $0xb0] sm:$0xff]  }
 0x6dc   :  { %15820 = vmatprep.subr.bf16.mxu0 %v17719_v52 }
 0x6dd   :  { %5292 = vmatpush1.bf16.msra.mxu1 %v4120_v56  ;;  %v17725_v56 = vld [vmem:[#allocation8 + $0xa8] sm:$0xff]  }
 0x6df   :  { %15821 = vmatpush3.bf16.msra.mxu0 %v17719_v52  ;;  %v17737_v52 = vld [vmem:[#allocation3 + $0x3c8] ss:$16 sps:$4 sm:$0xff]  }
 0x6e0   :  { %15822 = vmatprep.subr.bf16.mxu0 %v17720_v24 }
 0x6e2   :  { %5133 = vmatmul.mubr.bf16.gmra.mrb[0].mxu1 %v17591_v36  ;;  %v17730_v36 = vld [vmem:[#allocation8 + $0xb8] sm:$0xff]  }
 0x6e3   :  { %5140 = vmatprep.mubr.bf16.mxu1 %v17596_v32  ;;  %15823 = vmatpush3.bf16.msra.mxu0 %v17720_v24  ;;  %v17677_v32 = vld [vmem:[#allocation3 + $0x188] ss:$16 sps:$4 sm:$0xff]  }
 0x6e4   :  { %15824 = vmatprep.subr.bf16.mxu0 %v17724_v39 }
 0x6e7   :  { %15825 = vmatpush3.bf16.msra.mxu0 %v17724_v39 }
 0x6e8   :  { %15826 = vmatprep.subr.bf16.mxu0 %v17725_v56 }
 0x6ea   :  { %5141 = vmatmul.mubr.bf16.gmra.mrb[4].mxu1 %v17594_v33  ;;  %v17678_v33 = vld [vmem:[#allocation3 + $0x1ac] ss:$16 sps:$4 sm:$0xff]  }
 0x6eb   :  { %5148 = vmatprep.mubr.bf16.mxu1 %v17599_v20  ;;  %15827 = vmatpush3.bf16.msra.mxu0 %v17725_v56  ;;  %v17680_v20 = vld [vmem:[#allocation3 + $0x1a8] ss:$16 sps:$4 sm:$0xff]  }
 0x6ec   :  { %15828 = vmatprep.subr.bf16.mxu0 %v17729_v29 }
 0x6ef   :  { %15829 = vmatpush3.bf16.msra.mxu0 %v17729_v29 }
 0x6f0   :  { %15830 = vmatprep.subr.bf16.mxu0 %v17730_v36 }
 0x6f2   :  { %5149 = vmatmul.mubr.bf16.gmra.mrb[8].mxu1 %v17597_v34  ;;  %v17681_v34 = vld [vmem:[#allocation3 + $0x1cc] ss:$16 sps:$4 sm:$0xff]  }
 0x6f3   :  { %5156 = vmatprep.mubr.bf16.mxu1 %v17602_v38  ;;  %15831 = vmatpush3.bf16.msra.mxu0 %v17730_v36  ;;  %v17683_v38 = vld [vmem:[#allocation3 + $0x1c8] ss:$16 sps:$4 sm:$0xff]  }
 0x6f4   :  { %6872 = vmatprep.subr.bf16.mxu0 %v18900_v0 }
 0x6fa   :  { %5157 = vmatmul.mubr.bf16.gmra.mrb[12].mxu1 %v17600_v49  ;;  %v17684_v49 = vld [vmem:[#allocation3 + $0x1ec] ss:$16 sps:$4 sm:$0xff]  }
 0x6fb   :  { %5164 = vmatprep.mubr.bf16.mxu1 %v17605_v40  ;;  %v17686_v40 = vld [vmem:[#allocation3 + $0x1e8] ss:$16 sps:$4 sm:$0xff]  }
 0x702   :  { %5165 = vmatmul.mubr.bf16.gmra.mrb[16].mxu1 %v17603_v42  ;;  %v17689_v42 = vld [vmem:[#allocation3 + $0x20c] ss:$16 sps:$4 sm:$0xff]  }
 0x703   :  { %5172 = vmatprep.mubr.bf16.mxu1 %v17608_v60  ;;  %v17687_v60 = vld [vmem:[#allocation3 + $0x208] ss:$16 sps:$4 sm:$0xff]  }
 0x70a   :  { %5173 = vmatmul.mubr.bf16.gmra.mrb[20].mxu1 %v17606_v37  ;;  %v17692_v37 = vld [vmem:[#allocation3 + $0x22c] ss:$16 sps:$4 sm:$0xff]  }
 0x70b   :  { %5180 = vmatprep.mubr.bf16.mxu1 %v17611_v41  ;;  %v17690_v41 = vld [vmem:[#allocation3 + $0x228] ss:$16 sps:$4 sm:$0xff]  }
 0x712   :  { %5181 = vmatmul.mubr.bf16.gmra.mrb[24].mxu1 %v17609_v59  ;;  %v17695_v59 = vld [vmem:[#allocation3 + $0x24c] ss:$16 sps:$4 sm:$0xff]  }
 0x713   :  { %5188 = vmatprep.mubr.bf16.mxu1 %v17614_v43  ;;  %v17693_v43 = vld [vmem:[#allocation3 + $0x248] ss:$16 sps:$4 sm:$0xff]  }
 0x71a   :  { %5189 = vmatmul.mubr.bf16.gmra.mrb[28].mxu1 %v17612_v10  ;;  %v17698_v10 = vld [vmem:[#allocation3 + $0x26c] ss:$16 sps:$4 sm:$0xff]  }
 0x71b   :  { %5196 = vmatprep.mubr.bf16.mxu1 %v17617_v25  ;;  %v17696_v25 = vld [vmem:[#allocation3 + $0x268] ss:$16 sps:$4 sm:$0xff]  }
 0x722   :  { %5197 = vmatmul.mubr.bf16.gmra.mrb[32].mxu1 %v17615_v44  ;;  %v17701_v44 = vld [vmem:[#allocation3 + $0x28c] ss:$16 sps:$4 sm:$0xff]  }
 0x723   :  { %5204 = vmatprep.mubr.bf16.mxu1 %v17620_v63  ;;  %v17699_v63 = vld [vmem:[#allocation3 + $0x288] ss:$16 sps:$4 sm:$0xff]  }
 0x72a   :  { %5205 = vmatmul.mubr.bf16.gmra.mrb[36].mxu1 %v17618_v15  ;;  %v17704_v15 = vld [vmem:[#allocation3 + $0x2ac] ss:$16 sps:$4 sm:$0xff]  }
 0x72b   :  { %5212 = vmatprep.mubr.bf16.mxu1 %v17623_v46  ;;  %v17702_v46 = vld [vmem:[#allocation3 + $0x2a8] ss:$16 sps:$4 sm:$0xff]  }
 0x732   :  { %5213 = vmatmul.mubr.bf16.gmra.mrb[40].mxu1 %v17621_v48  ;;  %v17707_v48 = vld [vmem:[#allocation3 + $0x2cc] ss:$16 sps:$4 sm:$0xff]  }
 0x733   :  { %5220 = vmatprep.mubr.bf16.mxu1 %v17626_v45  ;;  %v17705_v45 = vld [vmem:[#allocation3 + $0x2c8] ss:$16 sps:$4 sm:$0xff]  }
 0x73a   :  { %5221 = vmatmul.mubr.bf16.gmra.mrb[44].mxu1 %v17624_v51  ;;  %v17710_v51 = vld [vmem:[#allocation3 + $0x2ec] ss:$16 sps:$4 sm:$0xff]  }
 0x73b   :  { %5228 = vmatprep.mubr.bf16.mxu1 %v17629_v55  ;;  %v17708_v55 = vld [vmem:[#allocation3 + $0x2e8] ss:$16 sps:$4 sm:$0xff]  }
 0x742   :  { %5229 = vmatmul.mubr.bf16.gmra.mrb[48].mxu1 %v17627_v2  ;;  %v17713_v2 = vld [vmem:[#allocation3 + $0x30c] ss:$16 sps:$4 sm:$0xff]  }
 0x743   :  { %5236 = vmatprep.mubr.bf16.mxu1 %v17632_v58  ;;  %v17711_v58 = vld [vmem:[#allocation3 + $0x308] ss:$16 sps:$4 sm:$0xff]  }
 0x74a   :  { %5237 = vmatmul.mubr.bf16.gmra.mrb[52].mxu1 %v17630_v54  ;;  %v17718_v54 = vld [vmem:[#allocation3 + $0x32c] ss:$16 sps:$4 sm:$0xff]  }
 0x74b   :  { %5244 = vmatprep.mubr.bf16.mxu1 %v17635_v28  ;;  %v17716_v28 = vld [vmem:[#allocation3 + $0x328] ss:$16 sps:$4 sm:$0xff]  }
 0x752   :  { %5245 = vmatmul.mubr.bf16.gmra.mrb[56].mxu1 %v17633_v6  ;;  %v17723_v6 = vld [vmem:[#allocation3 + $0x34c] ss:$16 sps:$4 sm:$0xff]  }
 0x753   :  { %5252 = vmatprep.mubr.bf16.mxu1 %v17638_v61  ;;  %v17721_v61 = vld [vmem:[#allocation3 + $0x348] ss:$16 sps:$4 sm:$0xff]  }
 0x75a   :  { %5253 = vmatmul.mubr.bf16.gmra.mrb[60].mxu1 %v17636_v62  ;;  %v17728_v62 = vld [vmem:[#allocation3 + $0x36c] ss:$16 sps:$4 sm:$0xff]  }
 0x75b   :  { %5293 = vmatprep.mubr.bf16.mxu1 %v17641_v3 }
 0x762   :  { %5294 = vmatmul.mubr.bf16.vlgmr.msra.gmra.mrb[192].mxu1 %v17639_v4 }
 0x763   :  { %5301 = vmatprep.mubr.bf16.mxu1 %v17642_v1  ;;  %v17726_v1 = vld [vmem:[#allocation3 + $0x368] ss:$16 sps:$4 sm:$0xff]  }
 0x76a   :  { %5302 = vmatmul.mubr.bf16.gmra.mrb[196].mxu1 %v17644_v8 }
 0x76b   :  { %5309 = vmatprep.mubr.bf16.mxu1 %v17645_v7  ;;  %v17733_v7 = vld [vmem:[#allocation3 + $0x38c] ss:$16 sps:$4 sm:$0xff]  }
 0x772   :  { %5310 = vmatmul.mubr.bf16.gmra.mrb[200].mxu1 %v17647_v47 }
 0x773   :  { %5317 = vmatprep.mubr.bf16.mxu1 %v17648_v12 }
 0x77a   :  { %5318 = vmatmul.mubr.bf16.gmra.mrb[204].mxu1 %v17650_v5 }
 0x77b   :  { %5325 = vmatprep.mubr.bf16.mxu1 %v17651_v23 }
 0x782   :  { %5326 = vmatmul.mubr.bf16.gmra.mrb[208].mxu1 %v17653_v50  ;;  %v17731_v50 = vld [vmem:[#allocation3 + $0x388] ss:$16 sps:$4 sm:$0xff]  }
 0x783   :  { %5333 = vmatprep.mubr.bf16.mxu1 %v17654_v11 }
 0x78a   :  { %5334 = vmatmul.mubr.bf16.gmra.mrb[212].mxu1 %v17656_v30  ;;  %v17736_v30 = vld [vmem:[#allocation3 + $0x3ac] ss:$16 sps:$4 sm:$0xff]  }
 0x78b   :  { %5341 = vmatprep.mubr.bf16.mxu1 %v17657_v14 }
 0x792   :  { %5342 = vmatmul.mubr.bf16.gmra.mrb[216].mxu1 %v17659_v16 }
 0x793   :  { %5349 = vmatprep.mubr.bf16.mxu1 %v17660_v17 }
 0x79a   :  { %5350 = vmatmul.mubr.bf16.gmra.mrb[220].mxu1 %v17662_v57 }
 0x79b   :  { %5357 = vmatprep.mubr.bf16.mxu1 %v17663_v18  ;;  %v17734_v18 = vld [vmem:[#allocation3 + $0x3a8] ss:$16 sps:$4 sm:$0xff]  }
 0x7a2   :  { %5358 = vmatmul.mubr.bf16.gmra.mrb[224].mxu1 %v17665_v35 }
 0x7a3   :  { %5365 = vmatprep.mubr.bf16.mxu1 %v17666_v53  ;;  %v17739_v53 = vld [vmem:[#allocation3 + $0x3cc] ss:$16 sps:$4 sm:$0xff]  }
 0x7aa   :  { %5366 = vmatmul.mubr.bf16.gmra.mrb[228].mxu1 %v17668_v21 }
 0x7ab   :  { %5373 = vmatprep.mubr.bf16.mxu1 %v17669_v9 }
 0x7b2   :  { %5374 = vmatmul.mubr.bf16.gmra.mrb[232].mxu1 %v17671_v13  ;;  %v17742_v13 = vld [vmem:[#allocation3 + $0x3ec] ss:$16 sps:$4 sm:$0xff]  }
 0x7b3   :  { %5381 = vmatprep.mubr.bf16.mxu1 %v17672_v26 }
 0x7ba   :  { %5382 = vmatmul.mubr.bf16.gmra.mrb[236].mxu1 %v17674_v31 }
 0x7bb   :  { %5389 = vmatprep.mubr.bf16.mxu1 %v17675_v27  ;;  %v17740_v27 = vld [vmem:[#allocation3 + $0x3e8] ss:$16 sps:$4 sm:$0xff]  }
 0x7c2   :  { %5390 = vmatmul.mubr.bf16.gmra.mrb[240].mxu1 %v17677_v32 }
 0x7c3   :  { %5397 = vmatprep.mubr.bf16.mxu1 %v17678_v33 }
 0x7ca   :  { %5398 = vmatmul.mubr.bf16.gmra.mrb[244].mxu1 %v17680_v20 }
 0x7cb   :  { %5405 = vmatprep.mubr.bf16.mxu1 %v17681_v34 }
 0x7d2   :  { %5406 = vmatmul.mubr.bf16.gmra.mrb[248].mxu1 %v17683_v38 }
 0x7d3   :  { %5413 = vmatprep.mubr.bf16.mxu1 %v17684_v49 }
 0x7da   :  { %5414 = vmatmul.mubr.bf16.gmra.mrb[252].mxu1 %v17686_v40 }
 0x7db   :  { %5421 = vmatprep.mubr.bf16.mxu1 %v17689_v42 }
 0x7e2   :  { %5422 = vmatmul.mubr.bf16.gmra.mrb[0].mxu1 %v17687_v60 }
 0x7e3   :  { %5429 = vmatprep.mubr.bf16.mxu1 %v17692_v37 }
 0x7ea   :  { %5430 = vmatmul.mubr.bf16.gmra.mrb[4].mxu1 %v17690_v41 }
 0x7eb   :  { %5437 = vmatprep.mubr.bf16.mxu1 %v17695_v59 }
 0x7f2   :  { %5438 = vmatmul.mubr.bf16.gmra.mrb[8].mxu1 %v17693_v43 }
 0x7f3   :  { %5445 = vmatprep.mubr.bf16.mxu1 %v17698_v10 }
 0x7fa   :  { %5446 = vmatmul.mubr.bf16.gmra.mrb[12].mxu1 %v17696_v25 }
 0x7fb   :  { %5453 = vmatprep.mubr.bf16.mxu1 %v17701_v44 }
 0x802   :  { %5454 = vmatmul.mubr.bf16.gmra.mrb[16].mxu1 %v17699_v63 }
 0x803   :  { %5461 = vmatprep.mubr.bf16.mxu1 %v17704_v15 }
 0x80a   :  { %5462 = vmatmul.mubr.bf16.gmra.mrb[20].mxu1 %v17702_v46 }
 0x80b   :  { %5469 = vmatprep.mubr.bf16.mxu1 %v17707_v48 }
 0x812   :  { %5470 = vmatmul.mubr.bf16.gmra.mrb[24].mxu1 %v17705_v45 }
 0x813   :  { %5477 = vmatprep.mubr.bf16.mxu1 %v17710_v51 }
 0x81a   :  { %5478 = vmatmul.mubr.bf16.gmra.mrb[28].mxu1 %v17708_v55 }
 0x81b   :  { %5485 = vmatprep.mubr.bf16.mxu1 %v17713_v2 }
 0x822   :  { %5486 = vmatmul.mubr.bf16.gmra.mrb[32].mxu1 %v17711_v58 }
 0x823   :  { %5493 = vmatprep.mubr.bf16.mxu1 %v17718_v54 }
 0x82a   :  { %5494 = vmatmul.mubr.bf16.gmra.mrb[36].mxu1 %v17716_v28 }
 0x82b   :  { %5501 = vmatprep.mubr.bf16.mxu1 %v17723_v6 }
 0x832   :  { %5502 = vmatmul.mubr.bf16.gmra.mrb[40].mxu1 %v17721_v61 }
 0x833   :  { %5509 = vmatprep.mubr.bf16.mxu1 %v17728_v62 }
 0x835   :  { %v5295_v3 = vpop.f32.mrb[192].mxu1 }
 0x836   :  { %v5297_v4 = vpop.f32.mrb[193].mxu1 }
 0x837   :  { %v5298_v8 = vpop.f32.mrb[194].mxu1 }
 0x838   :  { %v5300_v47 = vpop.f32.mrb[195].mxu1  ;;  %v5550_v12 = vpack.c.bf16 %v5298_v8, %v5295_v3 }
 0x83a   :  { %5510 = vmatmul.mubr.bf16.gmra.mrb[44].mxu1 %v17726_v1  ;;  %15832 = vmatprep.mubr.bf16.mxu0 %v5550_v12 }
 0x83b   :  { %5517 = vmatprep.mubr.bf16.mxu1 %v17733_v7 }
 0x83d   :  { %v5303_v5 = vpop.f32.mrb[196].mxu1 }
 0x83e   :  { %v5305_v23 = vpop.f32.mrb[197].mxu1 }
 0x83f   :  { %v5306_v11 = vpop.f32.mrb[198].mxu1 }
 0x840   :  { %v5551_v14 = vpack.c.bf16 %v5306_v11, %v5303_v5  ;;  %v5308_v16 = vpop.f32.mrb[199].mxu1 }
 0x842   :  { %5518 = vmatmul.mubr.bf16.gmra.mrb[48].mxu1 %v17731_v50  ;;  %15833 = vmatmul.mubr.bf16.vlgmr.msra.gmra.mrb[24].mxu0 %v5551_v14 }
 0x843   :  { %5525 = vmatprep.mubr.bf16.mxu1 %v17736_v30 }
 0x845   :  { %v5311_v17 = vpop.f32.mrb[200].mxu1 }
 0x846   :  { %v5313_v57 = vpop.f32.mrb[201].mxu1 }
 0x847   :  { %v5314_v35 = vpop.f32.mrb[202].mxu1 }
 0x848   :  { %v5316_v19 = vpop.f32.mrb[203].mxu1  ;;  %v5552_v22 = vpack.c.bf16 %v5314_v35, %v5311_v17 }
 0x84a   :  { %5526 = vmatmul.mubr.bf16.gmra.mrb[52].mxu1 %v17734_v18  ;;  %15836 = vmatprep.mubr.bf16.mxu0 %v5552_v22 }
 0x84b   :  { %5533 = vmatprep.mubr.bf16.mxu1 %v17739_v53 }
 0x84d   :  { %v5319_v21 = vpop.f32.mrb[204].mxu1 }
 0x84e   :  { %v5321_v9 = vpop.f32.mrb[205].mxu1 }
 0x84f   :  { %v5322_v24 = vpop.f32.mrb[206].mxu1 }
 0x850   :  { %v5553_v26 = vpack.c.bf16 %v5322_v24, %v5319_v21  ;;  %v5324_v39 = vpop.f32.mrb[207].mxu1 }
 0x852   :  { %5534 = vmatmul.mubr.bf16.gmra.mrb[56].mxu1 %v17737_v52  ;;  %15837 = vmatmul.mubr.bf16.gmra.mrb[28].mxu0 %v5553_v26 }
 0x853   :  { %5541 = vmatprep.mubr.bf16.mxu1 %v17742_v13 }
 0x855   :  { %v5327_v56 = vpop.f32.mrb[208].mxu1 }
 0x856   :  { %v5329_v31 = vpop.f32.mrb[209].mxu1 }
 0x857   :  { %v5330_v29 = vpop.f32.mrb[210].mxu1 }
 0x858   :  { %v5332_v36 = vpop.f32.mrb[211].mxu1  ;;  %v5554_v32 = vpack.c.bf16 %v5330_v29, %v5327_v56 }
 0x85a   :  { %5542 = vmatmul.mubr.bf16.gmra.mrb[60].mxu1 %v17740_v27  ;;  %15840 = vmatprep.mubr.bf16.mxu0 %v5554_v32 }
 0x85d   :  { %v5335_v33 = vpop.f32.mrb[212].mxu1 }
 0x85e   :  { %v5337_v20 = vpop.f32.mrb[213].mxu1 }
 0x85f   :  { %v5338_v34 = vpop.f32.mrb[214].mxu1 }
 0x860   :  { %v5555_v38 = vpack.c.bf16 %v5338_v34, %v5335_v33  ;;  %v5340_v49 = vpop.f32.mrb[215].mxu1 }
 0x862   :  { %15841 = vmatmul.mubr.bf16.gmra.mrb[32].mxu0 %v5555_v38 }
 0x865   :  { %v5343_v40 = vpop.f32.mrb[216].mxu1 }
 0x866   :  { %v5345_v42 = vpop.f32.mrb[217].mxu1 }
 0x867   :  { %v5346_v60 = vpop.f32.mrb[218].mxu1 }
 0x868   :  { %v5348_v37 = vpop.f32.mrb[219].mxu1  ;;  %v5556_v41 = vpack.c.bf16 %v5346_v60, %v5343_v40 }
 0x86a   :  { %15844 = vmatprep.mubr.bf16.mxu0 %v5556_v41 }
 0x86d   :  { %v5351_v59 = vpop.f32.mrb[220].mxu1 }
 0x86e   :  { %v5353_v43 = vpop.f32.mrb[221].mxu1 }
 0x86f   :  { %v5354_v10 = vpop.f32.mrb[222].mxu1 }
 0x870   :  { %v5557_v25 = vpack.c.bf16 %v5354_v10, %v5351_v59  ;;  %v5356_v44 = vpop.f32.mrb[223].mxu1 }
 0x872   :  { %15845 = vmatmul.mubr.bf16.gmra.mrb[36].mxu0 %v5557_v25 }
 0x875   :  { %v5359_v63 = vpop.f32.mrb[224].mxu1 }
 0x876   :  { %v5361_v15 = vpop.f32.mrb[225].mxu1 }
 0x877   :  { %v5362_v46 = vpop.f32.mrb[226].mxu1 }
 0x878   :  { %v5364_v48 = vpop.f32.mrb[227].mxu1  ;;  %v5558_v45 = vpack.c.bf16 %v5362_v46, %v5359_v63 }
 0x87a   :  { %15848 = vmatprep.mubr.bf16.mxu0 %v5558_v45 }
 0x87d   :  { %v5367_v51 = vpop.f32.mrb[228].mxu1 }
 0x87e   :  { %v5369_v55 = vpop.f32.mrb[229].mxu1 }
 0x87f   :  { %v5370_v2 = vpop.f32.mrb[230].mxu1 }
 0x880   :  { %v5559_v58 = vpack.c.bf16 %v5370_v2, %v5367_v51  ;;  %v5372_v54 = vpop.f32.mrb[231].mxu1 }
 0x882   :  { %15849 = vmatmul.mubr.bf16.gmra.mrb[40].mxu0 %v5559_v58 }
 0x885   :  { %v5375_v28 = vpop.f32.mrb[232].mxu1 }
 0x886   :  { %v5377_v6 = vpop.f32.mrb[233].mxu1 }
 0x887   :  { %v5378_v61 = vpop.f32.mrb[234].mxu1 }
 0x888   :  { %v5380_v62 = vpop.f32.mrb[235].mxu1  ;;  %v5560_v3 = vpack.c.bf16 %v5378_v61, %v5375_v28 }
 0x88a   :  { %15852 = vmatprep.mubr.bf16.mxu0 %v5560_v3 }
 0x88d   :  { %v5383_v4 = vpop.f32.mrb[236].mxu1 }
 0x88e   :  { %v5385_v1 = vpop.f32.mrb[237].mxu1 }
 0x88f   :  { %v5386_v8 = vpop.f32.mrb[238].mxu1 }
 0x890   :  { %v5561_v7 = vpack.c.bf16 %v5386_v8, %v5383_v4  ;;  %v5388_v47 = vpop.f32.mrb[239].mxu1 }
 0x892   :  { %15853 = vmatmul.mubr.bf16.gmra.mrb[44].mxu0 %v5561_v7 }
 0x895   :  { %v5391_v12 = vpop.f32.mrb[240].mxu1 }
 0x896   :  { %v5393_v5 = vpop.f32.mrb[241].mxu1 }
 0x897   :  { %v5394_v23 = vpop.f32.mrb[242].mxu1 }
 0x898   :  { %v5396_v50 = vpop.f32.mrb[243].mxu1  ;;  %v5562_v11 = vpack.c.bf16 %v5394_v23, %v5391_v12 }
 0x89a   :  { %15856 = vmatprep.mubr.bf16.mxu0 %v5562_v11 }
 0x89d   :  { %v5399_v30 = vpop.f32.mrb[244].mxu1 }
 0x89e   :  { %v5401_v14 = vpop.f32.mrb[245].mxu1 }
 0x89f   :  { %v5402_v16 = vpop.f32.mrb[246].mxu1 }
 0x8a0   :  { %v5563_v17 = vpack.c.bf16 %v5402_v16, %v5399_v30  ;;  %v5404_v57 = vpop.f32.mrb[247].mxu1 }
 0x8a2   :  { %15857 = vmatmul.mubr.bf16.gmra.mrb[48].mxu0 %v5563_v17 }
 0x8a5   :  { %v5407_v18 = vpop.f32.mrb[248].mxu1 }
 0x8a6   :  { %v5409_v35 = vpop.f32.mrb[249].mxu1 }
 0x8a7   :  { %v5410_v53 = vpop.f32.mrb[250].mxu1 }
 0x8a8   :  { %v5412_v19 = vpop.f32.mrb[251].mxu1  ;;  %v5564_v22 = vpack.c.bf16 %v5410_v53, %v5407_v18 }
 0x8aa   :  { %15860 = vmatprep.mubr.bf16.mxu0 %v5564_v22 }
 0x8ad   :  { %v5415_v21 = vpop.f32.mrb[252].mxu1 }
 0x8ae   :  { %v5417_v9 = vpop.f32.mrb[253].mxu1 }
 0x8af   :  { %v5418_v52 = vpop.f32.mrb[254].mxu1 }
 0x8b0   :  { %v5565_v24 = vpack.c.bf16 %v5418_v52, %v5415_v21  ;;  %v5420_v13 = vpop.f32.mrb[255].mxu1  ;;  %v19357_v52 = vld [vmem:[%s20612_s3 + $0x2] ss:$0 sm:$0xff] }
 0x8b2   :  { %15861 = vmatmul.mubr.bf16.gmra.mrb[52].mxu0 %v5565_v24 }
 0x8b5   :  { %v5423_v26 = vpop.f32.mrb[0].mxu1 }
 0x8b6   :  { %v5425_v39 = vpop.f32.mrb[1].mxu1 }
 0x8b7   :  { %v5426_v56 = vpop.f32.mrb[2].mxu1 }
 0x8b8   :  { %v5566_v31 = vpack.c.bf16 %v5426_v56, %v5423_v26  ;;  %v5428_v27 = vpop.f32.mrb[3].mxu1 }
 0x8ba   :  { %15864 = vmatprep.mubr.bf16.mxu0 %v5566_v31 }
 0x8bd   :  { %v5431_v29 = vpop.f32.mrb[4].mxu1 }
 0x8be   :  { %v5433_v36 = vpop.f32.mrb[5].mxu1 }
 0x8bf   :  { %v5434_v32 = vpop.f32.mrb[6].mxu1 }
 0x8c0   :  { %v5567_v33 = vpack.c.bf16 %v5434_v32, %v5431_v29  ;;  %v5436_v20 = vpop.f32.mrb[7].mxu1 }
 0x8c2   :  { %15865 = vmatmul.mubr.bf16.gmra.mrb[56].mxu0 %v5567_v33 }
 0x8c5   :  { %v5439_v34 = vpop.f32.mrb[8].mxu1 }
 0x8c6   :  { %v5441_v38 = vpop.f32.mrb[9].mxu1 }
 0x8c7   :  { %v5442_v49 = vpop.f32.mrb[10].mxu1 }
 0x8c8   :  { %v5568_v40 = vpack.c.bf16 %v5442_v49, %v5439_v34  ;;  %v5444_v42 = vpop.f32.mrb[11].mxu1 }
 0x8ca   :  { %15868 = vmatprep.mubr.bf16.mxu0 %v5568_v40 }
 0x8cd   :  { %v5447_v60 = vpop.f32.mrb[12].mxu1 }
 0x8ce   :  { %v5449_v37 = vpop.f32.mrb[13].mxu1 }
 0x8cf   :  { %v5450_v41 = vpop.f32.mrb[14].mxu1 }
 0x8d0   :  { %v5569_v59 = vpack.c.bf16 %v5450_v41, %v5447_v60  ;;  %v5452_v43 = vpop.f32.mrb[15].mxu1 }
 0x8d2   :  { %15869 = vmatmul.mubr.bf16.gmra.mrb[60].mxu0 %v5569_v59 }
 0x8d5   :  { %v5455_v10 = vpop.f32.mrb[16].mxu1 }
 0x8d6   :  { %v5457_v25 = vpop.f32.mrb[17].mxu1 }
 0x8d7   :  { %v5458_v44 = vpop.f32.mrb[18].mxu1 }
 0x8d8   :  { %v5570_v63 = vpack.c.bf16 %v5458_v44, %v5455_v10  ;;  %v5460_v15 = vpop.f32.mrb[19].mxu1 }
 0x8da   :  { %15872 = vmatprep.mubr.bf16.mxu0 %v5570_v63 }
 0x8dd   :  { %v5463_v46 = vpop.f32.mrb[20].mxu1 }
 0x8de   :  { %v5465_v48 = vpop.f32.mrb[21].mxu1 }
 0x8df   :  { %v5466_v45 = vpop.f32.mrb[22].mxu1 }
 0x8e0   :  { %v5571_v51 = vpack.c.bf16 %v5466_v45, %v5463_v46  ;;  %v5468_v55 = vpop.f32.mrb[23].mxu1 }
 0x8e2   :  { %15873 = vmatmul.mubr.bf16.gmra.mrb[64].mxu0 %v5571_v51 }
 0x8e5   :  { %v5471_v2 = vpop.f32.mrb[24].mxu1 }
 0x8e6   :  { %v5473_v58 = vpop.f32.mrb[25].mxu1 }
 0x8e7   :  { %v5474_v54 = vpop.f32.mrb[26].mxu1 }
 0x8e8   :  { %v5572_v28 = vpack.c.bf16 %v5474_v54, %v5471_v2  ;;  %v5476_v6 = vpop.f32.mrb[27].mxu1 }
 0x8ea   :  { %15876 = vmatprep.mubr.bf16.mxu0 %v5572_v28 }
 0x8ed   :  { %v5479_v61 = vpop.f32.mrb[28].mxu1 }
 0x8ee   :  { %v5481_v62 = vpop.f32.mrb[29].mxu1 }
 0x8ef   :  { %v5482_v3 = vpop.f32.mrb[30].mxu1 }
 0x8f0   :  { %v5573_v4 = vpack.c.bf16 %v5482_v3, %v5479_v61  ;;  %v5484_v1 = vpop.f32.mrb[31].mxu1 }
 0x8f2   :  { %15877 = vmatmul.mubr.bf16.gmra.mrb[68].mxu0 %v5573_v4 }
 0x8f5   :  { %v5487_v8 = vpop.f32.mrb[32].mxu1 }
 0x8f6   :  { %v5489_v7 = vpop.f32.mrb[33].mxu1 }
 0x8f7   :  { %v5490_v47 = vpop.f32.mrb[34].mxu1 }
 0x8f8   :  { %v5574_v12 = vpack.c.bf16 %v5490_v47, %v5487_v8  ;;  %v5492_v5 = vpop.f32.mrb[35].mxu1 }
 0x8f9   :  { %v17745_v5 = vld [vmem:[#allocation3 + $0x4] ss:$16 sps:$4 sm:$0xff]  }
 0x8fa   :  { %15880 = vmatprep.mubr.bf16.mxu0 %v5574_v12 }
 0x8fd   :  { %v5495_v23 = vpop.f32.mrb[36].mxu1 }
 0x8fe   :  { %v5497_v50 = vpop.f32.mrb[37].mxu1 }
 0x8ff   :  { %v5498_v11 = vpop.f32.mrb[38].mxu1 }
 0x900   :  { %v5575_v30 = vpack.c.bf16 %v5498_v11, %v5495_v23  ;;  %v5500_v14 = vpop.f32.mrb[39].mxu1 }
 0x902   :  { %15881 = vmatmul.mubr.bf16.gmra.mrb[72].mxu0 %v5575_v30 }
 0x905   :  { %v5503_v16 = vpop.f32.mrb[40].mxu1 }
 0x906   :  { %v5505_v17 = vpop.f32.mrb[41].mxu1 }
 0x907   :  { %v5506_v57 = vpop.f32.mrb[42].mxu1 }
 0x908   :  { %v5576_v18 = vpack.c.bf16 %v5506_v57, %v5503_v16  ;;  %v5508_v35 = vpop.f32.mrb[43].mxu1 }
 0x90a   :  { %15884 = vmatprep.mubr.bf16.mxu0 %v5576_v18 }
 0x90d   :  { %v5511_v53 = vpop.f32.mrb[44].mxu1 }
 0x90e   :  { %v5513_v19 = vpop.f32.mrb[45].mxu1 }
 0x90f   :  { %v5514_v22 = vpop.f32.mrb[46].mxu1 }
 0x910   :  { %v5577_v21 = vpack.c.bf16 %v5514_v22, %v5511_v53  ;;  %v5516_v9 = vpop.f32.mrb[47].mxu1 }
 0x912   :  { %15885 = vmatmul.mubr.bf16.gmra.mrb[76].mxu0 %v5577_v21 }
 0x915   :  { %v5519_v24 = vpop.f32.mrb[48].mxu1  ;;  %v15834_v13 = vpop.f32.mrb[24].mxu0 }
 0x916   :  { %v5679_v26 = vadd.f32 %v15834_v13, %v19357_v52  ;;  %v5521_v39 = vpop.f32.mrb[49].mxu1  ;;  %v5670_v56 = vpop.f32.mrb[25].mxu0 }
 0x917   :  { %v5671_v31 = vadd.f32 %v19357_v52, %v5670_v56  ;;  %v5522_v27 = vpop.f32.mrb[50].mxu1  ;;  %v15835_v29 = vpop.f32.mrb[26].mxu0 }
 0x918   :  { %v5578_v36 = vpack.c.bf16 %v5522_v27, %v5519_v24  ;;  %v5682_v32 = vadd.f32 %v15835_v29, %v19357_v52  ;;  %v5524_v33 = vpop.f32.mrb[51].mxu1  ;;  %v5673_v20 = vpop.f32.mrb[27].mxu0  ;;  %v5927_v38 = vmax.f32 %v5679_v26, 0.0 }
 0x919   :  { %v5674_v34 = vadd.f32 %v19357_v52, %v5673_v20  ;;  %v5925_v40 = vmax.f32 %v5671_v31, 0.0 }
 0x91a   :  { %v5928_v49 = vmax.f32 %v5682_v32, 0.0  ;;  %15888 = vmatprep.mubr.bf16.mxu0 %v5578_v36 }
 0x91b   :  { %v5926_v42 = vmax.f32 %v5674_v34, 0.0 }
 0x91c   :  { %v5990_v60 = vpack.c.bf16 %v5928_v49, %v5927_v38 }
 0x91d   :  { %v5527_v37 = vpop.f32.mrb[52].mxu1  ;;  %v5989_v41 = vpack.c.bf16 %v5926_v42, %v5925_v40 }
 0x91e   :  { %v5529_v59 = vpop.f32.mrb[53].mxu1 }
 0x91f   :  { %v5530_v43 = vpop.f32.mrb[54].mxu1  ;;  %6873 = vmatpush1.bf16.msra.mxu0 %v5989_v41 }
 0x920   :  { %v5579_v10 = vpack.c.bf16 %v5530_v43, %v5527_v37  ;;  %v5532_v25 = vpop.f32.mrb[55].mxu1  ;;  %6874 = vmatprep.subr.bf16.mxu0 %v18900_v0 }
 0x922   :  { %15889 = vmatmul.mubr.bf16.gmra.mrb[80].mxu0 %v5579_v10 }
 0x923   :  { %6875 = vmatpush1.bf16.msra.mxu0 %v5990_v60 }
 0x924   :  { %6876 = vmatprep.subr.bf16.mxu0 %v18900_v0 }
 0x925   :  { %v5535_v44 = vpop.f32.mrb[56].mxu1  ;;  %v15838_v63 = vpop.f32.mrb[28].mxu0 }
 0x926   :  { %v5695_v15 = vadd.f32 %v15838_v63, %v19357_v52  ;;  %v5537_v46 = vpop.f32.mrb[57].mxu1  ;;  %v5686_v48 = vpop.f32.mrb[29].mxu0 }
 0x927   :  { %v5687_v45 = vadd.f32 %v19357_v52, %v5686_v48  ;;  %v5538_v51 = vpop.f32.mrb[58].mxu1  ;;  %v15839_v55 = vpop.f32.mrb[30].mxu0 }
 0x928   :  { %v5580_v2 = vpack.c.bf16 %v5538_v51, %v5535_v44  ;;  %v5698_v58 = vadd.f32 %v15839_v55, %v19357_v52  ;;  %v5540_v54 = vpop.f32.mrb[59].mxu1  ;;  %v5689_v28 = vpop.f32.mrb[31].mxu0  ;;  %v5931_v61 = vmax.f32 %v5695_v15, 0.0 }
 0x929   :  { %v5690_v6 = vadd.f32 %v19357_v52, %v5689_v28  ;;  %v5929_v3 = vmax.f32 %v5687_v45, 0.0 }
 0x92a   :  { %v5932_v62 = vmax.f32 %v5698_v58, 0.0  ;;  %15892 = vmatprep.mubr.bf16.mxu0 %v5580_v2 }
 0x92b   :  { %v5930_v4 = vmax.f32 %v5690_v6, 0.0 }
 0x92c   :  { %v5992_v1 = vpack.c.bf16 %v5932_v62, %v5931_v61 }
 0x92d   :  { %v5543_v8 = vpop.f32.mrb[60].mxu1  ;;  %v5991_v7 = vpack.c.bf16 %v5930_v4, %v5929_v3 }
 0x92e   :  { %v5545_v47 = vpop.f32.mrb[61].mxu1 }
 0x92f   :  { %v5546_v12 = vpop.f32.mrb[62].mxu1  ;;  %6877 = vmatpush1.bf16.msra.mxu0 %v5991_v7 }
 0x930   :  { %v5581_v23 = vpack.c.bf16 %v5546_v12, %v5543_v8  ;;  %v5548_v50 = vpop.f32.mrb[63].mxu1  ;;  %6878 = vmatprep.subr.bf16.mxu0 %v18900_v0 }
 0x932   :  { %15893 = vmatmul.mubr.bf16.gmra.mrb[84].mxu0 %v5581_v23 }
 0x933   :  { %6879 = vmatpush1.bf16.msra.mxu0 %v5992_v1  ;;  %6904 = vmatprep.mubr.bf16.mxu0 %v17745_v5 }
 0x934   :  { %6880 = vmatprep.subr.bf16.mxu0 %v18900_v0 }
 0x935   :  { %v15842_v11 = vpop.f32.mrb[32].mxu0 }
 0x936   :  { %v5711_v30 = vadd.f32 %v15842_v11, %v19357_v52  ;;  %v5702_v14 = vpop.f32.mrb[33].mxu0 }
 0x937   :  { %v5703_v16 = vadd.f32 %v19357_v52, %v5702_v14  ;;  %v15843_v17 = vpop.f32.mrb[34].mxu0 }
 0x938   :  { %v5714_v57 = vadd.f32 %v15843_v17, %v19357_v52  ;;  %v5705_v18 = vpop.f32.mrb[35].mxu0  ;;  %v5935_v53 = vmax.f32 %v5711_v30, 0.0 }
 0x939   :  { %v5706_v35 = vadd.f32 %v19357_v52, %v5705_v18  ;;  %v5933_v22 = vmax.f32 %v5703_v16, 0.0 }
 0x93a   :  { %v5936_v19 = vmax.f32 %v5714_v57, 0.0 }
 0x93b   :  { %v5934_v21 = vmax.f32 %v5706_v35, 0.0 }
 0x93c   :  { %v5994_v9 = vpack.c.bf16 %v5936_v19, %v5935_v53 }
 0x93d   :  { %v5993_v24 = vpack.c.bf16 %v5934_v21, %v5933_v22 }
 0x93f   :  { %6881 = vmatpush1.bf16.msra.mxu0 %v5993_v24 }
 0x940   :  { %6882 = vmatprep.subr.bf16.mxu0 %v18900_v0 }
 0x943   :  { %6883 = vmatpush1.bf16.msra.mxu0 %v5994_v9 }
 0x944   :  { %6884 = vmatprep.subr.bf16.mxu0 %v18900_v0 }
 0x945   :  { %v15846_v13 = vpop.f32.mrb[36].mxu0 }
 0x946   :  { %v5727_v26 = vadd.f32 %v15846_v13, %v19357_v52  ;;  %v5718_v39 = vpop.f32.mrb[37].mxu0 }
 0x947   :  { %v5719_v56 = vadd.f32 %v19357_v52, %v5718_v39  ;;  %v15847_v31 = vpop.f32.mrb[38].mxu0 }
 0x948   :  { %v5730_v27 = vadd.f32 %v15847_v31, %v19357_v52  ;;  %v5721_v29 = vpop.f32.mrb[39].mxu0  ;;  %v5939_v32 = vmax.f32 %v5727_v26, 0.0 }
 0x949   :  { %v5722_v36 = vadd.f32 %v19357_v52, %v5721_v29  ;;  %v5937_v20 = vmax.f32 %v5719_v56, 0.0 }
 0x94a   :  { %v5940_v33 = vmax.f32 %v5730_v27, 0.0 }
 0x94b   :  { %v5938_v34 = vmax.f32 %v5722_v36, 0.0 }
 0x94c   :  { %v5996_v38 = vpack.c.bf16 %v5940_v33, %v5939_v32  ;;  %v17743_v32 = vld [vmem:[#allocation3] ss:$16 sps:$4 sm:$0xff]   ;;  %v17748_v33 = vld [vmem:[#allocation3 + $0x24] ss:$16 sps:$4 sm:$0xff]  }
 0x94d   :  { %v5995_v49 = vpack.c.bf16 %v5938_v34, %v5937_v20 }
 0x94f   :  { %6885 = vmatpush1.bf16.msra.mxu0 %v5995_v49 }
 0x950   :  { %6886 = vmatprep.subr.bf16.mxu0 %v18900_v0 }
 0x953   :  { %6887 = vmatpush1.bf16.msra.mxu0 %v5996_v38 }
 0x954   :  { %6888 = vmatprep.subr.bf16.mxu0 %v18900_v0 }
 0x955   :  { %v15850_v40 = vpop.f32.mrb[40].mxu0 }
 0x956   :  { %v5743_v42 = vadd.f32 %v15850_v40, %v19357_v52  ;;  %v5734_v60 = vpop.f32.mrb[41].mxu0 }
 0x957   :  { %v5735_v37 = vadd.f32 %v19357_v52, %v5734_v60  ;;  %v15851_v41 = vpop.f32.mrb[42].mxu0 }
 0x958   :  { %v5746_v59 = vadd.f32 %v15851_v41, %v19357_v52  ;;  %v5737_v43 = vpop.f32.mrb[43].mxu0  ;;  %v5943_v25 = vmax.f32 %v5743_v42, 0.0 }
 0x959   :  { %v5738_v10 = vadd.f32 %v19357_v52, %v5737_v43  ;;  %v5941_v63 = vmax.f32 %v5735_v37, 0.0  ;;  %v17746_v43 = vld [vmem:[#allocation3 + $0x20] ss:$16 sps:$4 sm:$0xff]  }
 0x95a   :  { %v5944_v44 = vmax.f32 %v5746_v59, 0.0 }
 0x95b   :  { %v5942_v15 = vmax.f32 %v5738_v10, 0.0 }
 0x95c   :  { %v5998_v46 = vpack.c.bf16 %v5944_v44, %v5943_v25  ;;  %v17751_v44 = vld [vmem:[#allocation3 + $0x44] ss:$16 sps:$4 sm:$0xff]  }
 0x95d   :  { %v5997_v48 = vpack.c.bf16 %v5942_v15, %v5941_v63 }
 0x95f   :  { %6889 = vmatpush1.bf16.msra.mxu0 %v5997_v48  ;;  %v17754_v48 = vld [vmem:[#allocation3 + $0x64] ss:$16 sps:$4 sm:$0xff]  }
 0x960   :  { %6890 = vmatprep.subr.bf16.mxu0 %v18900_v0 }
 0x963   :  { %6891 = vmatpush1.bf16.msra.mxu0 %v5998_v46  ;;  %v17749_v46 = vld [vmem:[#allocation3 + $0x40] ss:$16 sps:$4 sm:$0xff]  }
 0x964   :  { %6892 = vmatprep.subr.bf16.mxu0 %v18900_v0 }
 0x965   :  { %v15854_v45 = vpop.f32.mrb[44].mxu0 }
 0x966   :  { %v5759_v51 = vadd.f32 %v15854_v45, %v19357_v52  ;;  %v5750_v55 = vpop.f32.mrb[45].mxu0 }
 0x967   :  { %v5751_v2 = vadd.f32 %v19357_v52, %v5750_v55  ;;  %v15855_v58 = vpop.f32.mrb[46].mxu0 }
 0x968   :  { %v5762_v54 = vadd.f32 %v15855_v58, %v19357_v52  ;;  %v5753_v28 = vpop.f32.mrb[47].mxu0  ;;  %v5947_v61 = vmax.f32 %v5759_v51, 0.0 }
 0x969   :  { %v5754_v6 = vadd.f32 %v19357_v52, %v5753_v28  ;;  %v5945_v3 = vmax.f32 %v5751_v2, 0.0 }
 0x96a   :  { %v5948_v62 = vmax.f32 %v5762_v54, 0.0 }
 0x96b   :  { %v5946_v4 = vmax.f32 %v5754_v6, 0.0 }
 0x96c   :  { %v6000_v1 = vpack.c.bf16 %v5948_v62, %v5947_v61 }
 0x96d   :  { %v5999_v8 = vpack.c.bf16 %v5946_v4, %v5945_v3  ;;  %v17752_v3 = vld [vmem:[#allocation3 + $0x60] ss:$16 sps:$4 sm:$0xff]  }
 0x96f   :  { %6893 = vmatpush1.bf16.msra.mxu0 %v5999_v8  ;;  %v17757_v8 = vld [vmem:[#allocation3 + $0x84] ss:$16 sps:$4 sm:$0xff]  }
 0x970   :  { %6894 = vmatprep.subr.bf16.mxu0 %v18900_v0 }
 0x973   :  { %6895 = vmatpush1.bf16.msra.mxu0 %v6000_v1 }
 0x974   :  { %6896 = vmatprep.subr.bf16.mxu0 %v18900_v0 }
 0x975   :  { %v15858_v7 = vpop.f32.mrb[48].mxu0 }
 0x976   :  { %v5775_v47 = vadd.f32 %v15858_v7, %v19357_v52  ;;  %v5766_v12 = vpop.f32.mrb[49].mxu0 }
 0x977   :  { %v5767_v5 = vadd.f32 %v19357_v52, %v5766_v12  ;;  %v15859_v23 = vpop.f32.mrb[50].mxu0  ;;  %v17755_v12 = vld [vmem:[#allocation3 + $0x80] ss:$16 sps:$4 sm:$0xff]  }
 0x978   :  { %v5778_v50 = vadd.f32 %v15859_v23, %v19357_v52  ;;  %v5769_v11 = vpop.f32.mrb[51].mxu0  ;;  %v5951_v14 = vmax.f32 %v5775_v47, 0.0 }
 0x979   :  { %v5770_v30 = vadd.f32 %v19357_v52, %v5769_v11  ;;  %v5949_v17 = vmax.f32 %v5767_v5, 0.0  ;;  %v17760_v5 = vld [vmem:[#allocation3 + $0xa4] ss:$16 sps:$4 sm:$0xff]  }
 0x97a   :  { %v5952_v16 = vmax.f32 %v5778_v50, 0.0 }
 0x97b   :  { %v5950_v57 = vmax.f32 %v5770_v30, 0.0 }
 0x97c   :  { %v6002_v18 = vpack.c.bf16 %v5952_v16, %v5951_v14 }
 0x97d   :  { %v6001_v35 = vpack.c.bf16 %v5950_v57, %v5949_v17 }
 0x97f   :  { %6897 = vmatpush1.bf16.msra.mxu0 %v6001_v35 }
 0x980   :  { %6898 = vmatprep.subr.bf16.mxu0 %v18900_v0 }
 0x983   :  { %6899 = vmatpush1.bf16.msra.mxu0 %v6002_v18 }
 0x984   :  { %6900 = vmatprep.subr.bf16.mxu0 %v18900_v0 }
 0x985   :  { %v15862_v53 = vpop.f32.mrb[52].mxu0 }
 0x986   :  { %v5791_v19 = vadd.f32 %v15862_v53, %v19357_v52  ;;  %v5782_v22 = vpop.f32.mrb[53].mxu0  ;;  %v17758_v53 = vld [vmem:[#allocation3 + $0xa0] ss:$16 sps:$4 sm:$0xff]  }
 0x987   :  { %v5783_v21 = vadd.f32 %v19357_v52, %v5782_v22  ;;  %v15863_v9 = vpop.f32.mrb[54].mxu0 }
 0x988   :  { %v5794_v24 = vadd.f32 %v15863_v9, %v19357_v52  ;;  %v5785_v13 = vpop.f32.mrb[55].mxu0  ;;  %v5955_v39 = vmax.f32 %v5791_v19, 0.0 }
 0x989   :  { %v5786_v26 = vadd.f32 %v19357_v52, %v5785_v13  ;;  %v5953_v31 = vmax.f32 %v5783_v21, 0.0  ;;  %v17763_v21 = vld [vmem:[#allocation3 + $0xc4] ss:$16 sps:$4 sm:$0xff]   ;;  %v17761_v13 = vld [vmem:[#allocation3 + $0xc0] ss:$16 sps:$4 sm:$0xff]  }
 0x98a   :  { %v5956_v56 = vmax.f32 %v5794_v24, 0.0 }
 0x98b   :  { %v5954_v27 = vmax.f32 %v5786_v26, 0.0  ;;  %v17766_v26 = vld [vmem:[#allocation3 + $0xe4] ss:$16 sps:$4 sm:$0xff]  }
 0x98c   :  { %v6004_v29 = vpack.c.bf16 %v5956_v56, %v5955_v39 }
 0x98d   :  { %v6003_v36 = vpack.c.bf16 %v5954_v27, %v5953_v31 }
 0x98f   :  { %6901 = vmatpush1.bf16.msra.mxu0 %v6003_v36 }
 0x990   :  { %6902 = vmatprep.subr.bf16.mxu0 %v18900_v0 }
 0x993   :  { %6903 = vmatpush1.bf16.msra.mxu0 %v6004_v29 }
 0x994   :  { %7161 = vmatprep.subr.bf16.mxu0 %v18900_v0 }
 0x995   :  { %v15866_v20 = vpop.f32.mrb[56].mxu0 }
 0x996   :  { %v5807_v34 = vadd.f32 %v15866_v20, %v19357_v52  ;;  %v5798_v38 = vpop.f32.mrb[57].mxu0  ;;  %6905 = vmatmul.mubr.bf16.vlgmr.msra.gmra.mrb[88].mxu0 %v17743_v32 }
 0x997   :  { %v5799_v49 = vadd.f32 %v19357_v52, %v5798_v38  ;;  %v15867_v40 = vpop.f32.mrb[58].mxu0  ;;  %6912 = vmatprep.mubr.bf16.mxu0 %v17748_v33  ;;  %v17764_v38 = vld [vmem:[#allocation3 + $0xe0] ss:$16 sps:$4 sm:$0xff]  }
 0x998   :  { %v5810_v42 = vadd.f32 %v15867_v40, %v19357_v52  ;;  %v5801_v60 = vpop.f32.mrb[59].mxu0  ;;  %v5959_v41 = vmax.f32 %v5807_v34, 0.0 }
 0x999   :  { %v5802_v37 = vadd.f32 %v19357_v52, %v5801_v60  ;;  %v5957_v10 = vmax.f32 %v5799_v49, 0.0 }
 0x99a   :  { %v5960_v59 = vmax.f32 %v5810_v42, 0.0  ;;  %v17769_v42 = vld [vmem:[#allocation3 + $0x104] ss:$16 sps:$4 sm:$0xff]  }
 0x99b   :  { %v5958_v25 = vmax.f32 %v5802_v37, 0.0 }
 0x99c   :  { %v6006_v63 = vpack.c.bf16 %v5960_v59, %v5959_v41  ;;  %v17767_v41 = vld [vmem:[#allocation3 + $0x100] ss:$16 sps:$4 sm:$0xff]   ;;  %v17772_v59 = vld [vmem:[#allocation3 + $0x124] ss:$16 sps:$4 sm:$0xff]  }
 0x99d   :  { %v6005_v15 = vpack.c.bf16 %v5958_v25, %v5957_v10 }
 0x99e   :  { %6913 = vmatmul.mubr.bf16.gmra.mrb[92].mxu0 %v17746_v43 }
 0x99f   :  { %7162 = vmatpush1.bf16.msra.mxu0 %v6005_v15  ;;  %6920 = vmatprep.mubr.bf16.mxu0 %v17751_v44 }
 0x9a0   :  { %7163 = vmatprep.subr.bf16.mxu0 %v18900_v0 }
 0x9a3   :  { %7164 = vmatpush1.bf16.msra.mxu0 %v6006_v63 }
 0x9a4   :  { %7165 = vmatprep.subr.bf16.mxu0 %v18900_v0 }
 0x9a5   :  { %v15870_v45 = vpop.f32.mrb[60].mxu0 }
 0x9a6   :  { %v5823_v51 = vadd.f32 %v15870_v45, %v19357_v52  ;;  %v5814_v55 = vpop.f32.mrb[61].mxu0  ;;  %6921 = vmatmul.mubr.bf16.gmra.mrb[96].mxu0 %v17749_v46 }
 0x9a7   :  { %v5815_v2 = vadd.f32 %v19357_v52, %v5814_v55  ;;  %v15871_v58 = vpop.f32.mrb[62].mxu0  ;;  %6928 = vmatprep.mubr.bf16.mxu0 %v17754_v48  ;;  %v17770_v55 = vld [vmem:[#allocation3 + $0x120] ss:$16 sps:$4 sm:$0xff]  }
 0x9a8   :  { %v5826_v54 = vadd.f32 %v15871_v58, %v19357_v52  ;;  %v5817_v28 = vpop.f32.mrb[63].mxu0  ;;  %v5963_v61 = vmax.f32 %v5823_v51, 0.0 }
 0x9a9   :  { %v5818_v6 = vadd.f32 %v19357_v52, %v5817_v28  ;;  %v5961_v4 = vmax.f32 %v5815_v2, 0.0 }
 0x9aa   :  { %v5964_v62 = vmax.f32 %v5826_v54, 0.0  ;;  %v17775_v54 = vld [vmem:[#allocation3 + $0x144] ss:$16 sps:$4 sm:$0xff]  }
 0x9ab   :  { %v5962_v1 = vmax.f32 %v5818_v6, 0.0 }
 0x9ac   :  { %v6008_v7 = vpack.c.bf16 %v5964_v62, %v5963_v61  ;;  %v17773_v61 = vld [vmem:[#allocation3 + $0x140] ss:$16 sps:$4 sm:$0xff]   ;;  %v17778_v62 = vld [vmem:[#allocation3 + $0x164] ss:$16 sps:$4 sm:$0xff]  }
 0x9ad   :  { %v6007_v47 = vpack.c.bf16 %v5962_v1, %v5961_v4 }
 0x9ae   :  { %6929 = vmatmul.mubr.bf16.gmra.mrb[100].mxu0 %v17752_v3 }
 0x9af   :  { %7166 = vmatpush1.bf16.msra.mxu0 %v6007_v47  ;;  %6936 = vmatprep.mubr.bf16.mxu0 %v17757_v8 }
 0x9b0   :  { %7167 = vmatprep.subr.bf16.mxu0 %v18900_v0 }
 0x9b3   :  { %7168 = vmatpush1.bf16.msra.mxu0 %v6008_v7 }
 0x9b4   :  { %7169 = vmatprep.subr.bf16.mxu0 %v18900_v0 }
 0x9b5   :  { %v15874_v23 = vpop.f32.mrb[64].mxu0 }
 0x9b6   :  { %v5839_v50 = vadd.f32 %v15874_v23, %v19357_v52  ;;  %v5830_v11 = vpop.f32.mrb[65].mxu0  ;;  %6937 = vmatmul.mubr.bf16.gmra.mrb[104].mxu0 %v17755_v12 }
 0x9b7   :  { %v5831_v30 = vadd.f32 %v19357_v52, %v5830_v11  ;;  %v15875_v14 = vpop.f32.mrb[66].mxu0  ;;  %6944 = vmatprep.mubr.bf16.mxu0 %v17760_v5  ;;  %v17776_v11 = vld [vmem:[#allocation3 + $0x160] ss:$16 sps:$4 sm:$0xff]  }
 0x9b8   :  { %v5842_v16 = vadd.f32 %v15875_v14, %v19357_v52  ;;  %v5833_v17 = vpop.f32.mrb[67].mxu0  ;;  %v5967_v18 = vmax.f32 %v5839_v50, 0.0 }
 0x9b9   :  { %v5834_v57 = vadd.f32 %v19357_v52, %v5833_v17  ;;  %v5965_v19 = vmax.f32 %v5831_v30, 0.0 }
 0x9ba   :  { %v5968_v35 = vmax.f32 %v5842_v16, 0.0  ;;  %v17781_v16 = vld [vmem:[#allocation3 + $0x184] ss:$16 sps:$4 sm:$0xff]  }
 0x9bb   :  { %v5966_v22 = vmax.f32 %v5834_v57, 0.0 }
 0x9bc   :  { %v6010_v9 = vpack.c.bf16 %v5968_v35, %v5967_v18  ;;  %v17779_v18 = vld [vmem:[#allocation3 + $0x180] ss:$16 sps:$4 sm:$0xff]   ;;  %v17784_v35 = vld [vmem:[#allocation3 + $0x1a4] ss:$16 sps:$4 sm:$0xff]  }
 0x9bd   :  { %v6009_v24 = vpack.c.bf16 %v5966_v22, %v5965_v19 }
 0x9be   :  { %6945 = vmatmul.mubr.bf16.gmra.mrb[108].mxu0 %v17758_v53 }
 0x9bf   :  { %7170 = vmatpush1.bf16.msra.mxu0 %v6009_v24  ;;  %6952 = vmatprep.mubr.bf16.mxu0 %v17763_v21 }
 0x9c0   :  { %7171 = vmatprep.subr.bf16.mxu0 %v18900_v0 }
 0x9c3   :  { %7172 = vmatpush1.bf16.msra.mxu0 %v6010_v9 }
 0x9c4   :  { %7173 = vmatprep.subr.bf16.mxu0 %v18900_v0 }
 0x9c5   :  { %v15878_v39 = vpop.f32.mrb[68].mxu0 }
 0x9c6   :  { %v5855_v56 = vadd.f32 %v15878_v39, %v19357_v52  ;;  %v5846_v31 = vpop.f32.mrb[69].mxu0  ;;  %6953 = vmatmul.mubr.bf16.gmra.mrb[112].mxu0 %v17761_v13 }
 0x9c7   :  { %v5847_v27 = vadd.f32 %v19357_v52, %v5846_v31  ;;  %v15879_v29 = vpop.f32.mrb[70].mxu0  ;;  %6960 = vmatprep.mubr.bf16.mxu0 %v17766_v26  ;;  %v17782_v31 = vld [vmem:[#allocation3 + $0x1a0] ss:$16 sps:$4 sm:$0xff]  }
 0x9c8   :  { %v5858_v36 = vadd.f32 %v15879_v29, %v19357_v52  ;;  %v5849_v32 = vpop.f32.mrb[71].mxu0  ;;  %v5971_v20 = vmax.f32 %v5855_v56, 0.0 }
 0x9c9   :  { %v5850_v33 = vadd.f32 %v19357_v52, %v5849_v32  ;;  %v5969_v49 = vmax.f32 %v5847_v27, 0.0 }
 0x9ca   :  { %v5972_v34 = vmax.f32 %v5858_v36, 0.0  ;;  %v17787_v36 = vld [vmem:[#allocation3 + $0x1c4] ss:$16 sps:$4 sm:$0xff]  }
 0x9cb   :  { %v5970_v40 = vmax.f32 %v5850_v33, 0.0 }
 0x9cc   :  { %v6012_v60 = vpack.c.bf16 %v5972_v34, %v5971_v20  ;;  %v17785_v20 = vld [vmem:[#allocation3 + $0x1c0] ss:$16 sps:$4 sm:$0xff]   ;;  %v17790_v34 = vld [vmem:[#allocation3 + $0x1e4] ss:$16 sps:$4 sm:$0xff]  }
 0x9cd   :  { %v6011_v37 = vpack.c.bf16 %v5970_v40, %v5969_v49 }
 0x9ce   :  { %6961 = vmatmul.mubr.bf16.gmra.mrb[116].mxu0 %v17764_v38 }
 0x9cf   :  { %7174 = vmatpush1.bf16.msra.mxu0 %v6011_v37  ;;  %6968 = vmatprep.mubr.bf16.mxu0 %v17769_v42 }
 0x9d0   :  { %7175 = vmatprep.subr.bf16.mxu0 %v18900_v0 }
 0x9d3   :  { %7176 = vmatpush1.bf16.msra.mxu0 %v6012_v60 }
 0x9d4   :  { %7177 = vmatprep.subr.bf16.mxu0 %v18900_v0 }
 0x9d5   :  { %v15882_v43 = vpop.f32.mrb[72].mxu0 }
 0x9d6   :  { %v5871_v10 = vadd.f32 %v15882_v43, %v19357_v52  ;;  %v5862_v25 = vpop.f32.mrb[73].mxu0  ;;  %6969 = vmatmul.mubr.bf16.gmra.mrb[120].mxu0 %v17767_v41 }
 0x9d7   :  { %v5863_v44 = vadd.f32 %v19357_v52, %v5862_v25  ;;  %v15883_v63 = vpop.f32.mrb[74].mxu0  ;;  %6976 = vmatprep.mubr.bf16.mxu0 %v17772_v59  ;;  %v17788_v25 = vld [vmem:[#allocation3 + $0x1e0] ss:$16 sps:$4 sm:$0xff]  }
 0x9d8   :  { %v5874_v15 = vadd.f32 %v15883_v63, %v19357_v52  ;;  %v5865_v46 = vpop.f32.mrb[75].mxu0  ;;  %v5975_v45 = vmax.f32 %v5871_v10, 0.0 }
 0x9d9   :  { %v5866_v48 = vadd.f32 %v19357_v52, %v5865_v46  ;;  %v5973_v2 = vmax.f32 %v5863_v44, 0.0 }
 0x9da   :  { %v5976_v51 = vmax.f32 %v5874_v15, 0.0  ;;  %v17793_v15 = vld [vmem:[#allocation3 + $0x204] ss:$16 sps:$4 sm:$0xff]  }
 0x9db   :  { %v5974_v58 = vmax.f32 %v5866_v48, 0.0 }
 0x9dc   :  { %v6014_v28 = vpack.c.bf16 %v5976_v51, %v5975_v45  ;;  %v17791_v45 = vld [vmem:[#allocation3 + $0x200] ss:$16 sps:$4 sm:$0xff]   ;;  %v17796_v51 = vld [vmem:[#allocation3 + $0x224] ss:$16 sps:$4 sm:$0xff]  }
 0x9dd   :  { %v6013_v6 = vpack.c.bf16 %v5974_v58, %v5973_v2  ;;  %v17797_v2 = vld [vmem:[#allocation3 + $0x240] ss:$16 sps:$4 sm:$0xff]   ;;  %v17802_v58 = vld [vmem:[#allocation3 + $0x264] ss:$16 sps:$4 sm:$0xff]  }
 0x9de   :  { %6977 = vmatmul.mubr.bf16.gmra.mrb[124].mxu0 %v17770_v55  ;;  %v17794_v55 = vld [vmem:[#allocation3 + $0x220] ss:$16 sps:$4 sm:$0xff]  }
 0x9df   :  { %7178 = vmatpush1.bf16.msra.mxu0 %v6013_v6  ;;  %6984 = vmatprep.mubr.bf16.mxu0 %v17775_v54  ;;  %v17800_v54 = vld [vmem:[#allocation3 + $0x260] ss:$16 sps:$4 sm:$0xff]  }
 0x9e0   :  { %7179 = vmatprep.subr.bf16.mxu0 %v18900_v0  ;;  %v17803_v6 = vld [vmem:[#allocation3 + $0x280] ss:$16 sps:$4 sm:$0xff]  }
 0x9e3   :  { %7180 = vmatpush1.bf16.msra.mxu0 %v6014_v28  ;;  %v17805_v28 = vld [vmem:[#allocation3 + $0x284] ss:$16 sps:$4 sm:$0xff]  }
 0x9e4   :  { %7181 = vmatprep.subr.bf16.mxu0 %v18900_v0 }
 0x9e5   :  { %v15886_v3 = vpop.f32.mrb[76].mxu0 }
 0x9e6   :  { %v5887_v4 = vadd.f32 %v15886_v3, %v19357_v52  ;;  %v5878_v1 = vpop.f32.mrb[77].mxu0  ;;  %6985 = vmatmul.mubr.bf16.gmra.mrb[128].mxu0 %v17773_v61  ;;  %v17808_v61 = vld [vmem:[#allocation3 + $0x2a4] ss:$16 sps:$4 sm:$0xff]  }
 0x9e7   :  { %v5879_v8 = vadd.f32 %v19357_v52, %v5878_v1  ;;  %v15887_v7 = vpop.f32.mrb[78].mxu0  ;;  %6992 = vmatprep.mubr.bf16.mxu0 %v17778_v62  ;;  %v17806_v62 = vld [vmem:[#allocation3 + $0x2a0] ss:$16 sps:$4 sm:$0xff]   ;;  %v17811_v3 = vld [vmem:[#allocation3 + $0x2c4] ss:$16 sps:$4 sm:$0xff]  }
 0x9e8   :  { %v5890_v47 = vadd.f32 %v15887_v7, %v19357_v52  ;;  %v5881_v12 = vpop.f32.mrb[79].mxu0  ;;  %v5979_v23 = vmax.f32 %v5887_v4, 0.0  ;;  %v17809_v4 = vld [vmem:[#allocation3 + $0x2c0] ss:$16 sps:$4 sm:$0xff]   ;;  %v17814_v1 = vld [vmem:[#allocation3 + $0x2e4] ss:$16 sps:$4 sm:$0xff]  }
 0x9e9   :  { %v5882_v5 = vadd.f32 %v19357_v52, %v5881_v12  ;;  %v5977_v30 = vmax.f32 %v5879_v8, 0.0  ;;  %v17812_v8 = vld [vmem:[#allocation3 + $0x2e0] ss:$16 sps:$4 sm:$0xff]   ;;  %v17817_v7 = vld [vmem:[#allocation3 + $0x304] ss:$16 sps:$4 sm:$0xff]  }
 0x9ea   :  { %v5980_v50 = vmax.f32 %v5890_v47, 0.0  ;;  %v17815_v47 = vld [vmem:[#allocation3 + $0x300] ss:$16 sps:$4 sm:$0xff]   ;;  %v17820_v12 = vld [vmem:[#allocation3 + $0x324] ss:$16 sps:$4 sm:$0xff]  }
 0x9eb   :  { %v5978_v14 = vmax.f32 %v5882_v5, 0.0  ;;  %v17818_v5 = vld [vmem:[#allocation3 + $0x320] ss:$16 sps:$4 sm:$0xff]  }
 0x9ec   :  { %v6016_v17 = vpack.c.bf16 %v5980_v50, %v5979_v23  ;;  %v17823_v23 = vld [vmem:[#allocation3 + $0x344] ss:$16 sps:$4 sm:$0xff]   ;;  %v17821_v50 = vld [vmem:[#allocation3 + $0x340] ss:$16 sps:$4 sm:$0xff]  }
 0x9ed   :  { %v6015_v57 = vpack.c.bf16 %v5978_v14, %v5977_v30  ;;  %v17824_v30 = vld [vmem:[#allocation3 + $0x360] ss:$16 sps:$4 sm:$0xff]   ;;  %v17829_v14 = vld [vmem:[#allocation3 + $0x384] ss:$16 sps:$4 sm:$0xff]  }
 0x9ee   :  { %6993 = vmatmul.mubr.bf16.gmra.mrb[132].mxu0 %v17776_v11  ;;  %v17826_v11 = vld [vmem:[#allocation3 + $0x364] ss:$16 sps:$4 sm:$0xff]  }
 0x9ef   :  { %7182 = vmatpush1.bf16.msra.mxu0 %v6015_v57  ;;  %7000 = vmatprep.mubr.bf16.mxu0 %v17781_v16  ;;  %v17827_v16 = vld [vmem:[#allocation3 + $0x380] ss:$16 sps:$4 sm:$0xff]  }
 0x9f0   :  { %7183 = vmatprep.subr.bf16.mxu0 %v18900_v0  ;;  %v17830_v57 = vld [vmem:[#allocation3 + $0x3a0] ss:$16 sps:$4 sm:$0xff]  }
 0x9f3   :  { %7184 = vmatpush1.bf16.msra.mxu0 %v6016_v17  ;;  %v17832_v17 = vld [vmem:[#allocation3 + $0x3a4] ss:$16 sps:$4 sm:$0xff]  }
 0x9f4   :  { %7185 = vmatprep.subr.bf16.mxu0 %v18900_v0 }
 0x9f5   :  { %v15890_v53 = vpop.f32.mrb[80].mxu0 }
 0x9f6   :  { %v5903_v19 = vadd.f32 %v15890_v53, %v19357_v52  ;;  %v5894_v22 = vpop.f32.mrb[81].mxu0  ;;  %7001 = vmatmul.mubr.bf16.gmra.mrb[136].mxu0 %v17779_v18  ;;  %v17835_v18 = vld [vmem:[#allocation3 + $0x3c4] ss:$16 sps:$4 sm:$0xff]  }
 0x9f7   :  { %v5895_v21 = vadd.f32 %v19357_v52, %v5894_v22  ;;  %v15891_v9 = vpop.f32.mrb[82].mxu0  ;;  %7008 = vmatprep.mubr.bf16.mxu0 %v17784_v35  ;;  %v17833_v35 = vld [vmem:[#allocation3 + $0x3c0] ss:$16 sps:$4 sm:$0xff]   ;;  %v17838_v53 = vld [vmem:[#allocation3 + $0x3e4] ss:$16 sps:$4 sm:$0xff]  }
 0x9f8   :  { %v5906_v24 = vadd.f32 %v15891_v9, %v19357_v52  ;;  %v5897_v13 = vpop.f32.mrb[83].mxu0  ;;  %v5983_v39 = vmax.f32 %v5903_v19, 0.0  ;;  %v17836_v19 = vld [vmem:[#allocation3 + $0x3e0] ss:$16 sps:$4 sm:$0xff]   ;;  %v17841_v22 = vld [vmem:[#allocation3 + $0xc] ss:$16 sps:$4 sm:$0xff]  }
 0x9f9   :  { %v5898_v26 = vadd.f32 %v19357_v52, %v5897_v13  ;;  %v5981_v27 = vmax.f32 %v5895_v21, 0.0  ;;  %v17839_v21 = vld [vmem:[#allocation3 + $0x8] ss:$16 sps:$4 sm:$0xff]   ;;  %v17844_v9 = vld [vmem:[#allocation3 + $0x2c] ss:$16 sps:$4 sm:$0xff]  }
 0x9fa   :  { %v5984_v56 = vmax.f32 %v5906_v24, 0.0  ;;  %v17842_v24 = vld [vmem:[#allocation3 + $0x28] ss:$16 sps:$4 sm:$0xff]   ;;  %v17847_v13 = vld [vmem:[#allocation3 + $0x4c] ss:$16 sps:$4 sm:$0xff]  }
 0x9fb   :  { %v5982_v29 = vmax.f32 %v5898_v26, 0.0  ;;  %v17845_v26 = vld [vmem:[#allocation3 + $0x48] ss:$16 sps:$4 sm:$0xff]  }
 0x9fc   :  { %v6018_v32 = vpack.c.bf16 %v5984_v56, %v5983_v39  ;;  %v17850_v39 = vld [vmem:[#allocation3 + $0x6c] ss:$16 sps:$4 sm:$0xff]   ;;  %v17848_v56 = vld [vmem:[#allocation3 + $0x68] ss:$16 sps:$4 sm:$0xff]  }
 0x9fd   :  { %v6017_v33 = vpack.c.bf16 %v5982_v29, %v5981_v27  ;;  %v17851_v27 = vld [vmem:[#allocation3 + $0x88] ss:$16 sps:$4 sm:$0xff]   ;;  %v17856_v29 = vld [vmem:[#allocation3 + $0xac] ss:$16 sps:$4 sm:$0xff]  }
 0x9fe   :  { %7009 = vmatmul.mubr.bf16.gmra.mrb[140].mxu0 %v17782_v31  ;;  %v17853_v31 = vld [vmem:[#allocation3 + $0x8c] ss:$16 sps:$4 sm:$0xff]  }
 0x9ff   :  { %7186 = vmatpush1.bf16.msra.mxu0 %v6017_v33  ;;  %7016 = vmatprep.mubr.bf16.mxu0 %v17787_v36  ;;  %v17902_v36 = vld [vmem:[#allocation8 + $0xc0] sm:$0xff]   ;;  %v17859_v33 = vld [vmem:[#allocation3 + $0xcc] ss:$16 sps:$4 sm:$0xff]  }
 0xa00   :  { %7187 = vmatprep.subr.bf16.mxu0 %v18900_v0  ;;  %15896 = vmatprep.subr.bf16.mxu1 %v17902_v36 }
 0xa01   :  { %15897 = vmatpush3.bf16.msra.mxu1 %v17902_v36  ;;  %v17936_v36 = vld [vmem:[#allocation3 + $0x3ac] ss:$16 sps:$4 sm:$0xff]  }
 0xa03   :  { %7188 = vmatpush1.bf16.msra.mxu0 %v6018_v32  ;;  %v17854_v32 = vld [vmem:[#allocation3 + $0xa8] ss:$16 sps:$4 sm:$0xff]  }
 0xa04   :  { %7189 = vmatprep.subr.bf16.mxu0 %v18900_v0 }
 0xa05   :  { %v15894_v38 = vpop.f32.mrb[84].mxu0 }
 0xa06   :  { %v5919_v49 = vadd.f32 %v15894_v38, %v19357_v52  ;;  %v5910_v40 = vpop.f32.mrb[85].mxu0  ;;  %7017 = vmatmul.mubr.bf16.gmra.mrb[144].mxu0 %v17785_v20  ;;  %v17857_v20 = vld [vmem:[#allocation3 + $0xc8] ss:$16 sps:$4 sm:$0xff]  }
 0xa07   :  { %v5911_v42 = vadd.f32 %v19357_v52, %v5910_v40  ;;  %v15895_v60 = vpop.f32.mrb[86].mxu0  ;;  %7024 = vmatprep.mubr.bf16.mxu0 %v17790_v34  ;;  %v17862_v34 = vld [vmem:[#allocation3 + $0xec] ss:$16 sps:$4 sm:$0xff]   ;;  %v17860_v38 = vld [vmem:[#allocation3 + $0xe8] ss:$16 sps:$4 sm:$0xff]  }
 0xa08   :  { %v5922_v37 = vadd.f32 %v15895_v60, %v19357_v52  ;;  %v5913_v41 = vpop.f32.mrb[87].mxu0  ;;  %v5987_v43 = vmax.f32 %v5919_v49, 0.0  ;;  %v17865_v49 = vld [vmem:[#allocation3 + $0x10c] ss:$16 sps:$4 sm:$0xff]   ;;  %v17863_v40 = vld [vmem:[#allocation3 + $0x108] ss:$16 sps:$4 sm:$0xff]  }
 0xa09   :  { %v5914_v59 = vadd.f32 %v19357_v52, %v5913_v41  ;;  %v5985_v44 = vmax.f32 %v5911_v42, 0.0  ;;  %v17799_v52 = vld [vmem:[#allocation3 + $0x244] ss:$16 sps:$4 sm:$0xff]   ;;  %v17868_v42 = vld [vmem:[#allocation3 + $0x12c] ss:$16 sps:$4 sm:$0xff]  }
 0xa0a   :  { %v5988_v10 = vmax.f32 %v5922_v37, 0.0  ;;  %v17915_v60 = vld [vmem:[#allocation8 + $0xc8] sm:$0xff]  }
 0xa0b   :  { %v5986_v63 = vmax.f32 %v5914_v59, 0.0  ;;  %15898 = vmatprep.subr.bf16.mxu1 %v17915_v60  ;;  %v17866_v37 = vld [vmem:[#allocation3 + $0x128] ss:$16 sps:$4 sm:$0xff]   ;;  %v17871_v41 = vld [vmem:[#allocation3 + $0x14c] ss:$16 sps:$4 sm:$0xff]   ;;  %v17919_v59 = vld [vmem:[#allocation8 + $0xd0] sm:$0xff]  }
 0xa0c   :  { %v6020_v46 = vpack.c.bf16 %v5988_v10, %v5987_v43  ;;  %15899 = vmatpush3.bf16.msra.mxu1 %v17915_v60  ;;  %v17920_v43 = vld [vmem:[#allocation8 + $0xd8] sm:$0xff]  }
 0xa0d   :  { %v6019_v48 = vpack.c.bf16 %v5986_v63, %v5985_v44  ;;  %15900 = vmatprep.subr.bf16.mxu1 %v17919_v59  ;;  %v17869_v10 = vld [vmem:[#allocation3 + $0x148] ss:$16 sps:$4 sm:$0xff]   ;;  %v17924_v44 = vld [vmem:[#allocation8 + $0xe0] sm:$0xff]  }
 0xa0e   :  { %7025 = vmatmul.mubr.bf16.gmra.mrb[148].mxu0 %v17788_v25  ;;  %v17874_v25 = vld [vmem:[#allocation3 + $0x16c] ss:$16 sps:$4 sm:$0xff]  }
 0xa0f   :  { %7190 = vmatpush1.bf16.msra.mxu0 %v6019_v48  ;;  %7032 = vmatprep.mubr.bf16.mxu0 %v17793_v15  ;;  %v17925_v63 = vld [vmem:[#allocation8 + $0xe8] sm:$0xff]   ;;  %v17929_v48 = vld [vmem:[#allocation8 + $0xf0] sm:$0xff]  }
 0xa10   :  { %7191 = vmatprep.subr.bf16.mxu0 %v18900_v0  ;;  %15901 = vmatpush3.bf16.msra.mxu1 %v17919_v59  ;;  %v17872_v15 = vld [vmem:[#allocation3 + $0x168] ss:$16 sps:$4 sm:$0xff]  }
 0xa11   :  { %15902 = vmatprep.subr.bf16.mxu1 %v17920_v43  ;;  %v17937_v59 = vld [vmem:[#allocation3 + $0x3c8] ss:$16 sps:$4 sm:$0xff]  }
 0xa13   :  { %7192 = vmatpush1.bf16.msra.mxu0 %v6020_v46  ;;  %v17877_v46 = vld [vmem:[#allocation3 + $0x18c] ss:$16 sps:$4 sm:$0xff]  }
 0xa14   :  { %15903 = vmatpush3.bf16.msra.mxu1 %v17920_v43 }
 0xa15   :  { %15904 = vmatprep.subr.bf16.mxu1 %v17924_v44 }
 0xa16   :  { %7033 = vmatmul.mubr.bf16.gmra.mrb[152].mxu0 %v17791_v45  ;;  %v17930_v45 = vld [vmem:[#allocation8 + $0xf8] sm:$0xff]  }
 0xa17   :  { %7040 = vmatprep.mubr.bf16.mxu0 %v17796_v51  ;;  %v17875_v51 = vld [vmem:[#allocation3 + $0x188] ss:$16 sps:$4 sm:$0xff]  }
 0xa18   :  { %15905 = vmatpush3.bf16.msra.mxu1 %v17924_v44 }
 0xa19   :  { %15906 = vmatprep.subr.bf16.mxu1 %v17925_v63 }
 0xa1c   :  { %15907 = vmatpush3.bf16.msra.mxu1 %v17925_v63 }
 0xa1d   :  { %15908 = vmatprep.subr.bf16.mxu1 %v17929_v48 }
 0xa1e   :  { %7041 = vmatmul.mubr.bf16.gmra.mrb[156].mxu0 %v17794_v55  ;;  %v17880_v55 = vld [vmem:[#allocation3 + $0x1ac] ss:$16 sps:$4 sm:$0xff]  }
 0xa1f   :  { %7048 = vmatprep.mubr.bf16.mxu0 %v17799_v52  ;;  %v17878_v52 = vld [vmem:[#allocation3 + $0x1a8] ss:$16 sps:$4 sm:$0xff]  }
 0xa20   :  { %15909 = vmatpush3.bf16.msra.mxu1 %v17929_v48 }
 0xa21   :  { %15910 = vmatprep.subr.bf16.mxu1 %v17930_v45 }
 0xa24   :  { %15911 = vmatpush3.bf16.msra.mxu1 %v17930_v45 }
 0xa25   :  { %8772 = vmatprep.subr.bf16.mxu1 %v18900_v0 }
 0xa26   :  { %7049 = vmatmul.mubr.bf16.gmra.mrb[160].mxu0 %v17797_v2  ;;  %v17883_v2 = vld [vmem:[#allocation3 + $0x1cc] ss:$16 sps:$4 sm:$0xff]  }
 0xa27   :  { %7056 = vmatprep.mubr.bf16.mxu0 %v17802_v58  ;;  %v17881_v58 = vld [vmem:[#allocation3 + $0x1c8] ss:$16 sps:$4 sm:$0xff]  }
 0xa2e   :  { %7057 = vmatmul.mubr.bf16.gmra.mrb[164].mxu0 %v17800_v54  ;;  %v17886_v54 = vld [vmem:[#allocation3 + $0x1ec] ss:$16 sps:$4 sm:$0xff]  }
 0xa2f   :  { %7064 = vmatprep.mubr.bf16.mxu0 %v17805_v28  ;;  %v17884_v28 = vld [vmem:[#allocation3 + $0x1e8] ss:$16 sps:$4 sm:$0xff]  }
 0xa36   :  { %7065 = vmatmul.mubr.bf16.gmra.mrb[168].mxu0 %v17803_v6  ;;  %v17889_v6 = vld [vmem:[#allocation3 + $0x20c] ss:$16 sps:$4 sm:$0xff]  }
 0xa37   :  { %7072 = vmatprep.mubr.bf16.mxu0 %v17808_v61  ;;  %v17887_v61 = vld [vmem:[#allocation3 + $0x208] ss:$16 sps:$4 sm:$0xff]  }
 0xa3e   :  { %7073 = vmatmul.mubr.bf16.gmra.mrb[172].mxu0 %v17806_v62  ;;  %v17892_v62 = vld [vmem:[#allocation3 + $0x22c] ss:$16 sps:$4 sm:$0xff]  }
 0xa3f   :  { %7080 = vmatprep.mubr.bf16.mxu0 %v17811_v3  ;;  %v17890_v3 = vld [vmem:[#allocation3 + $0x228] ss:$16 sps:$4 sm:$0xff]  }
 0xa46   :  { %7081 = vmatmul.mubr.bf16.gmra.mrb[176].mxu0 %v17809_v4  ;;  %v17895_v4 = vld [vmem:[#allocation3 + $0x24c] ss:$16 sps:$4 sm:$0xff]  }
 0xa47   :  { %7088 = vmatprep.mubr.bf16.mxu0 %v17814_v1  ;;  %v17893_v1 = vld [vmem:[#allocation3 + $0x248] ss:$16 sps:$4 sm:$0xff]  }
 0xa4e   :  { %7089 = vmatmul.mubr.bf16.gmra.mrb[180].mxu0 %v17812_v8  ;;  %v17898_v8 = vld [vmem:[#allocation3 + $0x26c] ss:$16 sps:$4 sm:$0xff]  }
 0xa4f   :  { %7096 = vmatprep.mubr.bf16.mxu0 %v17817_v7  ;;  %v17896_v7 = vld [vmem:[#allocation3 + $0x268] ss:$16 sps:$4 sm:$0xff]  }
 0xa56   :  { %7097 = vmatmul.mubr.bf16.gmra.mrb[184].mxu0 %v17815_v47  ;;  %v17901_v47 = vld [vmem:[#allocation3 + $0x28c] ss:$16 sps:$4 sm:$0xff]  }
 0xa57   :  { %7104 = vmatprep.mubr.bf16.mxu0 %v17820_v12  ;;  %v17899_v12 = vld [vmem:[#allocation3 + $0x288] ss:$16 sps:$4 sm:$0xff]  }
 0xa5e   :  { %7105 = vmatmul.mubr.bf16.gmra.mrb[188].mxu0 %v17818_v5  ;;  %v17905_v5 = vld [vmem:[#allocation3 + $0x2ac] ss:$16 sps:$4 sm:$0xff]  }
 0xa5f   :  { %7112 = vmatprep.mubr.bf16.mxu0 %v17823_v23  ;;  %v17903_v23 = vld [vmem:[#allocation3 + $0x2a8] ss:$16 sps:$4 sm:$0xff]  }
 0xa66   :  { %7113 = vmatmul.mubr.bf16.gmra.mrb[192].mxu0 %v17821_v50  ;;  %v17908_v50 = vld [vmem:[#allocation3 + $0x2cc] ss:$16 sps:$4 sm:$0xff]  }
 0xa67   :  { %7120 = vmatprep.mubr.bf16.mxu0 %v17826_v11  ;;  %v17906_v11 = vld [vmem:[#allocation3 + $0x2c8] ss:$16 sps:$4 sm:$0xff]  }
 0xa6e   :  { %7121 = vmatmul.mubr.bf16.gmra.mrb[196].mxu0 %v17824_v30  ;;  %v17911_v30 = vld [vmem:[#allocation3 + $0x2ec] ss:$16 sps:$4 sm:$0xff]  }
 0xa6f   :  { %7128 = vmatprep.mubr.bf16.mxu0 %v17829_v14  ;;  %v17909_v14 = vld [vmem:[#allocation3 + $0x2e8] ss:$16 sps:$4 sm:$0xff]  }
 0xa76   :  { %7129 = vmatmul.mubr.bf16.gmra.mrb[200].mxu0 %v17827_v16  ;;  %v17914_v16 = vld [vmem:[#allocation3 + $0x30c] ss:$16 sps:$4 sm:$0xff]  }
 0xa77   :  { %7136 = vmatprep.mubr.bf16.mxu0 %v17832_v17  ;;  %v17912_v17 = vld [vmem:[#allocation3 + $0x308] ss:$16 sps:$4 sm:$0xff]  }
 0xa7e   :  { %7137 = vmatmul.mubr.bf16.gmra.mrb[204].mxu0 %v17830_v57  ;;  %v17918_v57 = vld [vmem:[#allocation3 + $0x32c] ss:$16 sps:$4 sm:$0xff]  }
 0xa7f   :  { %7144 = vmatprep.mubr.bf16.mxu0 %v17835_v18  ;;  %v17916_v18 = vld [vmem:[#allocation3 + $0x328] ss:$16 sps:$4 sm:$0xff]  }
 0xa86   :  { %7145 = vmatmul.mubr.bf16.gmra.mrb[208].mxu0 %v17833_v35  ;;  %v17923_v35 = vld [vmem:[#allocation3 + $0x34c] ss:$16 sps:$4 sm:$0xff]  }
 0xa87   :  { %7152 = vmatprep.mubr.bf16.mxu0 %v17838_v53  ;;  %v17921_v53 = vld [vmem:[#allocation3 + $0x348] ss:$16 sps:$4 sm:$0xff]  }
 0xa8e   :  { %7153 = vmatmul.mubr.bf16.gmra.mrb[212].mxu0 %v17836_v19  ;;  %v17928_v19 = vld [vmem:[#allocation3 + $0x36c] ss:$16 sps:$4 sm:$0xff]  }
 0xa8f   :  { %7193 = vmatprep.mubr.bf16.mxu0 %v17841_v22 }
 0xa96   :  { %7194 = vmatmul.mubr.bf16.vlgmr.msra.gmra.mrb[88].mxu0 %v17839_v21 }
 0xa97   :  { %7201 = vmatprep.mubr.bf16.mxu0 %v17844_v9  ;;  %v17926_v9 = vld [vmem:[#allocation3 + $0x368] ss:$16 sps:$4 sm:$0xff]  }
 0xa9e   :  { %7202 = vmatmul.mubr.bf16.gmra.mrb[92].mxu0 %v17842_v24 }
 0xa9f   :  { %7209 = vmatprep.mubr.bf16.mxu0 %v17847_v13  ;;  %v17933_v13 = vld [vmem:[#allocation3 + $0x38c] ss:$16 sps:$4 sm:$0xff]  }
 0xaa6   :  { %7210 = vmatmul.mubr.bf16.gmra.mrb[96].mxu0 %v17845_v26 }
 0xaa7   :  { %7217 = vmatprep.mubr.bf16.mxu0 %v17850_v39 }
 0xaae   :  { %7218 = vmatmul.mubr.bf16.gmra.mrb[100].mxu0 %v17848_v56 }
 0xaaf   :  { %7225 = vmatprep.mubr.bf16.mxu0 %v17853_v31 }
 0xab6   :  { %7226 = vmatmul.mubr.bf16.gmra.mrb[104].mxu0 %v17851_v27  ;;  %v17931_v27 = vld [vmem:[#allocation3 + $0x388] ss:$16 sps:$4 sm:$0xff]  }
 0xab7   :  { %7233 = vmatprep.mubr.bf16.mxu0 %v17856_v29 }
 0xabe   :  { %7234 = vmatmul.mubr.bf16.gmra.mrb[108].mxu0 %v17854_v32 }
 0xabf   :  { %7241 = vmatprep.mubr.bf16.mxu0 %v17859_v33 }
 0xac6   :  { %7242 = vmatmul.mubr.bf16.gmra.mrb[112].mxu0 %v17857_v20 }
 0xac7   :  { %7249 = vmatprep.mubr.bf16.mxu0 %v17862_v34 }
 0xace   :  { %7250 = vmatmul.mubr.bf16.gmra.mrb[116].mxu0 %v17860_v38  ;;  %v17934_v38 = vld [vmem:[#allocation3 + $0x3a8] ss:$16 sps:$4 sm:$0xff]  }
 0xacf   :  { %7257 = vmatprep.mubr.bf16.mxu0 %v17865_v49 }
 0xad6   :  { %7258 = vmatmul.mubr.bf16.gmra.mrb[120].mxu0 %v17863_v40  ;;  %v17939_v40 = vld [vmem:[#allocation3 + $0x3cc] ss:$16 sps:$4 sm:$0xff]  }
 0xad7   :  { %7265 = vmatprep.mubr.bf16.mxu0 %v17868_v42 }
 0xade   :  { %7266 = vmatmul.mubr.bf16.gmra.mrb[124].mxu0 %v17866_v37 }
 0xadf   :  { %7273 = vmatprep.mubr.bf16.mxu0 %v17871_v41 }
 0xae6   :  { %7274 = vmatmul.mubr.bf16.gmra.mrb[128].mxu0 %v17869_v10  ;;  %v17942_v10 = vld [vmem:[#allocation3 + $0x3ec] ss:$16 sps:$4 sm:$0xff]  }
 0xae7   :  { %7281 = vmatprep.mubr.bf16.mxu0 %v17874_v25 }
 0xaee   :  { %7282 = vmatmul.mubr.bf16.gmra.mrb[132].mxu0 %v17872_v15 }
 0xaef   :  { %7289 = vmatprep.mubr.bf16.mxu0 %v17877_v46  ;;  %v17940_v46 = vld [vmem:[#allocation3 + $0x3e8] ss:$16 sps:$4 sm:$0xff]  }
 0xaf6   :  { %7290 = vmatmul.mubr.bf16.gmra.mrb[136].mxu0 %v17875_v51 }
 0xaf7   :  { %7297 = vmatprep.mubr.bf16.mxu0 %v17880_v55 }
 0xafe   :  { %7298 = vmatmul.mubr.bf16.gmra.mrb[140].mxu0 %v17878_v52 }
 0xaff   :  { %7305 = vmatprep.mubr.bf16.mxu0 %v17883_v2 }
 0xb06   :  { %7306 = vmatmul.mubr.bf16.gmra.mrb[144].mxu0 %v17881_v58 }
 0xb07   :  { %7313 = vmatprep.mubr.bf16.mxu0 %v17886_v54 }
 0xb0e   :  { %7314 = vmatmul.mubr.bf16.gmra.mrb[148].mxu0 %v17884_v28 }
 0xb0f   :  { %7321 = vmatprep.mubr.bf16.mxu0 %v17889_v6 }
 0xb16   :  { %7322 = vmatmul.mubr.bf16.gmra.mrb[152].mxu0 %v17887_v61 }
 0xb17   :  { %7329 = vmatprep.mubr.bf16.mxu0 %v17892_v62 }
 0xb1e   :  { %7330 = vmatmul.mubr.bf16.gmra.mrb[156].mxu0 %v17890_v3 }
 0xb1f   :  { %7337 = vmatprep.mubr.bf16.mxu0 %v17895_v4 }
 0xb26   :  { %7338 = vmatmul.mubr.bf16.gmra.mrb[160].mxu0 %v17893_v1 }
 0xb27   :  { %7345 = vmatprep.mubr.bf16.mxu0 %v17898_v8 }
 0xb2e   :  { %7346 = vmatmul.mubr.bf16.gmra.mrb[164].mxu0 %v17896_v7 }
 0xb2f   :  { %7353 = vmatprep.mubr.bf16.mxu0 %v17901_v47 }
 0xb36   :  { %7354 = vmatmul.mubr.bf16.gmra.mrb[168].mxu0 %v17899_v12 }
 0xb37   :  { %7361 = vmatprep.mubr.bf16.mxu0 %v17905_v5 }
 0xb3e   :  { %7362 = vmatmul.mubr.bf16.gmra.mrb[172].mxu0 %v17903_v23 }
 0xb3f   :  { %7369 = vmatprep.mubr.bf16.mxu0 %v17908_v50 }
 0xb46   :  { %7370 = vmatmul.mubr.bf16.gmra.mrb[176].mxu0 %v17906_v11 }
 0xb47   :  { %7377 = vmatprep.mubr.bf16.mxu0 %v17911_v30 }
 0xb4e   :  { %7378 = vmatmul.mubr.bf16.gmra.mrb[180].mxu0 %v17909_v14 }
 0xb4f   :  { %7385 = vmatprep.mubr.bf16.mxu0 %v17914_v16 }
 0xb56   :  { %7386 = vmatmul.mubr.bf16.gmra.mrb[184].mxu0 %v17912_v17 }
 0xb57   :  { %7393 = vmatprep.mubr.bf16.mxu0 %v17918_v57 }
 0xb5e   :  { %7394 = vmatmul.mubr.bf16.gmra.mrb[188].mxu0 %v17916_v18 }
 0xb5f   :  { %7401 = vmatprep.mubr.bf16.mxu0 %v17923_v35 }
 0xb66   :  { %7402 = vmatmul.mubr.bf16.gmra.mrb[192].mxu0 %v17921_v53 }
 0xb67   :  { %7409 = vmatprep.mubr.bf16.mxu0 %v17928_v19 }
 0xb69   :  { %v7195_v22 = vpop.f32.mrb[88].mxu0 }
 0xb6a   :  { %v7197_v21 = vpop.f32.mrb[89].mxu0 }
 0xb6b   :  { %v7198_v24 = vpop.f32.mrb[90].mxu0 }
 0xb6c   :  { %v7200_v26 = vpop.f32.mrb[91].mxu0  ;;  %v7450_v39 = vpack.c.bf16 %v7198_v24, %v7195_v22 }
 0xb6e   :  { %7410 = vmatmul.mubr.bf16.gmra.mrb[196].mxu0 %v17926_v9  ;;  %15912 = vmatprep.mubr.bf16.mxu1 %v7450_v39 }
 0xb6f   :  { %7417 = vmatprep.mubr.bf16.mxu0 %v17933_v13 }
 0xb71   :  { %v7203_v56 = vpop.f32.mrb[92].mxu0 }
 0xb72   :  { %v7205_v31 = vpop.f32.mrb[93].mxu0 }
 0xb73   :  { %v7206_v29 = vpop.f32.mrb[94].mxu0 }
 0xb74   :  { %v7451_v32 = vpack.c.bf16 %v7206_v29, %v7203_v56  ;;  %v7208_v33 = vpop.f32.mrb[95].mxu0 }
 0xb76   :  { %7418 = vmatmul.mubr.bf16.gmra.mrb[200].mxu0 %v17931_v27  ;;  %15913 = vmatmul.mubr.bf16.vlgmr.msra.gmra.mrb[104].mxu1 %v7451_v32 }
 0xb77   :  { %7425 = vmatprep.mubr.bf16.mxu0 %v17936_v36 }
 0xb79   :  { %v7211_v20 = vpop.f32.mrb[96].mxu0 }
 0xb7a   :  { %v7213_v34 = vpop.f32.mrb[97].mxu0 }
 0xb7b   :  { %v7214_v49 = vpop.f32.mrb[98].mxu0 }
 0xb7c   :  { %v7216_v42 = vpop.f32.mrb[99].mxu0  ;;  %v7452_v60 = vpack.c.bf16 %v7214_v49, %v7211_v20 }
 0xb7e   :  { %7426 = vmatmul.mubr.bf16.gmra.mrb[204].mxu0 %v17934_v38  ;;  %15916 = vmatprep.mubr.bf16.mxu1 %v7452_v60 }
 0xb7f   :  { %7433 = vmatprep.mubr.bf16.mxu0 %v17939_v40 }
 0xb81   :  { %v7219_v37 = vpop.f32.mrb[100].mxu0 }
 0xb82   :  { %v7221_v41 = vpop.f32.mrb[101].mxu0 }
 0xb83   :  { %v7222_v43 = vpop.f32.mrb[102].mxu0 }
 0xb84   :  { %v7453_v25 = vpack.c.bf16 %v7222_v43, %v7219_v37  ;;  %v7224_v44 = vpop.f32.mrb[103].mxu0 }
 0xb86   :  { %7434 = vmatmul.mubr.bf16.gmra.mrb[208].mxu0 %v17937_v59  ;;  %15917 = vmatmul.mubr.bf16.gmra.mrb[108].mxu1 %v7453_v25 }
 0xb87   :  { %7441 = vmatprep.mubr.bf16.mxu0 %v17942_v10 }
 0xb89   :  { %v7227_v63 = vpop.f32.mrb[104].mxu0 }
 0xb8a   :  { %v7229_v15 = vpop.f32.mrb[105].mxu0 }
 0xb8b   :  { %v7230_v48 = vpop.f32.mrb[106].mxu0 }
 0xb8c   :  { %v7232_v45 = vpop.f32.mrb[107].mxu0  ;;  %v7454_v51 = vpack.c.bf16 %v7230_v48, %v7227_v63 }
 0xb8e   :  { %7442 = vmatmul.mubr.bf16.gmra.mrb[212].mxu0 %v17940_v46  ;;  %15920 = vmatprep.mubr.bf16.mxu1 %v7454_v51 }
 0xb91   :  { %v7235_v55 = vpop.f32.mrb[108].mxu0 }
 0xb92   :  { %v7237_v52 = vpop.f32.mrb[109].mxu0 }
 0xb93   :  { %v7238_v2 = vpop.f32.mrb[110].mxu0 }
 0xb94   :  { %v7455_v58 = vpack.c.bf16 %v7238_v2, %v7235_v55  ;;  %v7240_v54 = vpop.f32.mrb[111].mxu0 }
 0xb96   :  { %15921 = vmatmul.mubr.bf16.gmra.mrb[112].mxu1 %v7455_v58 }
 0xb99   :  { %v7243_v28 = vpop.f32.mrb[112].mxu0 }
 0xb9a   :  { %v7245_v6 = vpop.f32.mrb[113].mxu0 }
 0xb9b   :  { %v7246_v61 = vpop.f32.mrb[114].mxu0 }
 0xb9c   :  { %v7248_v62 = vpop.f32.mrb[115].mxu0  ;;  %v7456_v3 = vpack.c.bf16 %v7246_v61, %v7243_v28 }
 0xb9e   :  { %15924 = vmatprep.mubr.bf16.mxu1 %v7456_v3 }
 0xba1   :  { %v7251_v4 = vpop.f32.mrb[116].mxu0 }
 0xba2   :  { %v7253_v1 = vpop.f32.mrb[117].mxu0 }
 0xba3   :  { %v7254_v8 = vpop.f32.mrb[118].mxu0 }
 0xba4   :  { %v7457_v7 = vpack.c.bf16 %v7254_v8, %v7251_v4  ;;  %v7256_v47 = vpop.f32.mrb[119].mxu0 }
 0xba6   :  { %15925 = vmatmul.mubr.bf16.gmra.mrb[116].mxu1 %v7457_v7 }
 0xba9   :  { %v7259_v12 = vpop.f32.mrb[120].mxu0 }
 0xbaa   :  { %v7261_v5 = vpop.f32.mrb[121].mxu0 }
 0xbab   :  { %v7262_v23 = vpop.f32.mrb[122].mxu0 }
 0xbac   :  { %v7264_v50 = vpop.f32.mrb[123].mxu0  ;;  %v7458_v11 = vpack.c.bf16 %v7262_v23, %v7259_v12 }
 0xbae   :  { %15928 = vmatprep.mubr.bf16.mxu1 %v7458_v11 }
 0xbb1   :  { %v7267_v30 = vpop.f32.mrb[124].mxu0 }
 0xbb2   :  { %v7269_v14 = vpop.f32.mrb[125].mxu0 }
 0xbb3   :  { %v7270_v16 = vpop.f32.mrb[126].mxu0 }
 0xbb4   :  { %v7459_v17 = vpack.c.bf16 %v7270_v16, %v7267_v30  ;;  %v7272_v57 = vpop.f32.mrb[127].mxu0 }
 0xbb6   :  { %15929 = vmatmul.mubr.bf16.gmra.mrb[120].mxu1 %v7459_v17 }
 0xbb9   :  { %v7275_v18 = vpop.f32.mrb[128].mxu0 }
 0xbba   :  { %v7277_v35 = vpop.f32.mrb[129].mxu0 }
 0xbbb   :  { %v7278_v53 = vpop.f32.mrb[130].mxu0 }
 0xbbc   :  { %v7280_v19 = vpop.f32.mrb[131].mxu0  ;;  %v7460_v22 = vpack.c.bf16 %v7278_v53, %v7275_v18 }
 0xbbe   :  { %15932 = vmatprep.mubr.bf16.mxu1 %v7460_v22 }
 0xbc1   :  { %v7283_v21 = vpop.f32.mrb[132].mxu0 }
 0xbc2   :  { %v7285_v9 = vpop.f32.mrb[133].mxu0 }
 0xbc3   :  { %v7286_v24 = vpop.f32.mrb[134].mxu0 }
 0xbc4   :  { %v7461_v13 = vpack.c.bf16 %v7286_v24, %v7283_v21  ;;  %v7288_v26 = vpop.f32.mrb[135].mxu0 }
 0xbc6   :  { %15933 = vmatmul.mubr.bf16.gmra.mrb[124].mxu1 %v7461_v13 }
 0xbc9   :  { %v7291_v39 = vpop.f32.mrb[136].mxu0 }
 0xbca   :  { %v7293_v56 = vpop.f32.mrb[137].mxu0 }
 0xbcb   :  { %v7294_v31 = vpop.f32.mrb[138].mxu0 }
 0xbcc   :  { %v7296_v27 = vpop.f32.mrb[139].mxu0  ;;  %v7462_v29 = vpack.c.bf16 %v7294_v31, %v7291_v39 }
 0xbce   :  { %15936 = vmatprep.mubr.bf16.mxu1 %v7462_v29 }
 0xbd1   :  { %v7299_v36 = vpop.f32.mrb[140].mxu0 }
 0xbd2   :  { %v7301_v32 = vpop.f32.mrb[141].mxu0 }
 0xbd3   :  { %v7302_v33 = vpop.f32.mrb[142].mxu0 }
 0xbd4   :  { %v7463_v20 = vpack.c.bf16 %v7302_v33, %v7299_v36  ;;  %v7304_v34 = vpop.f32.mrb[143].mxu0 }
 0xbd6   :  { %15937 = vmatmul.mubr.bf16.gmra.mrb[128].mxu1 %v7463_v20 }
 0xbd9   :  { %v7307_v38 = vpop.f32.mrb[144].mxu0 }
 0xbda   :  { %v7309_v49 = vpop.f32.mrb[145].mxu0 }
 0xbdb   :  { %v7310_v40 = vpop.f32.mrb[146].mxu0 }
 0xbdc   :  { %v7312_v42 = vpop.f32.mrb[147].mxu0  ;;  %v7464_v60 = vpack.c.bf16 %v7310_v40, %v7307_v38 }
 0xbde   :  { %15940 = vmatprep.mubr.bf16.mxu1 %v7464_v60 }
 0xbe1   :  { %v7315_v37 = vpop.f32.mrb[148].mxu0 }
 0xbe2   :  { %v7317_v41 = vpop.f32.mrb[149].mxu0 }
 0xbe3   :  { %v7318_v59 = vpop.f32.mrb[150].mxu0 }
 0xbe4   :  { %v7465_v43 = vpack.c.bf16 %v7318_v59, %v7315_v37  ;;  %v7320_v10 = vpop.f32.mrb[151].mxu0  ;;  %v19458_v59 = vld [vmem:[%s20612_s3 + $0x3] ss:$0 sm:$0xff] }
 0xbe6   :  { %15941 = vmatmul.mubr.bf16.gmra.mrb[132].mxu1 %v7465_v43 }
 0xbe9   :  { %v7323_v25 = vpop.f32.mrb[152].mxu0 }
 0xbea   :  { %v7325_v44 = vpop.f32.mrb[153].mxu0 }
 0xbeb   :  { %v7326_v63 = vpop.f32.mrb[154].mxu0 }
 0xbec   :  { %v7466_v15 = vpack.c.bf16 %v7326_v63, %v7323_v25  ;;  %v7328_v46 = vpop.f32.mrb[155].mxu0 }
 0xbee   :  { %15944 = vmatprep.mubr.bf16.mxu1 %v7466_v15 }
 0xbf1   :  { %v7331_v48 = vpop.f32.mrb[156].mxu0 }
 0xbf2   :  { %v7333_v45 = vpop.f32.mrb[157].mxu0 }
 0xbf3   :  { %v7334_v51 = vpop.f32.mrb[158].mxu0 }
 0xbf4   :  { %v7467_v55 = vpack.c.bf16 %v7334_v51, %v7331_v48  ;;  %v7336_v52 = vpop.f32.mrb[159].mxu0 }
 0xbf6   :  { %15945 = vmatmul.mubr.bf16.gmra.mrb[136].mxu1 %v7467_v55 }
 0xbf9   :  { %v7339_v2 = vpop.f32.mrb[160].mxu0 }
 0xbfa   :  { %v7341_v58 = vpop.f32.mrb[161].mxu0 }
 0xbfb   :  { %v7342_v54 = vpop.f32.mrb[162].mxu0 }
 0xbfc   :  { %v7468_v28 = vpack.c.bf16 %v7342_v54, %v7339_v2  ;;  %v7344_v6 = vpop.f32.mrb[163].mxu0 }
 0xbfe   :  { %15948 = vmatprep.mubr.bf16.mxu1 %v7468_v28 }
 0xc01   :  { %v7347_v61 = vpop.f32.mrb[164].mxu0 }
 0xc02   :  { %v7349_v62 = vpop.f32.mrb[165].mxu0 }
 0xc03   :  { %v7350_v3 = vpop.f32.mrb[166].mxu0 }
 0xc04   :  { %v7469_v4 = vpack.c.bf16 %v7350_v3, %v7347_v61  ;;  %v7352_v1 = vpop.f32.mrb[167].mxu0 }
 0xc06   :  { %15949 = vmatmul.mubr.bf16.gmra.mrb[140].mxu1 %v7469_v4 }
 0xc09   :  { %v7355_v8 = vpop.f32.mrb[168].mxu0 }
 0xc0a   :  { %v7357_v7 = vpop.f32.mrb[169].mxu0 }
 0xc0b   :  { %v7358_v47 = vpop.f32.mrb[170].mxu0 }
 0xc0c   :  { %v7470_v12 = vpack.c.bf16 %v7358_v47, %v7355_v8  ;;  %v7360_v5 = vpop.f32.mrb[171].mxu0 }
 0xc0e   :  { %15952 = vmatprep.mubr.bf16.mxu1 %v7470_v12 }
 0xc11   :  { %v7363_v23 = vpop.f32.mrb[172].mxu0 }
 0xc12   :  { %v7365_v50 = vpop.f32.mrb[173].mxu0 }
 0xc13   :  { %v7366_v11 = vpop.f32.mrb[174].mxu0 }
 0xc14   :  { %v7471_v30 = vpack.c.bf16 %v7366_v11, %v7363_v23  ;;  %v7368_v14 = vpop.f32.mrb[175].mxu0 }
 0xc16   :  { %15953 = vmatmul.mubr.bf16.gmra.mrb[144].mxu1 %v7471_v30 }
 0xc19   :  { %v7371_v16 = vpop.f32.mrb[176].mxu0 }
 0xc1a   :  { %v7373_v17 = vpop.f32.mrb[177].mxu0 }
 0xc1b   :  { %v7374_v57 = vpop.f32.mrb[178].mxu0 }
 0xc1c   :  { %v7472_v18 = vpack.c.bf16 %v7374_v57, %v7371_v16  ;;  %v7376_v35 = vpop.f32.mrb[179].mxu0 }
 0xc1e   :  { %15956 = vmatprep.mubr.bf16.mxu1 %v7472_v18 }
 0xc21   :  { %v7379_v53 = vpop.f32.mrb[180].mxu0 }
 0xc22   :  { %v7381_v19 = vpop.f32.mrb[181].mxu0 }
 0xc23   :  { %v7382_v22 = vpop.f32.mrb[182].mxu0 }
 0xc24   :  { %v7473_v21 = vpack.c.bf16 %v7382_v22, %v7379_v53  ;;  %v7384_v9 = vpop.f32.mrb[183].mxu0 }
 0xc26   :  { %15957 = vmatmul.mubr.bf16.gmra.mrb[148].mxu1 %v7473_v21 }
 0xc29   :  { %v7387_v24 = vpop.f32.mrb[184].mxu0 }
 0xc2a   :  { %v7389_v13 = vpop.f32.mrb[185].mxu0 }
 0xc2b   :  { %v7390_v26 = vpop.f32.mrb[186].mxu0 }
 0xc2c   :  { %v7474_v39 = vpack.c.bf16 %v7390_v26, %v7387_v24  ;;  %v7392_v56 = vpop.f32.mrb[187].mxu0 }
 0xc2d   :  { %v17945_v56 = vld [vmem:[#allocation3 + $0x4] ss:$16 sps:$4 sm:$0xff]  }
 0xc2e   :  { %15960 = vmatprep.mubr.bf16.mxu1 %v7474_v39 }
 0xc31   :  { %v7395_v31 = vpop.f32.mrb[188].mxu0 }
 0xc32   :  { %v7397_v27 = vpop.f32.mrb[189].mxu0 }
 0xc33   :  { %v7398_v29 = vpop.f32.mrb[190].mxu0 }
 0xc34   :  { %v7475_v36 = vpack.c.bf16 %v7398_v29, %v7395_v31  ;;  %v7400_v32 = vpop.f32.mrb[191].mxu0 }
 0xc36   :  { %15961 = vmatmul.mubr.bf16.gmra.mrb[152].mxu1 %v7475_v36 }
 0xc39   :  { %v7403_v33 = vpop.f32.mrb[192].mxu0 }
 0xc3a   :  { %v7405_v20 = vpop.f32.mrb[193].mxu0 }
 0xc3b   :  { %v7406_v34 = vpop.f32.mrb[194].mxu0 }
 0xc3c   :  { %v7476_v38 = vpack.c.bf16 %v7406_v34, %v7403_v33  ;;  %v7408_v49 = vpop.f32.mrb[195].mxu0 }
 0xc3e   :  { %15964 = vmatprep.mubr.bf16.mxu1 %v7476_v38 }
 0xc41   :  { %v7411_v40 = vpop.f32.mrb[196].mxu0 }
 0xc42   :  { %v7413_v42 = vpop.f32.mrb[197].mxu0 }
 0xc43   :  { %v7414_v60 = vpop.f32.mrb[198].mxu0 }
 0xc44   :  { %v7477_v37 = vpack.c.bf16 %v7414_v60, %v7411_v40  ;;  %v7416_v41 = vpop.f32.mrb[199].mxu0 }
 0xc46   :  { %15965 = vmatmul.mubr.bf16.gmra.mrb[156].mxu1 %v7477_v37 }
 0xc49   :  { %v7419_v43 = vpop.f32.mrb[200].mxu0  ;;  %v15914_v10 = vpop.f32.mrb[104].mxu1 }
 0xc4a   :  { %v7579_v25 = vadd.f32 %v15914_v10, %v19458_v59  ;;  %v7421_v44 = vpop.f32.mrb[201].mxu0  ;;  %v7570_v63 = vpop.f32.mrb[105].mxu1 }
 0xc4b   :  { %v7571_v15 = vadd.f32 %v19458_v59, %v7570_v63  ;;  %v7422_v46 = vpop.f32.mrb[202].mxu0  ;;  %v15915_v48 = vpop.f32.mrb[106].mxu1 }
 0xc4c   :  { %v7478_v45 = vpack.c.bf16 %v7422_v46, %v7419_v43  ;;  %v7582_v51 = vadd.f32 %v15915_v48, %v19458_v59  ;;  %v7424_v55 = vpop.f32.mrb[203].mxu0  ;;  %v7573_v52 = vpop.f32.mrb[107].mxu1  ;;  %v7827_v58 = vmax.f32 %v7579_v25, 0.0 }
 0xc4d   :  { %v7574_v2 = vadd.f32 %v19458_v59, %v7573_v52  ;;  %v7825_v28 = vmax.f32 %v7571_v15, 0.0 }
 0xc4e   :  { %v7828_v54 = vmax.f32 %v7582_v51, 0.0  ;;  %15968 = vmatprep.mubr.bf16.mxu1 %v7478_v45 }
 0xc4f   :  { %v7826_v6 = vmax.f32 %v7574_v2, 0.0 }
 0xc50   :  { %v7890_v61 = vpack.c.bf16 %v7828_v54, %v7827_v58 }
 0xc51   :  { %v7427_v62 = vpop.f32.mrb[204].mxu0  ;;  %v7889_v3 = vpack.c.bf16 %v7826_v6, %v7825_v28 }
 0xc52   :  { %v7429_v4 = vpop.f32.mrb[205].mxu0 }
 0xc53   :  { %v7430_v1 = vpop.f32.mrb[206].mxu0  ;;  %8773 = vmatpush1.bf16.msra.mxu1 %v7889_v3 }
 0xc54   :  { %v7479_v8 = vpack.c.bf16 %v7430_v1, %v7427_v62  ;;  %v7432_v7 = vpop.f32.mrb[207].mxu0  ;;  %8774 = vmatprep.subr.bf16.mxu1 %v18900_v0 }
 0xc56   :  { %15969 = vmatmul.mubr.bf16.gmra.mrb[160].mxu1 %v7479_v8 }
 0xc57   :  { %8775 = vmatpush1.bf16.msra.mxu1 %v7890_v61 }
 0xc58   :  { %8776 = vmatprep.subr.bf16.mxu1 %v18900_v0 }
 0xc59   :  { %v7435_v47 = vpop.f32.mrb[208].mxu0  ;;  %v15918_v12 = vpop.f32.mrb[108].mxu1 }
 0xc5a   :  { %v7595_v5 = vadd.f32 %v15918_v12, %v19458_v59  ;;  %v7437_v23 = vpop.f32.mrb[209].mxu0  ;;  %v7586_v50 = vpop.f32.mrb[109].mxu1 }
 0xc5b   :  { %v7587_v11 = vadd.f32 %v19458_v59, %v7586_v50  ;;  %v7438_v30 = vpop.f32.mrb[210].mxu0  ;;  %v15919_v14 = vpop.f32.mrb[110].mxu1 }
 0xc5c   :  { %v7480_v16 = vpack.c.bf16 %v7438_v30, %v7435_v47  ;;  %v7598_v17 = vadd.f32 %v15919_v14, %v19458_v59  ;;  %v7440_v57 = vpop.f32.mrb[211].mxu0  ;;  %v7589_v18 = vpop.f32.mrb[111].mxu1  ;;  %v7831_v53 = vmax.f32 %v7595_v5, 0.0 }
 0xc5d   :  { %v7590_v35 = vadd.f32 %v19458_v59, %v7589_v18  ;;  %v7829_v22 = vmax.f32 %v7587_v11, 0.0 }
 0xc5e   :  { %v7832_v19 = vmax.f32 %v7598_v17, 0.0  ;;  %15972 = vmatprep.mubr.bf16.mxu1 %v7480_v16 }
 0xc5f   :  { %v7830_v21 = vmax.f32 %v7590_v35, 0.0 }
 0xc60   :  { %v7892_v9 = vpack.c.bf16 %v7832_v19, %v7831_v53 }
 0xc61   :  { %v7443_v24 = vpop.f32.mrb[212].mxu0  ;;  %v7891_v13 = vpack.c.bf16 %v7830_v21, %v7829_v22 }
 0xc62   :  { %v7445_v26 = vpop.f32.mrb[213].mxu0 }
 0xc63   :  { %v7446_v39 = vpop.f32.mrb[214].mxu0  ;;  %8777 = vmatpush1.bf16.msra.mxu1 %v7891_v13 }
 0xc64   :  { %v7481_v31 = vpack.c.bf16 %v7446_v39, %v7443_v24  ;;  %v7448_v27 = vpop.f32.mrb[215].mxu0  ;;  %8778 = vmatprep.subr.bf16.mxu1 %v18900_v0 }
 0xc66   :  { %15973 = vmatmul.mubr.bf16.gmra.mrb[164].mxu1 %v7481_v31 }
 0xc67   :  { %8779 = vmatpush1.bf16.msra.mxu1 %v7892_v9  ;;  %8804 = vmatprep.mubr.bf16.mxu1 %v17945_v56 }
 0xc68   :  { %8780 = vmatprep.subr.bf16.mxu1 %v18900_v0 }
 0xc69   :  { %v15922_v29 = vpop.f32.mrb[112].mxu1 }
 0xc6a   :  { %v7611_v36 = vadd.f32 %v15922_v29, %v19458_v59  ;;  %v7602_v32 = vpop.f32.mrb[113].mxu1 }
 0xc6b   :  { %v7603_v33 = vadd.f32 %v19458_v59, %v7602_v32  ;;  %v15923_v20 = vpop.f32.mrb[114].mxu1 }
 0xc6c   :  { %v7614_v34 = vadd.f32 %v15923_v20, %v19458_v59  ;;  %v7605_v38 = vpop.f32.mrb[115].mxu1  ;;  %v7835_v40 = vmax.f32 %v7611_v36, 0.0 }
 0xc6d   :  { %v7606_v49 = vadd.f32 %v19458_v59, %v7605_v38  ;;  %v7833_v60 = vmax.f32 %v7603_v33, 0.0 }
 0xc6e   :  { %v7836_v42 = vmax.f32 %v7614_v34, 0.0 }
 0xc6f   :  { %v7834_v37 = vmax.f32 %v7606_v49, 0.0 }
 0xc70   :  { %v7894_v41 = vpack.c.bf16 %v7836_v42, %v7835_v40 }
 0xc71   :  { %v7893_v43 = vpack.c.bf16 %v7834_v37, %v7833_v60 }
 0xc73   :  { %8781 = vmatpush1.bf16.msra.mxu1 %v7893_v43 }
 0xc74   :  { %8782 = vmatprep.subr.bf16.mxu1 %v18900_v0 }
 0xc77   :  { %8783 = vmatpush1.bf16.msra.mxu1 %v7894_v41 }
 0xc78   :  { %8784 = vmatprep.subr.bf16.mxu1 %v18900_v0 }
 0xc79   :  { %v15926_v10 = vpop.f32.mrb[116].mxu1 }
 0xc7a   :  { %v7627_v25 = vadd.f32 %v15926_v10, %v19458_v59  ;;  %v7618_v44 = vpop.f32.mrb[117].mxu1 }
 0xc7b   :  { %v7619_v63 = vadd.f32 %v19458_v59, %v7618_v44  ;;  %v15927_v15 = vpop.f32.mrb[118].mxu1 }
 0xc7c   :  { %v7630_v46 = vadd.f32 %v15927_v15, %v19458_v59  ;;  %v7621_v48 = vpop.f32.mrb[119].mxu1  ;;  %v7839_v51 = vmax.f32 %v7627_v25, 0.0 }
 0xc7d   :  { %v7622_v45 = vadd.f32 %v19458_v59, %v7621_v48  ;;  %v7837_v52 = vmax.f32 %v7619_v63, 0.0 }
 0xc7e   :  { %v7840_v55 = vmax.f32 %v7630_v46, 0.0 }
 0xc7f   :  { %v7838_v2 = vmax.f32 %v7622_v45, 0.0 }
 0xc80   :  { %v7896_v58 = vpack.c.bf16 %v7840_v55, %v7839_v51  ;;  %v17943_v51 = vld [vmem:[#allocation3] ss:$16 sps:$4 sm:$0xff]   ;;  %v17948_v55 = vld [vmem:[#allocation3 + $0x24] ss:$16 sps:$4 sm:$0xff]  }
 0xc81   :  { %v7895_v54 = vpack.c.bf16 %v7838_v2, %v7837_v52 }
 0xc83   :  { %8785 = vmatpush1.bf16.msra.mxu1 %v7895_v54 }
 0xc84   :  { %8786 = vmatprep.subr.bf16.mxu1 %v18900_v0 }
 0xc87   :  { %8787 = vmatpush1.bf16.msra.mxu1 %v7896_v58 }
 0xc88   :  { %8788 = vmatprep.subr.bf16.mxu1 %v18900_v0 }
 0xc89   :  { %v15930_v28 = vpop.f32.mrb[120].mxu1 }
 0xc8a   :  { %v7643_v6 = vadd.f32 %v15930_v28, %v19458_v59  ;;  %v7634_v61 = vpop.f32.mrb[121].mxu1 }
 0xc8b   :  { %v7635_v62 = vadd.f32 %v19458_v59, %v7634_v61  ;;  %v15931_v3 = vpop.f32.mrb[122].mxu1 }
 0xc8c   :  { %v7646_v4 = vadd.f32 %v15931_v3, %v19458_v59  ;;  %v7637_v1 = vpop.f32.mrb[123].mxu1  ;;  %v7843_v7 = vmax.f32 %v7643_v6, 0.0 }
 0xc8d   :  { %v7638_v8 = vadd.f32 %v19458_v59, %v7637_v1  ;;  %v7841_v12 = vmax.f32 %v7635_v62, 0.0  ;;  %v17946_v1 = vld [vmem:[#allocation3 + $0x20] ss:$16 sps:$4 sm:$0xff]  }
 0xc8e   :  { %v7844_v47 = vmax.f32 %v7646_v4, 0.0 }
 0xc8f   :  { %v7842_v5 = vmax.f32 %v7638_v8, 0.0 }
 0xc90   :  { %v7898_v23 = vpack.c.bf16 %v7844_v47, %v7843_v7  ;;  %v17951_v47 = vld [vmem:[#allocation3 + $0x44] ss:$16 sps:$4 sm:$0xff]  }
 0xc91   :  { %v7897_v50 = vpack.c.bf16 %v7842_v5, %v7841_v12 }
 0xc93   :  { %8789 = vmatpush1.bf16.msra.mxu1 %v7897_v50  ;;  %v17954_v50 = vld [vmem:[#allocation3 + $0x64] ss:$16 sps:$4 sm:$0xff]  }
 0xc94   :  { %8790 = vmatprep.subr.bf16.mxu1 %v18900_v0 }
 0xc97   :  { %8791 = vmatpush1.bf16.msra.mxu1 %v7898_v23  ;;  %v17949_v23 = vld [vmem:[#allocation3 + $0x40] ss:$16 sps:$4 sm:$0xff]  }
 0xc98   :  { %8792 = vmatprep.subr.bf16.mxu1 %v18900_v0 }
 0xc99   :  { %v15934_v11 = vpop.f32.mrb[124].mxu1 }
 0xc9a   :  { %v7659_v30 = vadd.f32 %v15934_v11, %v19458_v59  ;;  %v7650_v14 = vpop.f32.mrb[125].mxu1 }
 0xc9b   :  { %v7651_v16 = vadd.f32 %v19458_v59, %v7650_v14  ;;  %v15935_v17 = vpop.f32.mrb[126].mxu1 }
 0xc9c   :  { %v7662_v57 = vadd.f32 %v15935_v17, %v19458_v59  ;;  %v7653_v18 = vpop.f32.mrb[127].mxu1  ;;  %v7847_v53 = vmax.f32 %v7659_v30, 0.0 }
 0xc9d   :  { %v7654_v35 = vadd.f32 %v19458_v59, %v7653_v18  ;;  %v7845_v22 = vmax.f32 %v7651_v16, 0.0 }
 0xc9e   :  { %v7848_v19 = vmax.f32 %v7662_v57, 0.0 }
 0xc9f   :  { %v7846_v21 = vmax.f32 %v7654_v35, 0.0 }
 0xca0   :  { %v7900_v9 = vpack.c.bf16 %v7848_v19, %v7847_v53 }
 0xca1   :  { %v7899_v24 = vpack.c.bf16 %v7846_v21, %v7845_v22  ;;  %v17952_v22 = vld [vmem:[#allocation3 + $0x60] ss:$16 sps:$4 sm:$0xff]  }
 0xca3   :  { %8793 = vmatpush1.bf16.msra.mxu1 %v7899_v24  ;;  %v17957_v24 = vld [vmem:[#allocation3 + $0x84] ss:$16 sps:$4 sm:$0xff]  }
 0xca4   :  { %8794 = vmatprep.subr.bf16.mxu1 %v18900_v0 }
 0xca7   :  { %8795 = vmatpush1.bf16.msra.mxu1 %v7900_v9 }
 0xca8   :  { %8796 = vmatprep.subr.bf16.mxu1 %v18900_v0 }
 0xca9   :  { %v15938_v13 = vpop.f32.mrb[128].mxu1 }
 0xcaa   :  { %v7675_v26 = vadd.f32 %v15938_v13, %v19458_v59  ;;  %v7666_v39 = vpop.f32.mrb[129].mxu1 }
 0xcab   :  { %v7667_v56 = vadd.f32 %v19458_v59, %v7666_v39  ;;  %v15939_v31 = vpop.f32.mrb[130].mxu1  ;;  %v17955_v39 = vld [vmem:[#allocation3 + $0x80] ss:$16 sps:$4 sm:$0xff]  }
 0xcac   :  { %v7678_v27 = vadd.f32 %v15939_v31, %v19458_v59  ;;  %v7669_v29 = vpop.f32.mrb[131].mxu1  ;;  %v7851_v32 = vmax.f32 %v7675_v26, 0.0 }
 0xcad   :  { %v7670_v36 = vadd.f32 %v19458_v59, %v7669_v29  ;;  %v7849_v20 = vmax.f32 %v7667_v56, 0.0  ;;  %v17960_v56 = vld [vmem:[#allocation3 + $0xa4] ss:$16 sps:$4 sm:$0xff]  }
 0xcae   :  { %v7852_v33 = vmax.f32 %v7678_v27, 0.0 }
 0xcaf   :  { %v7850_v34 = vmax.f32 %v7670_v36, 0.0 }
 0xcb0   :  { %v7902_v38 = vpack.c.bf16 %v7852_v33, %v7851_v32 }
 0xcb1   :  { %v7901_v49 = vpack.c.bf16 %v7850_v34, %v7849_v20 }
 0xcb3   :  { %8797 = vmatpush1.bf16.msra.mxu1 %v7901_v49 }
 0xcb4   :  { %8798 = vmatprep.subr.bf16.mxu1 %v18900_v0 }
 0xcb7   :  { %8799 = vmatpush1.bf16.msra.mxu1 %v7902_v38 }
 0xcb8   :  { %8800 = vmatprep.subr.bf16.mxu1 %v18900_v0 }
 0xcb9   :  { %v15942_v40 = vpop.f32.mrb[132].mxu1 }
 0xcba   :  { %v7691_v42 = vadd.f32 %v15942_v40, %v19458_v59  ;;  %v7682_v60 = vpop.f32.mrb[133].mxu1  ;;  %v17958_v40 = vld [vmem:[#allocation3 + $0xa0] ss:$16 sps:$4 sm:$0xff]  }
 0xcbb   :  { %v7683_v37 = vadd.f32 %v19458_v59, %v7682_v60  ;;  %v15943_v41 = vpop.f32.mrb[134].mxu1 }
 0xcbc   :  { %v7694_v43 = vadd.f32 %v15943_v41, %v19458_v59  ;;  %v7685_v10 = vpop.f32.mrb[135].mxu1  ;;  %v7855_v44 = vmax.f32 %v7691_v42, 0.0 }
 0xcbd   :  { %v7686_v25 = vadd.f32 %v19458_v59, %v7685_v10  ;;  %v7853_v15 = vmax.f32 %v7683_v37, 0.0  ;;  %v17963_v37 = vld [vmem:[#allocation3 + $0xc4] ss:$16 sps:$4 sm:$0xff]   ;;  %v17961_v10 = vld [vmem:[#allocation3 + $0xc0] ss:$16 sps:$4 sm:$0xff]  }
 0xcbe   :  { %v7856_v63 = vmax.f32 %v7694_v43, 0.0 }
 0xcbf   :  { %v7854_v46 = vmax.f32 %v7686_v25, 0.0  ;;  %v17966_v25 = vld [vmem:[#allocation3 + $0xe4] ss:$16 sps:$4 sm:$0xff]  }
 0xcc0   :  { %v7904_v48 = vpack.c.bf16 %v7856_v63, %v7855_v44 }
 0xcc1   :  { %v7903_v45 = vpack.c.bf16 %v7854_v46, %v7853_v15 }
 0xcc3   :  { %8801 = vmatpush1.bf16.msra.mxu1 %v7903_v45 }
 0xcc4   :  { %8802 = vmatprep.subr.bf16.mxu1 %v18900_v0 }
 0xcc7   :  { %8803 = vmatpush1.bf16.msra.mxu1 %v7904_v48 }
 0xcc8   :  { %9061 = vmatprep.subr.bf16.mxu1 %v18900_v0 }
 0xcc9   :  { %v15946_v52 = vpop.f32.mrb[136].mxu1 }
 0xcca   :  { %v7707_v2 = vadd.f32 %v15946_v52, %v19458_v59  ;;  %v7698_v58 = vpop.f32.mrb[137].mxu1  ;;  %8805 = vmatmul.mubr.bf16.vlgmr.msra.gmra.mrb[168].mxu1 %v17943_v51 }
 0xccb   :  { %v7699_v54 = vadd.f32 %v19458_v59, %v7698_v58  ;;  %v15947_v28 = vpop.f32.mrb[138].mxu1  ;;  %8812 = vmatprep.mubr.bf16.mxu1 %v17948_v55  ;;  %v17964_v58 = vld [vmem:[#allocation3 + $0xe0] ss:$16 sps:$4 sm:$0xff]  }
 0xccc   :  { %v7710_v6 = vadd.f32 %v15947_v28, %v19458_v59  ;;  %v7701_v61 = vpop.f32.mrb[139].mxu1  ;;  %v7859_v3 = vmax.f32 %v7707_v2, 0.0 }
 0xccd   :  { %v7702_v62 = vadd.f32 %v19458_v59, %v7701_v61  ;;  %v7857_v8 = vmax.f32 %v7699_v54, 0.0 }
 0xcce   :  { %v7860_v4 = vmax.f32 %v7710_v6, 0.0  ;;  %v17969_v6 = vld [vmem:[#allocation3 + $0x104] ss:$16 sps:$4 sm:$0xff]  }
 0xccf   :  { %v7858_v7 = vmax.f32 %v7702_v62, 0.0 }
 0xcd0   :  { %v7906_v12 = vpack.c.bf16 %v7860_v4, %v7859_v3  ;;  %v17967_v3 = vld [vmem:[#allocation3 + $0x100] ss:$16 sps:$4 sm:$0xff]   ;;  %v17972_v4 = vld [vmem:[#allocation3 + $0x124] ss:$16 sps:$4 sm:$0xff]  }
 0xcd1   :  { %v7905_v5 = vpack.c.bf16 %v7858_v7, %v7857_v8 }
 0xcd2   :  { %8813 = vmatmul.mubr.bf16.gmra.mrb[172].mxu1 %v17946_v1 }
 0xcd3   :  { %9062 = vmatpush1.bf16.msra.mxu1 %v7905_v5  ;;  %8820 = vmatprep.mubr.bf16.mxu1 %v17951_v47 }
 0xcd4   :  { %9063 = vmatprep.subr.bf16.mxu1 %v18900_v0 }
 0xcd7   :  { %9064 = vmatpush1.bf16.msra.mxu1 %v7906_v12 }
 0xcd8   :  { %9065 = vmatprep.subr.bf16.mxu1 %v18900_v0 }
 0xcd9   :  { %v15950_v11 = vpop.f32.mrb[140].mxu1 }
 0xcda   :  { %v7723_v30 = vadd.f32 %v15950_v11, %v19458_v59  ;;  %v7714_v14 = vpop.f32.mrb[141].mxu1  ;;  %8821 = vmatmul.mubr.bf16.gmra.mrb[176].mxu1 %v17949_v23 }
 0xcdb   :  { %v7715_v16 = vadd.f32 %v19458_v59, %v7714_v14  ;;  %v15951_v17 = vpop.f32.mrb[142].mxu1  ;;  %8828 = vmatprep.mubr.bf16.mxu1 %v17954_v50  ;;  %v17970_v14 = vld [vmem:[#allocation3 + $0x120] ss:$16 sps:$4 sm:$0xff]  }
 0xcdc   :  { %v7726_v57 = vadd.f32 %v15951_v17, %v19458_v59  ;;  %v7717_v18 = vpop.f32.mrb[143].mxu1  ;;  %v7863_v53 = vmax.f32 %v7723_v30, 0.0 }
 0xcdd   :  { %v7718_v35 = vadd.f32 %v19458_v59, %v7717_v18  ;;  %v7861_v21 = vmax.f32 %v7715_v16, 0.0 }
 0xcde   :  { %v7864_v19 = vmax.f32 %v7726_v57, 0.0  ;;  %v17975_v57 = vld [vmem:[#allocation3 + $0x144] ss:$16 sps:$4 sm:$0xff]  }
 0xcdf   :  { %v7862_v9 = vmax.f32 %v7718_v35, 0.0 }
 0xce0   :  { %v7908_v13 = vpack.c.bf16 %v7864_v19, %v7863_v53  ;;  %v17973_v53 = vld [vmem:[#allocation3 + $0x140] ss:$16 sps:$4 sm:$0xff]   ;;  %v17978_v19 = vld [vmem:[#allocation3 + $0x164] ss:$16 sps:$4 sm:$0xff]  }
 0xce1   :  { %v7907_v26 = vpack.c.bf16 %v7862_v9, %v7861_v21 }
 0xce2   :  { %8829 = vmatmul.mubr.bf16.gmra.mrb[180].mxu1 %v17952_v22 }
 0xce3   :  { %9066 = vmatpush1.bf16.msra.mxu1 %v7907_v26  ;;  %8836 = vmatprep.mubr.bf16.mxu1 %v17957_v24 }
 0xce4   :  { %9067 = vmatprep.subr.bf16.mxu1 %v18900_v0 }
 0xce7   :  { %9068 = vmatpush1.bf16.msra.mxu1 %v7908_v13 }
 0xce8   :  { %9069 = vmatprep.subr.bf16.mxu1 %v18900_v0 }
 0xce9   :  { %v15954_v31 = vpop.f32.mrb[144].mxu1 }
 0xcea   :  { %v7739_v27 = vadd.f32 %v15954_v31, %v19458_v59  ;;  %v7730_v29 = vpop.f32.mrb[145].mxu1  ;;  %8837 = vmatmul.mubr.bf16.gmra.mrb[184].mxu1 %v17955_v39 }
 0xceb   :  { %v7731_v36 = vadd.f32 %v19458_v59, %v7730_v29  ;;  %v15955_v32 = vpop.f32.mrb[146].mxu1  ;;  %8844 = vmatprep.mubr.bf16.mxu1 %v17960_v56  ;;  %v17976_v29 = vld [vmem:[#allocation3 + $0x160] ss:$16 sps:$4 sm:$0xff]  }
 0xcec   :  { %v7742_v33 = vadd.f32 %v15955_v32, %v19458_v59  ;;  %v7733_v20 = vpop.f32.mrb[147].mxu1  ;;  %v7867_v38 = vmax.f32 %v7739_v27, 0.0 }
 0xced   :  { %v7734_v34 = vadd.f32 %v19458_v59, %v7733_v20  ;;  %v7865_v42 = vmax.f32 %v7731_v36, 0.0 }
 0xcee   :  { %v7868_v49 = vmax.f32 %v7742_v33, 0.0  ;;  %v17981_v33 = vld [vmem:[#allocation3 + $0x184] ss:$16 sps:$4 sm:$0xff]  }
 0xcef   :  { %v7866_v60 = vmax.f32 %v7734_v34, 0.0 }
 0xcf0   :  { %v7910_v41 = vpack.c.bf16 %v7868_v49, %v7867_v38  ;;  %v17979_v38 = vld [vmem:[#allocation3 + $0x180] ss:$16 sps:$4 sm:$0xff]   ;;  %v17984_v49 = vld [vmem:[#allocation3 + $0x1a4] ss:$16 sps:$4 sm:$0xff]  }
 0xcf1   :  { %v7909_v43 = vpack.c.bf16 %v7866_v60, %v7865_v42 }
 0xcf2   :  { %8845 = vmatmul.mubr.bf16.gmra.mrb[188].mxu1 %v17958_v40 }
 0xcf3   :  { %9070 = vmatpush1.bf16.msra.mxu1 %v7909_v43  ;;  %8852 = vmatprep.mubr.bf16.mxu1 %v17963_v37 }
 0xcf4   :  { %9071 = vmatprep.subr.bf16.mxu1 %v18900_v0 }
 0xcf7   :  { %9072 = vmatpush1.bf16.msra.mxu1 %v7910_v41 }
 0xcf8   :  { %9073 = vmatprep.subr.bf16.mxu1 %v18900_v0 }
 0xcf9   :  { %v15958_v44 = vpop.f32.mrb[148].mxu1 }
 0xcfa   :  { %v7755_v63 = vadd.f32 %v15958_v44, %v19458_v59  ;;  %v7746_v15 = vpop.f32.mrb[149].mxu1  ;;  %8853 = vmatmul.mubr.bf16.gmra.mrb[64].mxu1 %v17961_v10 }
 0xcfb   :  { %v7747_v46 = vadd.f32 %v19458_v59, %v7746_v15  ;;  %v15959_v48 = vpop.f32.mrb[150].mxu1  ;;  %8860 = vmatprep.mubr.bf16.mxu1 %v17966_v25  ;;  %v17982_v15 = vld [vmem:[#allocation3 + $0x1a0] ss:$16 sps:$4 sm:$0xff]  }
 0xcfc   :  { %v7758_v45 = vadd.f32 %v15959_v48, %v19458_v59  ;;  %v7749_v51 = vpop.f32.mrb[151].mxu1  ;;  %v7871_v52 = vmax.f32 %v7755_v63, 0.0 }
 0xcfd   :  { %v7750_v55 = vadd.f32 %v19458_v59, %v7749_v51  ;;  %v7869_v54 = vmax.f32 %v7747_v46, 0.0 }
 0xcfe   :  { %v7872_v2 = vmax.f32 %v7758_v45, 0.0  ;;  %v17987_v45 = vld [vmem:[#allocation3 + $0x1c4] ss:$16 sps:$4 sm:$0xff]  }
 0xcff   :  { %v7870_v28 = vmax.f32 %v7750_v55, 0.0 }
 0xd00   :  { %v7912_v61 = vpack.c.bf16 %v7872_v2, %v7871_v52  ;;  %v17985_v52 = vld [vmem:[#allocation3 + $0x1c0] ss:$16 sps:$4 sm:$0xff]   ;;  %v17990_v2 = vld [vmem:[#allocation3 + $0x1e4] ss:$16 sps:$4 sm:$0xff]  }
 0xd01   :  { %v7911_v62 = vpack.c.bf16 %v7870_v28, %v7869_v54 }
 0xd02   :  { %8861 = vmatmul.mubr.bf16.gmra.mrb[68].mxu1 %v17964_v58 }
 0xd03   :  { %9074 = vmatpush1.bf16.msra.mxu1 %v7911_v62  ;;  %8868 = vmatprep.mubr.bf16.mxu1 %v17969_v6 }
 0xd04   :  { %9075 = vmatprep.subr.bf16.mxu1 %v18900_v0 }
 0xd07   :  { %9076 = vmatpush1.bf16.msra.mxu1 %v7912_v61 }
 0xd08   :  { %9077 = vmatprep.subr.bf16.mxu1 %v18900_v0 }
 0xd09   :  { %v15962_v1 = vpop.f32.mrb[152].mxu1 }
 0xd0a   :  { %v7771_v8 = vadd.f32 %v15962_v1, %v19458_v59  ;;  %v7762_v7 = vpop.f32.mrb[153].mxu1  ;;  %8869 = vmatmul.mubr.bf16.gmra.mrb[72].mxu1 %v17967_v3 }
 0xd0b   :  { %v7763_v47 = vadd.f32 %v19458_v59, %v7762_v7  ;;  %v15963_v12 = vpop.f32.mrb[154].mxu1  ;;  %8876 = vmatprep.mubr.bf16.mxu1 %v17972_v4  ;;  %v17988_v7 = vld [vmem:[#allocation3 + $0x1e0] ss:$16 sps:$4 sm:$0xff]  }
 0xd0c   :  { %v7774_v5 = vadd.f32 %v15963_v12, %v19458_v59  ;;  %v7765_v23 = vpop.f32.mrb[155].mxu1  ;;  %v7875_v11 = vmax.f32 %v7771_v8, 0.0 }
 0xd0d   :  { %v7766_v50 = vadd.f32 %v19458_v59, %v7765_v23  ;;  %v7873_v16 = vmax.f32 %v7763_v47, 0.0 }
 0xd0e   :  { %v7876_v30 = vmax.f32 %v7774_v5, 0.0  ;;  %v17993_v5 = vld [vmem:[#allocation3 + $0x204] ss:$16 sps:$4 sm:$0xff]  }
 0xd0f   :  { %v7874_v17 = vmax.f32 %v7766_v50, 0.0 }
 0xd10   :  { %v7914_v18 = vpack.c.bf16 %v7876_v30, %v7875_v11  ;;  %v17991_v11 = vld [vmem:[#allocation3 + $0x200] ss:$16 sps:$4 sm:$0xff]   ;;  %v17996_v30 = vld [vmem:[#allocation3 + $0x224] ss:$16 sps:$4 sm:$0xff]  }
 0xd11   :  { %v7913_v35 = vpack.c.bf16 %v7874_v17, %v7873_v16  ;;  %v17997_v16 = vld [vmem:[#allocation3 + $0x240] ss:$16 sps:$4 sm:$0xff]   ;;  %v18002_v17 = vld [vmem:[#allocation3 + $0x264] ss:$16 sps:$4 sm:$0xff]  }
 0xd12   :  { %8877 = vmatmul.mubr.bf16.gmra.mrb[76].mxu1 %v17970_v14  ;;  %v17994_v14 = vld [vmem:[#allocation3 + $0x220] ss:$16 sps:$4 sm:$0xff]  }
 0xd13   :  { %9078 = vmatpush1.bf16.msra.mxu1 %v7913_v35  ;;  %8884 = vmatprep.mubr.bf16.mxu1 %v17975_v57  ;;  %v18000_v57 = vld [vmem:[#allocation3 + $0x260] ss:$16 sps:$4 sm:$0xff]  }
 0xd14   :  { %9079 = vmatprep.subr.bf16.mxu1 %v18900_v0  ;;  %v18003_v35 = vld [vmem:[#allocation3 + $0x280] ss:$16 sps:$4 sm:$0xff]  }
 0xd17   :  { %9080 = vmatpush1.bf16.msra.mxu1 %v7914_v18  ;;  %v18005_v18 = vld [vmem:[#allocation3 + $0x284] ss:$16 sps:$4 sm:$0xff]  }
 0xd18   :  { %9081 = vmatprep.subr.bf16.mxu1 %v18900_v0 }
 0xd19   :  { %v15966_v22 = vpop.f32.mrb[156].mxu1 }
 0xd1a   :  { %v7787_v21 = vadd.f32 %v15966_v22, %v19458_v59  ;;  %v7778_v9 = vpop.f32.mrb[157].mxu1  ;;  %8885 = vmatmul.mubr.bf16.gmra.mrb[80].mxu1 %v17973_v53  ;;  %v18008_v53 = vld [vmem:[#allocation3 + $0x2a4] ss:$16 sps:$4 sm:$0xff]  }
 0xd1b   :  { %v7779_v24 = vadd.f32 %v19458_v59, %v7778_v9  ;;  %v15967_v13 = vpop.f32.mrb[158].mxu1  ;;  %8892 = vmatprep.mubr.bf16.mxu1 %v17978_v19  ;;  %v18006_v19 = vld [vmem:[#allocation3 + $0x2a0] ss:$16 sps:$4 sm:$0xff]   ;;  %v18011_v22 = vld [vmem:[#allocation3 + $0x2c4] ss:$16 sps:$4 sm:$0xff]  }
 0xd1c   :  { %v7790_v26 = vadd.f32 %v15967_v13, %v19458_v59  ;;  %v7781_v39 = vpop.f32.mrb[159].mxu1  ;;  %v7879_v31 = vmax.f32 %v7787_v21, 0.0  ;;  %v18009_v21 = vld [vmem:[#allocation3 + $0x2c0] ss:$16 sps:$4 sm:$0xff]   ;;  %v18014_v9 = vld [vmem:[#allocation3 + $0x2e4] ss:$16 sps:$4 sm:$0xff]  }
 0xd1d   :  { %v7782_v56 = vadd.f32 %v19458_v59, %v7781_v39  ;;  %v7877_v36 = vmax.f32 %v7779_v24, 0.0  ;;  %v18012_v24 = vld [vmem:[#allocation3 + $0x2e0] ss:$16 sps:$4 sm:$0xff]   ;;  %v18017_v13 = vld [vmem:[#allocation3 + $0x304] ss:$16 sps:$4 sm:$0xff]  }
 0xd1e   :  { %v7880_v27 = vmax.f32 %v7790_v26, 0.0  ;;  %v18015_v26 = vld [vmem:[#allocation3 + $0x300] ss:$16 sps:$4 sm:$0xff]   ;;  %v18020_v39 = vld [vmem:[#allocation3 + $0x324] ss:$16 sps:$4 sm:$0xff]  }
 0xd1f   :  { %v7878_v32 = vmax.f32 %v7782_v56, 0.0  ;;  %v18018_v56 = vld [vmem:[#allocation3 + $0x320] ss:$16 sps:$4 sm:$0xff]  }
 0xd20   :  { %v7916_v20 = vpack.c.bf16 %v7880_v27, %v7879_v31  ;;  %v18023_v31 = vld [vmem:[#allocation3 + $0x344] ss:$16 sps:$4 sm:$0xff]   ;;  %v18021_v27 = vld [vmem:[#allocation3 + $0x340] ss:$16 sps:$4 sm:$0xff]  }
 0xd21   :  { %v7915_v34 = vpack.c.bf16 %v7878_v32, %v7877_v36  ;;  %v18024_v36 = vld [vmem:[#allocation3 + $0x360] ss:$16 sps:$4 sm:$0xff]   ;;  %v18029_v32 = vld [vmem:[#allocation3 + $0x384] ss:$16 sps:$4 sm:$0xff]  }
 0xd22   :  { %8893 = vmatmul.mubr.bf16.gmra.mrb[84].mxu1 %v17976_v29  ;;  %v18026_v29 = vld [vmem:[#allocation3 + $0x364] ss:$16 sps:$4 sm:$0xff]  }
 0xd23   :  { %9082 = vmatpush1.bf16.msra.mxu1 %v7915_v34  ;;  %8900 = vmatprep.mubr.bf16.mxu1 %v17981_v33  ;;  %v18027_v33 = vld [vmem:[#allocation3 + $0x380] ss:$16 sps:$4 sm:$0xff]  }
 0xd24   :  { %9083 = vmatprep.subr.bf16.mxu1 %v18900_v0  ;;  %v18030_v34 = vld [vmem:[#allocation3 + $0x3a0] ss:$16 sps:$4 sm:$0xff]  }
 0xd27   :  { %9084 = vmatpush1.bf16.msra.mxu1 %v7916_v20  ;;  %v18032_v20 = vld [vmem:[#allocation3 + $0x3a4] ss:$16 sps:$4 sm:$0xff]  }
 0xd28   :  { %9085 = vmatprep.subr.bf16.mxu1 %v18900_v0 }
 0xd29   :  { %v15970_v40 = vpop.f32.mrb[160].mxu1 }
 0xd2a   :  { %v7803_v42 = vadd.f32 %v15970_v40, %v19458_v59  ;;  %v7794_v60 = vpop.f32.mrb[161].mxu1  ;;  %8901 = vmatmul.mubr.bf16.gmra.mrb[88].mxu1 %v17979_v38  ;;  %v18035_v38 = vld [vmem:[#allocation3 + $0x3c4] ss:$16 sps:$4 sm:$0xff]  }
 0xd2b   :  { %v7795_v37 = vadd.f32 %v19458_v59, %v7794_v60  ;;  %v15971_v41 = vpop.f32.mrb[162].mxu1  ;;  %8908 = vmatprep.mubr.bf16.mxu1 %v17984_v49  ;;  %v18033_v49 = vld [vmem:[#allocation3 + $0x3c0] ss:$16 sps:$4 sm:$0xff]   ;;  %v18038_v40 = vld [vmem:[#allocation3 + $0x3e4] ss:$16 sps:$4 sm:$0xff]  }
 0xd2c   :  { %v7806_v43 = vadd.f32 %v15971_v41, %v19458_v59  ;;  %v7797_v10 = vpop.f32.mrb[163].mxu1  ;;  %v7883_v44 = vmax.f32 %v7803_v42, 0.0  ;;  %v18036_v42 = vld [vmem:[#allocation3 + $0x3e0] ss:$16 sps:$4 sm:$0xff]   ;;  %v18041_v60 = vld [vmem:[#allocation3 + $0xc] ss:$16 sps:$4 sm:$0xff]  }
 0xd2d   :  { %v7798_v25 = vadd.f32 %v19458_v59, %v7797_v10  ;;  %v7881_v46 = vmax.f32 %v7795_v37, 0.0  ;;  %v18039_v37 = vld [vmem:[#allocation3 + $0x8] ss:$16 sps:$4 sm:$0xff]   ;;  %v18044_v41 = vld [vmem:[#allocation3 + $0x2c] ss:$16 sps:$4 sm:$0xff]  }
 0xd2e   :  { %v7884_v63 = vmax.f32 %v7806_v43, 0.0  ;;  %v18042_v43 = vld [vmem:[#allocation3 + $0x28] ss:$16 sps:$4 sm:$0xff]   ;;  %v18047_v10 = vld [vmem:[#allocation3 + $0x4c] ss:$16 sps:$4 sm:$0xff]  }
 0xd2f   :  { %v7882_v48 = vmax.f32 %v7798_v25, 0.0  ;;  %v18045_v25 = vld [vmem:[#allocation3 + $0x48] ss:$16 sps:$4 sm:$0xff]  }
 0xd30   :  { %v7918_v51 = vpack.c.bf16 %v7884_v63, %v7883_v44  ;;  %v18050_v44 = vld [vmem:[#allocation3 + $0x6c] ss:$16 sps:$4 sm:$0xff]   ;;  %v18048_v63 = vld [vmem:[#allocation3 + $0x68] ss:$16 sps:$4 sm:$0xff]  }
 0xd31   :  { %v7917_v55 = vpack.c.bf16 %v7882_v48, %v7881_v46  ;;  %v18051_v46 = vld [vmem:[#allocation3 + $0x88] ss:$16 sps:$4 sm:$0xff]   ;;  %v18056_v48 = vld [vmem:[#allocation3 + $0xac] ss:$16 sps:$4 sm:$0xff]  }
 0xd32   :  { %8909 = vmatmul.mubr.bf16.gmra.mrb[92].mxu1 %v17982_v15  ;;  %v18053_v15 = vld [vmem:[#allocation3 + $0x8c] ss:$16 sps:$4 sm:$0xff]  }
 0xd33   :  { %9086 = vmatpush1.bf16.msra.mxu1 %v7917_v55  ;;  %8916 = vmatprep.mubr.bf16.mxu1 %v17987_v45  ;;  %v18102_v45 = vld [vmem:[#allocation8 + $0x100] sm:$0xff]   ;;  %v18059_v55 = vld [vmem:[#allocation3 + $0xcc] ss:$16 sps:$4 sm:$0xff]  }
 0xd34   :  { %9087 = vmatprep.subr.bf16.mxu1 %v18900_v0  ;;  %15976 = vmatprep.subr.bf16.mxu0 %v18102_v45 }
 0xd35   :  { %15977 = vmatpush3.bf16.msra.mxu0 %v18102_v45  ;;  %v18136_v45 = vld [vmem:[#allocation3 + $0x3ac] ss:$16 sps:$4 sm:$0xff]  }
 0xd37   :  { %9088 = vmatpush1.bf16.msra.mxu1 %v7918_v51  ;;  %v18054_v51 = vld [vmem:[#allocation3 + $0xa8] ss:$16 sps:$4 sm:$0xff]  }
 0xd38   :  { %9089 = vmatprep.subr.bf16.mxu1 %v18900_v0 }
 0xd39   :  { %v15974_v58 = vpop.f32.mrb[164].mxu1 }
 0xd3a   :  { %v7819_v54 = vadd.f32 %v15974_v58, %v19458_v59  ;;  %v7810_v28 = vpop.f32.mrb[165].mxu1  ;;  %8917 = vmatmul.mubr.bf16.gmra.mrb[96].mxu1 %v17985_v52  ;;  %v18057_v52 = vld [vmem:[#allocation3 + $0xc8] ss:$16 sps:$4 sm:$0xff]  }
 0xd3b   :  { %v7811_v6 = vadd.f32 %v19458_v59, %v7810_v28  ;;  %v15975_v61 = vpop.f32.mrb[166].mxu1  ;;  %8924 = vmatprep.mubr.bf16.mxu1 %v17990_v2  ;;  %v18062_v2 = vld [vmem:[#allocation3 + $0xec] ss:$16 sps:$4 sm:$0xff]   ;;  %v18060_v58 = vld [vmem:[#allocation3 + $0xe8] ss:$16 sps:$4 sm:$0xff]  }
 0xd3c   :  { %v7822_v62 = vadd.f32 %v15975_v61, %v19458_v59  ;;  %v7813_v3 = vpop.f32.mrb[167].mxu1  ;;  %v7887_v1 = vmax.f32 %v7819_v54, 0.0  ;;  %v18065_v54 = vld [vmem:[#allocation3 + $0x10c] ss:$16 sps:$4 sm:$0xff]   ;;  %v18063_v28 = vld [vmem:[#allocation3 + $0x108] ss:$16 sps:$4 sm:$0xff]  }
 0xd3d   :  { %v7814_v4 = vadd.f32 %v19458_v59, %v7813_v3  ;;  %v7885_v47 = vmax.f32 %v7811_v6, 0.0  ;;  %v17999_v59 = vld [vmem:[#allocation3 + $0x244] ss:$16 sps:$4 sm:$0xff]   ;;  %v18068_v6 = vld [vmem:[#allocation3 + $0x12c] ss:$16 sps:$4 sm:$0xff]  }
 0xd3e   :  { %v7888_v8 = vmax.f32 %v7822_v62, 0.0  ;;  %v18115_v61 = vld [vmem:[#allocation8 + $0x108] sm:$0xff]  }
 0xd3f   :  { %v7886_v12 = vmax.f32 %v7814_v4, 0.0  ;;  %15978 = vmatprep.subr.bf16.mxu0 %v18115_v61  ;;  %v18066_v62 = vld [vmem:[#allocation3 + $0x128] ss:$16 sps:$4 sm:$0xff]   ;;  %v18071_v3 = vld [vmem:[#allocation3 + $0x14c] ss:$16 sps:$4 sm:$0xff]   ;;  %v18119_v4 = vld [vmem:[#allocation8 + $0x110] sm:$0xff]  }
 0xd40   :  { %v7920_v23 = vpack.c.bf16 %v7888_v8, %v7887_v1  ;;  %15979 = vmatpush3.bf16.msra.mxu0 %v18115_v61  ;;  %v18120_v1 = vld [vmem:[#allocation8 + $0x118] sm:$0xff]  }
 0xd41   :  { %v7919_v50 = vpack.c.bf16 %v7886_v12, %v7885_v47  ;;  %15980 = vmatprep.subr.bf16.mxu0 %v18119_v4  ;;  %v18069_v8 = vld [vmem:[#allocation3 + $0x148] ss:$16 sps:$4 sm:$0xff]   ;;  %v18124_v47 = vld [vmem:[#allocation8 + $0x120] sm:$0xff]  }
 0xd42   :  { %8925 = vmatmul.mubr.bf16.gmra.mrb[100].mxu1 %v17988_v7  ;;  %v18074_v7 = vld [vmem:[#allocation3 + $0x16c] ss:$16 sps:$4 sm:$0xff]  }
 0xd43   :  { %9090 = vmatpush1.bf16.msra.mxu1 %v7919_v50  ;;  %8932 = vmatprep.mubr.bf16.mxu1 %v17993_v5  ;;  %v18125_v12 = vld [vmem:[#allocation8 + $0x128] sm:$0xff]   ;;  %v18129_v50 = vld [vmem:[#allocation8 + $0x130] sm:$0xff]  }
 0xd44   :  { %9091 = vmatprep.subr.bf16.mxu1 %v18900_v0  ;;  %15981 = vmatpush3.bf16.msra.mxu0 %v18119_v4  ;;  %v18072_v5 = vld [vmem:[#allocation3 + $0x168] ss:$16 sps:$4 sm:$0xff]  }
 0xd45   :  { %15982 = vmatprep.subr.bf16.mxu0 %v18120_v1  ;;  %v18137_v4 = vld [vmem:[#allocation3 + $0x3c8] ss:$16 sps:$4 sm:$0xff]  }
 0xd47   :  { %9092 = vmatpush1.bf16.msra.mxu1 %v7920_v23  ;;  %v18077_v23 = vld [vmem:[#allocation3 + $0x18c] ss:$16 sps:$4 sm:$0xff]  }
 0xd48   :  { %15983 = vmatpush3.bf16.msra.mxu0 %v18120_v1 }
 0xd49   :  { %15984 = vmatprep.subr.bf16.mxu0 %v18124_v47 }
 0xd4a   :  { %8933 = vmatmul.mubr.bf16.gmra.mrb[192].mxu1 %v17991_v11  ;;  %v18130_v11 = vld [vmem:[#allocation8 + $0x138] sm:$0xff]  }
 0xd4b   :  { %8940 = vmatprep.mubr.bf16.mxu1 %v17996_v30  ;;  %v18075_v30 = vld [vmem:[#allocation3 + $0x188] ss:$16 sps:$4 sm:$0xff]  }
 0xd4c   :  { %15985 = vmatpush3.bf16.msra.mxu0 %v18124_v47 }
 0xd4d   :  { %15986 = vmatprep.subr.bf16.mxu0 %v18125_v12 }
 0xd50   :  { %15987 = vmatpush3.bf16.msra.mxu0 %v18125_v12 }
 0xd51   :  { %15988 = vmatprep.subr.bf16.mxu0 %v18129_v50 }
 0xd52   :  { %8941 = vmatmul.mubr.bf16.gmra.mrb[196].mxu1 %v17994_v14  ;;  %v18080_v14 = vld [vmem:[#allocation3 + $0x1ac] ss:$16 sps:$4 sm:$0xff]  }
 0xd53   :  { %8948 = vmatprep.mubr.bf16.mxu1 %v17999_v59  ;;  %v18078_v59 = vld [vmem:[#allocation3 + $0x1a8] ss:$16 sps:$4 sm:$0xff]  }
 0xd54   :  { %15989 = vmatpush3.bf16.msra.mxu0 %v18129_v50 }
 0xd55   :  { %15990 = vmatprep.subr.bf16.mxu0 %v18130_v11 }
 0xd58   :  { %15991 = vmatpush3.bf16.msra.mxu0 %v18130_v11 }
 0xd59   :  { %10672 = vmatprep.subr.bf16.mxu0 %v18900_v0 }
 0xd5a   :  { %8949 = vmatmul.mubr.bf16.gmra.mrb[200].mxu1 %v17997_v16  ;;  %v18083_v16 = vld [vmem:[#allocation3 + $0x1cc] ss:$16 sps:$4 sm:$0xff]  }
 0xd5b   :  { %8956 = vmatprep.mubr.bf16.mxu1 %v18002_v17  ;;  %v18081_v17 = vld [vmem:[#allocation3 + $0x1c8] ss:$16 sps:$4 sm:$0xff]  }
 0xd62   :  { %8957 = vmatmul.mubr.bf16.gmra.mrb[204].mxu1 %v18000_v57  ;;  %v18086_v57 = vld [vmem:[#allocation3 + $0x1ec] ss:$16 sps:$4 sm:$0xff]  }
 0xd63   :  { %8964 = vmatprep.mubr.bf16.mxu1 %v18005_v18  ;;  %v18084_v18 = vld [vmem:[#allocation3 + $0x1e8] ss:$16 sps:$4 sm:$0xff]  }
 0xd6a   :  { %8965 = vmatmul.mubr.bf16.gmra.mrb[208].mxu1 %v18003_v35  ;;  %v18089_v35 = vld [vmem:[#allocation3 + $0x20c] ss:$16 sps:$4 sm:$0xff]  }
 0xd6b   :  { %8972 = vmatprep.mubr.bf16.mxu1 %v18008_v53  ;;  %v18087_v53 = vld [vmem:[#allocation3 + $0x208] ss:$16 sps:$4 sm:$0xff]  }
 0xd72   :  { %8973 = vmatmul.mubr.bf16.gmra.mrb[212].mxu1 %v18006_v19  ;;  %v18092_v19 = vld [vmem:[#allocation3 + $0x22c] ss:$16 sps:$4 sm:$0xff]  }
 0xd73   :  { %8980 = vmatprep.mubr.bf16.mxu1 %v18011_v22  ;;  %v18090_v22 = vld [vmem:[#allocation3 + $0x228] ss:$16 sps:$4 sm:$0xff]  }
 0xd7a   :  { %8981 = vmatmul.mubr.bf16.gmra.mrb[216].mxu1 %v18009_v21  ;;  %v18095_v21 = vld [vmem:[#allocation3 + $0x24c] ss:$16 sps:$4 sm:$0xff]  }
 0xd7b   :  { %8988 = vmatprep.mubr.bf16.mxu1 %v18014_v9  ;;  %v18093_v9 = vld [vmem:[#allocation3 + $0x248] ss:$16 sps:$4 sm:$0xff]  }
 0xd82   :  { %8989 = vmatmul.mubr.bf16.gmra.mrb[220].mxu1 %v18012_v24  ;;  %v18098_v24 = vld [vmem:[#allocation3 + $0x26c] ss:$16 sps:$4 sm:$0xff]  }
 0xd83   :  { %8996 = vmatprep.mubr.bf16.mxu1 %v18017_v13  ;;  %v18096_v13 = vld [vmem:[#allocation3 + $0x268] ss:$16 sps:$4 sm:$0xff]  }
 0xd8a   :  { %8997 = vmatmul.mubr.bf16.gmra.mrb[224].mxu1 %v18015_v26  ;;  %v18101_v26 = vld [vmem:[#allocation3 + $0x28c] ss:$16 sps:$4 sm:$0xff]  }
 0xd8b   :  { %9004 = vmatprep.mubr.bf16.mxu1 %v18020_v39  ;;  %v18099_v39 = vld [vmem:[#allocation3 + $0x288] ss:$16 sps:$4 sm:$0xff]  }
 0xd92   :  { %9005 = vmatmul.mubr.bf16.gmra.mrb[228].mxu1 %v18018_v56  ;;  %v18105_v56 = vld [vmem:[#allocation3 + $0x2ac] ss:$16 sps:$4 sm:$0xff]  }
 0xd93   :  { %9012 = vmatprep.mubr.bf16.mxu1 %v18023_v31  ;;  %v18103_v31 = vld [vmem:[#allocation3 + $0x2a8] ss:$16 sps:$4 sm:$0xff]  }
 0xd9a   :  { %9013 = vmatmul.mubr.bf16.gmra.mrb[232].mxu1 %v18021_v27  ;;  %v18108_v27 = vld [vmem:[#allocation3 + $0x2cc] ss:$16 sps:$4 sm:$0xff]  }
 0xd9b   :  { %9020 = vmatprep.mubr.bf16.mxu1 %v18026_v29  ;;  %v18106_v29 = vld [vmem:[#allocation3 + $0x2c8] ss:$16 sps:$4 sm:$0xff]  }
 0xda2   :  { %9021 = vmatmul.mubr.bf16.gmra.mrb[236].mxu1 %v18024_v36  ;;  %v18111_v36 = vld [vmem:[#allocation3 + $0x2ec] ss:$16 sps:$4 sm:$0xff]  }
 0xda3   :  { %9028 = vmatprep.mubr.bf16.mxu1 %v18029_v32  ;;  %v18109_v32 = vld [vmem:[#allocation3 + $0x2e8] ss:$16 sps:$4 sm:$0xff]  }
 0xdaa   :  { %9029 = vmatmul.mubr.bf16.gmra.mrb[240].mxu1 %v18027_v33  ;;  %v18114_v33 = vld [vmem:[#allocation3 + $0x30c] ss:$16 sps:$4 sm:$0xff]  }
 0xdab   :  { %9036 = vmatprep.mubr.bf16.mxu1 %v18032_v20  ;;  %v18112_v20 = vld [vmem:[#allocation3 + $0x308] ss:$16 sps:$4 sm:$0xff]  }
 0xdb2   :  { %9037 = vmatmul.mubr.bf16.gmra.mrb[244].mxu1 %v18030_v34  ;;  %v18118_v34 = vld [vmem:[#allocation3 + $0x32c] ss:$16 sps:$4 sm:$0xff]  }
 0xdb3   :  { %9044 = vmatprep.mubr.bf16.mxu1 %v18035_v38  ;;  %v18116_v38 = vld [vmem:[#allocation3 + $0x328] ss:$16 sps:$4 sm:$0xff]  }
 0xdba   :  { %9045 = vmatmul.mubr.bf16.gmra.mrb[248].mxu1 %v18033_v49  ;;  %v18123_v49 = vld [vmem:[#allocation3 + $0x34c] ss:$16 sps:$4 sm:$0xff]  }
 0xdbb   :  { %9052 = vmatprep.mubr.bf16.mxu1 %v18038_v40  ;;  %v18121_v40 = vld [vmem:[#allocation3 + $0x348] ss:$16 sps:$4 sm:$0xff]  }
 0xdc2   :  { %9053 = vmatmul.mubr.bf16.gmra.mrb[252].mxu1 %v18036_v42  ;;  %v18128_v42 = vld [vmem:[#allocation3 + $0x36c] ss:$16 sps:$4 sm:$0xff]  }
 0xdc3   :  { %9093 = vmatprep.mubr.bf16.mxu1 %v18041_v60 }
 0xdca   :  { %9094 = vmatmul.mubr.bf16.vlgmr.msra.gmra.mrb[168].mxu1 %v18039_v37 }
 0xdcb   :  { %9101 = vmatprep.mubr.bf16.mxu1 %v18044_v41  ;;  %v18126_v41 = vld [vmem:[#allocation3 + $0x368] ss:$16 sps:$4 sm:$0xff]  }
 0xdd2   :  { %9102 = vmatmul.mubr.bf16.gmra.mrb[172].mxu1 %v18042_v43 }
 0xdd3   :  { %9109 = vmatprep.mubr.bf16.mxu1 %v18047_v10  ;;  %v18133_v10 = vld [vmem:[#allocation3 + $0x38c] ss:$16 sps:$4 sm:$0xff]  }
 0xdda   :  { %9110 = vmatmul.mubr.bf16.gmra.mrb[176].mxu1 %v18045_v25 }
 0xddb   :  { %9117 = vmatprep.mubr.bf16.mxu1 %v18050_v44 }
 0xde2   :  { %9118 = vmatmul.mubr.bf16.gmra.mrb[180].mxu1 %v18048_v63 }
 0xde3   :  { %9125 = vmatprep.mubr.bf16.mxu1 %v18053_v15 }
 0xdea   :  { %9126 = vmatmul.mubr.bf16.gmra.mrb[184].mxu1 %v18051_v46  ;;  %v18131_v46 = vld [vmem:[#allocation3 + $0x388] ss:$16 sps:$4 sm:$0xff]  }
 0xdeb   :  { %9133 = vmatprep.mubr.bf16.mxu1 %v18056_v48 }
 0xdf2   :  { %9134 = vmatmul.mubr.bf16.gmra.mrb[188].mxu1 %v18054_v51 }
 0xdf3   :  { %9141 = vmatprep.mubr.bf16.mxu1 %v18059_v55 }
 0xdfa   :  { %9142 = vmatmul.mubr.bf16.gmra.mrb[64].mxu1 %v18057_v52 }
 0xdfb   :  { %9149 = vmatprep.mubr.bf16.mxu1 %v18062_v2 }
 0xe02   :  { %9150 = vmatmul.mubr.bf16.gmra.mrb[68].mxu1 %v18060_v58  ;;  %v18134_v58 = vld [vmem:[#allocation3 + $0x3a8] ss:$16 sps:$4 sm:$0xff]  }
 0xe03   :  { %9157 = vmatprep.mubr.bf16.mxu1 %v18065_v54 }
 0xe0a   :  { %9158 = vmatmul.mubr.bf16.gmra.mrb[72].mxu1 %v18063_v28  ;;  %v18139_v28 = vld [vmem:[#allocation3 + $0x3cc] ss:$16 sps:$4 sm:$0xff]  }
 0xe0b   :  { %9165 = vmatprep.mubr.bf16.mxu1 %v18068_v6 }
 0xe12   :  { %9166 = vmatmul.mubr.bf16.gmra.mrb[76].mxu1 %v18066_v62 }
 0xe13   :  { %9173 = vmatprep.mubr.bf16.mxu1 %v18071_v3 }
 0xe1a   :  { %9174 = vmatmul.mubr.bf16.gmra.mrb[80].mxu1 %v18069_v8  ;;  %v18142_v8 = vld [vmem:[#allocation3 + $0x3ec] ss:$16 sps:$4 sm:$0xff]  }
 0xe1b   :  { %9181 = vmatprep.mubr.bf16.mxu1 %v18074_v7 }
 0xe22   :  { %9182 = vmatmul.mubr.bf16.gmra.mrb[84].mxu1 %v18072_v5 }
 0xe23   :  { %9189 = vmatprep.mubr.bf16.mxu1 %v18077_v23  ;;  %v18140_v23 = vld [vmem:[#allocation3 + $0x3e8] ss:$16 sps:$4 sm:$0xff]  }
 0xe2a   :  { %9190 = vmatmul.mubr.bf16.gmra.mrb[88].mxu1 %v18075_v30 }
 0xe2b   :  { %9197 = vmatprep.mubr.bf16.mxu1 %v18080_v14 }
 0xe32   :  { %9198 = vmatmul.mubr.bf16.gmra.mrb[92].mxu1 %v18078_v59 }
 0xe33   :  { %9205 = vmatprep.mubr.bf16.mxu1 %v18083_v16 }
 0xe3a   :  { %9206 = vmatmul.mubr.bf16.gmra.mrb[96].mxu1 %v18081_v17 }
 0xe3b   :  { %9213 = vmatprep.mubr.bf16.mxu1 %v18086_v57 }
 0xe42   :  { %9214 = vmatmul.mubr.bf16.gmra.mrb[100].mxu1 %v18084_v18 }
 0xe43   :  { %9221 = vmatprep.mubr.bf16.mxu1 %v18089_v35 }
 0xe4a   :  { %9222 = vmatmul.mubr.bf16.gmra.mrb[192].mxu1 %v18087_v53 }
 0xe4b   :  { %9229 = vmatprep.mubr.bf16.mxu1 %v18092_v19 }
 0xe52   :  { %9230 = vmatmul.mubr.bf16.gmra.mrb[196].mxu1 %v18090_v22 }
 0xe53   :  { %9237 = vmatprep.mubr.bf16.mxu1 %v18095_v21 }
 0xe5a   :  { %9238 = vmatmul.mubr.bf16.gmra.mrb[200].mxu1 %v18093_v9 }
 0xe5b   :  { %9245 = vmatprep.mubr.bf16.mxu1 %v18098_v24 }
 0xe62   :  { %9246 = vmatmul.mubr.bf16.gmra.mrb[204].mxu1 %v18096_v13 }
 0xe63   :  { %9253 = vmatprep.mubr.bf16.mxu1 %v18101_v26 }
 0xe6a   :  { %9254 = vmatmul.mubr.bf16.gmra.mrb[208].mxu1 %v18099_v39 }
 0xe6b   :  { %9261 = vmatprep.mubr.bf16.mxu1 %v18105_v56 }
 0xe72   :  { %9262 = vmatmul.mubr.bf16.gmra.mrb[212].mxu1 %v18103_v31 }
 0xe73   :  { %9269 = vmatprep.mubr.bf16.mxu1 %v18108_v27 }
 0xe7a   :  { %9270 = vmatmul.mubr.bf16.gmra.mrb[216].mxu1 %v18106_v29 }
 0xe7b   :  { %9277 = vmatprep.mubr.bf16.mxu1 %v18111_v36 }
 0xe82   :  { %9278 = vmatmul.mubr.bf16.gmra.mrb[220].mxu1 %v18109_v32 }
 0xe83   :  { %9285 = vmatprep.mubr.bf16.mxu1 %v18114_v33 }
 0xe8a   :  { %9286 = vmatmul.mubr.bf16.gmra.mrb[224].mxu1 %v18112_v20 }
 0xe8b   :  { %9293 = vmatprep.mubr.bf16.mxu1 %v18118_v34 }
 0xe92   :  { %9294 = vmatmul.mubr.bf16.gmra.mrb[228].mxu1 %v18116_v38 }
 0xe93   :  { %9301 = vmatprep.mubr.bf16.mxu1 %v18123_v49 }
 0xe9a   :  { %9302 = vmatmul.mubr.bf16.gmra.mrb[232].mxu1 %v18121_v40 }
 0xe9b   :  { %9309 = vmatprep.mubr.bf16.mxu1 %v18128_v42 }
 0xe9d   :  { %v9095_v60 = vpop.f32.mrb[168].mxu1 }
 0xe9e   :  { %v9097_v37 = vpop.f32.mrb[169].mxu1 }
 0xe9f   :  { %v9098_v43 = vpop.f32.mrb[170].mxu1 }
 0xea0   :  { %v9100_v25 = vpop.f32.mrb[171].mxu1  ;;  %v9350_v44 = vpack.c.bf16 %v9098_v43, %v9095_v60 }
 0xea2   :  { %9310 = vmatmul.mubr.bf16.gmra.mrb[236].mxu1 %v18126_v41  ;;  %15992 = vmatprep.mubr.bf16.mxu0 %v9350_v44 }
 0xea3   :  { %9317 = vmatprep.mubr.bf16.mxu1 %v18133_v10 }
 0xea5   :  { %v9103_v63 = vpop.f32.mrb[172].mxu1 }
 0xea6   :  { %v9105_v15 = vpop.f32.mrb[173].mxu1 }
 0xea7   :  { %v9106_v48 = vpop.f32.mrb[174].mxu1 }
 0xea8   :  { %v9351_v51 = vpack.c.bf16 %v9106_v48, %v9103_v63  ;;  %v9108_v55 = vpop.f32.mrb[175].mxu1 }
 0xeaa   :  { %9318 = vmatmul.mubr.bf16.gmra.mrb[240].mxu1 %v18131_v46  ;;  %15993 = vmatmul.mubr.bf16.vlgmr.msra.gmra.mrb[216].mxu0 %v9351_v51 }
 0xeab   :  { %9325 = vmatprep.mubr.bf16.mxu1 %v18136_v45 }
 0xead   :  { %v9111_v52 = vpop.f32.mrb[176].mxu1 }
 0xeae   :  { %v9113_v2 = vpop.f32.mrb[177].mxu1 }
 0xeaf   :  { %v9114_v54 = vpop.f32.mrb[178].mxu1 }
 0xeb0   :  { %v9116_v6 = vpop.f32.mrb[179].mxu1  ;;  %v9352_v61 = vpack.c.bf16 %v9114_v54, %v9111_v52 }
 0xeb2   :  { %9326 = vmatmul.mubr.bf16.gmra.mrb[244].mxu1 %v18134_v58  ;;  %15996 = vmatprep.mubr.bf16.mxu0 %v9352_v61 }
 0xeb3   :  { %9333 = vmatprep.mubr.bf16.mxu1 %v18139_v28 }
 0xeb5   :  { %v9119_v62 = vpop.f32.mrb[180].mxu1 }
 0xeb6   :  { %v9121_v3 = vpop.f32.mrb[181].mxu1 }
 0xeb7   :  { %v9122_v1 = vpop.f32.mrb[182].mxu1 }
 0xeb8   :  { %v9353_v7 = vpack.c.bf16 %v9122_v1, %v9119_v62  ;;  %v9124_v47 = vpop.f32.mrb[183].mxu1 }
 0xeba   :  { %9334 = vmatmul.mubr.bf16.gmra.mrb[248].mxu1 %v18137_v4  ;;  %15997 = vmatmul.mubr.bf16.gmra.mrb[220].mxu0 %v9353_v7 }
 0xebb   :  { %9341 = vmatprep.mubr.bf16.mxu1 %v18142_v8 }
 0xebd   :  { %v9127_v12 = vpop.f32.mrb[184].mxu1 }
 0xebe   :  { %v9129_v5 = vpop.f32.mrb[185].mxu1 }
 0xebf   :  { %v9130_v50 = vpop.f32.mrb[186].mxu1 }
 0xec0   :  { %v9132_v11 = vpop.f32.mrb[187].mxu1  ;;  %v9354_v30 = vpack.c.bf16 %v9130_v50, %v9127_v12 }
 0xec2   :  { %9342 = vmatmul.mubr.bf16.gmra.mrb[252].mxu1 %v18140_v23  ;;  %16000 = vmatprep.mubr.bf16.mxu0 %v9354_v30 }
 0xec5   :  { %v9135_v14 = vpop.f32.mrb[188].mxu1 }
 0xec6   :  { %v9137_v59 = vpop.f32.mrb[189].mxu1 }
 0xec7   :  { %v9138_v16 = vpop.f32.mrb[190].mxu1 }
 0xec8   :  { %v9355_v17 = vpack.c.bf16 %v9138_v16, %v9135_v14  ;;  %v9140_v57 = vpop.f32.mrb[191].mxu1 }
 0xeca   :  { %16001 = vmatmul.mubr.bf16.gmra.mrb[224].mxu0 %v9355_v17 }
 0xecd   :  { %v9143_v18 = vpop.f32.mrb[64].mxu1 }
 0xece   :  { %v9145_v35 = vpop.f32.mrb[65].mxu1 }
 0xecf   :  { %v9146_v53 = vpop.f32.mrb[66].mxu1 }
 0xed0   :  { %v9148_v19 = vpop.f32.mrb[67].mxu1  ;;  %v9356_v22 = vpack.c.bf16 %v9146_v53, %v9143_v18 }
 0xed2   :  { %16004 = vmatprep.mubr.bf16.mxu0 %v9356_v22 }
 0xed5   :  { %v9151_v21 = vpop.f32.mrb[68].mxu1 }
 0xed6   :  { %v9153_v9 = vpop.f32.mrb[69].mxu1 }
 0xed7   :  { %v9154_v24 = vpop.f32.mrb[70].mxu1 }
 0xed8   :  { %v9357_v13 = vpack.c.bf16 %v9154_v24, %v9151_v21  ;;  %v9156_v26 = vpop.f32.mrb[71].mxu1 }
 0xeda   :  { %16005 = vmatmul.mubr.bf16.gmra.mrb[228].mxu0 %v9357_v13 }
 0xedd   :  { %v9159_v39 = vpop.f32.mrb[72].mxu1 }
 0xede   :  { %v9161_v56 = vpop.f32.mrb[73].mxu1 }
 0xedf   :  { %v9162_v31 = vpop.f32.mrb[74].mxu1 }
 0xee0   :  { %v9164_v27 = vpop.f32.mrb[75].mxu1  ;;  %v9358_v29 = vpack.c.bf16 %v9162_v31, %v9159_v39 }
 0xee2   :  { %16008 = vmatprep.mubr.bf16.mxu0 %v9358_v29 }
 0xee5   :  { %v9167_v36 = vpop.f32.mrb[76].mxu1 }
 0xee6   :  { %v9169_v32 = vpop.f32.mrb[77].mxu1 }
 0xee7   :  { %v9170_v33 = vpop.f32.mrb[78].mxu1 }
 0xee8   :  { %v9359_v20 = vpack.c.bf16 %v9170_v33, %v9167_v36  ;;  %v9172_v34 = vpop.f32.mrb[79].mxu1 }
 0xeea   :  { %16009 = vmatmul.mubr.bf16.gmra.mrb[232].mxu0 %v9359_v20 }
 0xeed   :  { %v9175_v38 = vpop.f32.mrb[80].mxu1 }
 0xeee   :  { %v9177_v49 = vpop.f32.mrb[81].mxu1 }
 0xeef   :  { %v9178_v40 = vpop.f32.mrb[82].mxu1 }
 0xef0   :  { %v9180_v42 = vpop.f32.mrb[83].mxu1  ;;  %v9360_v60 = vpack.c.bf16 %v9178_v40, %v9175_v38 }
 0xef2   :  { %16012 = vmatprep.mubr.bf16.mxu0 %v9360_v60 }
 0xef5   :  { %v9183_v37 = vpop.f32.mrb[84].mxu1 }
 0xef6   :  { %v9185_v41 = vpop.f32.mrb[85].mxu1 }
 0xef7   :  { %v9186_v43 = vpop.f32.mrb[86].mxu1 }
 0xef8   :  { %v9361_v10 = vpack.c.bf16 %v9186_v43, %v9183_v37  ;;  %v9188_v25 = vpop.f32.mrb[87].mxu1 }
 0xefa   :  { %16013 = vmatmul.mubr.bf16.gmra.mrb[236].mxu0 %v9361_v10 }
 0xefd   :  { %v9191_v44 = vpop.f32.mrb[88].mxu1 }
 0xefe   :  { %v9193_v63 = vpop.f32.mrb[89].mxu1 }
 0xeff   :  { %v9194_v15 = vpop.f32.mrb[90].mxu1 }
 0xf00   :  { %v9196_v46 = vpop.f32.mrb[91].mxu1  ;;  %v9362_v48 = vpack.c.bf16 %v9194_v15, %v9191_v44 }
 0xf02   :  { %16016 = vmatprep.mubr.bf16.mxu0 %v9362_v48 }
 0xf05   :  { %v9199_v45 = vpop.f32.mrb[92].mxu1 }
 0xf06   :  { %v9201_v51 = vpop.f32.mrb[93].mxu1 }
 0xf07   :  { %v9202_v55 = vpop.f32.mrb[94].mxu1 }
 0xf08   :  { %v9363_v52 = vpack.c.bf16 %v9202_v55, %v9199_v45  ;;  %v9204_v2 = vpop.f32.mrb[95].mxu1 }
 0xf0a   :  { %16017 = vmatmul.mubr.bf16.gmra.mrb[240].mxu0 %v9363_v52 }
 0xf0d   :  { %v9207_v58 = vpop.f32.mrb[96].mxu1 }
 0xf0e   :  { %v9209_v54 = vpop.f32.mrb[97].mxu1 }
 0xf0f   :  { %v9210_v28 = vpop.f32.mrb[98].mxu1 }
 0xf10   :  { %v9212_v6 = vpop.f32.mrb[99].mxu1  ;;  %v9364_v61 = vpack.c.bf16 %v9210_v28, %v9207_v58 }
 0xf12   :  { %16020 = vmatprep.mubr.bf16.mxu0 %v9364_v61 }
 0xf15   :  { %v9215_v62 = vpop.f32.mrb[100].mxu1 }
 0xf16   :  { %v9217_v3 = vpop.f32.mrb[101].mxu1 }
 0xf17   :  { %v9218_v4 = vpop.f32.mrb[102].mxu1 }
 0xf18   :  { %v9365_v1 = vpack.c.bf16 %v9218_v4, %v9215_v62  ;;  %v9220_v8 = vpop.f32.mrb[103].mxu1  ;;  %v19559_v4 = vld [vmem:[%s20612_s3 + $0x4] ss:$0 sm:$0xff] }
 0xf1a   :  { %16021 = vmatmul.mubr.bf16.gmra.mrb[244].mxu0 %v9365_v1 }
 0xf1d   :  { %v9223_v7 = vpop.f32.mrb[192].mxu1 }
 0xf1e   :  { %v9225_v47 = vpop.f32.mrb[193].mxu1 }
 0xf1f   :  { %v9226_v12 = vpop.f32.mrb[194].mxu1 }
 0xf20   :  { %v9366_v5 = vpack.c.bf16 %v9226_v12, %v9223_v7  ;;  %v9228_v23 = vpop.f32.mrb[195].mxu1 }
 0xf22   :  { %16024 = vmatprep.mubr.bf16.mxu0 %v9366_v5 }
 0xf25   :  { %v9231_v50 = vpop.f32.mrb[196].mxu1 }
 0xf26   :  { %v9233_v11 = vpop.f32.mrb[197].mxu1 }
 0xf27   :  { %v9234_v30 = vpop.f32.mrb[198].mxu1 }
 0xf28   :  { %v9367_v14 = vpack.c.bf16 %v9234_v30, %v9231_v50  ;;  %v9236_v59 = vpop.f32.mrb[199].mxu1 }
 0xf2a   :  { %16025 = vmatmul.mubr.bf16.gmra.mrb[248].mxu0 %v9367_v14 }
 0xf2d   :  { %v9239_v16 = vpop.f32.mrb[200].mxu1 }
 0xf2e   :  { %v9241_v17 = vpop.f32.mrb[201].mxu1 }
 0xf2f   :  { %v9242_v57 = vpop.f32.mrb[202].mxu1 }
 0xf30   :  { %v9368_v18 = vpack.c.bf16 %v9242_v57, %v9239_v16  ;;  %v9244_v35 = vpop.f32.mrb[203].mxu1 }
 0xf32   :  { %16028 = vmatprep.mubr.bf16.mxu0 %v9368_v18 }
 0xf35   :  { %v9247_v53 = vpop.f32.mrb[204].mxu1 }
 0xf36   :  { %v9249_v19 = vpop.f32.mrb[205].mxu1 }
 0xf37   :  { %v9250_v22 = vpop.f32.mrb[206].mxu1 }
 0xf38   :  { %v9369_v21 = vpack.c.bf16 %v9250_v22, %v9247_v53  ;;  %v9252_v9 = vpop.f32.mrb[207].mxu1 }
 0xf3a   :  { %16029 = vmatmul.mubr.bf16.gmra.mrb[252].mxu0 %v9369_v21 }
 0xf3d   :  { %v9255_v24 = vpop.f32.mrb[208].mxu1 }
 0xf3e   :  { %v9257_v13 = vpop.f32.mrb[209].mxu1 }
 0xf3f   :  { %v9258_v26 = vpop.f32.mrb[210].mxu1 }
 0xf40   :  { %v9370_v39 = vpack.c.bf16 %v9258_v26, %v9255_v24  ;;  %v9260_v56 = vpop.f32.mrb[211].mxu1 }
 0xf42   :  { %16032 = vmatprep.mubr.bf16.mxu0 %v9370_v39 }
 0xf45   :  { %v9263_v31 = vpop.f32.mrb[212].mxu1 }
 0xf46   :  { %v9265_v27 = vpop.f32.mrb[213].mxu1 }
 0xf47   :  { %v9266_v29 = vpop.f32.mrb[214].mxu1 }
 0xf48   :  { %v9371_v36 = vpack.c.bf16 %v9266_v29, %v9263_v31  ;;  %v9268_v32 = vpop.f32.mrb[215].mxu1 }
 0xf4a   :  { %16033 = vmatmul.mubr.bf16.gmra.mrb[0].mxu0 %v9371_v36 }
 0xf4d   :  { %v9271_v33 = vpop.f32.mrb[216].mxu1 }
 0xf4e   :  { %v9273_v20 = vpop.f32.mrb[217].mxu1 }
 0xf4f   :  { %v9274_v34 = vpop.f32.mrb[218].mxu1 }
 0xf50   :  { %v9372_v38 = vpack.c.bf16 %v9274_v34, %v9271_v33  ;;  %v9276_v49 = vpop.f32.mrb[219].mxu1 }
 0xf52   :  { %16036 = vmatprep.mubr.bf16.mxu0 %v9372_v38 }
 0xf55   :  { %v9279_v40 = vpop.f32.mrb[220].mxu1 }
 0xf56   :  { %v9281_v42 = vpop.f32.mrb[221].mxu1 }
 0xf57   :  { %v9282_v60 = vpop.f32.mrb[222].mxu1 }
 0xf58   :  { %v9373_v37 = vpack.c.bf16 %v9282_v60, %v9279_v40  ;;  %v9284_v41 = vpop.f32.mrb[223].mxu1 }
 0xf5a   :  { %16037 = vmatmul.mubr.bf16.gmra.mrb[4].mxu0 %v9373_v37 }
 0xf5d   :  { %v9287_v43 = vpop.f32.mrb[224].mxu1 }
 0xf5e   :  { %v9289_v10 = vpop.f32.mrb[225].mxu1 }
 0xf5f   :  { %v9290_v25 = vpop.f32.mrb[226].mxu1 }
 0xf60   :  { %v9374_v44 = vpack.c.bf16 %v9290_v25, %v9287_v43  ;;  %v9292_v63 = vpop.f32.mrb[227].mxu1 }
 0xf61   :  { %v18145_v63 = vld [vmem:[#allocation3 + $0x4] ss:$16 sps:$4 sm:$0xff]  }
 0xf62   :  { %16040 = vmatprep.mubr.bf16.mxu0 %v9374_v44 }
 0xf65   :  { %v9295_v15 = vpop.f32.mrb[228].mxu1 }
 0xf66   :  { %v9297_v46 = vpop.f32.mrb[229].mxu1 }
 0xf67   :  { %v9298_v48 = vpop.f32.mrb[230].mxu1 }
 0xf68   :  { %v9375_v45 = vpack.c.bf16 %v9298_v48, %v9295_v15  ;;  %v9300_v51 = vpop.f32.mrb[231].mxu1 }
 0xf6a   :  { %16041 = vmatmul.mubr.bf16.gmra.mrb[8].mxu0 %v9375_v45 }
 0xf6d   :  { %v9303_v55 = vpop.f32.mrb[232].mxu1 }
 0xf6e   :  { %v9305_v52 = vpop.f32.mrb[233].mxu1 }
 0xf6f   :  { %v9306_v2 = vpop.f32.mrb[234].mxu1 }
 0xf70   :  { %v9376_v58 = vpack.c.bf16 %v9306_v2, %v9303_v55  ;;  %v9308_v54 = vpop.f32.mrb[235].mxu1 }
 0xf72   :  { %16044 = vmatprep.mubr.bf16.mxu0 %v9376_v58 }
 0xf75   :  { %v9311_v28 = vpop.f32.mrb[236].mxu1 }
 0xf76   :  { %v9313_v6 = vpop.f32.mrb[237].mxu1 }
 0xf77   :  { %v9314_v61 = vpop.f32.mrb[238].mxu1 }
 0xf78   :  { %v9377_v62 = vpack.c.bf16 %v9314_v61, %v9311_v28  ;;  %v9316_v3 = vpop.f32.mrb[239].mxu1 }
 0xf7a   :  { %16045 = vmatmul.mubr.bf16.gmra.mrb[12].mxu0 %v9377_v62 }
 0xf7d   :  { %v9319_v1 = vpop.f32.mrb[240].mxu1  ;;  %v15994_v8 = vpop.f32.mrb[216].mxu0 }
 0xf7e   :  { %v9479_v7 = vadd.f32 %v15994_v8, %v19559_v4  ;;  %v9321_v47 = vpop.f32.mrb[241].mxu1  ;;  %v9470_v12 = vpop.f32.mrb[217].mxu0 }
 0xf7f   :  { %v9471_v5 = vadd.f32 %v19559_v4, %v9470_v12  ;;  %v9322_v23 = vpop.f32.mrb[242].mxu1  ;;  %v15995_v50 = vpop.f32.mrb[218].mxu0 }
 0xf80   :  { %v9378_v11 = vpack.c.bf16 %v9322_v23, %v9319_v1  ;;  %v9482_v30 = vadd.f32 %v15995_v50, %v19559_v4  ;;  %v9324_v14 = vpop.f32.mrb[243].mxu1  ;;  %v9473_v59 = vpop.f32.mrb[219].mxu0  ;;  %v9727_v17 = vmax.f32 %v9479_v7, 0.0 }
 0xf81   :  { %v9474_v16 = vadd.f32 %v19559_v4, %v9473_v59  ;;  %v9725_v18 = vmax.f32 %v9471_v5, 0.0 }
 0xf82   :  { %v9728_v57 = vmax.f32 %v9482_v30, 0.0  ;;  %16048 = vmatprep.mubr.bf16.mxu0 %v9378_v11 }
 0xf83   :  { %v9726_v35 = vmax.f32 %v9474_v16, 0.0 }
 0xf84   :  { %v9790_v53 = vpack.c.bf16 %v9728_v57, %v9727_v17 }
 0xf85   :  { %v9789_v19 = vpack.c.bf16 %v9726_v35, %v9725_v18  ;;  %v9327_v22 = vpop.f32.mrb[244].mxu1 }
 0xf86   :  { %v9329_v21 = vpop.f32.mrb[245].mxu1 }
 0xf87   :  { %v9330_v9 = vpop.f32.mrb[246].mxu1  ;;  %10673 = vmatpush1.bf16.msra.mxu0 %v9789_v19 }
 0xf88   :  { %v9379_v24 = vpack.c.bf16 %v9330_v9, %v9327_v22  ;;  %v9332_v13 = vpop.f32.mrb[247].mxu1  ;;  %10674 = vmatprep.subr.bf16.mxu0 %v18900_v0 }
 0xf8a   :  { %16049 = vmatmul.mubr.bf16.gmra.mrb[16].mxu0 %v9379_v24 }
 0xf8b   :  { %10675 = vmatpush1.bf16.msra.mxu0 %v9790_v53 }
 0xf8c   :  { %10676 = vmatprep.subr.bf16.mxu0 %v18900_v0 }
 0xf8d   :  { %v9335_v26 = vpop.f32.mrb[248].mxu1  ;;  %v15998_v39 = vpop.f32.mrb[220].mxu0 }
 0xf8e   :  { %v9495_v56 = vadd.f32 %v15998_v39, %v19559_v4  ;;  %v9337_v31 = vpop.f32.mrb[249].mxu1  ;;  %v9486_v27 = vpop.f32.mrb[221].mxu0 }
 0xf8f   :  { %v9487_v29 = vadd.f32 %v19559_v4, %v9486_v27  ;;  %v9338_v36 = vpop.f32.mrb[250].mxu1  ;;  %v15999_v32 = vpop.f32.mrb[222].mxu0 }
 0xf90   :  { %v9380_v33 = vpack.c.bf16 %v9338_v36, %v9335_v26  ;;  %v9498_v20 = vadd.f32 %v15999_v32, %v19559_v4  ;;  %v9340_v34 = vpop.f32.mrb[251].mxu1  ;;  %v9489_v38 = vpop.f32.mrb[223].mxu0  ;;  %v9731_v40 = vmax.f32 %v9495_v56, 0.0 }
 0xf91   :  { %v9490_v49 = vadd.f32 %v19559_v4, %v9489_v38  ;;  %v9729_v60 = vmax.f32 %v9487_v29, 0.0 }
 0xf92   :  { %v9732_v42 = vmax.f32 %v9498_v20, 0.0  ;;  %16052 = vmatprep.mubr.bf16.mxu0 %v9380_v33 }
 0xf93   :  { %v9730_v37 = vmax.f32 %v9490_v49, 0.0 }
 0xf94   :  { %v9792_v41 = vpack.c.bf16 %v9732_v42, %v9731_v40 }
 0xf95   :  { %v9791_v43 = vpack.c.bf16 %v9730_v37, %v9729_v60  ;;  %v9343_v10 = vpop.f32.mrb[252].mxu1 }
 0xf96   :  { %v9345_v25 = vpop.f32.mrb[253].mxu1 }
 0xf97   :  { %v9346_v44 = vpop.f32.mrb[254].mxu1  ;;  %10677 = vmatpush1.bf16.msra.mxu0 %v9791_v43 }
 0xf98   :  { %v9381_v15 = vpack.c.bf16 %v9346_v44, %v9343_v10  ;;  %v9348_v46 = vpop.f32.mrb[255].mxu1  ;;  %10678 = vmatprep.subr.bf16.mxu0 %v18900_v0 }
 0xf9a   :  { %16053 = vmatmul.mubr.bf16.gmra.mrb[20].mxu0 %v9381_v15 }
 0xf9b   :  { %10679 = vmatpush1.bf16.msra.mxu0 %v9792_v41  ;;  %10704 = vmatprep.mubr.bf16.mxu0 %v18145_v63 }
 0xf9c   :  { %10680 = vmatprep.subr.bf16.mxu0 %v18900_v0 }
 0xf9d   :  { %v16002_v48 = vpop.f32.mrb[224].mxu0 }
 0xf9e   :  { %v9511_v45 = vadd.f32 %v16002_v48, %v19559_v4  ;;  %v9502_v51 = vpop.f32.mrb[225].mxu0 }
 0xf9f   :  { %v9503_v55 = vadd.f32 %v19559_v4, %v9502_v51  ;;  %v16003_v52 = vpop.f32.mrb[226].mxu0 }
 0xfa0   :  { %v9514_v2 = vadd.f32 %v16003_v52, %v19559_v4  ;;  %v9505_v58 = vpop.f32.mrb[227].mxu0  ;;  %v9735_v28 = vmax.f32 %v9511_v45, 0.0 }
 0xfa1   :  { %v9506_v54 = vadd.f32 %v19559_v4, %v9505_v58  ;;  %v9733_v61 = vmax.f32 %v9503_v55, 0.0 }
 0xfa2   :  { %v9736_v6 = vmax.f32 %v9514_v2, 0.0 }
 0xfa3   :  { %v9734_v62 = vmax.f32 %v9506_v54, 0.0 }
 0xfa4   :  { %v9794_v3 = vpack.c.bf16 %v9736_v6, %v9735_v28 }
 0xfa5   :  { %v9793_v1 = vpack.c.bf16 %v9734_v62, %v9733_v61 }
 0xfa7   :  { %10681 = vmatpush1.bf16.msra.mxu0 %v9793_v1 }
 0xfa8   :  { %10682 = vmatprep.subr.bf16.mxu0 %v18900_v0 }
 0xfab   :  { %10683 = vmatpush1.bf16.msra.mxu0 %v9794_v3 }
 0xfac   :  { %10684 = vmatprep.subr.bf16.mxu0 %v18900_v0 }
 0xfad   :  { %v16006_v8 = vpop.f32.mrb[228].mxu0 }
 0xfae   :  { %v9527_v7 = vadd.f32 %v16006_v8, %v19559_v4  ;;  %v9518_v47 = vpop.f32.mrb[229].mxu0 }
 0xfaf   :  { %v9519_v12 = vadd.f32 %v19559_v4, %v9518_v47  ;;  %v16007_v5 = vpop.f32.mrb[230].mxu0 }
 0xfb0   :  { %v9530_v23 = vadd.f32 %v16007_v5, %v19559_v4  ;;  %v9521_v50 = vpop.f32.mrb[231].mxu0  ;;  %v9739_v30 = vmax.f32 %v9527_v7, 0.0 }
 0xfb1   :  { %v9522_v11 = vadd.f32 %v19559_v4, %v9521_v50  ;;  %v9737_v59 = vmax.f32 %v9519_v12, 0.0 }
 0xfb2   :  { %v9740_v14 = vmax.f32 %v9530_v23, 0.0 }
 0xfb3   :  { %v9738_v16 = vmax.f32 %v9522_v11, 0.0 }
 0xfb4   :  { %v9796_v17 = vpack.c.bf16 %v9740_v14, %v9739_v30  ;;  %v18143_v30 = vld [vmem:[#allocation3] ss:$16 sps:$4 sm:$0xff]   ;;  %v18148_v14 = vld [vmem:[#allocation3 + $0x24] ss:$16 sps:$4 sm:$0xff]  }
 0xfb5   :  { %v9795_v57 = vpack.c.bf16 %v9738_v16, %v9737_v59 }
 0xfb7   :  { %10685 = vmatpush1.bf16.msra.mxu0 %v9795_v57 }
 0xfb8   :  { %10686 = vmatprep.subr.bf16.mxu0 %v18900_v0 }
 0xfbb   :  { %10687 = vmatpush1.bf16.msra.mxu0 %v9796_v17 }
 0xfbc   :  { %10688 = vmatprep.subr.bf16.mxu0 %v18900_v0 }
 0xfbd   :  { %v16010_v18 = vpop.f32.mrb[232].mxu0 }
 0xfbe   :  { %v9543_v35 = vadd.f32 %v16010_v18, %v19559_v4  ;;  %v9534_v53 = vpop.f32.mrb[233].mxu0 }
 0xfbf   :  { %v9535_v19 = vadd.f32 %v19559_v4, %v9534_v53  ;;  %v16011_v22 = vpop.f32.mrb[234].mxu0 }
 0xfc0   :  { %v9546_v21 = vadd.f32 %v16011_v22, %v19559_v4  ;;  %v9537_v9 = vpop.f32.mrb[235].mxu0  ;;  %v9743_v13 = vmax.f32 %v9543_v35, 0.0 }
 0xfc1   :  { %v9538_v24 = vadd.f32 %v19559_v4, %v9537_v9  ;;  %v9741_v39 = vmax.f32 %v9535_v19, 0.0  ;;  %v18146_v9 = vld [vmem:[#allocation3 + $0x20] ss:$16 sps:$4 sm:$0xff]  }
 0xfc2   :  { %v9744_v26 = vmax.f32 %v9546_v21, 0.0 }
 0xfc3   :  { %v9742_v56 = vmax.f32 %v9538_v24, 0.0 }
 0xfc4   :  { %v9798_v31 = vpack.c.bf16 %v9744_v26, %v9743_v13  ;;  %v18151_v26 = vld [vmem:[#allocation3 + $0x44] ss:$16 sps:$4 sm:$0xff]  }
 0xfc5   :  { %v9797_v27 = vpack.c.bf16 %v9742_v56, %v9741_v39 }
 0xfc7   :  { %10689 = vmatpush1.bf16.msra.mxu0 %v9797_v27  ;;  %v18154_v27 = vld [vmem:[#allocation3 + $0x64] ss:$16 sps:$4 sm:$0xff]  }
 0xfc8   :  { %10690 = vmatprep.subr.bf16.mxu0 %v18900_v0 }
 0xfcb   :  { %10691 = vmatpush1.bf16.msra.mxu0 %v9798_v31  ;;  %v18149_v31 = vld [vmem:[#allocation3 + $0x40] ss:$16 sps:$4 sm:$0xff]  }
 0xfcc   :  { %10692 = vmatprep.subr.bf16.mxu0 %v18900_v0 }
 0xfcd   :  { %v16014_v29 = vpop.f32.mrb[236].mxu0 }
 0xfce   :  { %v9559_v36 = vadd.f32 %v16014_v29, %v19559_v4  ;;  %v9550_v32 = vpop.f32.mrb[237].mxu0 }
 0xfcf   :  { %v9551_v33 = vadd.f32 %v19559_v4, %v9550_v32  ;;  %v16015_v20 = vpop.f32.mrb[238].mxu0 }
 0xfd0   :  { %v9562_v34 = vadd.f32 %v16015_v20, %v19559_v4  ;;  %v9553_v38 = vpop.f32.mrb[239].mxu0  ;;  %v9747_v40 = vmax.f32 %v9559_v36, 0.0 }
 0xfd1   :  { %v9554_v49 = vadd.f32 %v19559_v4, %v9553_v38  ;;  %v9745_v60 = vmax.f32 %v9551_v33, 0.0 }
 0xfd2   :  { %v9748_v42 = vmax.f32 %v9562_v34, 0.0 }
 0xfd3   :  { %v9746_v37 = vmax.f32 %v9554_v49, 0.0 }
 0xfd4   :  { %v9800_v41 = vpack.c.bf16 %v9748_v42, %v9747_v40 }
 0xfd5   :  { %v9799_v43 = vpack.c.bf16 %v9746_v37, %v9745_v60  ;;  %v18152_v60 = vld [vmem:[#allocation3 + $0x60] ss:$16 sps:$4 sm:$0xff]  }
 0xfd7   :  { %10693 = vmatpush1.bf16.msra.mxu0 %v9799_v43  ;;  %v18157_v43 = vld [vmem:[#allocation3 + $0x84] ss:$16 sps:$4 sm:$0xff]  }
 0xfd8   :  { %10694 = vmatprep.subr.bf16.mxu0 %v18900_v0 }
 0xfdb   :  { %10695 = vmatpush1.bf16.msra.mxu0 %v9800_v41 }
 0xfdc   :  { %10696 = vmatprep.subr.bf16.mxu0 %v18900_v0 }
 0xfdd   :  { %v16018_v10 = vpop.f32.mrb[240].mxu0 }
 0xfde   :  { %v9575_v25 = vadd.f32 %v16018_v10, %v19559_v4  ;;  %v9566_v44 = vpop.f32.mrb[241].mxu0 }
 0xfdf   :  { %v9567_v63 = vadd.f32 %v19559_v4, %v9566_v44  ;;  %v16019_v15 = vpop.f32.mrb[242].mxu0  ;;  %v18155_v44 = vld [vmem:[#allocation3 + $0x80] ss:$16 sps:$4 sm:$0xff]  }
 0xfe0   :  { %v9578_v46 = vadd.f32 %v16019_v15, %v19559_v4  ;;  %v9569_v48 = vpop.f32.mrb[243].mxu0  ;;  %v9751_v51 = vmax.f32 %v9575_v25, 0.0 }
 0xfe1   :  { %v9570_v45 = vadd.f32 %v19559_v4, %v9569_v48  ;;  %v9749_v52 = vmax.f32 %v9567_v63, 0.0  ;;  %v18160_v63 = vld [vmem:[#allocation3 + $0xa4] ss:$16 sps:$4 sm:$0xff]  }
 0xfe2   :  { %v9752_v55 = vmax.f32 %v9578_v46, 0.0 }
 0xfe3   :  { %v9750_v2 = vmax.f32 %v9570_v45, 0.0 }
 0xfe4   :  { %v9802_v58 = vpack.c.bf16 %v9752_v55, %v9751_v51 }
 0xfe5   :  { %v9801_v54 = vpack.c.bf16 %v9750_v2, %v9749_v52 }
 0xfe7   :  { %10697 = vmatpush1.bf16.msra.mxu0 %v9801_v54 }
 0xfe8   :  { %10698 = vmatprep.subr.bf16.mxu0 %v18900_v0 }
 0xfeb   :  { %10699 = vmatpush1.bf16.msra.mxu0 %v9802_v58 }
 0xfec   :  { %10700 = vmatprep.subr.bf16.mxu0 %v18900_v0 }
 0xfed   :  { %v16022_v28 = vpop.f32.mrb[244].mxu0 }
 0xfee   :  { %v9591_v6 = vadd.f32 %v16022_v28, %v19559_v4  ;;  %v9582_v61 = vpop.f32.mrb[245].mxu0  ;;  %v18158_v28 = vld [vmem:[#allocation3 + $0xa0] ss:$16 sps:$4 sm:$0xff]  }
 0xfef   :  { %v9583_v62 = vadd.f32 %v19559_v4, %v9582_v61  ;;  %v16023_v3 = vpop.f32.mrb[246].mxu0 }
 0xff0   :  { %v9594_v1 = vadd.f32 %v16023_v3, %v19559_v4  ;;  %v9585_v8 = vpop.f32.mrb[247].mxu0  ;;  %v9755_v47 = vmax.f32 %v9591_v6, 0.0 }
 0xff1   :  { %v9586_v7 = vadd.f32 %v19559_v4, %v9585_v8  ;;  %v9753_v5 = vmax.f32 %v9583_v62, 0.0  ;;  %v18163_v62 = vld [vmem:[#allocation3 + $0xc4] ss:$16 sps:$4 sm:$0xff]   ;;  %v18161_v8 = vld [vmem:[#allocation3 + $0xc0] ss:$16 sps:$4 sm:$0xff]  }
 0xff2   :  { %v9756_v12 = vmax.f32 %v9594_v1, 0.0 }
 0xff3   :  { %v9754_v23 = vmax.f32 %v9586_v7, 0.0  ;;  %v18166_v7 = vld [vmem:[#allocation3 + $0xe4] ss:$16 sps:$4 sm:$0xff]  }
 0xff4   :  { %v9804_v50 = vpack.c.bf16 %v9756_v12, %v9755_v47 }
 0xff5   :  { %v9803_v11 = vpack.c.bf16 %v9754_v23, %v9753_v5 }
 0xff7   :  { %10701 = vmatpush1.bf16.msra.mxu0 %v9803_v11 }
 0xff8   :  { %10702 = vmatprep.subr.bf16.mxu0 %v18900_v0 }
 0xffb   :  { %10703 = vmatpush1.bf16.msra.mxu0 %v9804_v50 }
 0xffc   :  { %10961 = vmatprep.subr.bf16.mxu0 %v18900_v0 }
 0xffd   :  { %v16026_v59 = vpop.f32.mrb[248].mxu0 }
 0xffe   :  { %v9607_v16 = vadd.f32 %v16026_v59, %v19559_v4  ;;  %v9598_v17 = vpop.f32.mrb[249].mxu0  ;;  %10705 = vmatmul.mubr.bf16.vlgmr.msra.gmra.mrb[24].mxu0 %v18143_v30 }
 0xfff   :  { %v9599_v57 = vadd.f32 %v19559_v4, %v9598_v17  ;;  %v16027_v18 = vpop.f32.mrb[250].mxu0  ;;  %10712 = vmatprep.mubr.bf16.mxu0 %v18148_v14  ;;  %v18164_v17 = vld [vmem:[#allocation3 + $0xe0] ss:$16 sps:$4 sm:$0xff]  }
0x1000   :  { %v9610_v35 = vadd.f32 %v16027_v18, %v19559_v4  ;;  %v9601_v53 = vpop.f32.mrb[251].mxu0  ;;  %v9759_v22 = vmax.f32 %v9607_v16, 0.0 }
0x1001   :  { %v9602_v19 = vadd.f32 %v19559_v4, %v9601_v53  ;;  %v9757_v24 = vmax.f32 %v9599_v57, 0.0 }
0x1002   :  { %v9760_v21 = vmax.f32 %v9610_v35, 0.0  ;;  %v18169_v35 = vld [vmem:[#allocation3 + $0x104] ss:$16 sps:$4 sm:$0xff]  }
0x1003   :  { %v9758_v13 = vmax.f32 %v9602_v19, 0.0 }
0x1004   :  { %v9806_v39 = vpack.c.bf16 %v9760_v21, %v9759_v22  ;;  %v18167_v22 = vld [vmem:[#allocation3 + $0x100] ss:$16 sps:$4 sm:$0xff]   ;;  %v18172_v21 = vld [vmem:[#allocation3 + $0x124] ss:$16 sps:$4 sm:$0xff]  }
0x1005   :  { %v9805_v56 = vpack.c.bf16 %v9758_v13, %v9757_v24 }
0x1006   :  { %10713 = vmatmul.mubr.bf16.gmra.mrb[28].mxu0 %v18146_v9 }
0x1007   :  { %10962 = vmatpush1.bf16.msra.mxu0 %v9805_v56  ;;  %10720 = vmatprep.mubr.bf16.mxu0 %v18151_v26 }
0x1008   :  { %10963 = vmatprep.subr.bf16.mxu0 %v18900_v0 }
0x100b   :  { %10964 = vmatpush1.bf16.msra.mxu0 %v9806_v39 }
0x100c   :  { %10965 = vmatprep.subr.bf16.mxu0 %v18900_v0 }
0x100d   :  { %v16030_v29 = vpop.f32.mrb[252].mxu0 }
0x100e   :  { %v9623_v36 = vadd.f32 %v16030_v29, %v19559_v4  ;;  %v9614_v32 = vpop.f32.mrb[253].mxu0  ;;  %10721 = vmatmul.mubr.bf16.gmra.mrb[32].mxu0 %v18149_v31 }
0x100f   :  { %v9615_v33 = vadd.f32 %v19559_v4, %v9614_v32  ;;  %v16031_v20 = vpop.f32.mrb[254].mxu0  ;;  %10728 = vmatprep.mubr.bf16.mxu0 %v18154_v27  ;;  %v18170_v32 = vld [vmem:[#allocation3 + $0x120] ss:$16 sps:$4 sm:$0xff]  }
0x1010   :  { %v9626_v34 = vadd.f32 %v16031_v20, %v19559_v4  ;;  %v9617_v38 = vpop.f32.mrb[255].mxu0  ;;  %v9763_v40 = vmax.f32 %v9623_v36, 0.0 }
0x1011   :  { %v9618_v49 = vadd.f32 %v19559_v4, %v9617_v38  ;;  %v9761_v37 = vmax.f32 %v9615_v33, 0.0 }
0x1012   :  { %v9764_v42 = vmax.f32 %v9626_v34, 0.0  ;;  %v18175_v34 = vld [vmem:[#allocation3 + $0x144] ss:$16 sps:$4 sm:$0xff]  }
0x1013   :  { %v9762_v41 = vmax.f32 %v9618_v49, 0.0 }
0x1014   :  { %v9808_v10 = vpack.c.bf16 %v9764_v42, %v9763_v40  ;;  %v18173_v40 = vld [vmem:[#allocation3 + $0x140] ss:$16 sps:$4 sm:$0xff]   ;;  %v18178_v42 = vld [vmem:[#allocation3 + $0x164] ss:$16 sps:$4 sm:$0xff]  }
0x1015   :  { %v9807_v25 = vpack.c.bf16 %v9762_v41, %v9761_v37 }
0x1016   :  { %10729 = vmatmul.mubr.bf16.gmra.mrb[36].mxu0 %v18152_v60 }
0x1017   :  { %10966 = vmatpush1.bf16.msra.mxu0 %v9807_v25  ;;  %10736 = vmatprep.mubr.bf16.mxu0 %v18157_v43 }
0x1018   :  { %10967 = vmatprep.subr.bf16.mxu0 %v18900_v0 }
0x101b   :  { %10968 = vmatpush1.bf16.msra.mxu0 %v9808_v10 }
0x101c   :  { %10969 = vmatprep.subr.bf16.mxu0 %v18900_v0 }
0x101d   :  { %v16034_v15 = vpop.f32.mrb[0].mxu0 }
0x101e   :  { %v9639_v46 = vadd.f32 %v16034_v15, %v19559_v4  ;;  %v9630_v48 = vpop.f32.mrb[1].mxu0  ;;  %10737 = vmatmul.mubr.bf16.gmra.mrb[40].mxu0 %v18155_v44 }
0x101f   :  { %v9631_v45 = vadd.f32 %v19559_v4, %v9630_v48  ;;  %v16035_v51 = vpop.f32.mrb[2].mxu0  ;;  %10744 = vmatprep.mubr.bf16.mxu0 %v18160_v63  ;;  %v18176_v48 = vld [vmem:[#allocation3 + $0x160] ss:$16 sps:$4 sm:$0xff]  }
0x1020   :  { %v9642_v55 = vadd.f32 %v16035_v51, %v19559_v4  ;;  %v9633_v52 = vpop.f32.mrb[3].mxu0  ;;  %v9767_v58 = vmax.f32 %v9639_v46, 0.0 }
0x1021   :  { %v9634_v2 = vadd.f32 %v19559_v4, %v9633_v52  ;;  %v9765_v6 = vmax.f32 %v9631_v45, 0.0 }
0x1022   :  { %v9768_v54 = vmax.f32 %v9642_v55, 0.0  ;;  %v18181_v55 = vld [vmem:[#allocation3 + $0x184] ss:$16 sps:$4 sm:$0xff]  }
0x1023   :  { %v9766_v61 = vmax.f32 %v9634_v2, 0.0 }
0x1024   :  { %v9810_v3 = vpack.c.bf16 %v9768_v54, %v9767_v58  ;;  %v18179_v58 = vld [vmem:[#allocation3 + $0x180] ss:$16 sps:$4 sm:$0xff]   ;;  %v18184_v54 = vld [vmem:[#allocation3 + $0x1a4] ss:$16 sps:$4 sm:$0xff]  }
0x1025   :  { %v9809_v1 = vpack.c.bf16 %v9766_v61, %v9765_v6 }
0x1026   :  { %10745 = vmatmul.mubr.bf16.gmra.mrb[44].mxu0 %v18158_v28 }
0x1027   :  { %10970 = vmatpush1.bf16.msra.mxu0 %v9809_v1  ;;  %10752 = vmatprep.mubr.bf16.mxu0 %v18163_v62 }
0x1028   :  { %10971 = vmatprep.subr.bf16.mxu0 %v18900_v0 }
0x102b   :  { %10972 = vmatpush1.bf16.msra.mxu0 %v9810_v3 }
0x102c   :  { %10973 = vmatprep.subr.bf16.mxu0 %v18900_v0 }
0x102d   :  { %v16038_v47 = vpop.f32.mrb[4].mxu0 }
0x102e   :  { %v9655_v12 = vadd.f32 %v16038_v47, %v19559_v4  ;;  %v9646_v5 = vpop.f32.mrb[5].mxu0  ;;  %10753 = vmatmul.mubr.bf16.gmra.mrb[48].mxu0 %v18161_v8 }
0x102f   :  { %v9647_v23 = vadd.f32 %v19559_v4, %v9646_v5  ;;  %v16039_v50 = vpop.f32.mrb[6].mxu0  ;;  %10760 = vmatprep.mubr.bf16.mxu0 %v18166_v7  ;;  %v18182_v5 = vld [vmem:[#allocation3 + $0x1a0] ss:$16 sps:$4 sm:$0xff]  }
0x1030   :  { %v9658_v11 = vadd.f32 %v16039_v50, %v19559_v4  ;;  %v9649_v30 = vpop.f32.mrb[7].mxu0  ;;  %v9771_v59 = vmax.f32 %v9655_v12, 0.0 }
0x1031   :  { %v9650_v14 = vadd.f32 %v19559_v4, %v9649_v30  ;;  %v9769_v57 = vmax.f32 %v9647_v23, 0.0 }
0x1032   :  { %v9772_v16 = vmax.f32 %v9658_v11, 0.0  ;;  %v18187_v11 = vld [vmem:[#allocation3 + $0x1c4] ss:$16 sps:$4 sm:$0xff]  }
0x1033   :  { %v9770_v18 = vmax.f32 %v9650_v14, 0.0 }
0x1034   :  { %v9812_v53 = vpack.c.bf16 %v9772_v16, %v9771_v59  ;;  %v18185_v59 = vld [vmem:[#allocation3 + $0x1c0] ss:$16 sps:$4 sm:$0xff]   ;;  %v18190_v16 = vld [vmem:[#allocation3 + $0x1e4] ss:$16 sps:$4 sm:$0xff]  }
0x1035   :  { %v9811_v19 = vpack.c.bf16 %v9770_v18, %v9769_v57 }
0x1036   :  { %10761 = vmatmul.mubr.bf16.gmra.mrb[52].mxu0 %v18164_v17 }
0x1037   :  { %10974 = vmatpush1.bf16.msra.mxu0 %v9811_v19  ;;  %10768 = vmatprep.mubr.bf16.mxu0 %v18169_v35 }
0x1038   :  { %10975 = vmatprep.subr.bf16.mxu0 %v18900_v0 }
0x103b   :  { %10976 = vmatpush1.bf16.msra.mxu0 %v9812_v53 }
0x103c   :  { %10977 = vmatprep.subr.bf16.mxu0 %v18900_v0 }
0x103d   :  { %v16042_v9 = vpop.f32.mrb[8].mxu0 }
0x103e   :  { %v9671_v24 = vadd.f32 %v16042_v9, %v19559_v4  ;;  %v9662_v13 = vpop.f32.mrb[9].mxu0  ;;  %10769 = vmatmul.mubr.bf16.gmra.mrb[56].mxu0 %v18167_v22 }
0x103f   :  { %v9663_v26 = vadd.f32 %v19559_v4, %v9662_v13  ;;  %v16043_v39 = vpop.f32.mrb[10].mxu0  ;;  %10776 = vmatprep.mubr.bf16.mxu0 %v18172_v21  ;;  %v18188_v13 = vld [vmem:[#allocation3 + $0x1e0] ss:$16 sps:$4 sm:$0xff]  }
0x1040   :  { %v9674_v56 = vadd.f32 %v16043_v39, %v19559_v4  ;;  %v9665_v31 = vpop.f32.mrb[11].mxu0  ;;  %v9775_v29 = vmax.f32 %v9671_v24, 0.0 }
0x1041   :  { %v9666_v27 = vadd.f32 %v19559_v4, %v9665_v31  ;;  %v9773_v33 = vmax.f32 %v9663_v26, 0.0 }
0x1042   :  { %v9776_v36 = vmax.f32 %v9674_v56, 0.0  ;;  %v18193_v56 = vld [vmem:[#allocation3 + $0x204] ss:$16 sps:$4 sm:$0xff]  }
0x1043   :  { %v9774_v20 = vmax.f32 %v9666_v27, 0.0 }
0x1044   :  { %v9814_v38 = vpack.c.bf16 %v9776_v36, %v9775_v29  ;;  %v18191_v29 = vld [vmem:[#allocation3 + $0x200] ss:$16 sps:$4 sm:$0xff]   ;;  %v18196_v36 = vld [vmem:[#allocation3 + $0x224] ss:$16 sps:$4 sm:$0xff]  }
0x1045   :  { %v9813_v49 = vpack.c.bf16 %v9774_v20, %v9773_v33  ;;  %v18197_v33 = vld [vmem:[#allocation3 + $0x240] ss:$16 sps:$4 sm:$0xff]   ;;  %v18202_v20 = vld [vmem:[#allocation3 + $0x264] ss:$16 sps:$4 sm:$0xff]  }
0x1046   :  { %10777 = vmatmul.mubr.bf16.gmra.mrb[60].mxu0 %v18170_v32  ;;  %v18194_v32 = vld [vmem:[#allocation3 + $0x220] ss:$16 sps:$4 sm:$0xff]  }
0x1047   :  { %10978 = vmatpush1.bf16.msra.mxu0 %v9813_v49  ;;  %10784 = vmatprep.mubr.bf16.mxu0 %v18175_v34  ;;  %v18200_v34 = vld [vmem:[#allocation3 + $0x260] ss:$16 sps:$4 sm:$0xff]  }
0x1048   :  { %10979 = vmatprep.subr.bf16.mxu0 %v18900_v0  ;;  %v18203_v49 = vld [vmem:[#allocation3 + $0x280] ss:$16 sps:$4 sm:$0xff]  }
0x104b   :  { %10980 = vmatpush1.bf16.msra.mxu0 %v9814_v38  ;;  %v18205_v38 = vld [vmem:[#allocation3 + $0x284] ss:$16 sps:$4 sm:$0xff]  }
0x104c   :  { %10981 = vmatprep.subr.bf16.mxu0 %v18900_v0 }
0x104d   :  { %v16046_v60 = vpop.f32.mrb[12].mxu0 }
0x104e   :  { %v9687_v37 = vadd.f32 %v16046_v60, %v19559_v4  ;;  %v9678_v41 = vpop.f32.mrb[13].mxu0  ;;  %10785 = vmatmul.mubr.bf16.gmra.mrb[64].mxu0 %v18173_v40  ;;  %v18208_v40 = vld [vmem:[#allocation3 + $0x2a4] ss:$16 sps:$4 sm:$0xff]  }
0x104f   :  { %v9679_v43 = vadd.f32 %v19559_v4, %v9678_v41  ;;  %v16047_v10 = vpop.f32.mrb[14].mxu0  ;;  %10792 = vmatprep.mubr.bf16.mxu0 %v18178_v42  ;;  %v18206_v42 = vld [vmem:[#allocation3 + $0x2a0] ss:$16 sps:$4 sm:$0xff]   ;;  %v18211_v60 = vld [vmem:[#allocation3 + $0x2c4] ss:$16 sps:$4 sm:$0xff]  }
0x1050   :  { %v9690_v25 = vadd.f32 %v16047_v10, %v19559_v4  ;;  %v9681_v44 = vpop.f32.mrb[15].mxu0  ;;  %v9779_v15 = vmax.f32 %v9687_v37, 0.0  ;;  %v18209_v37 = vld [vmem:[#allocation3 + $0x2c0] ss:$16 sps:$4 sm:$0xff]   ;;  %v18214_v41 = vld [vmem:[#allocation3 + $0x2e4] ss:$16 sps:$4 sm:$0xff]  }
0x1051   :  { %v9682_v63 = vadd.f32 %v19559_v4, %v9681_v44  ;;  %v9777_v45 = vmax.f32 %v9679_v43, 0.0  ;;  %v18212_v43 = vld [vmem:[#allocation3 + $0x2e0] ss:$16 sps:$4 sm:$0xff]   ;;  %v18217_v10 = vld [vmem:[#allocation3 + $0x304] ss:$16 sps:$4 sm:$0xff]  }
0x1052   :  { %v9780_v46 = vmax.f32 %v9690_v25, 0.0  ;;  %v18215_v25 = vld [vmem:[#allocation3 + $0x300] ss:$16 sps:$4 sm:$0xff]   ;;  %v18220_v44 = vld [vmem:[#allocation3 + $0x324] ss:$16 sps:$4 sm:$0xff]  }
0x1053   :  { %v9778_v51 = vmax.f32 %v9682_v63, 0.0  ;;  %v18218_v63 = vld [vmem:[#allocation3 + $0x320] ss:$16 sps:$4 sm:$0xff]  }
0x1054   :  { %v9816_v52 = vpack.c.bf16 %v9780_v46, %v9779_v15  ;;  %v18223_v15 = vld [vmem:[#allocation3 + $0x344] ss:$16 sps:$4 sm:$0xff]   ;;  %v18221_v46 = vld [vmem:[#allocation3 + $0x340] ss:$16 sps:$4 sm:$0xff]  }
0x1055   :  { %v9815_v2 = vpack.c.bf16 %v9778_v51, %v9777_v45  ;;  %v18224_v45 = vld [vmem:[#allocation3 + $0x360] ss:$16 sps:$4 sm:$0xff]   ;;  %v18229_v51 = vld [vmem:[#allocation3 + $0x384] ss:$16 sps:$4 sm:$0xff]  }
0x1056   :  { %10793 = vmatmul.mubr.bf16.gmra.mrb[68].mxu0 %v18176_v48  ;;  %v18226_v48 = vld [vmem:[#allocation3 + $0x364] ss:$16 sps:$4 sm:$0xff]  }
0x1057   :  { %10982 = vmatpush1.bf16.msra.mxu0 %v9815_v2  ;;  %10800 = vmatprep.mubr.bf16.mxu0 %v18181_v55  ;;  %v18227_v55 = vld [vmem:[#allocation3 + $0x380] ss:$16 sps:$4 sm:$0xff]  }
0x1058   :  { %10983 = vmatprep.subr.bf16.mxu0 %v18900_v0  ;;  %v18230_v2 = vld [vmem:[#allocation3 + $0x3a0] ss:$16 sps:$4 sm:$0xff]  }
0x105b   :  { %10984 = vmatpush1.bf16.msra.mxu0 %v9816_v52  ;;  %v18232_v52 = vld [vmem:[#allocation3 + $0x3a4] ss:$16 sps:$4 sm:$0xff]  }
0x105c   :  { %10985 = vmatprep.subr.bf16.mxu0 %v18900_v0 }
0x105d   :  { %v16050_v28 = vpop.f32.mrb[16].mxu0 }
0x105e   :  { %v9703_v6 = vadd.f32 %v16050_v28, %v19559_v4  ;;  %v9694_v61 = vpop.f32.mrb[17].mxu0  ;;  %10801 = vmatmul.mubr.bf16.gmra.mrb[72].mxu0 %v18179_v58  ;;  %v18235_v58 = vld [vmem:[#allocation3 + $0x3c4] ss:$16 sps:$4 sm:$0xff]  }
0x105f   :  { %v9695_v62 = vadd.f32 %v19559_v4, %v9694_v61  ;;  %v16051_v3 = vpop.f32.mrb[18].mxu0  ;;  %10808 = vmatprep.mubr.bf16.mxu0 %v18184_v54  ;;  %v18233_v54 = vld [vmem:[#allocation3 + $0x3c0] ss:$16 sps:$4 sm:$0xff]   ;;  %v18238_v28 = vld [vmem:[#allocation3 + $0x3e4] ss:$16 sps:$4 sm:$0xff]  }
0x1060   :  { %v9706_v1 = vadd.f32 %v16051_v3, %v19559_v4  ;;  %v9697_v8 = vpop.f32.mrb[19].mxu0  ;;  %v9783_v47 = vmax.f32 %v9703_v6, 0.0  ;;  %v18236_v6 = vld [vmem:[#allocation3 + $0x3e0] ss:$16 sps:$4 sm:$0xff]   ;;  %v18241_v61 = vld [vmem:[#allocation3 + $0xc] ss:$16 sps:$4 sm:$0xff]  }
0x1061   :  { %v9698_v7 = vadd.f32 %v19559_v4, %v9697_v8  ;;  %v9781_v23 = vmax.f32 %v9695_v62, 0.0  ;;  %v18239_v62 = vld [vmem:[#allocation3 + $0x8] ss:$16 sps:$4 sm:$0xff]   ;;  %v18244_v3 = vld [vmem:[#allocation3 + $0x2c] ss:$16 sps:$4 sm:$0xff]  }
0x1062   :  { %v9784_v12 = vmax.f32 %v9706_v1, 0.0  ;;  %v18242_v1 = vld [vmem:[#allocation3 + $0x28] ss:$16 sps:$4 sm:$0xff]   ;;  %v18247_v8 = vld [vmem:[#allocation3 + $0x4c] ss:$16 sps:$4 sm:$0xff]  }
0x1063   :  { %v9782_v50 = vmax.f32 %v9698_v7, 0.0  ;;  %v18245_v7 = vld [vmem:[#allocation3 + $0x48] ss:$16 sps:$4 sm:$0xff]  }
0x1064   :  { %v9818_v30 = vpack.c.bf16 %v9784_v12, %v9783_v47  ;;  %v18250_v47 = vld [vmem:[#allocation3 + $0x6c] ss:$16 sps:$4 sm:$0xff]   ;;  %v18248_v12 = vld [vmem:[#allocation3 + $0x68] ss:$16 sps:$4 sm:$0xff]  }
0x1065   :  { %v9817_v14 = vpack.c.bf16 %v9782_v50, %v9781_v23  ;;  %v18251_v23 = vld [vmem:[#allocation3 + $0x88] ss:$16 sps:$4 sm:$0xff]   ;;  %v18256_v50 = vld [vmem:[#allocation3 + $0xac] ss:$16 sps:$4 sm:$0xff]  }
0x1066   :  { %10809 = vmatmul.mubr.bf16.gmra.mrb[76].mxu0 %v18182_v5  ;;  %v18253_v5 = vld [vmem:[#allocation3 + $0x8c] ss:$16 sps:$4 sm:$0xff]  }
0x1067   :  { %10986 = vmatpush1.bf16.msra.mxu0 %v9817_v14  ;;  %10816 = vmatprep.mubr.bf16.mxu0 %v18187_v11  ;;  %v18302_v11 = vld [vmem:[#allocation8 + $0x140] sm:$0xff]   ;;  %v18259_v14 = vld [vmem:[#allocation3 + $0xcc] ss:$16 sps:$4 sm:$0xff]  }
0x1068   :  { %10987 = vmatprep.subr.bf16.mxu0 %v18900_v0  ;;  %16056 = vmatprep.subr.bf16.mxu1 %v18302_v11 }
0x1069   :  { %16057 = vmatpush3.bf16.msra.mxu1 %v18302_v11  ;;  %v18336_v11 = vld [vmem:[#allocation3 + $0x3ac] ss:$16 sps:$4 sm:$0xff]  }
0x106b   :  { %10988 = vmatpush1.bf16.msra.mxu0 %v9818_v30  ;;  %v18254_v30 = vld [vmem:[#allocation3 + $0xa8] ss:$16 sps:$4 sm:$0xff]  }
0x106c   :  { %10989 = vmatprep.subr.bf16.mxu0 %v18900_v0 }
0x106d   :  { %v16054_v17 = vpop.f32.mrb[20].mxu0 }
0x106e   :  { %v9719_v57 = vadd.f32 %v16054_v17, %v19559_v4  ;;  %v9710_v18 = vpop.f32.mrb[21].mxu0  ;;  %10817 = vmatmul.mubr.bf16.gmra.mrb[80].mxu0 %v18185_v59  ;;  %v18257_v59 = vld [vmem:[#allocation3 + $0xc8] ss:$16 sps:$4 sm:$0xff]  }
0x106f   :  { %v9711_v35 = vadd.f32 %v19559_v4, %v9710_v18  ;;  %v16055_v53 = vpop.f32.mrb[22].mxu0  ;;  %10824 = vmatprep.mubr.bf16.mxu0 %v18190_v16  ;;  %v18262_v16 = vld [vmem:[#allocation3 + $0xec] ss:$16 sps:$4 sm:$0xff]   ;;  %v18260_v17 = vld [vmem:[#allocation3 + $0xe8] ss:$16 sps:$4 sm:$0xff]  }
0x1070   :  { %v9722_v19 = vadd.f32 %v16055_v53, %v19559_v4  ;;  %v9713_v22 = vpop.f32.mrb[23].mxu0  ;;  %v9787_v9 = vmax.f32 %v9719_v57, 0.0  ;;  %v18265_v57 = vld [vmem:[#allocation3 + $0x10c] ss:$16 sps:$4 sm:$0xff]   ;;  %v18263_v18 = vld [vmem:[#allocation3 + $0x108] ss:$16 sps:$4 sm:$0xff]  }
0x1071   :  { %v9714_v21 = vadd.f32 %v19559_v4, %v9713_v22  ;;  %v9785_v26 = vmax.f32 %v9711_v35, 0.0  ;;  %v18199_v4 = vld [vmem:[#allocation3 + $0x244] ss:$16 sps:$4 sm:$0xff]   ;;  %v18268_v35 = vld [vmem:[#allocation3 + $0x12c] ss:$16 sps:$4 sm:$0xff]  }
0x1072   :  { %v9788_v24 = vmax.f32 %v9722_v19, 0.0  ;;  %v18315_v53 = vld [vmem:[#allocation8 + $0x148] sm:$0xff]  }
0x1073   :  { %v9786_v39 = vmax.f32 %v9714_v21, 0.0  ;;  %16058 = vmatprep.subr.bf16.mxu1 %v18315_v53  ;;  %v18266_v19 = vld [vmem:[#allocation3 + $0x128] ss:$16 sps:$4 sm:$0xff]   ;;  %v18271_v22 = vld [vmem:[#allocation3 + $0x14c] ss:$16 sps:$4 sm:$0xff]   ;;  %v18319_v21 = vld [vmem:[#allocation8 + $0x150] sm:$0xff]  }
0x1074   :  { %v9820_v31 = vpack.c.bf16 %v9788_v24, %v9787_v9  ;;  %16059 = vmatpush3.bf16.msra.mxu1 %v18315_v53  ;;  %v18320_v9 = vld [vmem:[#allocation8 + $0x158] sm:$0xff]  }
0x1075   :  { %v9819_v27 = vpack.c.bf16 %v9786_v39, %v9785_v26  ;;  %16060 = vmatprep.subr.bf16.mxu1 %v18319_v21  ;;  %v18269_v24 = vld [vmem:[#allocation3 + $0x148] ss:$16 sps:$4 sm:$0xff]   ;;  %v18324_v26 = vld [vmem:[#allocation8 + $0x160] sm:$0xff]  }
0x1076   :  { %10825 = vmatmul.mubr.bf16.gmra.mrb[84].mxu0 %v18188_v13  ;;  %v18274_v13 = vld [vmem:[#allocation3 + $0x16c] ss:$16 sps:$4 sm:$0xff]  }
0x1077   :  { %10990 = vmatpush1.bf16.msra.mxu0 %v9819_v27  ;;  %10832 = vmatprep.mubr.bf16.mxu0 %v18193_v56  ;;  %v18325_v39 = vld [vmem:[#allocation8 + $0x168] sm:$0xff]   ;;  %v18329_v27 = vld [vmem:[#allocation8 + $0x170] sm:$0xff]  }
0x1078   :  { %10991 = vmatprep.subr.bf16.mxu0 %v18900_v0  ;;  %16061 = vmatpush3.bf16.msra.mxu1 %v18319_v21  ;;  %v18272_v56 = vld [vmem:[#allocation3 + $0x168] ss:$16 sps:$4 sm:$0xff]  }
0x1079   :  { %16062 = vmatprep.subr.bf16.mxu1 %v18320_v9  ;;  %v18337_v21 = vld [vmem:[#allocation3 + $0x3c8] ss:$16 sps:$4 sm:$0xff]  }
0x107b   :  { %10992 = vmatpush1.bf16.msra.mxu0 %v9820_v31  ;;  %v18277_v31 = vld [vmem:[#allocation3 + $0x18c] ss:$16 sps:$4 sm:$0xff]  }
0x107c   :  { %16063 = vmatpush3.bf16.msra.mxu1 %v18320_v9 }
0x107d   :  { %16064 = vmatprep.subr.bf16.mxu1 %v18324_v26 }
0x107e   :  { %10833 = vmatmul.mubr.bf16.gmra.mrb[88].mxu0 %v18191_v29  ;;  %v18330_v29 = vld [vmem:[#allocation8 + $0x178] sm:$0xff]  }
0x107f   :  { %10840 = vmatprep.mubr.bf16.mxu0 %v18196_v36  ;;  %v18275_v36 = vld [vmem:[#allocation3 + $0x188] ss:$16 sps:$4 sm:$0xff]  }
0x1080   :  { %16065 = vmatpush3.bf16.msra.mxu1 %v18324_v26 }
0x1081   :  { %16066 = vmatprep.subr.bf16.mxu1 %v18325_v39 }
0x1084   :  { %16067 = vmatpush3.bf16.msra.mxu1 %v18325_v39 }
0x1085   :  { %16068 = vmatprep.subr.bf16.mxu1 %v18329_v27 }
0x1086   :  { %10841 = vmatmul.mubr.bf16.gmra.mrb[92].mxu0 %v18194_v32  ;;  %v18280_v32 = vld [vmem:[#allocation3 + $0x1ac] ss:$16 sps:$4 sm:$0xff]  }
0x1087   :  { %10848 = vmatprep.mubr.bf16.mxu0 %v18199_v4  ;;  %v18278_v4 = vld [vmem:[#allocation3 + $0x1a8] ss:$16 sps:$4 sm:$0xff]  }
0x1088   :  { %16069 = vmatpush3.bf16.msra.mxu1 %v18329_v27 }
0x1089   :  { %16070 = vmatprep.subr.bf16.mxu1 %v18330_v29 }
0x108c   :  { %16071 = vmatpush3.bf16.msra.mxu1 %v18330_v29 }
0x108d   :  { %12572 = vmatprep.subr.bf16.mxu1 %v18900_v0 }
0x108e   :  { %10849 = vmatmul.mubr.bf16.gmra.mrb[96].mxu0 %v18197_v33  ;;  %v18283_v33 = vld [vmem:[#allocation3 + $0x1cc] ss:$16 sps:$4 sm:$0xff]  }
0x108f   :  { %10856 = vmatprep.mubr.bf16.mxu0 %v18202_v20  ;;  %v18281_v20 = vld [vmem:[#allocation3 + $0x1c8] ss:$16 sps:$4 sm:$0xff]  }
0x1096   :  { %10857 = vmatmul.mubr.bf16.gmra.mrb[100].mxu0 %v18200_v34  ;;  %v18286_v34 = vld [vmem:[#allocation3 + $0x1ec] ss:$16 sps:$4 sm:$0xff]  }
0x1097   :  { %10864 = vmatprep.mubr.bf16.mxu0 %v18205_v38  ;;  %v18284_v38 = vld [vmem:[#allocation3 + $0x1e8] ss:$16 sps:$4 sm:$0xff]  }
0x109e   :  { %10865 = vmatmul.mubr.bf16.gmra.mrb[104].mxu0 %v18203_v49  ;;  %v18289_v49 = vld [vmem:[#allocation3 + $0x20c] ss:$16 sps:$4 sm:$0xff]  }
0x109f   :  { %10872 = vmatprep.mubr.bf16.mxu0 %v18208_v40  ;;  %v18287_v40 = vld [vmem:[#allocation3 + $0x208] ss:$16 sps:$4 sm:$0xff]  }
0x10a6   :  { %10873 = vmatmul.mubr.bf16.gmra.mrb[108].mxu0 %v18206_v42  ;;  %v18292_v42 = vld [vmem:[#allocation3 + $0x22c] ss:$16 sps:$4 sm:$0xff]  }
0x10a7   :  { %10880 = vmatprep.mubr.bf16.mxu0 %v18211_v60  ;;  %v18290_v60 = vld [vmem:[#allocation3 + $0x228] ss:$16 sps:$4 sm:$0xff]  }
0x10ae   :  { %10881 = vmatmul.mubr.bf16.gmra.mrb[112].mxu0 %v18209_v37  ;;  %v18295_v37 = vld [vmem:[#allocation3 + $0x24c] ss:$16 sps:$4 sm:$0xff]  }
0x10af   :  { %10888 = vmatprep.mubr.bf16.mxu0 %v18214_v41  ;;  %v18293_v41 = vld [vmem:[#allocation3 + $0x248] ss:$16 sps:$4 sm:$0xff]  }
0x10b6   :  { %10889 = vmatmul.mubr.bf16.gmra.mrb[116].mxu0 %v18212_v43  ;;  %v18298_v43 = vld [vmem:[#allocation3 + $0x26c] ss:$16 sps:$4 sm:$0xff]  }
0x10b7   :  { %10896 = vmatprep.mubr.bf16.mxu0 %v18217_v10  ;;  %v18296_v10 = vld [vmem:[#allocation3 + $0x268] ss:$16 sps:$4 sm:$0xff]  }
0x10be   :  { %10897 = vmatmul.mubr.bf16.gmra.mrb[120].mxu0 %v18215_v25  ;;  %v18301_v25 = vld [vmem:[#allocation3 + $0x28c] ss:$16 sps:$4 sm:$0xff]  }
0x10bf   :  { %10904 = vmatprep.mubr.bf16.mxu0 %v18220_v44  ;;  %v18299_v44 = vld [vmem:[#allocation3 + $0x288] ss:$16 sps:$4 sm:$0xff]  }
0x10c6   :  { %10905 = vmatmul.mubr.bf16.gmra.mrb[124].mxu0 %v18218_v63  ;;  %v18305_v63 = vld [vmem:[#allocation3 + $0x2ac] ss:$16 sps:$4 sm:$0xff]  }
0x10c7   :  { %10912 = vmatprep.mubr.bf16.mxu0 %v18223_v15  ;;  %v18303_v15 = vld [vmem:[#allocation3 + $0x2a8] ss:$16 sps:$4 sm:$0xff]  }
0x10ce   :  { %10913 = vmatmul.mubr.bf16.gmra.mrb[128].mxu0 %v18221_v46  ;;  %v18308_v46 = vld [vmem:[#allocation3 + $0x2cc] ss:$16 sps:$4 sm:$0xff]  }
0x10cf   :  { %10920 = vmatprep.mubr.bf16.mxu0 %v18226_v48  ;;  %v18306_v48 = vld [vmem:[#allocation3 + $0x2c8] ss:$16 sps:$4 sm:$0xff]  }
0x10d6   :  { %10921 = vmatmul.mubr.bf16.gmra.mrb[132].mxu0 %v18224_v45  ;;  %v18311_v45 = vld [vmem:[#allocation3 + $0x2ec] ss:$16 sps:$4 sm:$0xff]  }
0x10d7   :  { %10928 = vmatprep.mubr.bf16.mxu0 %v18229_v51  ;;  %v18309_v51 = vld [vmem:[#allocation3 + $0x2e8] ss:$16 sps:$4 sm:$0xff]  }
0x10de   :  { %10929 = vmatmul.mubr.bf16.gmra.mrb[136].mxu0 %v18227_v55  ;;  %v18314_v55 = vld [vmem:[#allocation3 + $0x30c] ss:$16 sps:$4 sm:$0xff]  }
0x10df   :  { %10936 = vmatprep.mubr.bf16.mxu0 %v18232_v52  ;;  %v18312_v52 = vld [vmem:[#allocation3 + $0x308] ss:$16 sps:$4 sm:$0xff]  }
0x10e6   :  { %10937 = vmatmul.mubr.bf16.gmra.mrb[140].mxu0 %v18230_v2  ;;  %v18318_v2 = vld [vmem:[#allocation3 + $0x32c] ss:$16 sps:$4 sm:$0xff]  }
0x10e7   :  { %10944 = vmatprep.mubr.bf16.mxu0 %v18235_v58  ;;  %v18316_v58 = vld [vmem:[#allocation3 + $0x328] ss:$16 sps:$4 sm:$0xff]  }
0x10ee   :  { %10945 = vmatmul.mubr.bf16.gmra.mrb[144].mxu0 %v18233_v54  ;;  %v18323_v54 = vld [vmem:[#allocation3 + $0x34c] ss:$16 sps:$4 sm:$0xff]  }
0x10ef   :  { %10952 = vmatprep.mubr.bf16.mxu0 %v18238_v28  ;;  %v18321_v28 = vld [vmem:[#allocation3 + $0x348] ss:$16 sps:$4 sm:$0xff]  }
0x10f6   :  { %10953 = vmatmul.mubr.bf16.gmra.mrb[148].mxu0 %v18236_v6  ;;  %v18328_v6 = vld [vmem:[#allocation3 + $0x36c] ss:$16 sps:$4 sm:$0xff]  }
0x10f7   :  { %10993 = vmatprep.mubr.bf16.mxu0 %v18241_v61 }
0x10fe   :  { %10994 = vmatmul.mubr.bf16.vlgmr.msra.gmra.mrb[24].mxu0 %v18239_v62 }
0x10ff   :  { %11001 = vmatprep.mubr.bf16.mxu0 %v18244_v3  ;;  %v18326_v3 = vld [vmem:[#allocation3 + $0x368] ss:$16 sps:$4 sm:$0xff]  }
0x1106   :  { %11002 = vmatmul.mubr.bf16.gmra.mrb[28].mxu0 %v18242_v1 }
0x1107   :  { %11009 = vmatprep.mubr.bf16.mxu0 %v18247_v8  ;;  %v18333_v8 = vld [vmem:[#allocation3 + $0x38c] ss:$16 sps:$4 sm:$0xff]  }
0x110e   :  { %11010 = vmatmul.mubr.bf16.gmra.mrb[32].mxu0 %v18245_v7 }
0x110f   :  { %11017 = vmatprep.mubr.bf16.mxu0 %v18250_v47 }
0x1116   :  { %11018 = vmatmul.mubr.bf16.gmra.mrb[36].mxu0 %v18248_v12 }
0x1117   :  { %11025 = vmatprep.mubr.bf16.mxu0 %v18253_v5 }
0x111e   :  { %11026 = vmatmul.mubr.bf16.gmra.mrb[40].mxu0 %v18251_v23  ;;  %v18331_v23 = vld [vmem:[#allocation3 + $0x388] ss:$16 sps:$4 sm:$0xff]  }
0x111f   :  { %11033 = vmatprep.mubr.bf16.mxu0 %v18256_v50 }
0x1126   :  { %11034 = vmatmul.mubr.bf16.gmra.mrb[44].mxu0 %v18254_v30 }
0x1127   :  { %11041 = vmatprep.mubr.bf16.mxu0 %v18259_v14 }
0x112e   :  { %11042 = vmatmul.mubr.bf16.gmra.mrb[48].mxu0 %v18257_v59 }
0x112f   :  { %11049 = vmatprep.mubr.bf16.mxu0 %v18262_v16 }
0x1136   :  { %11050 = vmatmul.mubr.bf16.gmra.mrb[52].mxu0 %v18260_v17  ;;  %v18334_v17 = vld [vmem:[#allocation3 + $0x3a8] ss:$16 sps:$4 sm:$0xff]  }
0x1137   :  { %11057 = vmatprep.mubr.bf16.mxu0 %v18265_v57 }
0x113e   :  { %11058 = vmatmul.mubr.bf16.gmra.mrb[56].mxu0 %v18263_v18  ;;  %v18339_v18 = vld [vmem:[#allocation3 + $0x3cc] ss:$16 sps:$4 sm:$0xff]  }
0x113f   :  { %11065 = vmatprep.mubr.bf16.mxu0 %v18268_v35 }
0x1146   :  { %11066 = vmatmul.mubr.bf16.gmra.mrb[60].mxu0 %v18266_v19 }
0x1147   :  { %11073 = vmatprep.mubr.bf16.mxu0 %v18271_v22 }
0x114e   :  { %11074 = vmatmul.mubr.bf16.gmra.mrb[64].mxu0 %v18269_v24  ;;  %v18342_v24 = vld [vmem:[#allocation3 + $0x3ec] ss:$16 sps:$4 sm:$0xff]  }
0x114f   :  { %11081 = vmatprep.mubr.bf16.mxu0 %v18274_v13 }
0x1156   :  { %11082 = vmatmul.mubr.bf16.gmra.mrb[68].mxu0 %v18272_v56 }
0x1157   :  { %11089 = vmatprep.mubr.bf16.mxu0 %v18277_v31  ;;  %v18340_v31 = vld [vmem:[#allocation3 + $0x3e8] ss:$16 sps:$4 sm:$0xff]  }
0x115e   :  { %11090 = vmatmul.mubr.bf16.gmra.mrb[72].mxu0 %v18275_v36 }
0x115f   :  { %11097 = vmatprep.mubr.bf16.mxu0 %v18280_v32 }
0x1166   :  { %11098 = vmatmul.mubr.bf16.gmra.mrb[76].mxu0 %v18278_v4 }
0x1167   :  { %11105 = vmatprep.mubr.bf16.mxu0 %v18283_v33 }
0x116e   :  { %11106 = vmatmul.mubr.bf16.gmra.mrb[80].mxu0 %v18281_v20 }
0x116f   :  { %11113 = vmatprep.mubr.bf16.mxu0 %v18286_v34 }
0x1176   :  { %11114 = vmatmul.mubr.bf16.gmra.mrb[84].mxu0 %v18284_v38 }
0x1177   :  { %11121 = vmatprep.mubr.bf16.mxu0 %v18289_v49 }
0x117e   :  { %11122 = vmatmul.mubr.bf16.gmra.mrb[88].mxu0 %v18287_v40 }
0x117f   :  { %11129 = vmatprep.mubr.bf16.mxu0 %v18292_v42 }
0x1186   :  { %11130 = vmatmul.mubr.bf16.gmra.mrb[92].mxu0 %v18290_v60 }
0x1187   :  { %11137 = vmatprep.mubr.bf16.mxu0 %v18295_v37 }
0x118e   :  { %11138 = vmatmul.mubr.bf16.gmra.mrb[96].mxu0 %v18293_v41 }
0x118f   :  { %11145 = vmatprep.mubr.bf16.mxu0 %v18298_v43 }
0x1196   :  { %11146 = vmatmul.mubr.bf16.gmra.mrb[100].mxu0 %v18296_v10 }
0x1197   :  { %11153 = vmatprep.mubr.bf16.mxu0 %v18301_v25 }
0x119e   :  { %11154 = vmatmul.mubr.bf16.gmra.mrb[104].mxu0 %v18299_v44 }
0x119f   :  { %11161 = vmatprep.mubr.bf16.mxu0 %v18305_v63 }
0x11a6   :  { %11162 = vmatmul.mubr.bf16.gmra.mrb[108].mxu0 %v18303_v15 }
0x11a7   :  { %11169 = vmatprep.mubr.bf16.mxu0 %v18308_v46 }
0x11ae   :  { %11170 = vmatmul.mubr.bf16.gmra.mrb[112].mxu0 %v18306_v48 }
0x11af   :  { %11177 = vmatprep.mubr.bf16.mxu0 %v18311_v45 }
0x11b6   :  { %11178 = vmatmul.mubr.bf16.gmra.mrb[116].mxu0 %v18309_v51 }
0x11b7   :  { %11185 = vmatprep.mubr.bf16.mxu0 %v18314_v55 }
0x11be   :  { %11186 = vmatmul.mubr.bf16.gmra.mrb[120].mxu0 %v18312_v52 }
0x11bf   :  { %11193 = vmatprep.mubr.bf16.mxu0 %v18318_v2 }
0x11c6   :  { %11194 = vmatmul.mubr.bf16.gmra.mrb[124].mxu0 %v18316_v58 }
0x11c7   :  { %11201 = vmatprep.mubr.bf16.mxu0 %v18323_v54 }
0x11ce   :  { %11202 = vmatmul.mubr.bf16.gmra.mrb[128].mxu0 %v18321_v28 }
0x11cf   :  { %11209 = vmatprep.mubr.bf16.mxu0 %v18328_v6 }
0x11d1   :  { %v10995_v61 = vpop.f32.mrb[24].mxu0 }
0x11d2   :  { %v10997_v62 = vpop.f32.mrb[25].mxu0 }
0x11d3   :  { %v10998_v1 = vpop.f32.mrb[26].mxu0 }
0x11d4   :  { %v11250_v7 = vpack.c.bf16 %v10998_v1, %v10995_v61  ;;  %v11000_v47 = vpop.f32.mrb[27].mxu0 }
0x11d6   :  { %11210 = vmatmul.mubr.bf16.gmra.mrb[132].mxu0 %v18326_v3  ;;  %16072 = vmatprep.mubr.bf16.mxu1 %v11250_v7 }
0x11d7   :  { %11217 = vmatprep.mubr.bf16.mxu0 %v18333_v8 }
0x11d9   :  { %v11003_v12 = vpop.f32.mrb[28].mxu0 }
0x11da   :  { %v11005_v5 = vpop.f32.mrb[29].mxu0 }
0x11db   :  { %v11006_v50 = vpop.f32.mrb[30].mxu0 }
0x11dc   :  { %v11251_v30 = vpack.c.bf16 %v11006_v50, %v11003_v12  ;;  %v11008_v14 = vpop.f32.mrb[31].mxu0 }
0x11de   :  { %11218 = vmatmul.mubr.bf16.gmra.mrb[136].mxu0 %v18331_v23  ;;  %16073 = vmatmul.mubr.bf16.vlgmr.msra.gmra.mrb[0].mxu1 %v11251_v30 }
0x11df   :  { %11225 = vmatprep.mubr.bf16.mxu0 %v18336_v11 }
0x11e1   :  { %v11011_v59 = vpop.f32.mrb[32].mxu0 }
0x11e2   :  { %v11013_v16 = vpop.f32.mrb[33].mxu0 }
0x11e3   :  { %v11014_v57 = vpop.f32.mrb[34].mxu0 }
0x11e4   :  { %v11252_v35 = vpack.c.bf16 %v11014_v57, %v11011_v59  ;;  %v11016_v53 = vpop.f32.mrb[35].mxu0 }
0x11e6   :  { %11226 = vmatmul.mubr.bf16.gmra.mrb[140].mxu0 %v18334_v17  ;;  %16076 = vmatprep.mubr.bf16.mxu1 %v11252_v35 }
0x11e7   :  { %11233 = vmatprep.mubr.bf16.mxu0 %v18339_v18 }
0x11e9   :  { %v11019_v19 = vpop.f32.mrb[36].mxu0 }
0x11ea   :  { %v11021_v22 = vpop.f32.mrb[37].mxu0 }
0x11eb   :  { %v11022_v9 = vpop.f32.mrb[38].mxu0 }
0x11ec   :  { %v11253_v13 = vpack.c.bf16 %v11022_v9, %v11019_v19  ;;  %v11024_v26 = vpop.f32.mrb[39].mxu0 }
0x11ee   :  { %11234 = vmatmul.mubr.bf16.gmra.mrb[144].mxu0 %v18337_v21  ;;  %16077 = vmatmul.mubr.bf16.gmra.mrb[4].mxu1 %v11253_v13 }
0x11ef   :  { %11241 = vmatprep.mubr.bf16.mxu0 %v18342_v24 }
0x11f1   :  { %v11027_v39 = vpop.f32.mrb[40].mxu0 }
0x11f2   :  { %v11029_v56 = vpop.f32.mrb[41].mxu0 }
0x11f3   :  { %v11030_v27 = vpop.f32.mrb[42].mxu0 }
0x11f4   :  { %v11254_v29 = vpack.c.bf16 %v11030_v27, %v11027_v39  ;;  %v11032_v36 = vpop.f32.mrb[43].mxu0 }
0x11f6   :  { %11242 = vmatmul.mubr.bf16.gmra.mrb[148].mxu0 %v18340_v31  ;;  %16080 = vmatprep.mubr.bf16.mxu1 %v11254_v29 }
0x11f9   :  { %v11035_v32 = vpop.f32.mrb[44].mxu0 }
0x11fa   :  { %v11037_v4 = vpop.f32.mrb[45].mxu0 }
0x11fb   :  { %v11038_v33 = vpop.f32.mrb[46].mxu0 }
0x11fc   :  { %v11255_v20 = vpack.c.bf16 %v11038_v33, %v11035_v32  ;;  %v11040_v34 = vpop.f32.mrb[47].mxu0 }
0x11fe   :  { %16081 = vmatmul.mubr.bf16.gmra.mrb[8].mxu1 %v11255_v20 }
0x1201   :  { %v11043_v38 = vpop.f32.mrb[48].mxu0 }
0x1202   :  { %v11045_v49 = vpop.f32.mrb[49].mxu0 }
0x1203   :  { %v11046_v40 = vpop.f32.mrb[50].mxu0 }
0x1204   :  { %v11256_v42 = vpack.c.bf16 %v11046_v40, %v11043_v38  ;;  %v11048_v60 = vpop.f32.mrb[51].mxu0 }
0x1206   :  { %16084 = vmatprep.mubr.bf16.mxu1 %v11256_v42 }
0x1209   :  { %v11051_v37 = vpop.f32.mrb[52].mxu0 }
0x120a   :  { %v11053_v41 = vpop.f32.mrb[53].mxu0 }
0x120b   :  { %v11054_v43 = vpop.f32.mrb[54].mxu0 }
0x120c   :  { %v11257_v10 = vpack.c.bf16 %v11054_v43, %v11051_v37  ;;  %v11056_v25 = vpop.f32.mrb[55].mxu0 }
0x120e   :  { %16085 = vmatmul.mubr.bf16.gmra.mrb[12].mxu1 %v11257_v10 }
0x1211   :  { %v11059_v44 = vpop.f32.mrb[56].mxu0 }
0x1212   :  { %v11061_v63 = vpop.f32.mrb[57].mxu0 }
0x1213   :  { %v11062_v15 = vpop.f32.mrb[58].mxu0 }
0x1214   :  { %v11258_v46 = vpack.c.bf16 %v11062_v15, %v11059_v44  ;;  %v11064_v48 = vpop.f32.mrb[59].mxu0 }
0x1216   :  { %16088 = vmatprep.mubr.bf16.mxu1 %v11258_v46 }
0x1219   :  { %v11067_v45 = vpop.f32.mrb[60].mxu0 }
0x121a   :  { %v11069_v51 = vpop.f32.mrb[61].mxu0 }
0x121b   :  { %v11070_v55 = vpop.f32.mrb[62].mxu0 }
0x121c   :  { %v11259_v52 = vpack.c.bf16 %v11070_v55, %v11067_v45  ;;  %v11072_v2 = vpop.f32.mrb[63].mxu0 }
0x121e   :  { %16089 = vmatmul.mubr.bf16.gmra.mrb[16].mxu1 %v11259_v52 }
0x1221   :  { %v11075_v58 = vpop.f32.mrb[64].mxu0 }
0x1222   :  { %v11077_v54 = vpop.f32.mrb[65].mxu0 }
0x1223   :  { %v11078_v28 = vpop.f32.mrb[66].mxu0 }
0x1224   :  { %v11260_v6 = vpack.c.bf16 %v11078_v28, %v11075_v58  ;;  %v11080_v61 = vpop.f32.mrb[67].mxu0 }
0x1226   :  { %16092 = vmatprep.mubr.bf16.mxu1 %v11260_v6 }
0x1229   :  { %v11083_v62 = vpop.f32.mrb[68].mxu0 }
0x122a   :  { %v11085_v3 = vpop.f32.mrb[69].mxu0 }
0x122b   :  { %v11086_v1 = vpop.f32.mrb[70].mxu0 }
0x122c   :  { %v11261_v8 = vpack.c.bf16 %v11086_v1, %v11083_v62  ;;  %v11088_v7 = vpop.f32.mrb[71].mxu0 }
0x122e   :  { %16093 = vmatmul.mubr.bf16.gmra.mrb[20].mxu1 %v11261_v8 }
0x1231   :  { %v11091_v47 = vpop.f32.mrb[72].mxu0 }
0x1232   :  { %v11093_v12 = vpop.f32.mrb[73].mxu0 }
0x1233   :  { %v11094_v5 = vpop.f32.mrb[74].mxu0 }
0x1234   :  { %v11262_v23 = vpack.c.bf16 %v11094_v5, %v11091_v47  ;;  %v11096_v50 = vpop.f32.mrb[75].mxu0 }
0x1236   :  { %16096 = vmatprep.mubr.bf16.mxu1 %v11262_v23 }
0x1239   :  { %v11099_v11 = vpop.f32.mrb[76].mxu0 }
0x123a   :  { %v11101_v30 = vpop.f32.mrb[77].mxu0 }
0x123b   :  { %v11102_v14 = vpop.f32.mrb[78].mxu0 }
0x123c   :  { %v11263_v59 = vpack.c.bf16 %v11102_v14, %v11099_v11  ;;  %v11104_v16 = vpop.f32.mrb[79].mxu0 }
0x123e   :  { %16097 = vmatmul.mubr.bf16.gmra.mrb[24].mxu1 %v11263_v59 }
0x1241   :  { %v11107_v17 = vpop.f32.mrb[80].mxu0 }
0x1242   :  { %v11109_v57 = vpop.f32.mrb[81].mxu0 }
0x1243   :  { %v11110_v18 = vpop.f32.mrb[82].mxu0 }
0x1244   :  { %v11264_v35 = vpack.c.bf16 %v11110_v18, %v11107_v17  ;;  %v11112_v53 = vpop.f32.mrb[83].mxu0 }
0x1246   :  { %16100 = vmatprep.mubr.bf16.mxu1 %v11264_v35 }
0x1249   :  { %v11115_v19 = vpop.f32.mrb[84].mxu0 }
0x124a   :  { %v11117_v22 = vpop.f32.mrb[85].mxu0 }
0x124b   :  { %v11118_v21 = vpop.f32.mrb[86].mxu0 }
0x124c   :  { %v11265_v9 = vpack.c.bf16 %v11118_v21, %v11115_v19  ;;  %v11120_v24 = vpop.f32.mrb[87].mxu0  ;;  %v19660_v21 = vld [vmem:[%s20612_s3 + $0x5] ss:$0 sm:$0xff] }
0x124e   :  { %16101 = vmatmul.mubr.bf16.gmra.mrb[28].mxu1 %v11265_v9 }
0x1251   :  { %v11123_v13 = vpop.f32.mrb[88].mxu0 }
0x1252   :  { %v11125_v26 = vpop.f32.mrb[89].mxu0 }
0x1253   :  { %v11126_v39 = vpop.f32.mrb[90].mxu0 }
0x1254   :  { %v11266_v56 = vpack.c.bf16 %v11126_v39, %v11123_v13  ;;  %v11128_v31 = vpop.f32.mrb[91].mxu0 }
0x1256   :  { %16104 = vmatprep.mubr.bf16.mxu1 %v11266_v56 }
0x1259   :  { %v11131_v27 = vpop.f32.mrb[92].mxu0 }
0x125a   :  { %v11133_v29 = vpop.f32.mrb[93].mxu0 }
0x125b   :  { %v11134_v36 = vpop.f32.mrb[94].mxu0 }
0x125c   :  { %v11267_v32 = vpack.c.bf16 %v11134_v36, %v11131_v27  ;;  %v11136_v4 = vpop.f32.mrb[95].mxu0 }
0x125e   :  { %16105 = vmatmul.mubr.bf16.gmra.mrb[32].mxu1 %v11267_v32 }
0x1261   :  { %v11139_v33 = vpop.f32.mrb[96].mxu0 }
0x1262   :  { %v11141_v20 = vpop.f32.mrb[97].mxu0 }
0x1263   :  { %v11142_v34 = vpop.f32.mrb[98].mxu0 }
0x1264   :  { %v11268_v38 = vpack.c.bf16 %v11142_v34, %v11139_v33  ;;  %v11144_v49 = vpop.f32.mrb[99].mxu0 }
0x1266   :  { %16108 = vmatprep.mubr.bf16.mxu1 %v11268_v38 }
0x1269   :  { %v11147_v40 = vpop.f32.mrb[100].mxu0 }
0x126a   :  { %v11149_v42 = vpop.f32.mrb[101].mxu0 }
0x126b   :  { %v11150_v60 = vpop.f32.mrb[102].mxu0 }
0x126c   :  { %v11269_v37 = vpack.c.bf16 %v11150_v60, %v11147_v40  ;;  %v11152_v41 = vpop.f32.mrb[103].mxu0 }
0x126e   :  { %16109 = vmatmul.mubr.bf16.gmra.mrb[36].mxu1 %v11269_v37 }
0x1271   :  { %v11155_v43 = vpop.f32.mrb[104].mxu0 }
0x1272   :  { %v11157_v10 = vpop.f32.mrb[105].mxu0 }
0x1273   :  { %v11158_v25 = vpop.f32.mrb[106].mxu0 }
0x1274   :  { %v11270_v44 = vpack.c.bf16 %v11158_v25, %v11155_v43  ;;  %v11160_v63 = vpop.f32.mrb[107].mxu0 }
0x1276   :  { %16112 = vmatprep.mubr.bf16.mxu1 %v11270_v44 }
0x1279   :  { %v11163_v15 = vpop.f32.mrb[108].mxu0 }
0x127a   :  { %v11165_v46 = vpop.f32.mrb[109].mxu0 }
0x127b   :  { %v11166_v48 = vpop.f32.mrb[110].mxu0 }
0x127c   :  { %v11271_v45 = vpack.c.bf16 %v11166_v48, %v11163_v15  ;;  %v11168_v51 = vpop.f32.mrb[111].mxu0 }
0x127e   :  { %16113 = vmatmul.mubr.bf16.gmra.mrb[40].mxu1 %v11271_v45 }
0x1281   :  { %v11171_v55 = vpop.f32.mrb[112].mxu0 }
0x1282   :  { %v11173_v52 = vpop.f32.mrb[113].mxu0 }
0x1283   :  { %v11174_v2 = vpop.f32.mrb[114].mxu0 }
0x1284   :  { %v11272_v58 = vpack.c.bf16 %v11174_v2, %v11171_v55  ;;  %v11176_v54 = vpop.f32.mrb[115].mxu0 }
0x1286   :  { %16116 = vmatprep.mubr.bf16.mxu1 %v11272_v58 }
0x1289   :  { %v11179_v28 = vpop.f32.mrb[116].mxu0 }
0x128a   :  { %v11181_v6 = vpop.f32.mrb[117].mxu0 }
0x128b   :  { %v11182_v61 = vpop.f32.mrb[118].mxu0 }
0x128c   :  { %v11273_v62 = vpack.c.bf16 %v11182_v61, %v11179_v28  ;;  %v11184_v3 = vpop.f32.mrb[119].mxu0 }
0x128e   :  { %16117 = vmatmul.mubr.bf16.gmra.mrb[44].mxu1 %v11273_v62 }
0x1291   :  { %v11187_v1 = vpop.f32.mrb[120].mxu0 }
0x1292   :  { %v11189_v8 = vpop.f32.mrb[121].mxu0 }
0x1293   :  { %v11190_v7 = vpop.f32.mrb[122].mxu0 }
0x1294   :  { %v11274_v47 = vpack.c.bf16 %v11190_v7, %v11187_v1  ;;  %v11192_v12 = vpop.f32.mrb[123].mxu0 }
0x1295   :  { %v18345_v12 = vld [vmem:[#allocation3 + $0x4] ss:$16 sps:$4 sm:$0xff]  }
0x1296   :  { %16120 = vmatprep.mubr.bf16.mxu1 %v11274_v47 }
0x1299   :  { %v11195_v5 = vpop.f32.mrb[124].mxu0 }
0x129a   :  { %v11197_v23 = vpop.f32.mrb[125].mxu0 }
0x129b   :  { %v11198_v50 = vpop.f32.mrb[126].mxu0 }
0x129c   :  { %v11275_v11 = vpack.c.bf16 %v11198_v50, %v11195_v5  ;;  %v11200_v30 = vpop.f32.mrb[127].mxu0 }
0x129e   :  { %16121 = vmatmul.mubr.bf16.gmra.mrb[48].mxu1 %v11275_v11 }
0x12a1   :  { %v11203_v14 = vpop.f32.mrb[128].mxu0 }
0x12a2   :  { %v11205_v59 = vpop.f32.mrb[129].mxu0 }
0x12a3   :  { %v11206_v16 = vpop.f32.mrb[130].mxu0 }
0x12a4   :  { %v11276_v17 = vpack.c.bf16 %v11206_v16, %v11203_v14  ;;  %v11208_v57 = vpop.f32.mrb[131].mxu0 }
0x12a6   :  { %16124 = vmatprep.mubr.bf16.mxu1 %v11276_v17 }
0x12a9   :  { %v11211_v18 = vpop.f32.mrb[132].mxu0 }
0x12aa   :  { %v11213_v35 = vpop.f32.mrb[133].mxu0 }
0x12ab   :  { %v11214_v53 = vpop.f32.mrb[134].mxu0 }
0x12ac   :  { %v11277_v19 = vpack.c.bf16 %v11214_v53, %v11211_v18  ;;  %v11216_v22 = vpop.f32.mrb[135].mxu0 }
0x12ae   :  { %16125 = vmatmul.mubr.bf16.gmra.mrb[52].mxu1 %v11277_v19 }
0x12b1   :  { %v11219_v9 = vpop.f32.mrb[136].mxu0  ;;  %v16074_v24 = vpop.f32.mrb[0].mxu1 }
0x12b2   :  { %v11379_v13 = vadd.f32 %v16074_v24, %v19660_v21  ;;  %v11221_v26 = vpop.f32.mrb[137].mxu0  ;;  %v11370_v39 = vpop.f32.mrb[1].mxu1 }
0x12b3   :  { %v11371_v56 = vadd.f32 %v19660_v21, %v11370_v39  ;;  %v11222_v31 = vpop.f32.mrb[138].mxu0  ;;  %v16075_v27 = vpop.f32.mrb[2].mxu1 }
0x12b4   :  { %v11278_v29 = vpack.c.bf16 %v11222_v31, %v11219_v9  ;;  %v11382_v36 = vadd.f32 %v16075_v27, %v19660_v21  ;;  %v11224_v32 = vpop.f32.mrb[139].mxu0  ;;  %v11373_v4 = vpop.f32.mrb[3].mxu1  ;;  %v11627_v20 = vmax.f32 %v11379_v13, 0.0 }
0x12b5   :  { %v11374_v33 = vadd.f32 %v19660_v21, %v11373_v4  ;;  %v11625_v38 = vmax.f32 %v11371_v56, 0.0 }
0x12b6   :  { %v11628_v34 = vmax.f32 %v11382_v36, 0.0  ;;  %16128 = vmatprep.mubr.bf16.mxu1 %v11278_v29 }
0x12b7   :  { %v11626_v49 = vmax.f32 %v11374_v33, 0.0 }
0x12b8   :  { %v11690_v40 = vpack.c.bf16 %v11628_v34, %v11627_v20 }
0x12b9   :  { %v11689_v42 = vpack.c.bf16 %v11626_v49, %v11625_v38  ;;  %v11227_v60 = vpop.f32.mrb[140].mxu0 }
0x12ba   :  { %v11229_v37 = vpop.f32.mrb[141].mxu0 }
0x12bb   :  { %v11230_v41 = vpop.f32.mrb[142].mxu0  ;;  %12573 = vmatpush1.bf16.msra.mxu1 %v11689_v42 }
0x12bc   :  { %v11279_v43 = vpack.c.bf16 %v11230_v41, %v11227_v60  ;;  %v11232_v10 = vpop.f32.mrb[143].mxu0  ;;  %12574 = vmatprep.subr.bf16.mxu1 %v18900_v0 }
0x12be   :  { %16129 = vmatmul.mubr.bf16.gmra.mrb[56].mxu1 %v11279_v43 }
0x12bf   :  { %12575 = vmatpush1.bf16.msra.mxu1 %v11690_v40 }
0x12c0   :  { %12576 = vmatprep.subr.bf16.mxu1 %v18900_v0 }
0x12c1   :  { %v11235_v25 = vpop.f32.mrb[144].mxu0  ;;  %v16078_v44 = vpop.f32.mrb[4].mxu1 }
0x12c2   :  { %v11395_v63 = vadd.f32 %v16078_v44, %v19660_v21  ;;  %v11237_v15 = vpop.f32.mrb[145].mxu0  ;;  %v11386_v46 = vpop.f32.mrb[5].mxu1 }
0x12c3   :  { %v11387_v48 = vadd.f32 %v19660_v21, %v11386_v46  ;;  %v11238_v45 = vpop.f32.mrb[146].mxu0  ;;  %v16079_v51 = vpop.f32.mrb[6].mxu1 }
0x12c4   :  { %v11280_v55 = vpack.c.bf16 %v11238_v45, %v11235_v25  ;;  %v11398_v52 = vadd.f32 %v16079_v51, %v19660_v21  ;;  %v11240_v2 = vpop.f32.mrb[147].mxu0  ;;  %v11389_v58 = vpop.f32.mrb[7].mxu1  ;;  %v11631_v28 = vmax.f32 %v11395_v63, 0.0 }
0x12c5   :  { %v11390_v54 = vadd.f32 %v19660_v21, %v11389_v58  ;;  %v11629_v61 = vmax.f32 %v11387_v48, 0.0 }
0x12c6   :  { %v11632_v6 = vmax.f32 %v11398_v52, 0.0  ;;  %16132 = vmatprep.mubr.bf16.mxu1 %v11280_v55 }
0x12c7   :  { %v11630_v62 = vmax.f32 %v11390_v54, 0.0 }
0x12c8   :  { %v11692_v3 = vpack.c.bf16 %v11632_v6, %v11631_v28 }
0x12c9   :  { %v11691_v1 = vpack.c.bf16 %v11630_v62, %v11629_v61  ;;  %v11243_v8 = vpop.f32.mrb[148].mxu0 }
0x12ca   :  { %v11245_v7 = vpop.f32.mrb[149].mxu0 }
0x12cb   :  { %v11246_v47 = vpop.f32.mrb[150].mxu0  ;;  %12577 = vmatpush1.bf16.msra.mxu1 %v11691_v1 }
0x12cc   :  { %v11281_v5 = vpack.c.bf16 %v11246_v47, %v11243_v8  ;;  %v11248_v23 = vpop.f32.mrb[151].mxu0  ;;  %12578 = vmatprep.subr.bf16.mxu1 %v18900_v0 }
0x12ce   :  { %16133 = vmatmul.mubr.bf16.gmra.mrb[60].mxu1 %v11281_v5 }
0x12cf   :  { %12579 = vmatpush1.bf16.msra.mxu1 %v11692_v3  ;;  %12604 = vmatprep.mubr.bf16.mxu1 %v18345_v12 }
0x12d0   :  { %12580 = vmatprep.subr.bf16.mxu1 %v18900_v0 }
0x12d1   :  { %v16082_v50 = vpop.f32.mrb[8].mxu1 }
0x12d2   :  { %v11411_v11 = vadd.f32 %v16082_v50, %v19660_v21  ;;  %v11402_v30 = vpop.f32.mrb[9].mxu1 }
0x12d3   :  { %v11403_v14 = vadd.f32 %v19660_v21, %v11402_v30  ;;  %v16083_v59 = vpop.f32.mrb[10].mxu1 }
0x12d4   :  { %v11414_v16 = vadd.f32 %v16083_v59, %v19660_v21  ;;  %v11405_v17 = vpop.f32.mrb[11].mxu1  ;;  %v11635_v18 = vmax.f32 %v11411_v11, 0.0 }
0x12d5   :  { %v11406_v57 = vadd.f32 %v19660_v21, %v11405_v17  ;;  %v11633_v53 = vmax.f32 %v11403_v14, 0.0 }
0x12d6   :  { %v11636_v35 = vmax.f32 %v11414_v16, 0.0 }
0x12d7   :  { %v11634_v19 = vmax.f32 %v11406_v57, 0.0 }
0x12d8   :  { %v11694_v22 = vpack.c.bf16 %v11636_v35, %v11635_v18 }
0x12d9   :  { %v11693_v9 = vpack.c.bf16 %v11634_v19, %v11633_v53 }
0x12db   :  { %12581 = vmatpush1.bf16.msra.mxu1 %v11693_v9 }
0x12dc   :  { %12582 = vmatprep.subr.bf16.mxu1 %v18900_v0 }
0x12df   :  { %12583 = vmatpush1.bf16.msra.mxu1 %v11694_v22 }
0x12e0   :  { %12584 = vmatprep.subr.bf16.mxu1 %v18900_v0 }
0x12e1   :  { %v16086_v24 = vpop.f32.mrb[12].mxu1 }
0x12e2   :  { %v11427_v13 = vadd.f32 %v16086_v24, %v19660_v21  ;;  %v11418_v26 = vpop.f32.mrb[13].mxu1 }
0x12e3   :  { %v11419_v39 = vadd.f32 %v19660_v21, %v11418_v26  ;;  %v16087_v56 = vpop.f32.mrb[14].mxu1 }
0x12e4   :  { %v11430_v31 = vadd.f32 %v16087_v56, %v19660_v21  ;;  %v11421_v27 = vpop.f32.mrb[15].mxu1  ;;  %v11639_v36 = vmax.f32 %v11427_v13, 0.0 }
0x12e5   :  { %v11422_v29 = vadd.f32 %v19660_v21, %v11421_v27  ;;  %v11637_v4 = vmax.f32 %v11419_v39, 0.0 }
0x12e6   :  { %v11640_v32 = vmax.f32 %v11430_v31, 0.0 }
0x12e7   :  { %v11638_v33 = vmax.f32 %v11422_v29, 0.0 }
0x12e8   :  { %v11696_v20 = vpack.c.bf16 %v11640_v32, %v11639_v36  ;;  %v18343_v36 = vld [vmem:[#allocation3] ss:$16 sps:$4 sm:$0xff]   ;;  %v18348_v32 = vld [vmem:[#allocation3 + $0x24] ss:$16 sps:$4 sm:$0xff]  }
0x12e9   :  { %v11695_v34 = vpack.c.bf16 %v11638_v33, %v11637_v4 }
0x12eb   :  { %12585 = vmatpush1.bf16.msra.mxu1 %v11695_v34 }
0x12ec   :  { %12586 = vmatprep.subr.bf16.mxu1 %v18900_v0 }
0x12ef   :  { %12587 = vmatpush1.bf16.msra.mxu1 %v11696_v20 }
0x12f0   :  { %12588 = vmatprep.subr.bf16.mxu1 %v18900_v0 }
0x12f1   :  { %v16090_v38 = vpop.f32.mrb[16].mxu1 }
0x12f2   :  { %v11443_v49 = vadd.f32 %v16090_v38, %v19660_v21  ;;  %v11434_v40 = vpop.f32.mrb[17].mxu1 }
0x12f3   :  { %v11435_v42 = vadd.f32 %v19660_v21, %v11434_v40  ;;  %v16091_v60 = vpop.f32.mrb[18].mxu1 }
0x12f4   :  { %v11446_v37 = vadd.f32 %v16091_v60, %v19660_v21  ;;  %v11437_v41 = vpop.f32.mrb[19].mxu1  ;;  %v11643_v10 = vmax.f32 %v11443_v49, 0.0 }
0x12f5   :  { %v11438_v43 = vadd.f32 %v19660_v21, %v11437_v41  ;;  %v11641_v44 = vmax.f32 %v11435_v42, 0.0  ;;  %v18346_v41 = vld [vmem:[#allocation3 + $0x20] ss:$16 sps:$4 sm:$0xff]  }
0x12f6   :  { %v11644_v25 = vmax.f32 %v11446_v37, 0.0 }
0x12f7   :  { %v11642_v63 = vmax.f32 %v11438_v43, 0.0 }
0x12f8   :  { %v11698_v15 = vpack.c.bf16 %v11644_v25, %v11643_v10  ;;  %v18351_v25 = vld [vmem:[#allocation3 + $0x44] ss:$16 sps:$4 sm:$0xff]  }
0x12f9   :  { %v11697_v46 = vpack.c.bf16 %v11642_v63, %v11641_v44 }
0x12fb   :  { %12589 = vmatpush1.bf16.msra.mxu1 %v11697_v46  ;;  %v18354_v46 = vld [vmem:[#allocation3 + $0x64] ss:$16 sps:$4 sm:$0xff]  }
0x12fc   :  { %12590 = vmatprep.subr.bf16.mxu1 %v18900_v0 }
0x12ff   :  { %12591 = vmatpush1.bf16.msra.mxu1 %v11698_v15  ;;  %v18349_v15 = vld [vmem:[#allocation3 + $0x40] ss:$16 sps:$4 sm:$0xff]  }
0x1300   :  { %12592 = vmatprep.subr.bf16.mxu1 %v18900_v0 }
0x1301   :  { %v16094_v48 = vpop.f32.mrb[20].mxu1 }
0x1302   :  { %v11459_v45 = vadd.f32 %v16094_v48, %v19660_v21  ;;  %v11450_v51 = vpop.f32.mrb[21].mxu1 }
0x1303   :  { %v11451_v55 = vadd.f32 %v19660_v21, %v11450_v51  ;;  %v16095_v52 = vpop.f32.mrb[22].mxu1 }
0x1304   :  { %v11462_v2 = vadd.f32 %v16095_v52, %v19660_v21  ;;  %v11453_v58 = vpop.f32.mrb[23].mxu1  ;;  %v11647_v28 = vmax.f32 %v11459_v45, 0.0 }
0x1305   :  { %v11454_v54 = vadd.f32 %v19660_v21, %v11453_v58  ;;  %v11645_v61 = vmax.f32 %v11451_v55, 0.0 }
0x1306   :  { %v11648_v6 = vmax.f32 %v11462_v2, 0.0 }
0x1307   :  { %v11646_v62 = vmax.f32 %v11454_v54, 0.0 }
0x1308   :  { %v11700_v3 = vpack.c.bf16 %v11648_v6, %v11647_v28 }
0x1309   :  { %v11699_v1 = vpack.c.bf16 %v11646_v62, %v11645_v61  ;;  %v18352_v61 = vld [vmem:[#allocation3 + $0x60] ss:$16 sps:$4 sm:$0xff]  }
0x130b   :  { %12593 = vmatpush1.bf16.msra.mxu1 %v11699_v1  ;;  %v18357_v1 = vld [vmem:[#allocation3 + $0x84] ss:$16 sps:$4 sm:$0xff]  }
0x130c   :  { %12594 = vmatprep.subr.bf16.mxu1 %v18900_v0 }
0x130f   :  { %12595 = vmatpush1.bf16.msra.mxu1 %v11700_v3 }
0x1310   :  { %12596 = vmatprep.subr.bf16.mxu1 %v18900_v0 }
0x1311   :  { %v16098_v8 = vpop.f32.mrb[24].mxu1 }
0x1312   :  { %v11475_v7 = vadd.f32 %v16098_v8, %v19660_v21  ;;  %v11466_v47 = vpop.f32.mrb[25].mxu1 }
0x1313   :  { %v11467_v12 = vadd.f32 %v19660_v21, %v11466_v47  ;;  %v16099_v5 = vpop.f32.mrb[26].mxu1  ;;  %v18355_v47 = vld [vmem:[#allocation3 + $0x80] ss:$16 sps:$4 sm:$0xff]  }
0x1314   :  { %v11478_v23 = vadd.f32 %v16099_v5, %v19660_v21  ;;  %v11469_v50 = vpop.f32.mrb[27].mxu1  ;;  %v11651_v30 = vmax.f32 %v11475_v7, 0.0 }
0x1315   :  { %v11470_v11 = vadd.f32 %v19660_v21, %v11469_v50  ;;  %v11649_v59 = vmax.f32 %v11467_v12, 0.0  ;;  %v18360_v12 = vld [vmem:[#allocation3 + $0xa4] ss:$16 sps:$4 sm:$0xff]  }
0x1316   :  { %v11652_v14 = vmax.f32 %v11478_v23, 0.0 }
0x1317   :  { %v11650_v16 = vmax.f32 %v11470_v11, 0.0 }
0x1318   :  { %v11702_v17 = vpack.c.bf16 %v11652_v14, %v11651_v30 }
0x1319   :  { %v11701_v57 = vpack.c.bf16 %v11650_v16, %v11649_v59 }
0x131b   :  { %12597 = vmatpush1.bf16.msra.mxu1 %v11701_v57 }
0x131c   :  { %12598 = vmatprep.subr.bf16.mxu1 %v18900_v0 }
0x131f   :  { %12599 = vmatpush1.bf16.msra.mxu1 %v11702_v17 }
0x1320   :  { %12600 = vmatprep.subr.bf16.mxu1 %v18900_v0 }
0x1321   :  { %v16102_v18 = vpop.f32.mrb[28].mxu1 }
0x1322   :  { %v11491_v35 = vadd.f32 %v16102_v18, %v19660_v21  ;;  %v11482_v53 = vpop.f32.mrb[29].mxu1  ;;  %v18358_v18 = vld [vmem:[#allocation3 + $0xa0] ss:$16 sps:$4 sm:$0xff]  }
0x1323   :  { %v11483_v19 = vadd.f32 %v19660_v21, %v11482_v53  ;;  %v16103_v22 = vpop.f32.mrb[30].mxu1 }
0x1324   :  { %v11494_v9 = vadd.f32 %v16103_v22, %v19660_v21  ;;  %v11485_v24 = vpop.f32.mrb[31].mxu1  ;;  %v11655_v26 = vmax.f32 %v11491_v35, 0.0 }
0x1325   :  { %v11486_v13 = vadd.f32 %v19660_v21, %v11485_v24  ;;  %v11653_v56 = vmax.f32 %v11483_v19, 0.0  ;;  %v18363_v19 = vld [vmem:[#allocation3 + $0xc4] ss:$16 sps:$4 sm:$0xff]   ;;  %v18361_v24 = vld [vmem:[#allocation3 + $0xc0] ss:$16 sps:$4 sm:$0xff]  }
0x1326   :  { %v11656_v39 = vmax.f32 %v11494_v9, 0.0 }
0x1327   :  { %v11654_v31 = vmax.f32 %v11486_v13, 0.0  ;;  %v18366_v13 = vld [vmem:[#allocation3 + $0xe4] ss:$16 sps:$4 sm:$0xff]  }
0x1328   :  { %v11704_v27 = vpack.c.bf16 %v11656_v39, %v11655_v26 }
0x1329   :  { %v11703_v29 = vpack.c.bf16 %v11654_v31, %v11653_v56 }
0x132b   :  { %12601 = vmatpush1.bf16.msra.mxu1 %v11703_v29 }
0x132c   :  { %12602 = vmatprep.subr.bf16.mxu1 %v18900_v0 }
0x132f   :  { %12603 = vmatpush1.bf16.msra.mxu1 %v11704_v27 }
0x1330   :  { %12861 = vmatprep.subr.bf16.mxu1 %v18900_v0 }
0x1331   :  { %v16106_v4 = vpop.f32.mrb[32].mxu1 }
0x1332   :  { %v11507_v33 = vadd.f32 %v16106_v4, %v19660_v21  ;;  %v11498_v20 = vpop.f32.mrb[33].mxu1  ;;  %12605 = vmatmul.mubr.bf16.vlgmr.msra.gmra.mrb[104].mxu1 %v18343_v36 }
0x1333   :  { %v11499_v34 = vadd.f32 %v19660_v21, %v11498_v20  ;;  %v16107_v38 = vpop.f32.mrb[34].mxu1  ;;  %12612 = vmatprep.mubr.bf16.mxu1 %v18348_v32  ;;  %v18364_v20 = vld [vmem:[#allocation3 + $0xe0] ss:$16 sps:$4 sm:$0xff]  }
0x1334   :  { %v11510_v49 = vadd.f32 %v16107_v38, %v19660_v21  ;;  %v11501_v40 = vpop.f32.mrb[35].mxu1  ;;  %v11659_v60 = vmax.f32 %v11507_v33, 0.0 }
0x1335   :  { %v11502_v42 = vadd.f32 %v19660_v21, %v11501_v40  ;;  %v11657_v43 = vmax.f32 %v11499_v34, 0.0 }
0x1336   :  { %v11660_v37 = vmax.f32 %v11510_v49, 0.0  ;;  %v18369_v49 = vld [vmem:[#allocation3 + $0x104] ss:$16 sps:$4 sm:$0xff]  }
0x1337   :  { %v11658_v10 = vmax.f32 %v11502_v42, 0.0 }
0x1338   :  { %v11706_v44 = vpack.c.bf16 %v11660_v37, %v11659_v60  ;;  %v18367_v60 = vld [vmem:[#allocation3 + $0x100] ss:$16 sps:$4 sm:$0xff]   ;;  %v18372_v37 = vld [vmem:[#allocation3 + $0x124] ss:$16 sps:$4 sm:$0xff]  }
0x1339   :  { %v11705_v63 = vpack.c.bf16 %v11658_v10, %v11657_v43 }
0x133a   :  { %12613 = vmatmul.mubr.bf16.gmra.mrb[108].mxu1 %v18346_v41 }
0x133b   :  { %12862 = vmatpush1.bf16.msra.mxu1 %v11705_v63  ;;  %12620 = vmatprep.mubr.bf16.mxu1 %v18351_v25 }
0x133c   :  { %12863 = vmatprep.subr.bf16.mxu1 %v18900_v0 }
0x133f   :  { %12864 = vmatpush1.bf16.msra.mxu1 %v11706_v44 }
0x1340   :  { %12865 = vmatprep.subr.bf16.mxu1 %v18900_v0 }
0x1341   :  { %v16110_v48 = vpop.f32.mrb[36].mxu1 }
0x1342   :  { %v11523_v45 = vadd.f32 %v16110_v48, %v19660_v21  ;;  %v11514_v51 = vpop.f32.mrb[37].mxu1  ;;  %12621 = vmatmul.mubr.bf16.gmra.mrb[112].mxu1 %v18349_v15 }
0x1343   :  { %v11515_v55 = vadd.f32 %v19660_v21, %v11514_v51  ;;  %v16111_v52 = vpop.f32.mrb[38].mxu1  ;;  %12628 = vmatprep.mubr.bf16.mxu1 %v18354_v46  ;;  %v18370_v51 = vld [vmem:[#allocation3 + $0x120] ss:$16 sps:$4 sm:$0xff]  }
0x1344   :  { %v11526_v2 = vadd.f32 %v16111_v52, %v19660_v21  ;;  %v11517_v58 = vpop.f32.mrb[39].mxu1  ;;  %v11663_v28 = vmax.f32 %v11523_v45, 0.0 }
0x1345   :  { %v11518_v54 = vadd.f32 %v19660_v21, %v11517_v58  ;;  %v11661_v62 = vmax.f32 %v11515_v55, 0.0 }
0x1346   :  { %v11664_v6 = vmax.f32 %v11526_v2, 0.0  ;;  %v18375_v2 = vld [vmem:[#allocation3 + $0x144] ss:$16 sps:$4 sm:$0xff]  }
0x1347   :  { %v11662_v3 = vmax.f32 %v11518_v54, 0.0 }
0x1348   :  { %v11708_v8 = vpack.c.bf16 %v11664_v6, %v11663_v28  ;;  %v18373_v28 = vld [vmem:[#allocation3 + $0x140] ss:$16 sps:$4 sm:$0xff]   ;;  %v18378_v6 = vld [vmem:[#allocation3 + $0x164] ss:$16 sps:$4 sm:$0xff]  }
0x1349   :  { %v11707_v7 = vpack.c.bf16 %v11662_v3, %v11661_v62 }
0x134a   :  { %12629 = vmatmul.mubr.bf16.gmra.mrb[116].mxu1 %v18352_v61 }
0x134b   :  { %12866 = vmatpush1.bf16.msra.mxu1 %v11707_v7  ;;  %12636 = vmatprep.mubr.bf16.mxu1 %v18357_v1 }
0x134c   :  { %12867 = vmatprep.subr.bf16.mxu1 %v18900_v0 }
0x134f   :  { %12868 = vmatpush1.bf16.msra.mxu1 %v11708_v8 }
0x1350   :  { %12869 = vmatprep.subr.bf16.mxu1 %v18900_v0 }
0x1351   :  { %v16114_v5 = vpop.f32.mrb[40].mxu1 }
0x1352   :  { %v11539_v23 = vadd.f32 %v16114_v5, %v19660_v21  ;;  %v11530_v50 = vpop.f32.mrb[41].mxu1  ;;  %12637 = vmatmul.mubr.bf16.gmra.mrb[120].mxu1 %v18355_v47 }
0x1353   :  { %v11531_v11 = vadd.f32 %v19660_v21, %v11530_v50  ;;  %v16115_v30 = vpop.f32.mrb[42].mxu1  ;;  %12644 = vmatprep.mubr.bf16.mxu1 %v18360_v12  ;;  %v18376_v50 = vld [vmem:[#allocation3 + $0x160] ss:$16 sps:$4 sm:$0xff]  }
0x1354   :  { %v11542_v14 = vadd.f32 %v16115_v30, %v19660_v21  ;;  %v11533_v59 = vpop.f32.mrb[43].mxu1  ;;  %v11667_v17 = vmax.f32 %v11539_v23, 0.0 }
0x1355   :  { %v11534_v16 = vadd.f32 %v19660_v21, %v11533_v59  ;;  %v11665_v35 = vmax.f32 %v11531_v11, 0.0 }
0x1356   :  { %v11668_v57 = vmax.f32 %v11542_v14, 0.0  ;;  %v18381_v14 = vld [vmem:[#allocation3 + $0x184] ss:$16 sps:$4 sm:$0xff]  }
0x1357   :  { %v11666_v53 = vmax.f32 %v11534_v16, 0.0 }
0x1358   :  { %v11710_v22 = vpack.c.bf16 %v11668_v57, %v11667_v17  ;;  %v18379_v17 = vld [vmem:[#allocation3 + $0x180] ss:$16 sps:$4 sm:$0xff]   ;;  %v18384_v57 = vld [vmem:[#allocation3 + $0x1a4] ss:$16 sps:$4 sm:$0xff]  }
0x1359   :  { %v11709_v9 = vpack.c.bf16 %v11666_v53, %v11665_v35 }
0x135a   :  { %12645 = vmatmul.mubr.bf16.gmra.mrb[124].mxu1 %v18358_v18 }
0x135b   :  { %12870 = vmatpush1.bf16.msra.mxu1 %v11709_v9  ;;  %12652 = vmatprep.mubr.bf16.mxu1 %v18363_v19 }
0x135c   :  { %12871 = vmatprep.subr.bf16.mxu1 %v18900_v0 }
0x135f   :  { %12872 = vmatpush1.bf16.msra.mxu1 %v11710_v22 }
0x1360   :  { %12873 = vmatprep.subr.bf16.mxu1 %v18900_v0 }
0x1361   :  { %v16118_v26 = vpop.f32.mrb[44].mxu1 }
0x1362   :  { %v11555_v39 = vadd.f32 %v16118_v26, %v19660_v21  ;;  %v11546_v56 = vpop.f32.mrb[45].mxu1  ;;  %12653 = vmatmul.mubr.bf16.gmra.mrb[128].mxu1 %v18361_v24 }
0x1363   :  { %v11547_v31 = vadd.f32 %v19660_v21, %v11546_v56  ;;  %v16119_v27 = vpop.f32.mrb[46].mxu1  ;;  %12660 = vmatprep.mubr.bf16.mxu1 %v18366_v13  ;;  %v18382_v56 = vld [vmem:[#allocation3 + $0x1a0] ss:$16 sps:$4 sm:$0xff]  }
0x1364   :  { %v11558_v29 = vadd.f32 %v16119_v27, %v19660_v21  ;;  %v11549_v36 = vpop.f32.mrb[47].mxu1  ;;  %v11671_v4 = vmax.f32 %v11555_v39, 0.0 }
0x1365   :  { %v11550_v32 = vadd.f32 %v19660_v21, %v11549_v36  ;;  %v11669_v34 = vmax.f32 %v11547_v31, 0.0 }
0x1366   :  { %v11672_v33 = vmax.f32 %v11558_v29, 0.0  ;;  %v18387_v29 = vld [vmem:[#allocation3 + $0x1c4] ss:$16 sps:$4 sm:$0xff]  }
0x1367   :  { %v11670_v38 = vmax.f32 %v11550_v32, 0.0 }
0x1368   :  { %v11712_v40 = vpack.c.bf16 %v11672_v33, %v11671_v4  ;;  %v18385_v4 = vld [vmem:[#allocation3 + $0x1c0] ss:$16 sps:$4 sm:$0xff]   ;;  %v18390_v33 = vld [vmem:[#allocation3 + $0x1e4] ss:$16 sps:$4 sm:$0xff]  }
0x1369   :  { %v11711_v42 = vpack.c.bf16 %v11670_v38, %v11669_v34 }
0x136a   :  { %12661 = vmatmul.mubr.bf16.gmra.mrb[132].mxu1 %v18364_v20 }
0x136b   :  { %12874 = vmatpush1.bf16.msra.mxu1 %v11711_v42  ;;  %12668 = vmatprep.mubr.bf16.mxu1 %v18369_v49 }
0x136c   :  { %12875 = vmatprep.subr.bf16.mxu1 %v18900_v0 }
0x136f   :  { %12876 = vmatpush1.bf16.msra.mxu1 %v11712_v40 }
0x1370   :  { %12877 = vmatprep.subr.bf16.mxu1 %v18900_v0 }
0x1371   :  { %v16122_v41 = vpop.f32.mrb[48].mxu1 }
0x1372   :  { %v11571_v43 = vadd.f32 %v16122_v41, %v19660_v21  ;;  %v11562_v10 = vpop.f32.mrb[49].mxu1  ;;  %12669 = vmatmul.mubr.bf16.gmra.mrb[136].mxu1 %v18367_v60 }
0x1373   :  { %v11563_v25 = vadd.f32 %v19660_v21, %v11562_v10  ;;  %v16123_v44 = vpop.f32.mrb[50].mxu1  ;;  %12676 = vmatprep.mubr.bf16.mxu1 %v18372_v37  ;;  %v18388_v10 = vld [vmem:[#allocation3 + $0x1e0] ss:$16 sps:$4 sm:$0xff]  }
0x1374   :  { %v11574_v63 = vadd.f32 %v16123_v44, %v19660_v21  ;;  %v11565_v15 = vpop.f32.mrb[51].mxu1  ;;  %v11675_v48 = vmax.f32 %v11571_v43, 0.0 }
0x1375   :  { %v11566_v46 = vadd.f32 %v19660_v21, %v11565_v15  ;;  %v11673_v55 = vmax.f32 %v11563_v25, 0.0 }
0x1376   :  { %v11676_v45 = vmax.f32 %v11574_v63, 0.0  ;;  %v18393_v63 = vld [vmem:[#allocation3 + $0x204] ss:$16 sps:$4 sm:$0xff]  }
0x1377   :  { %v11674_v52 = vmax.f32 %v11566_v46, 0.0 }
0x1378   :  { %v11714_v58 = vpack.c.bf16 %v11676_v45, %v11675_v48  ;;  %v18391_v48 = vld [vmem:[#allocation3 + $0x200] ss:$16 sps:$4 sm:$0xff]   ;;  %v18396_v45 = vld [vmem:[#allocation3 + $0x224] ss:$16 sps:$4 sm:$0xff]  }
0x1379   :  { %v11713_v54 = vpack.c.bf16 %v11674_v52, %v11673_v55  ;;  %v18397_v55 = vld [vmem:[#allocation3 + $0x240] ss:$16 sps:$4 sm:$0xff]   ;;  %v18402_v52 = vld [vmem:[#allocation3 + $0x264] ss:$16 sps:$4 sm:$0xff]  }
0x137a   :  { %12677 = vmatmul.mubr.bf16.gmra.mrb[140].mxu1 %v18370_v51  ;;  %v18394_v51 = vld [vmem:[#allocation3 + $0x220] ss:$16 sps:$4 sm:$0xff]  }
0x137b   :  { %12878 = vmatpush1.bf16.msra.mxu1 %v11713_v54  ;;  %12684 = vmatprep.mubr.bf16.mxu1 %v18375_v2  ;;  %v18400_v2 = vld [vmem:[#allocation3 + $0x260] ss:$16 sps:$4 sm:$0xff]  }
0x137c   :  { %12879 = vmatprep.subr.bf16.mxu1 %v18900_v0  ;;  %v18403_v54 = vld [vmem:[#allocation3 + $0x280] ss:$16 sps:$4 sm:$0xff]  }
0x137f   :  { %12880 = vmatpush1.bf16.msra.mxu1 %v11714_v58  ;;  %v18405_v58 = vld [vmem:[#allocation3 + $0x284] ss:$16 sps:$4 sm:$0xff]  }
0x1380   :  { %12881 = vmatprep.subr.bf16.mxu1 %v18900_v0 }
0x1381   :  { %v16126_v61 = vpop.f32.mrb[52].mxu1 }
0x1382   :  { %v11587_v62 = vadd.f32 %v16126_v61, %v19660_v21  ;;  %v11578_v3 = vpop.f32.mrb[53].mxu1  ;;  %12685 = vmatmul.mubr.bf16.gmra.mrb[144].mxu1 %v18373_v28  ;;  %v18408_v28 = vld [vmem:[#allocation3 + $0x2a4] ss:$16 sps:$4 sm:$0xff]   ;;  %v18409_v61 = vld [vmem:[#allocation3 + $0x2c0] ss:$16 sps:$4 sm:$0xff]  }
0x1383   :  { %v11579_v1 = vadd.f32 %v19660_v21, %v11578_v3  ;;  %v16127_v8 = vpop.f32.mrb[54].mxu1  ;;  %12692 = vmatprep.mubr.bf16.mxu1 %v18378_v6  ;;  %v18411_v6 = vld [vmem:[#allocation3 + $0x2c4] ss:$16 sps:$4 sm:$0xff]   ;;  %v18412_v3 = vld [vmem:[#allocation3 + $0x2e0] ss:$16 sps:$4 sm:$0xff]  }
0x1384   :  { %v11590_v7 = vadd.f32 %v16127_v8, %v19660_v21  ;;  %v11581_v47 = vpop.f32.mrb[55].mxu1  ;;  %v11679_v5 = vmax.f32 %v11587_v62, 0.0  ;;  %v18414_v62 = vld [vmem:[#allocation3 + $0x2e4] ss:$16 sps:$4 sm:$0xff]   ;;  %v18415_v8 = vld [vmem:[#allocation3 + $0x300] ss:$16 sps:$4 sm:$0xff]  }
0x1385   :  { %v11582_v12 = vadd.f32 %v19660_v21, %v11581_v47  ;;  %v11677_v11 = vmax.f32 %v11579_v1, 0.0  ;;  %v18417_v1 = vld [vmem:[#allocation3 + $0x304] ss:$16 sps:$4 sm:$0xff]   ;;  %v18418_v47 = vld [vmem:[#allocation3 + $0x320] ss:$16 sps:$4 sm:$0xff]  }
0x1386   :  { %v11680_v23 = vmax.f32 %v11590_v7, 0.0  ;;  %v18420_v7 = vld [vmem:[#allocation3 + $0x324] ss:$16 sps:$4 sm:$0xff]  }
0x1387   :  { %v11678_v30 = vmax.f32 %v11582_v12, 0.0  ;;  %v18423_v12 = vld [vmem:[#allocation3 + $0x344] ss:$16 sps:$4 sm:$0xff]  }
0x1388   :  { %v11716_v59 = vpack.c.bf16 %v11680_v23, %v11679_v5  ;;  %v18421_v5 = vld [vmem:[#allocation3 + $0x340] ss:$16 sps:$4 sm:$0xff]   ;;  %v18426_v23 = vld [vmem:[#allocation3 + $0x364] ss:$16 sps:$4 sm:$0xff]  }
0x1389   :  { %v11715_v16 = vpack.c.bf16 %v11678_v30, %v11677_v11  ;;  %v18429_v11 = vld [vmem:[#allocation3 + $0x384] ss:$16 sps:$4 sm:$0xff]   ;;  %v18427_v30 = vld [vmem:[#allocation3 + $0x380] ss:$16 sps:$4 sm:$0xff]  }
0x138a   :  { %12693 = vmatmul.mubr.bf16.gmra.mrb[148].mxu1 %v18376_v50  ;;  %v18424_v50 = vld [vmem:[#allocation3 + $0x360] ss:$16 sps:$4 sm:$0xff]  }
0x138b   :  { %12882 = vmatpush1.bf16.msra.mxu1 %v11715_v16  ;;  %12700 = vmatprep.mubr.bf16.mxu1 %v18381_v14  ;;  %v18432_v14 = vld [vmem:[#allocation3 + $0x3a4] ss:$16 sps:$4 sm:$0xff]  }
0x138c   :  { %12883 = vmatprep.subr.bf16.mxu1 %v18900_v0  ;;  %v18435_v16 = vld [vmem:[#allocation3 + $0x3c4] ss:$16 sps:$4 sm:$0xff]  }
0x138f   :  { %12884 = vmatpush1.bf16.msra.mxu1 %v11716_v59  ;;  %v18430_v59 = vld [vmem:[#allocation3 + $0x3a0] ss:$16 sps:$4 sm:$0xff]  }
0x1390   :  { %12885 = vmatprep.subr.bf16.mxu1 %v18900_v0 }
0x1391   :  { %v16130_v18 = vpop.f32.mrb[56].mxu1 }
0x1392   :  { %v11603_v35 = vadd.f32 %v16130_v18, %v19660_v21  ;;  %v11594_v53 = vpop.f32.mrb[57].mxu1  ;;  %12701 = vmatmul.mubr.bf16.gmra.mrb[152].mxu1 %v18379_v17  ;;  %v18481_v17 = vld [vmem:[#allocation8 + $0x180] sm:$0xff]  }
0x1393   :  { %v11595_v19 = vadd.f32 %v19660_v21, %v11594_v53  ;;  %v16131_v22 = vpop.f32.mrb[58].mxu1  ;;  %12708 = vmatprep.mubr.bf16.mxu1 %v18384_v57  ;;  %16136 = vmatprep.subr.bf16.mxu0 %v18481_v17  ;;  %v18433_v57 = vld [vmem:[#allocation3 + $0x3c0] ss:$16 sps:$4 sm:$0xff]   ;;  %v18438_v18 = vld [vmem:[#allocation3 + $0x3e4] ss:$16 sps:$4 sm:$0xff]  }
0x1394   :  { %v11606_v9 = vadd.f32 %v16131_v22, %v19660_v21  ;;  %v11597_v24 = vpop.f32.mrb[59].mxu1  ;;  %v11683_v26 = vmax.f32 %v11603_v35, 0.0  ;;  %16137 = vmatpush3.bf16.msra.mxu0 %v18481_v17  ;;  %v18436_v35 = vld [vmem:[#allocation3 + $0x3e0] ss:$16 sps:$4 sm:$0xff]   ;;  %v18441_v53 = vld [vmem:[#allocation3 + $0xc] ss:$16 sps:$4 sm:$0xff]  }
0x1395   :  { %v11598_v13 = vadd.f32 %v19660_v21, %v11597_v24  ;;  %v11681_v31 = vmax.f32 %v11595_v19, 0.0  ;;  %v18439_v19 = vld [vmem:[#allocation3 + $0x8] ss:$16 sps:$4 sm:$0xff]   ;;  %v18444_v22 = vld [vmem:[#allocation3 + $0x2c] ss:$16 sps:$4 sm:$0xff]  }
0x1396   :  { %v11684_v39 = vmax.f32 %v11606_v9, 0.0  ;;  %v18442_v9 = vld [vmem:[#allocation3 + $0x28] ss:$16 sps:$4 sm:$0xff]   ;;  %v18447_v24 = vld [vmem:[#allocation3 + $0x4c] ss:$16 sps:$4 sm:$0xff]  }
0x1397   :  { %v11682_v27 = vmax.f32 %v11598_v13, 0.0  ;;  %v18494_v13 = vld [vmem:[#allocation8 + $0x188] sm:$0xff]  }
0x1398   :  { %v11718_v36 = vpack.c.bf16 %v11684_v39, %v11683_v26  ;;  %16138 = vmatprep.subr.bf16.mxu0 %v18494_v13  ;;  %v18445_v26 = vld [vmem:[#allocation3 + $0x48] ss:$16 sps:$4 sm:$0xff]   ;;  %v18450_v39 = vld [vmem:[#allocation3 + $0x6c] ss:$16 sps:$4 sm:$0xff]  }
0x1399   :  { %v11717_v32 = vpack.c.bf16 %v11682_v27, %v11681_v31  ;;  %16139 = vmatpush3.bf16.msra.mxu0 %v18494_v13  ;;  %v18453_v31 = vld [vmem:[#allocation3 + $0x8c] ss:$16 sps:$4 sm:$0xff]   ;;  %v18451_v27 = vld [vmem:[#allocation3 + $0x88] ss:$16 sps:$4 sm:$0xff]  }
0x139a   :  { %12709 = vmatmul.mubr.bf16.gmra.mrb[156].mxu1 %v18382_v56  ;;  %v18448_v56 = vld [vmem:[#allocation3 + $0x68] ss:$16 sps:$4 sm:$0xff]  }
0x139b   :  { %12886 = vmatpush1.bf16.msra.mxu1 %v11717_v32  ;;  %12716 = vmatprep.mubr.bf16.mxu1 %v18387_v29  ;;  %v18456_v29 = vld [vmem:[#allocation3 + $0xac] ss:$16 sps:$4 sm:$0xff]   ;;  %v18521_v17 = vld [vmem:[#allocation3 + $0x348] ss:$16 sps:$4 sm:$0xff]  }
0x139c   :  { %12887 = vmatprep.subr.bf16.mxu1 %v18900_v0  ;;  %v18459_v32 = vld [vmem:[#allocation3 + $0xcc] ss:$16 sps:$4 sm:$0xff]  }
0x139f   :  { %12888 = vmatpush1.bf16.msra.mxu1 %v11718_v36  ;;  %v18454_v36 = vld [vmem:[#allocation3 + $0xa8] ss:$16 sps:$4 sm:$0xff]  }
0x13a0   :  { %12889 = vmatprep.subr.bf16.mxu1 %v18900_v0 }
0x13a1   :  { %v16134_v20 = vpop.f32.mrb[60].mxu1 }
0x13a2   :  { %v11619_v34 = vadd.f32 %v16134_v20, %v19660_v21  ;;  %v11610_v38 = vpop.f32.mrb[61].mxu1  ;;  %12717 = vmatmul.mubr.bf16.gmra.mrb[160].mxu1 %v18385_v4  ;;  %v18507_v4 = vld [vmem:[#allocation8 + $0x190] sm:$0xff]   ;;  %v18462_v20 = vld [vmem:[#allocation3 + $0xec] ss:$16 sps:$4 sm:$0xff]  }
0x13a3   :  { %v11611_v49 = vadd.f32 %v19660_v21, %v11610_v38  ;;  %v16135_v40 = vpop.f32.mrb[62].mxu1  ;;  %12724 = vmatprep.mubr.bf16.mxu1 %v18390_v33  ;;  %16140 = vmatprep.subr.bf16.mxu0 %v18507_v4  ;;  %v18457_v33 = vld [vmem:[#allocation3 + $0xc8] ss:$16 sps:$4 sm:$0xff]   ;;  %v18465_v38 = vld [vmem:[#allocation3 + $0x10c] ss:$16 sps:$4 sm:$0xff]  }
0x13a4   :  { %v11622_v42 = vadd.f32 %v16135_v40, %v19660_v21  ;;  %v11613_v60 = vpop.f32.mrb[63].mxu1  ;;  %v11687_v41 = vmax.f32 %v11619_v34, 0.0  ;;  %16141 = vmatpush3.bf16.msra.mxu0 %v18507_v4  ;;  %v18460_v34 = vld [vmem:[#allocation3 + $0xe8] ss:$16 sps:$4 sm:$0xff]   ;;  %v18468_v40 = vld [vmem:[#allocation3 + $0x12c] ss:$16 sps:$4 sm:$0xff]  }
0x13a5   :  { %v11614_v37 = vadd.f32 %v19660_v21, %v11613_v60  ;;  %v11685_v25 = vmax.f32 %v11611_v49, 0.0  ;;  %v18399_v21 = vld [vmem:[#allocation3 + $0x244] ss:$16 sps:$4 sm:$0xff]   ;;  %v18463_v49 = vld [vmem:[#allocation3 + $0x108] ss:$16 sps:$4 sm:$0xff]  }
0x13a6   :  { %v11688_v43 = vmax.f32 %v11622_v42, 0.0  ;;  %v18466_v42 = vld [vmem:[#allocation3 + $0x128] ss:$16 sps:$4 sm:$0xff]   ;;  %v18471_v60 = vld [vmem:[#allocation3 + $0x14c] ss:$16 sps:$4 sm:$0xff]  }
0x13a7   :  { %v11686_v44 = vmax.f32 %v11614_v37, 0.0  ;;  %v18520_v37 = vld [vmem:[#allocation8 + $0x198] sm:$0xff]  }
0x13a8   :  { %v11720_v15 = vpack.c.bf16 %v11688_v43, %v11687_v41  ;;  %16142 = vmatprep.subr.bf16.mxu0 %v18520_v37  ;;  %v18469_v41 = vld [vmem:[#allocation3 + $0x148] ss:$16 sps:$4 sm:$0xff]   ;;  %v18474_v43 = vld [vmem:[#allocation3 + $0x16c] ss:$16 sps:$4 sm:$0xff]  }
0x13a9   :  { %v11719_v46 = vpack.c.bf16 %v11686_v44, %v11685_v25  ;;  %16143 = vmatpush3.bf16.msra.mxu0 %v18520_v37  ;;  %v18525_v25 = vld [vmem:[#allocation8 + $0x1a8] sm:$0xff]  }
0x13aa   :  { %12725 = vmatmul.mubr.bf16.gmra.mrb[164].mxu1 %v18388_v10  ;;  %v18524_v10 = vld [vmem:[#allocation8 + $0x1a0] sm:$0xff]   ;;  %v18472_v44 = vld [vmem:[#allocation3 + $0x168] ss:$16 sps:$4 sm:$0xff]   ;;  %v18542_v37 = vld [vmem:[#allocation3 + $0x3ec] ss:$16 sps:$4 sm:$0xff]  }
0x13ab   :  { %12890 = vmatpush1.bf16.msra.mxu1 %v11719_v46  ;;  %12732 = vmatprep.mubr.bf16.mxu1 %v18393_v63  ;;  %v18477_v63 = vld [vmem:[#allocation3 + $0x18c] ss:$16 sps:$4 sm:$0xff]   ;;  %v18534_v4 = vld [vmem:[#allocation3 + $0x3a8] ss:$16 sps:$4 sm:$0xff]  }
0x13ac   :  { %12891 = vmatprep.subr.bf16.mxu1 %v18900_v0  ;;  %v18406_v0 = vld [vmem:[#allocation3 + $0x2a0] ss:$16 sps:$4 sm:$0xff]   ;;  %16144 = vmatprep.subr.bf16.mxu0 %v18524_v10  ;;  %v18530_v46 = vld [vmem:[#allocation8 + $0x1b8] sm:$0xff]  }
0x13ad   :  { %16145 = vmatpush3.bf16.msra.mxu0 %v18524_v10 }
0x13ae   :  { %16146 = vmatprep.subr.bf16.mxu0 %v18525_v25 }
0x13af   :  { %12892 = vmatpush1.bf16.msra.mxu1 %v11720_v15  ;;  %v18529_v15 = vld [vmem:[#allocation8 + $0x1b0] sm:$0xff]  }
0x13b1   :  { %16147 = vmatpush3.bf16.msra.mxu0 %v18525_v25 }
0x13b2   :  { %12733 = vmatmul.mubr.bf16.gmra.mrb[168].mxu1 %v18391_v48  ;;  %16148 = vmatprep.subr.bf16.mxu0 %v18529_v15  ;;  %v18475_v48 = vld [vmem:[#allocation3 + $0x188] ss:$16 sps:$4 sm:$0xff]  }
0x13b3   :  { %12740 = vmatprep.mubr.bf16.mxu1 %v18396_v45  ;;  %v18480_v45 = vld [vmem:[#allocation3 + $0x1ac] ss:$16 sps:$4 sm:$0xff]  }
0x13b5   :  { %16149 = vmatpush3.bf16.msra.mxu0 %v18529_v15 }
0x13b6   :  { %16150 = vmatprep.subr.bf16.mxu0 %v18530_v46 }
0x13b9   :  { %16151 = vmatpush3.bf16.msra.mxu0 %v18530_v46 }
0x13ba   :  { %12741 = vmatmul.mubr.bf16.gmra.mrb[172].mxu1 %v18394_v51  ;;  %v18478_v51 = vld [vmem:[#allocation3 + $0x1a8] ss:$16 sps:$4 sm:$0xff]  }
0x13bb   :  { %12748 = vmatprep.mubr.bf16.mxu1 %v18399_v21  ;;  %v18484_v21 = vld [vmem:[#allocation3 + $0x1cc] ss:$16 sps:$4 sm:$0xff]  }
0x13c2   :  { %12749 = vmatmul.mubr.bf16.gmra.mrb[176].mxu1 %v18397_v55  ;;  %v18482_v55 = vld [vmem:[#allocation3 + $0x1c8] ss:$16 sps:$4 sm:$0xff]  }
0x13c3   :  { %12756 = vmatprep.mubr.bf16.mxu1 %v18402_v52  ;;  %v18487_v52 = vld [vmem:[#allocation3 + $0x1ec] ss:$16 sps:$4 sm:$0xff]  }
0x13ca   :  { %12757 = vmatmul.mubr.bf16.gmra.mrb[180].mxu1 %v18400_v2  ;;  %v18485_v2 = vld [vmem:[#allocation3 + $0x1e8] ss:$16 sps:$4 sm:$0xff]  }
0x13cb   :  { %12764 = vmatprep.mubr.bf16.mxu1 %v18405_v58  ;;  %v18490_v58 = vld [vmem:[#allocation3 + $0x20c] ss:$16 sps:$4 sm:$0xff]  }
0x13d2   :  { %12765 = vmatmul.mubr.bf16.gmra.mrb[184].mxu1 %v18403_v54  ;;  %v18488_v54 = vld [vmem:[#allocation3 + $0x208] ss:$16 sps:$4 sm:$0xff]  }
0x13d3   :  { %12772 = vmatprep.mubr.bf16.mxu1 %v18408_v28  ;;  %v18493_v28 = vld [vmem:[#allocation3 + $0x22c] ss:$16 sps:$4 sm:$0xff]  }
0x13da   :  { %12773 = vmatmul.mubr.bf16.gmra.mrb[188].mxu1 %v18406_v0  ;;  %v18491_v0 = vld [vmem:[#allocation3 + $0x228] ss:$16 sps:$4 sm:$0xff]  }
0x13db   :  { %12780 = vmatprep.mubr.bf16.mxu1 %v18411_v6  ;;  %v18497_v6 = vld [vmem:[#allocation3 + $0x24c] ss:$16 sps:$4 sm:$0xff]  }
0x13e2   :  { %12781 = vmatmul.mubr.bf16.gmra.mrb[64].mxu1 %v18409_v61  ;;  %v18495_v61 = vld [vmem:[#allocation3 + $0x248] ss:$16 sps:$4 sm:$0xff]  }
0x13e3   :  { %12788 = vmatprep.mubr.bf16.mxu1 %v18414_v62  ;;  %v18500_v62 = vld [vmem:[#allocation3 + $0x26c] ss:$16 sps:$4 sm:$0xff]  }
0x13ea   :  { %12789 = vmatmul.mubr.bf16.gmra.mrb[68].mxu1 %v18412_v3  ;;  %v18498_v3 = vld [vmem:[#allocation3 + $0x268] ss:$16 sps:$4 sm:$0xff]  }
0x13eb   :  { %12796 = vmatprep.mubr.bf16.mxu1 %v18417_v1  ;;  %v18503_v1 = vld [vmem:[#allocation3 + $0x28c] ss:$16 sps:$4 sm:$0xff]  }
0x13f2   :  { %12797 = vmatmul.mubr.bf16.gmra.mrb[72].mxu1 %v18415_v8  ;;  %v18501_v8 = vld [vmem:[#allocation3 + $0x288] ss:$16 sps:$4 sm:$0xff]  }
0x13f3   :  { %12804 = vmatprep.mubr.bf16.mxu1 %v18420_v7  ;;  %v18506_v7 = vld [vmem:[#allocation3 + $0x2ac] ss:$16 sps:$4 sm:$0xff]  }
0x13fa   :  { %12805 = vmatmul.mubr.bf16.gmra.mrb[76].mxu1 %v18418_v47  ;;  %v18504_v47 = vld [vmem:[#allocation3 + $0x2a8] ss:$16 sps:$4 sm:$0xff]  }
0x13fb   :  { %12812 = vmatprep.mubr.bf16.mxu1 %v18423_v12  ;;  %v18510_v12 = vld [vmem:[#allocation3 + $0x2cc] ss:$16 sps:$4 sm:$0xff]  }
0x1402   :  { %12813 = vmatmul.mubr.bf16.gmra.mrb[80].mxu1 %v18421_v5  ;;  %v18508_v5 = vld [vmem:[#allocation3 + $0x2c8] ss:$16 sps:$4 sm:$0xff]  }
0x1403   :  { %12820 = vmatprep.mubr.bf16.mxu1 %v18426_v23  ;;  %v18513_v23 = vld [vmem:[#allocation3 + $0x2ec] ss:$16 sps:$4 sm:$0xff]  }
0x140a   :  { %12821 = vmatmul.mubr.bf16.gmra.mrb[84].mxu1 %v18424_v50  ;;  %v18511_v50 = vld [vmem:[#allocation3 + $0x2e8] ss:$16 sps:$4 sm:$0xff]  }
0x140b   :  { %12828 = vmatprep.mubr.bf16.mxu1 %v18429_v11  ;;  %v18516_v11 = vld [vmem:[#allocation3 + $0x30c] ss:$16 sps:$4 sm:$0xff]  }
0x1412   :  { %12829 = vmatmul.mubr.bf16.gmra.mrb[88].mxu1 %v18427_v30  ;;  %v18514_v30 = vld [vmem:[#allocation3 + $0x308] ss:$16 sps:$4 sm:$0xff]  }
0x1413   :  { %12836 = vmatprep.mubr.bf16.mxu1 %v18432_v14  ;;  %v18519_v14 = vld [vmem:[#allocation3 + $0x32c] ss:$16 sps:$4 sm:$0xff]  }
0x141a   :  { %12837 = vmatmul.mubr.bf16.gmra.mrb[92].mxu1 %v18430_v59  ;;  %v18517_v59 = vld [vmem:[#allocation3 + $0x328] ss:$16 sps:$4 sm:$0xff]  }
0x141b   :  { %12844 = vmatprep.mubr.bf16.mxu1 %v18435_v16  ;;  %v18523_v16 = vld [vmem:[#allocation3 + $0x34c] ss:$16 sps:$4 sm:$0xff]  }
0x1422   :  { %12845 = vmatmul.mubr.bf16.gmra.mrb[96].mxu1 %v18433_v57  ;;  %v18528_v57 = vld [vmem:[#allocation3 + $0x36c] ss:$16 sps:$4 sm:$0xff]  }
0x1423   :  { %12852 = vmatprep.mubr.bf16.mxu1 %v18438_v18 }
0x142a   :  { %12853 = vmatmul.mubr.bf16.gmra.mrb[100].mxu1 %v18436_v35 }
0x142b   :  { %12893 = vmatprep.mubr.bf16.mxu1 %v18441_v53  ;;  %v18526_v53 = vld [vmem:[#allocation3 + $0x368] ss:$16 sps:$4 sm:$0xff]  }
0x1432   :  { %12894 = vmatmul.mubr.bf16.vlgmr.msra.gmra.mrb[104].mxu1 %v18439_v19 }
0x1433   :  { %12901 = vmatprep.mubr.bf16.mxu1 %v18444_v22  ;;  %v18533_v22 = vld [vmem:[#allocation3 + $0x38c] ss:$16 sps:$4 sm:$0xff]  }
0x143a   :  { %12902 = vmatmul.mubr.bf16.gmra.mrb[108].mxu1 %v18442_v9 }
0x143b   :  { %12909 = vmatprep.mubr.bf16.mxu1 %v18447_v24 }
0x1442   :  { %12910 = vmatmul.mubr.bf16.gmra.mrb[112].mxu1 %v18445_v26 }
0x1443   :  { %12917 = vmatprep.mubr.bf16.mxu1 %v18450_v39  ;;  %v18531_v39 = vld [vmem:[#allocation3 + $0x388] ss:$16 sps:$4 sm:$0xff]  }
0x144a   :  { %12918 = vmatmul.mubr.bf16.gmra.mrb[116].mxu1 %v18448_v56 }
0x144b   :  { %12925 = vmatprep.mubr.bf16.mxu1 %v18453_v31  ;;  %v18536_v31 = vld [vmem:[#allocation3 + $0x3ac] ss:$16 sps:$4 sm:$0xff]  }
0x1452   :  { %12926 = vmatmul.mubr.bf16.gmra.mrb[120].mxu1 %v18451_v27 }
0x1453   :  { %12933 = vmatprep.mubr.bf16.mxu1 %v18456_v29 }
0x145a   :  { %12934 = vmatmul.mubr.bf16.gmra.mrb[124].mxu1 %v18454_v36 }
0x145b   :  { %12941 = vmatprep.mubr.bf16.mxu1 %v18459_v32 }
0x1462   :  { %12942 = vmatmul.mubr.bf16.gmra.mrb[128].mxu1 %v18457_v33 }
0x1463   :  { %12949 = vmatprep.mubr.bf16.mxu1 %v18462_v20  ;;  %v18539_v20 = vld [vmem:[#allocation3 + $0x3cc] ss:$16 sps:$4 sm:$0xff]  }
0x146a   :  { %12950 = vmatmul.mubr.bf16.gmra.mrb[132].mxu1 %v18460_v34 }
0x146b   :  { %12957 = vmatprep.mubr.bf16.mxu1 %v18465_v38 }
0x1472   :  { %12958 = vmatmul.mubr.bf16.gmra.mrb[136].mxu1 %v18463_v49 }
0x1473   :  { %12965 = vmatprep.mubr.bf16.mxu1 %v18468_v40 }
0x147a   :  { %12966 = vmatmul.mubr.bf16.gmra.mrb[140].mxu1 %v18466_v42  ;;  %v18537_v42 = vld [vmem:[#allocation3 + $0x3c8] ss:$16 sps:$4 sm:$0xff]  }
0x147b   :  { %12973 = vmatprep.mubr.bf16.mxu1 %v18471_v60 }
0x1482   :  { %12974 = vmatmul.mubr.bf16.gmra.mrb[144].mxu1 %v18469_v41 }
0x1483   :  { %12981 = vmatprep.mubr.bf16.mxu1 %v18474_v43 }
0x148a   :  { %12982 = vmatmul.mubr.bf16.gmra.mrb[148].mxu1 %v18472_v44  ;;  %v18540_v44 = vld [vmem:[#allocation3 + $0x3e8] ss:$16 sps:$4 sm:$0xff]  }
0x148b   :  { %12989 = vmatprep.mubr.bf16.mxu1 %v18477_v63 }
0x1492   :  { %12990 = vmatmul.mubr.bf16.gmra.mrb[152].mxu1 %v18475_v48 }
0x1493   :  { %12997 = vmatprep.mubr.bf16.mxu1 %v18480_v45 }
0x149a   :  { %12998 = vmatmul.mubr.bf16.gmra.mrb[156].mxu1 %v18478_v51 }
0x149b   :  { %13005 = vmatprep.mubr.bf16.mxu1 %v18484_v21 }
0x14a2   :  { %13006 = vmatmul.mubr.bf16.gmra.mrb[160].mxu1 %v18482_v55 }
0x14a3   :  { %13013 = vmatprep.mubr.bf16.mxu1 %v18487_v52 }
0x14aa   :  { %13014 = vmatmul.mubr.bf16.gmra.mrb[164].mxu1 %v18485_v2 }
0x14ab   :  { %13021 = vmatprep.mubr.bf16.mxu1 %v18490_v58 }
0x14b2   :  { %13022 = vmatmul.mubr.bf16.gmra.mrb[168].mxu1 %v18488_v54 }
0x14b3   :  { %13029 = vmatprep.mubr.bf16.mxu1 %v18493_v28 }
0x14ba   :  { %13030 = vmatmul.mubr.bf16.gmra.mrb[172].mxu1 %v18491_v0 }
0x14bb   :  { %13037 = vmatprep.mubr.bf16.mxu1 %v18497_v6 }
0x14c2   :  { %13038 = vmatmul.mubr.bf16.gmra.mrb[176].mxu1 %v18495_v61 }
0x14c3   :  { %13045 = vmatprep.mubr.bf16.mxu1 %v18500_v62 }
0x14ca   :  { %13046 = vmatmul.mubr.bf16.gmra.mrb[180].mxu1 %v18498_v3 }
0x14cb   :  { %13053 = vmatprep.mubr.bf16.mxu1 %v18503_v1 }
0x14d2   :  { %13054 = vmatmul.mubr.bf16.gmra.mrb[184].mxu1 %v18501_v8 }
0x14d3   :  { %13061 = vmatprep.mubr.bf16.mxu1 %v18506_v7 }
0x14da   :  { %13062 = vmatmul.mubr.bf16.gmra.mrb[188].mxu1 %v18504_v47 }
0x14db   :  { %13069 = vmatprep.mubr.bf16.mxu1 %v18510_v12 }
0x14e2   :  { %13070 = vmatmul.mubr.bf16.gmra.mrb[64].mxu1 %v18508_v5 }
0x14e3   :  { %13077 = vmatprep.mubr.bf16.mxu1 %v18513_v23 }
0x14ea   :  { %13078 = vmatmul.mubr.bf16.gmra.mrb[68].mxu1 %v18511_v50 }
0x14eb   :  { %13085 = vmatprep.mubr.bf16.mxu1 %v18516_v11 }
0x14f2   :  { %13086 = vmatmul.mubr.bf16.gmra.mrb[72].mxu1 %v18514_v30 }
0x14f3   :  { %13093 = vmatprep.mubr.bf16.mxu1 %v18519_v14 }
0x14fa   :  { %13094 = vmatmul.mubr.bf16.gmra.mrb[76].mxu1 %v18517_v59 }
0x14fb   :  { %13101 = vmatprep.mubr.bf16.mxu1 %v18523_v16 }
0x1502   :  { %13102 = vmatmul.mubr.bf16.gmra.mrb[80].mxu1 %v18521_v17 }
0x1503   :  { %13109 = vmatprep.mubr.bf16.mxu1 %v18528_v57 }
0x1505   :  { %v12895_v18 = vpop.f32.mrb[104].mxu1 }
0x1506   :  { %v12897_v35 = vpop.f32.mrb[105].mxu1 }
0x1507   :  { %v12898_v19 = vpop.f32.mrb[106].mxu1 }
0x1508   :  { %v13150_v9 = vpack.c.bf16 %v12898_v19, %v12895_v18  ;;  %v12900_v24 = vpop.f32.mrb[107].mxu1 }
0x150a   :  { %13110 = vmatmul.mubr.bf16.gmra.mrb[84].mxu1 %v18526_v53  ;;  %16152 = vmatprep.mubr.bf16.mxu0 %v13150_v9 }
0x150b   :  { %13117 = vmatprep.mubr.bf16.mxu1 %v18533_v22 }
0x150d   :  { %v12903_v13 = vpop.f32.mrb[108].mxu1 }
0x150e   :  { %v12905_v26 = vpop.f32.mrb[109].mxu1 }
0x150f   :  { %v12906_v56 = vpop.f32.mrb[110].mxu1 }
0x1510   :  { %v13151_v27 = vpack.c.bf16 %v12906_v56, %v12903_v13  ;;  %v12908_v29 = vpop.f32.mrb[111].mxu1 }
0x1512   :  { %13118 = vmatmul.mubr.bf16.gmra.mrb[88].mxu1 %v18531_v39  ;;  %16153 = vmatmul.mubr.bf16.vlgmr.msra.gmra.mrb[152].mxu0 %v13151_v27 }
0x1513   :  { %13125 = vmatprep.mubr.bf16.mxu1 %v18536_v31 }
0x1515   :  { %v12911_v36 = vpop.f32.mrb[112].mxu1 }
0x1516   :  { %v12913_v32 = vpop.f32.mrb[113].mxu1 }
0x1517   :  { %v12914_v33 = vpop.f32.mrb[114].mxu1 }
0x1518   :  { %v13152_v34 = vpack.c.bf16 %v12914_v33, %v12911_v36  ;;  %v12916_v38 = vpop.f32.mrb[115].mxu1 }
0x151a   :  { %13126 = vmatmul.mubr.bf16.gmra.mrb[92].mxu1 %v18534_v4  ;;  %16156 = vmatprep.mubr.bf16.mxu0 %v13152_v34 }
0x151b   :  { %13133 = vmatprep.mubr.bf16.mxu1 %v18539_v20 }
0x151d   :  { %v12919_v49 = vpop.f32.mrb[116].mxu1 }
0x151e   :  { %v12921_v40 = vpop.f32.mrb[117].mxu1 }
0x151f   :  { %v12922_v60 = vpop.f32.mrb[118].mxu1 }
0x1520   :  { %v13153_v41 = vpack.c.bf16 %v12922_v60, %v12919_v49  ;;  %v12924_v43 = vpop.f32.mrb[119].mxu1 }
0x1522   :  { %13134 = vmatmul.mubr.bf16.gmra.mrb[96].mxu1 %v18537_v42  ;;  %16157 = vmatmul.mubr.bf16.gmra.mrb[156].mxu0 %v13153_v41 }
0x1523   :  { %13141 = vmatprep.mubr.bf16.mxu1 %v18542_v37 }
0x1525   :  { %v12927_v10 = vpop.f32.mrb[120].mxu1 }
0x1526   :  { %v12929_v25 = vpop.f32.mrb[121].mxu1 }
0x1527   :  { %v12930_v63 = vpop.f32.mrb[122].mxu1 }
0x1528   :  { %v13154_v15 = vpack.c.bf16 %v12930_v63, %v12927_v10  ;;  %v12932_v46 = vpop.f32.mrb[123].mxu1 }
0x152a   :  { %13142 = vmatmul.mubr.bf16.gmra.mrb[100].mxu1 %v18540_v44  ;;  %16160 = vmatprep.mubr.bf16.mxu0 %v13154_v15 }
0x152d   :  { %v12935_v48 = vpop.f32.mrb[124].mxu1 }
0x152e   :  { %v12937_v45 = vpop.f32.mrb[125].mxu1 }
0x152f   :  { %v12938_v51 = vpop.f32.mrb[126].mxu1 }
0x1530   :  { %v13155_v21 = vpack.c.bf16 %v12938_v51, %v12935_v48  ;;  %v12940_v55 = vpop.f32.mrb[127].mxu1 }
0x1532   :  { %16161 = vmatmul.mubr.bf16.gmra.mrb[160].mxu0 %v13155_v21 }
0x1535   :  { %v12943_v52 = vpop.f32.mrb[128].mxu1 }
0x1536   :  { %v12945_v2 = vpop.f32.mrb[129].mxu1 }
0x1537   :  { %v12946_v58 = vpop.f32.mrb[130].mxu1 }
0x1538   :  { %v13156_v54 = vpack.c.bf16 %v12946_v58, %v12943_v52  ;;  %v12948_v28 = vpop.f32.mrb[131].mxu1 }
0x153a   :  { %16164 = vmatprep.mubr.bf16.mxu0 %v13156_v54 }
0x153d   :  { %v12951_v0 = vpop.f32.mrb[132].mxu1 }
0x153e   :  { %v12953_v6 = vpop.f32.mrb[133].mxu1 }
0x153f   :  { %v12954_v61 = vpop.f32.mrb[134].mxu1 }
0x1540   :  { %v13157_v62 = vpack.c.bf16 %v12954_v61, %v12951_v0  ;;  %v12956_v3 = vpop.f32.mrb[135].mxu1 }
0x1542   :  { %16165 = vmatmul.mubr.bf16.gmra.mrb[164].mxu0 %v13157_v62 }
0x1545   :  { %v12959_v1 = vpop.f32.mrb[136].mxu1 }
0x1546   :  { %v12961_v8 = vpop.f32.mrb[137].mxu1 }
0x1547   :  { %v12962_v7 = vpop.f32.mrb[138].mxu1 }
0x1548   :  { %v13158_v47 = vpack.c.bf16 %v12962_v7, %v12959_v1  ;;  %v12964_v12 = vpop.f32.mrb[139].mxu1 }
0x154a   :  { %16168 = vmatprep.mubr.bf16.mxu0 %v13158_v47 }
0x154d   :  { %v12967_v5 = vpop.f32.mrb[140].mxu1 }
0x154e   :  { %v12969_v23 = vpop.f32.mrb[141].mxu1 }
0x154f   :  { %v12970_v50 = vpop.f32.mrb[142].mxu1 }
0x1550   :  { %v13159_v11 = vpack.c.bf16 %v12970_v50, %v12967_v5  ;;  %v12972_v30 = vpop.f32.mrb[143].mxu1 }
0x1552   :  { %16169 = vmatmul.mubr.bf16.gmra.mrb[168].mxu0 %v13159_v11 }
0x1555   :  { %v12975_v14 = vpop.f32.mrb[144].mxu1 }
0x1556   :  { %v12977_v59 = vpop.f32.mrb[145].mxu1 }
0x1557   :  { %v12978_v16 = vpop.f32.mrb[146].mxu1 }
0x1558   :  { %v13160_v17 = vpack.c.bf16 %v12978_v16, %v12975_v14  ;;  %v12980_v57 = vpop.f32.mrb[147].mxu1 }
0x155a   :  { %16172 = vmatprep.mubr.bf16.mxu0 %v13160_v17 }
0x155d   :  { %v12983_v18 = vpop.f32.mrb[148].mxu1 }
0x155e   :  { %v12985_v35 = vpop.f32.mrb[149].mxu1 }
0x155f   :  { %v12986_v53 = vpop.f32.mrb[150].mxu1 }
0x1560   :  { %v13161_v19 = vpack.c.bf16 %v12986_v53, %v12983_v18  ;;  %v12988_v22 = vpop.f32.mrb[151].mxu1 }
0x1562   :  { %16173 = vmatmul.mubr.bf16.gmra.mrb[172].mxu0 %v13161_v19 }
0x1565   :  { %v12991_v9 = vpop.f32.mrb[152].mxu1 }
0x1566   :  { %v12993_v24 = vpop.f32.mrb[153].mxu1 }
0x1567   :  { %v12994_v13 = vpop.f32.mrb[154].mxu1 }
0x1568   :  { %v13162_v26 = vpack.c.bf16 %v12994_v13, %v12991_v9  ;;  %v12996_v39 = vpop.f32.mrb[155].mxu1 }
0x156a   :  { %16176 = vmatprep.mubr.bf16.mxu0 %v13162_v26 }
0x156d   :  { %v12999_v56 = vpop.f32.mrb[156].mxu1 }
0x156e   :  { %v13001_v31 = vpop.f32.mrb[157].mxu1 }
0x156f   :  { %v13002_v27 = vpop.f32.mrb[158].mxu1 }
0x1570   :  { %v13163_v29 = vpack.c.bf16 %v13002_v27, %v12999_v56  ;;  %v13004_v36 = vpop.f32.mrb[159].mxu1 }
0x1572   :  { %16177 = vmatmul.mubr.bf16.gmra.mrb[176].mxu0 %v13163_v29 }
0x1575   :  { %v13007_v32 = vpop.f32.mrb[160].mxu1 }
0x1576   :  { %v13009_v4 = vpop.f32.mrb[161].mxu1 }
0x1577   :  { %v13010_v33 = vpop.f32.mrb[162].mxu1 }
0x1578   :  { %v13164_v20 = vpack.c.bf16 %v13010_v33, %v13007_v32  ;;  %v13012_v34 = vpop.f32.mrb[163].mxu1  ;;  %v13525_v33 = vlaneseq }
0x157a   :  { %16180 = vmatprep.mubr.bf16.mxu0 %v13164_v20 }
0x157d   :  { %v13015_v38 = vpop.f32.mrb[164].mxu1 }
0x157e   :  { %v13017_v49 = vpop.f32.mrb[165].mxu1 }
0x157f   :  { %v13018_v40 = vpop.f32.mrb[166].mxu1 }
0x1580   :  { %v13165_v42 = vpack.c.bf16 %v13018_v40, %v13015_v38  ;;  %v13020_v60 = vpop.f32.mrb[167].mxu1  ;;  %v19757_v40 = vand.u32 127, %v13525_v33 }
0x1582   :  { %16181 = vmatmul.mubr.bf16.gmra.mrb[180].mxu0 %v13165_v42  ;;  %v19762_v42 = vld [vmem:[%s20612_s3 + $0x6] ss:$0 sm:$0xff]  ;;  %vm13527_vm0 = vcmp.lt.s32.totalorder %v19757_v40, 6  ;;  %s18901_s3 = smov [#allocation9]  }
0x1583   :  { %s14365_s13 = sshll.u32 %s18901_s3, 4  ;;  %s14366_s13 = int_to_ptr.vmem [resolvable:$true] %s14365_s13 }
0x1584   :  { %s18865_s14 = scalar_lea.vmem %s14366_s13, 8192  ;;  %p18870_p11 = scmp.lt.s32.totalorder %s14366_s13, %s14366_s13 }
0x1585   :  { %v13023_v37 = vpop.f32.mrb[168].mxu1  ;;  %p18866_p10 = scmp.ne.s32.totalorder %s14366_s13, %s18865_s14  ;;  %p18871_p12 = scmp.lt.s32.totalorder %s18865_s14, %s18865_s14 }
0x1586   :  { %v13025_v41 = vpop.f32.mrb[169].mxu1 }
0x1587   :  { %v13026_v43 = vpop.f32.mrb[170].mxu1  ;;  %p18872_p13 = por %p18871_p12, %p18870_p11 }
0x1588   :  { %v13166_v10 = vpack.c.bf16 %v13026_v43, %v13023_v37  ;;  %v13028_v25 = vpop.f32.mrb[171].mxu1 }
0x1589   :  { %p18873_p0 = pnand %p18872_p13, %p18866_p10 }
0x158a   :  { %16184 = vmatprep.mubr.bf16.mxu0 %v13166_v10 }
0x158d   :  { %v13031_v44 = vpop.f32.mrb[172].mxu1 }
0x158e   :  { %v13033_v63 = vpop.f32.mrb[173].mxu1 }
0x158f   :  { %v13034_v15 = vpop.f32.mrb[174].mxu1 }
0x1590   :  { %v13167_v46 = vpack.c.bf16 %v13034_v15, %v13031_v44  ;;  %v13036_v48 = vpop.f32.mrb[175].mxu1 }
0x1592   :  { %16185 = vmatmul.mubr.bf16.gmra.mrb[184].mxu0 %v13167_v46 }
0x1595   :  { %v13039_v45 = vpop.f32.mrb[176].mxu1 }
0x1596   :  { %v13041_v51 = vpop.f32.mrb[177].mxu1 }
0x1597   :  { %v13042_v21 = vpop.f32.mrb[178].mxu1 }
0x1598   :  { %v13168_v55 = vpack.c.bf16 %v13042_v21, %v13039_v45  ;;  %v13044_v52 = vpop.f32.mrb[179].mxu1 }
0x159a   :  { %16188 = vmatprep.mubr.bf16.mxu0 %v13168_v55 }
0x159d   :  { %v13047_v2 = vpop.f32.mrb[180].mxu1 }
0x159e   :  { %v13049_v58 = vpop.f32.mrb[181].mxu1 }
0x159f   :  { %v13050_v54 = vpop.f32.mrb[182].mxu1 }
0x15a0   :  { %v13169_v28 = vpack.c.bf16 %v13050_v54, %v13047_v2  ;;  %v13052_v0 = vpop.f32.mrb[183].mxu1 }
0x15a2   :  { %16189 = vmatmul.mubr.bf16.gmra.mrb[188].mxu0 %v13169_v28 }
0x15a5   :  { %v13055_v6 = vpop.f32.mrb[184].mxu1 }
0x15a6   :  { %v13057_v61 = vpop.f32.mrb[185].mxu1 }
0x15a7   :  { %v13058_v62 = vpop.f32.mrb[186].mxu1 }
0x15a8   :  { %v13170_v3 = vpack.c.bf16 %v13058_v62, %v13055_v6  ;;  %v13060_v1 = vpop.f32.mrb[187].mxu1 }
0x15aa   :  { %16192 = vmatprep.mubr.bf16.mxu0 %v13170_v3 }
0x15ad   :  { %v13063_v8 = vpop.f32.mrb[188].mxu1 }
0x15ae   :  { %v13065_v7 = vpop.f32.mrb[189].mxu1 }
0x15af   :  { %v13066_v47 = vpop.f32.mrb[190].mxu1 }
0x15b0   :  { %v13171_v12 = vpack.c.bf16 %v13066_v47, %v13063_v8  ;;  %v13068_v5 = vpop.f32.mrb[191].mxu1 }
0x15b2   :  { %16193 = vmatmul.mubr.bf16.gmra.mrb[192].mxu0 %v13171_v12 }
0x15b5   :  { %v13071_v23 = vpop.f32.mrb[64].mxu1 }
0x15b6   :  { %v13073_v50 = vpop.f32.mrb[65].mxu1 }
0x15b7   :  { %v13074_v11 = vpop.f32.mrb[66].mxu1 }
0x15b8   :  { %v13172_v30 = vpack.c.bf16 %v13074_v11, %v13071_v23  ;;  %v13076_v14 = vpop.f32.mrb[67].mxu1 }
0x15ba   :  { %16196 = vmatprep.mubr.bf16.mxu0 %v13172_v30 }
0x15bd   :  { %v13079_v59 = vpop.f32.mrb[68].mxu1 }
0x15be   :  { %v13081_v16 = vpop.f32.mrb[69].mxu1 }
0x15bf   :  { %v13082_v17 = vpop.f32.mrb[70].mxu1 }
0x15c0   :  { %v13173_v57 = vpack.c.bf16 %v13082_v17, %v13079_v59  ;;  %v13084_v18 = vpop.f32.mrb[71].mxu1 }
0x15c2   :  { %16197 = vmatmul.mubr.bf16.gmra.mrb[196].mxu0 %v13173_v57 }
0x15c5   :  { %v13087_v35 = vpop.f32.mrb[72].mxu1 }
0x15c6   :  { %v13089_v53 = vpop.f32.mrb[73].mxu1 }
0x15c7   :  { %v13090_v19 = vpop.f32.mrb[74].mxu1 }
0x15c8   :  { %v13174_v22 = vpack.c.bf16 %v13090_v19, %v13087_v35  ;;  %v13092_v9 = vpop.f32.mrb[75].mxu1 }
0x15ca   :  { %16200 = vmatprep.mubr.bf16.mxu0 %v13174_v22 }
0x15cd   :  { %v13095_v24 = vpop.f32.mrb[76].mxu1 }
0x15ce   :  { %v13097_v13 = vpop.f32.mrb[77].mxu1 }
0x15cf   :  { %v13098_v26 = vpop.f32.mrb[78].mxu1 }
0x15d0   :  { %v13175_v39 = vpack.c.bf16 %v13098_v26, %v13095_v24  ;;  %v13100_v56 = vpop.f32.mrb[79].mxu1 }
0x15d2   :  { %16201 = vmatmul.mubr.bf16.gmra.mrb[200].mxu0 %v13175_v39 }
0x15d5   :  { %v13103_v31 = vpop.f32.mrb[80].mxu1 }
0x15d6   :  { %v13105_v27 = vpop.f32.mrb[81].mxu1 }
0x15d7   :  { %v13106_v29 = vpop.f32.mrb[82].mxu1 }
0x15d8   :  { %v13176_v36 = vpack.c.bf16 %v13106_v29, %v13103_v31  ;;  %v13108_v32 = vpop.f32.mrb[83].mxu1 }
0x15da   :  { %16204 = vmatprep.mubr.bf16.mxu0 %v13176_v36 }
0x15dd   :  { %v13111_v4 = vpop.f32.mrb[84].mxu1 }
0x15de   :  { %v13113_v20 = vpop.f32.mrb[85].mxu1 }
0x15df   :  { %v13114_v34 = vpop.f32.mrb[86].mxu1 }
0x15e0   :  { %v13177_v38 = vpack.c.bf16 %v13114_v34, %v13111_v4  ;;  %v13116_v49 = vpop.f32.mrb[87].mxu1 }
0x15e2   :  { %16205 = vmatmul.mubr.bf16.gmra.mrb[204].mxu0 %v13177_v38 }
0x15e5   :  { %v13119_v60 = vpop.f32.mrb[88].mxu1  ;;  %v16154_v37 = vpop.f32.mrb[152].mxu0 }
0x15e6   :  { %v13279_v41 = vadd.f32 %v16154_v37, %v19762_v42  ;;  %v13121_v43 = vpop.f32.mrb[89].mxu1  ;;  %v13270_v10 = vpop.f32.mrb[153].mxu0 }
0x15e7   :  { %v13271_v25 = vadd.f32 %v19762_v42, %v13270_v10  ;;  %v13122_v44 = vpop.f32.mrb[90].mxu1  ;;  %v16155_v63 = vpop.f32.mrb[154].mxu0 }
0x15e8   :  { %v13178_v15 = vpack.c.bf16 %v13122_v44, %v13119_v60  ;;  %v13282_v46 = vadd.f32 %v16155_v63, %v19762_v42  ;;  %v13124_v48 = vpop.f32.mrb[91].mxu1  ;;  %v13273_v45 = vpop.f32.mrb[155].mxu0  ;;  %v19770_v51 = vsel %vm13527_vm0, %v13279_v41, -inf }
0x15e9   :  { %v13274_v21 = vadd.f32 %v19762_v42, %v13273_v45  ;;  %13596 = vmax.xlane.f32.xlu1 %v19770_v51  ;;  %v19776_v55 = vsel %vm13527_vm0, %v13271_v25, -inf }
0x15ea   :  { %13592 = vmax.xlane.f32.xlu0 %v19776_v55  ;;  %16208 = vmatprep.mubr.bf16.mxu0 %v13178_v15  ;;  %v19781_v52 = vsel %vm13527_vm0, %v13282_v46, -inf }
0x15eb   :  { %v19786_v58 = vsel %vm13527_vm0, %v13274_v21, -inf }
0x15ed   :  { %13598 = vmax.xlane.f32.xlu1 %v19781_v52  ;;  %v13127_v2 = vpop.f32.mrb[92].mxu1 }
0x15ee   :  { %13594 = vmax.xlane.f32.xlu0 %v19786_v58  ;;  %v13129_v54 = vpop.f32.mrb[93].mxu1 }
0x15ef   :  { %v13130_v28 = vpop.f32.mrb[94].mxu1 }
0x15f0   :  { %v13179_v0 = vpack.c.bf16 %v13130_v28, %v13127_v2  ;;  %v13132_v6 = vpop.f32.mrb[95].mxu1 }
0x15f2   :  { %16209 = vmatmul.mubr.bf16.gmra.mrb[208].mxu0 %v13179_v0 }
0x15f5   :  { %v13135_v61 = vpop.f32.mrb[96].mxu1  ;;  %v16158_v62 = vpop.f32.mrb[156].mxu0 }
0x15f6   :  { %v13295_v3 = vadd.f32 %v16158_v62, %v19762_v42  ;;  %v13137_v1 = vpop.f32.mrb[97].mxu1  ;;  %v13286_v8 = vpop.f32.mrb[157].mxu0 }
0x15f7   :  { %v13138_v7 = vpop.f32.mrb[98].mxu1  ;;  %v16159_v47 = vpop.f32.mrb[158].mxu0  ;;  %v13287_v12 = vadd.f32 %v19762_v42, %v13286_v8 }
0x15f8   :  { %v13180_v5 = vpack.c.bf16 %v13138_v7, %v13135_v61  ;;  %v13298_v23 = vadd.f32 %v16159_v47, %v19762_v42  ;;  %v13140_v50 = vpop.f32.mrb[99].mxu1  ;;  %v13289_v11 = vpop.f32.mrb[159].mxu0  ;;  %v19794_v30 = vsel %vm13527_vm0, %v13295_v3, -inf }
0x15f9   :  { %13604 = vmax.xlane.f32.xlu0 %v19794_v30  ;;  %v13290_v14 = vadd.f32 %v19762_v42, %v13289_v11  ;;  %v19805_v16 = vsel %vm13527_vm0, %v13287_v12, -inf }
0x15fa   :  { %16212 = vmatprep.mubr.bf16.mxu0 %v13180_v5  ;;  %v19800_v59 = vsel %vm13527_vm0, %v13298_v23, -inf }
0x15fb   :  { %13606 = vmax.xlane.f32.xlu1 %v19800_v59  ;;  %v19810_v18 = vsel %vm13527_vm0, %v13290_v14, -inf }
0x15fd   :  { %13600 = vmax.xlane.f32.xlu0 %v19805_v16  ;;  %v13143_v17 = vpop.f32.mrb[100].mxu1 }
0x15fe   :  { %v13145_v57 = vpop.f32.mrb[101].mxu1 }
0x15ff   :  { %13602 = vmax.xlane.f32.xlu1 %v19810_v18  ;;  %v13146_v35 = vpop.f32.mrb[102].mxu1 }
0x1600   :  { %v13181_v53 = vpack.c.bf16 %v13146_v35, %v13143_v17  ;;  %v13148_v19 = vpop.f32.mrb[103].mxu1 }
0x1602   :  { %16213 = vmatmul.mubr.bf16.gmra.mrb[212].mxu0 %v13181_v53 }
0x1605   :  { %v16162_v22 = vpop.f32.mrb[160].mxu0 }
0x1606   :  { %v13311_v9 = vadd.f32 %v16162_v22, %v19762_v42  ;;  %v13302_v24 = vpop.f32.mrb[161].mxu0 }
0x1607   :  { %v16163_v13 = vpop.f32.mrb[162].mxu0  ;;  %v13303_v26 = vadd.f32 %v19762_v42, %v13302_v24 }
0x1608   :  { %v13314_v39 = vadd.f32 %v16163_v13, %v19762_v42  ;;  %v13305_v56 = vpop.f32.mrb[163].mxu0  ;;  %v19818_v31 = vsel %vm13527_vm0, %v13311_v9, -inf }
0x1609   :  { %13612 = vmax.xlane.f32.xlu0 %v19818_v31  ;;  %v13306_v27 = vadd.f32 %v19762_v42, %v13305_v56  ;;  %v19829_v36 = vsel %vm13527_vm0, %v13303_v26, -inf }
0x160a   :  { %v19824_v29 = vsel %vm13527_vm0, %v13314_v39, -inf }
0x160b   :  { %13614 = vmax.xlane.f32.xlu1 %v19824_v29  ;;  %v19834_v32 = vsel %vm13527_vm0, %v13306_v27, -inf }
0x160d   :  { %13608 = vmax.xlane.f32.xlu0 %v19829_v36 }
0x160f   :  { %13610 = vmax.xlane.f32.xlu1 %v19834_v32 }
0x1615   :  { %v16166_v4 = vpop.f32.mrb[164].mxu0 }
0x1616   :  { %v13327_v33 = vadd.f32 %v16166_v4, %v19762_v42  ;;  %v13318_v20 = vpop.f32.mrb[165].mxu0 }
0x1617   :  { %v16167_v34 = vpop.f32.mrb[166].mxu0  ;;  %v13319_v38 = vadd.f32 %v19762_v42, %v13318_v20 }
0x1618   :  { %v13330_v49 = vadd.f32 %v16167_v34, %v19762_v42  ;;  %v13321_v60 = vpop.f32.mrb[167].mxu0  ;;  %v19842_v37 = vsel %vm13527_vm0, %v13327_v33, -inf }
0x1619   :  { %13620 = vmax.xlane.f32.xlu0 %v19842_v37  ;;  %v13322_v41 = vadd.f32 %v19762_v42, %v13321_v60  ;;  %v19853_v10 = vsel %vm13527_vm0, %v13319_v38, -inf }
0x161a   :  { %v19848_v43 = vsel %vm13527_vm0, %v13330_v49, -inf }
0x161b   :  { %13622 = vmax.xlane.f32.xlu1 %v19848_v43  ;;  %v19858_v25 = vsel %vm13527_vm0, %v13322_v41, -inf }
0x161d   :  { %13616 = vmax.xlane.f32.xlu0 %v19853_v10 }
0x161f   :  { %13618 = vmax.xlane.f32.xlu1 %v19858_v25 }
0x1625   :  { %v16170_v44 = vpop.f32.mrb[168].mxu0 }
0x1626   :  { %v13343_v63 = vadd.f32 %v16170_v44, %v19762_v42  ;;  %v13334_v15 = vpop.f32.mrb[169].mxu0 }
0x1627   :  { %v16171_v46 = vpop.f32.mrb[170].mxu0  ;;  %v13335_v48 = vadd.f32 %v19762_v42, %v13334_v15 }
0x1628   :  { %v13346_v45 = vadd.f32 %v16171_v46, %v19762_v42  ;;  %v13337_v21 = vpop.f32.mrb[171].mxu0  ;;  %v19866_v2 = vsel %vm13527_vm0, %v13343_v63, -inf }
0x1629   :  { %13628 = vmax.xlane.f32.xlu0 %v19866_v2  ;;  %v13338_v54 = vadd.f32 %v19762_v42, %v13337_v21  ;;  %v19877_v0 = vsel %vm13527_vm0, %v13335_v48, -inf }
0x162a   :  { %v19872_v28 = vsel %vm13527_vm0, %v13346_v45, -inf }
0x162b   :  { %13630 = vmax.xlane.f32.xlu1 %v19872_v28  ;;  %v19882_v6 = vsel %vm13527_vm0, %v13338_v54, -inf }
0x162d   :  { %13624 = vmax.xlane.f32.xlu0 %v19877_v0 }
0x162f   :  { %13626 = vmax.xlane.f32.xlu1 %v19882_v6 }
0x1635   :  { %v16174_v61 = vpop.f32.mrb[172].mxu0 }
0x1636   :  { %v13359_v62 = vadd.f32 %v16174_v61, %v19762_v42  ;;  %v13350_v3 = vpop.f32.mrb[173].mxu0 }
0x1637   :  { %v16175_v1 = vpop.f32.mrb[174].mxu0  ;;  %v13351_v8 = vadd.f32 %v19762_v42, %v13350_v3 }
0x1638   :  { %v13362_v7 = vadd.f32 %v16175_v1, %v19762_v42  ;;  %v13353_v47 = vpop.f32.mrb[175].mxu0  ;;  %v19890_v12 = vsel %vm13527_vm0, %v13359_v62, -inf }
0x1639   :  { %13636 = vmax.xlane.f32.xlu0 %v19890_v12  ;;  %v13354_v5 = vadd.f32 %v19762_v42, %v13353_v47  ;;  %v19901_v50 = vsel %vm13527_vm0, %v13351_v8, -inf }
0x163a   :  { %v19896_v23 = vsel %vm13527_vm0, %v13362_v7, -inf }
0x163b   :  { %13638 = vmax.xlane.f32.xlu1 %v19896_v23  ;;  %v19906_v11 = vsel %vm13527_vm0, %v13354_v5, -inf }
0x163d   :  { %13632 = vmax.xlane.f32.xlu0 %v19901_v50 }
0x163f   :  { %13634 = vmax.xlane.f32.xlu1 %v19906_v11 }
0x1645   :  { %v16178_v14 = vpop.f32.mrb[176].mxu0 }
0x1646   :  { %v13375_v17 = vadd.f32 %v16178_v14, %v19762_v42  ;;  %v13366_v57 = vpop.f32.mrb[177].mxu0 }
0x1647   :  { %v16179_v35 = vpop.f32.mrb[178].mxu0  ;;  %v13367_v53 = vadd.f32 %v19762_v42, %v13366_v57 }
0x1648   :  { %v13378_v19 = vadd.f32 %v16179_v35, %v19762_v42  ;;  %v13369_v22 = vpop.f32.mrb[179].mxu0  ;;  %v19914_v9 = vsel %vm13527_vm0, %v13375_v17, -inf }
0x1649   :  { %13644 = vmax.xlane.f32.xlu0 %v19914_v9  ;;  %v13370_v24 = vadd.f32 %v19762_v42, %v13369_v22  ;;  %v19925_v26 = vsel %vm13527_vm0, %v13367_v53, -inf }
0x164a   :  { %v19920_v13 = vsel %vm13527_vm0, %v13378_v19, -inf }
0x164b   :  { %13646 = vmax.xlane.f32.xlu1 %v19920_v13  ;;  %v19930_v39 = vsel %vm13527_vm0, %v13370_v24, -inf }
0x164d   :  { %13640 = vmax.xlane.f32.xlu0 %v19925_v26 }
0x164f   :  { %13642 = vmax.xlane.f32.xlu1 %v19930_v39 }
0x1655   :  { %v16182_v56 = vpop.f32.mrb[180].mxu0 }
0x1656   :  { %v13391_v27 = vadd.f32 %v16182_v56, %v19762_v42  ;;  %v13382_v4 = vpop.f32.mrb[181].mxu0 }
0x1657   :  { %v16183_v33 = vpop.f32.mrb[182].mxu0  ;;  %v13383_v20 = vadd.f32 %v19762_v42, %v13382_v4 }
0x1658   :  { %v13394_v34 = vadd.f32 %v16183_v33, %v19762_v42  ;;  %v13385_v38 = vpop.f32.mrb[183].mxu0  ;;  %v19938_v49 = vsel %vm13527_vm0, %v13391_v27, -inf }
0x1659   :  { %13652 = vmax.xlane.f32.xlu0 %v19938_v49  ;;  %v13386_v60 = vadd.f32 %v19762_v42, %v13385_v38  ;;  %v19949_v44 = vsel %vm13527_vm0, %v13383_v20, -inf }
0x165a   :  { %v19944_v41 = vsel %vm13527_vm0, %v13394_v34, -inf }
0x165b   :  { %13654 = vmax.xlane.f32.xlu1 %v19944_v41  ;;  %v19954_v63 = vsel %vm13527_vm0, %v13386_v60, -inf }
0x165d   :  { %13648 = vmax.xlane.f32.xlu0 %v19949_v44 }
0x165f   :  { %13650 = vmax.xlane.f32.xlu1 %v19954_v63 }
0x1665   :  { %v16186_v15 = vpop.f32.mrb[184].mxu0 }
0x1666   :  { %v13407_v46 = vadd.f32 %v16186_v15, %v19762_v42  ;;  %v13398_v48 = vpop.f32.mrb[185].mxu0 }
0x1667   :  { %v16187_v45 = vpop.f32.mrb[186].mxu0  ;;  %v13399_v21 = vadd.f32 %v19762_v42, %v13398_v48 }
0x1668   :  { %v13410_v54 = vadd.f32 %v16187_v45, %v19762_v42  ;;  %v13401_v61 = vpop.f32.mrb[187].mxu0  ;;  %v19962_v62 = vsel %vm13527_vm0, %v13407_v46, -inf }
0x1669   :  { %13660 = vmax.xlane.f32.xlu0 %v19962_v62  ;;  %v13402_v3 = vadd.f32 %v19762_v42, %v13401_v61  ;;  %v19973_v8 = vsel %vm13527_vm0, %v13399_v21, -inf }
0x166a   :  { %v19968_v1 = vsel %vm13527_vm0, %v13410_v54, -inf }
0x166b   :  { %13662 = vmax.xlane.f32.xlu1 %v19968_v1  ;;  %v19978_v7 = vsel %vm13527_vm0, %v13402_v3, -inf }
0x166d   :  { %13656 = vmax.xlane.f32.xlu0 %v19973_v8 }
0x166f   :  { %13658 = vmax.xlane.f32.xlu1 %v19978_v7 }
0x1675   :  { %v16190_v47 = vpop.f32.mrb[188].mxu0 }
0x1676   :  { %v13423_v5 = vadd.f32 %v16190_v47, %v19762_v42  ;;  %v13597_v14 = vpop.xlane.xlu1 %13596  ;;  %v13414_v17 = vpop.f32.mrb[189].mxu0 }
0x1677   :  { %v19983_v57 = vsub.f32 %v19770_v51, %v13597_v14  ;;  %v13593_v35 = vpop.xlane.xlu0 %13592  ;;  %v16191_v53 = vpop.f32.mrb[190].mxu0  ;;  %v13415_v19 = vadd.f32 %v19762_v42, %v13414_v17 }
0x1678   :  { %v19987_v22 = vsub.f32 %v19776_v55, %v13593_v35  ;;  %v13426_v24 = vadd.f32 %v16191_v53, %v19762_v42  ;;  %v13417_v56 = vpop.f32.mrb[191].mxu0  ;;  %v19992_v27 = vsel %vm13527_vm0, %v13423_v5, -inf }
0x1679   :  { %v13788_v4 = vmul.f32 1.442695, %v19983_v57  ;;  %13668 = vmax.xlane.f32.xlu0 %v19992_v27  ;;  %v13418_v33 = vadd.f32 %v19762_v42, %v13417_v56  ;;  %v20011_v15 = vsel %vm13527_vm0, %v13415_v19, -inf }
0x167a   :  { %v13784_v51 = vmul.f32 1.442695, %v19987_v22  ;;  %v13599_v20 = vpop.xlane.xlu1 %13598  ;;  %v20000_v55 = vsel %vm13527_vm0, %v13426_v24, -inf }
0x167b   :  { %18543 = vpow2.f32 %v13788_v4  ;;  %v20003_v34 = vsub.f32 %v19781_v52, %v13599_v20  ;;  %v13595_v38 = vpop.xlane.xlu0 %13594  ;;  %13670 = vmax.xlane.f32.xlu1 %v20000_v55  ;;  %v20017_v48 = vsel %vm13527_vm0, %v13418_v33, -inf }
0x167c   :  { %v20007_v60 = vsub.f32 %v19786_v58, %v13595_v38  ;;  %18545 = vpow2.f32 %v13784_v51 }
0x167d   :  { %v13790_v46 = vmul.f32 1.442695, %v20003_v34  ;;  %13664 = vmax.xlane.f32.xlu0 %v20011_v15 }
0x167e   :  { %v13786_v52 = vmul.f32 1.442695, %v20007_v60 }
0x167f   :  { %18547 = vpow2.f32 %v13790_v46  ;;  %13666 = vmax.xlane.f32.xlu1 %v20017_v48 }
0x1680   :  { %18549 = vpow2.f32 %v13786_v52 }
0x1685   :  { %v18544_v58 = vpop.eup %18543  ;;  %v16194_v45 = vpop.f32.mrb[192].mxu0 }
0x1686   :  { %v13605_v21 = vpop.xlane.xlu0 %13604  ;;  %13916 = vadd.xlane.f32.xlu0 %v18544_v58  ;;  %v13430_v54 = vpop.f32.mrb[193].mxu0  ;;  %v13439_v35 = vadd.f32 %v16194_v45, %v19762_v42 }
0x1687   :  { %v20022_v61 = vsub.f32 %v19794_v30, %v13605_v21  ;;  %v16195_v3 = vpop.f32.mrb[194].mxu0  ;;  %v18546_v47 = vpop.eup %18545  ;;  %v13431_v4 = vadd.f32 %v19762_v42, %v13430_v54 }
0x1688   :  { %v13607_v5 = vpop.xlane.xlu1 %13606  ;;  %v13433_v14 = vpop.f32.mrb[195].mxu0  ;;  %v13442_v20 = vadd.f32 %v16195_v3, %v19762_v42  ;;  %v20041_v46 = vsel %vm13527_vm0, %v13439_v35, -inf }
0x1689   :  { %v18548_v17 = vpop.eup %18547  ;;  %v13796_v53 = vmul.f32 1.442695, %v20022_v61  ;;  %v20027_v19 = vsub.f32 %v19800_v59, %v13607_v5  ;;  %v13434_v52 = vadd.f32 %v19762_v42, %v13433_v14 }
0x168a   :  { %v13601_v24 = vpop.xlane.xlu0 %13600  ;;  %13918 = vadd.xlane.f32.xlu1 %v18548_v17  ;;  %13912 = vadd.xlane.f32.xlu0 %v18546_v47  ;;  %v18550_v33 = vpop.eup %18549  ;;  %v20048_v58 = vsel %vm13527_vm0, %v13442_v20, -inf }
0x168b   :  { %18551 = vpow2.f32 %v13796_v53  ;;  %v13798_v56 = vmul.f32 1.442695, %v20027_v19  ;;  %v20031_v30 = vsub.f32 %v19805_v16, %v13601_v24  ;;  %v20058_v54 = vsel %vm13527_vm0, %v13434_v52, -inf }
0x168c   :  { %v13603_v51 = vpop.xlane.xlu1 %13602 }
0x168d   :  { %v13792_v38 = vmul.f32 1.442695, %v20031_v30  ;;  %v20037_v59 = vsub.f32 %v19810_v18, %v13603_v51  ;;  %18553 = vpow2.f32 %v13798_v56  ;;  %v20052_v18 = vsel %vm13527_vm0, %v13431_v4, -inf }
0x168e   :  { %13914 = vadd.xlane.f32.xlu1 %v18550_v33  ;;  %13676 = vmax.xlane.f32.xlu0 %v20041_v46 }
0x168f   :  { %18555 = vpow2.f32 %v13792_v38  ;;  %v13794_v16 = vmul.f32 1.442695, %v20037_v59 }
0x1691   :  { %18557 = vpow2.f32 %v13794_v16 }
0x1692   :  { %13678 = vmax.xlane.f32.xlu1 %v20048_v58  ;;  %13672 = vmax.xlane.f32.xlu0 %v20052_v18 }
0x1695   :  { %v18552_v45 = vpop.eup %18551  ;;  %v16198_v21 = vpop.f32.mrb[196].mxu0 }
0x1696   :  { %v13613_v3 = vpop.xlane.xlu0 %13612  ;;  %13674 = vmax.xlane.f32.xlu1 %v20058_v54  ;;  %13924 = vadd.xlane.f32.xlu0 %v18552_v45  ;;  %v13446_v47 = vpop.f32.mrb[197].mxu0  ;;  %v13455_v56 = vadd.f32 %v16198_v21, %v19762_v42 }
0x1697   :  { %v20062_v5 = vsub.f32 %v19818_v31, %v13613_v3  ;;  %v16199_v14 = vpop.f32.mrb[198].mxu0  ;;  %v18554_v17 = vpop.eup %18553  ;;  %v13447_v38 = vadd.f32 %v19762_v42, %v13446_v47 }
0x1698   :  { %v13615_v35 = vpop.xlane.xlu1 %13614  ;;  %v13449_v53 = vpop.f32.mrb[199].mxu0  ;;  %v13458_v45 = vadd.f32 %v16199_v14, %v19762_v42  ;;  %v20081_v3 = vsel %vm13527_vm0, %v13455_v56, -inf }
0x1699   :  { %v18556_v24 = vpop.eup %18555  ;;  %v13804_v4 = vmul.f32 1.442695, %v20062_v5  ;;  %v20067_v51 = vsub.f32 %v19824_v29, %v13615_v35  ;;  %v13450_v47 = vadd.f32 %v19762_v42, %v13449_v53 }
0x169a   :  { %v13609_v33 = vpop.xlane.xlu0 %13608  ;;  %13926 = vadd.xlane.f32.xlu1 %v18554_v17  ;;  %13920 = vadd.xlane.f32.xlu0 %v18556_v24  ;;  %v20088_v14 = vsel %vm13527_vm0, %v13458_v45, -inf }
0x169b   :  { %18559 = vpow2.f32 %v13804_v4  ;;  %v13806_v20 = vmul.f32 1.442695, %v20067_v51  ;;  %v20071_v31 = vsub.f32 %v19829_v36, %v13609_v33  ;;  %v18558_v52 = vpop.eup %18557  ;;  %v20098_v24 = vsel %vm13527_vm0, %v13450_v47, -inf }
0x169c   :  { %v13611_v16 = vpop.xlane.xlu1 %13610 }
0x169d   :  { %20630 = vst [vmem:[#allocation13_spill] sm:$0xff] %v20071_v31  ;;  %v13800_v21 = vmul.f32 1.442695, %v20071_v31  ;;  %v20077_v29 = vsub.f32 %v19834_v32, %v13611_v16  ;;  %18561 = vpow2.f32 %v13806_v20  ;;  %v20092_v32 = vsel %vm13527_vm0, %v13447_v38, -inf }
0x169e   :  { %13922 = vadd.xlane.f32.xlu1 %v18558_v52  ;;  %13684 = vmax.xlane.f32.xlu0 %v20081_v3 }
0x169f   :  { %20631 = vst [vmem:[#allocation14_spill] sm:$0xff] %v20077_v29  ;;  %18563 = vpow2.f32 %v13800_v21  ;;  %v13802_v36 = vmul.f32 1.442695, %v20077_v29 }
0x16a1   :  { %18565 = vpow2.f32 %v13802_v36 }
0x16a2   :  { %13686 = vmax.xlane.f32.xlu1 %v20088_v14  ;;  %13680 = vmax.xlane.f32.xlu0 %v20092_v32 }
0x16a5   :  { %v18560_v17 = vpop.eup %18559  ;;  %v16202_v35 = vpop.f32.mrb[200].mxu0 }
0x16a6   :  { %v13621_v53 = vpop.xlane.xlu0 %13620  ;;  %13682 = vmax.xlane.f32.xlu1 %v20098_v24  ;;  %13932 = vadd.xlane.f32.xlu0 %v18560_v17  ;;  %v13462_v56 = vpop.f32.mrb[201].mxu0  ;;  %v13471_v45 = vadd.f32 %v16202_v35, %v19762_v42 }
0x16a7   :  { %v20102_v4 = vsub.f32 %v19842_v37, %v13621_v53  ;;  %v16203_v33 = vpop.f32.mrb[202].mxu0  ;;  %v18562_v20 = vpop.eup %18561  ;;  %v13463_v53 = vadd.f32 %v19762_v42, %v13462_v56 }
0x16a8   :  { %v13623_v38 = vpop.xlane.xlu1 %13622  ;;  %v13465_v16 = vpop.f32.mrb[203].mxu0  ;;  %v13474_v35 = vadd.f32 %v16203_v33, %v19762_v42 }
0x16a9   :  { %20632 = vst [vmem:[#allocation15_spill] sm:$0xff] %v20102_v4  ;;  %v18564_v52 = vpop.eup %18563  ;;  %v13812_v21 = vmul.f32 1.442695, %v20102_v4  ;;  %v20107_v36 = vsub.f32 %v19848_v43, %v13623_v38  ;;  %v13466_v56 = vadd.f32 %v19762_v42, %v13465_v16 }
0x16aa   :  { %v13617_v47 = vpop.xlane.xlu0 %13616  ;;  %13934 = vadd.xlane.f32.xlu1 %v18562_v20  ;;  %13928 = vadd.xlane.f32.xlu0 %v18564_v52  ;;  %v20121_v20 = vsel %vm13527_vm0, %v13471_v45, -inf  ;;  %v20128_v33 = vsel %vm13527_vm0, %v13474_v35, -inf }
0x16ab   :  { %20633 = vst [vmem:[#allocation16_spill] sm:$0xff] %v20107_v36  ;;  %18567 = vpow2.f32 %v13812_v21  ;;  %v13814_v17 = vmul.f32 1.442695, %v20107_v36  ;;  %v20111_v37 = vsub.f32 %v19853_v10, %v13617_v47  ;;  %v18566_v31 = vpop.eup %18565 }
0x16ac   :  { %v13619_v29 = vpop.xlane.xlu1 %13618 }
0x16ad   :  { %20634 = vst [vmem:[#allocation17_spill] sm:$0xff] %v20111_v37  ;;  %v13808_v4 = vmul.f32 1.442695, %v20111_v37  ;;  %v20117_v43 = vsub.f32 %v19858_v25, %v13619_v29  ;;  %18569 = vpow2.f32 %v13814_v17  ;;  %v20132_v25 = vsel %vm13527_vm0, %v13463_v53, -inf }
0x16ae   :  { %13930 = vadd.xlane.f32.xlu1 %v18566_v31  ;;  %13692 = vmax.xlane.f32.xlu0 %v20121_v20 }
0x16af   :  { %20635 = vst [vmem:[#allocation18_spill] sm:$0xff] %v20117_v43  ;;  %18571 = vpow2.f32 %v13808_v4  ;;  %v13810_v10 = vmul.f32 1.442695, %v20117_v43  ;;  %v20138_v4 = vsel %vm13527_vm0, %v13466_v56, -inf }
0x16b1   :  { %18573 = vpow2.f32 %v13810_v10 }
0x16b2   :  { %13694 = vmax.xlane.f32.xlu1 %v20128_v33  ;;  %13688 = vmax.xlane.f32.xlu0 %v20132_v25 }
0x16b5   :  { %v18568_v31 = vpop.eup %18567  ;;  %v16206_v29 = vpop.f32.mrb[204].mxu0 }
0x16b6   :  { %v13629_v38 = vpop.xlane.xlu0 %13628  ;;  %13690 = vmax.xlane.f32.xlu1 %v20138_v4  ;;  %13940 = vadd.xlane.f32.xlu0 %v18568_v31  ;;  %v13478_v16 = vpop.f32.mrb[205].mxu0  ;;  %v13487_v35 = vadd.f32 %v16206_v29, %v19762_v42 }
0x16b7   :  { %v20142_v52 = vsub.f32 %v19866_v2, %v13629_v38  ;;  %v16207_v45 = vpop.f32.mrb[206].mxu0  ;;  %v18570_v21 = vpop.eup %18569  ;;  %v13479_v38 = vadd.f32 %v19762_v42, %v13478_v16 }
0x16b8   :  { %v13631_v47 = vpop.xlane.xlu1 %13630  ;;  %v13481_v17 = vpop.f32.mrb[207].mxu0  ;;  %v13490_v29 = vadd.f32 %v16207_v45, %v19762_v42 }
0x16b9   :  { %20636 = vst [vmem:[#allocation19_spill] sm:$0xff] %v20142_v52  ;;  %v18572_v53 = vpop.eup %18571  ;;  %v13820_v10 = vmul.f32 1.442695, %v20142_v52  ;;  %v20147_v56 = vsub.f32 %v19872_v28, %v13631_v47 }
0x16ba   :  { %v13625_v43 = vpop.xlane.xlu0 %13624  ;;  %13942 = vadd.xlane.f32.xlu1 %v18570_v21  ;;  %13936 = vadd.xlane.f32.xlu0 %v18572_v53  ;;  %v20161_v21 = vsel %vm13527_vm0, %v13487_v35, -inf  ;;  %v20168_v16 = vsel %vm13527_vm0, %v13490_v29, -inf }
0x16bb   :  { %20637 = vst [vmem:[#allocation20_spill] sm:$0xff] %v20147_v56  ;;  %18575 = vpow2.f32 %v13820_v10  ;;  %v13822_v31 = vmul.f32 1.442695, %v20147_v56  ;;  %v20151_v2 = vsub.f32 %v19877_v0, %v13625_v43  ;;  %v18574_v36 = vpop.eup %18573  ;;  %v13482_v43 = vadd.f32 %v19762_v42, %v13481_v17 }
0x16bc   :  { %v13627_v37 = vpop.xlane.xlu1 %13626 }
0x16bd   :  { %20638 = vst [vmem:[#allocation21_spill] sm:$0xff] %v20151_v2  ;;  %v13816_v52 = vmul.f32 1.442695, %v20151_v2  ;;  %v20157_v28 = vsub.f32 %v19882_v6, %v13627_v37  ;;  %18577 = vpow2.f32 %v13822_v31  ;;  %v20172_v6 = vsel %vm13527_vm0, %v13479_v38, -inf }
0x16be   :  { %13938 = vadd.xlane.f32.xlu1 %v18574_v36  ;;  %13700 = vmax.xlane.f32.xlu0 %v20161_v21 }
0x16bf   :  { %20639 = vst [vmem:[#allocation22_spill] sm:$0xff] %v20157_v28  ;;  %18579 = vpow2.f32 %v13816_v52  ;;  %v13818_v0 = vmul.f32 1.442695, %v20157_v28  ;;  %v20178_v52 = vsel %vm13527_vm0, %v13482_v43, -inf }
0x16c1   :  { %18581 = vpow2.f32 %v13818_v0 }
0x16c2   :  { %13702 = vmax.xlane.f32.xlu1 %v20168_v16  ;;  %13696 = vmax.xlane.f32.xlu0 %v20172_v6 }
0x16c5   :  { %v18576_v36 = vpop.eup %18575  ;;  %v16210_v37 = vpop.f32.mrb[208].mxu0 }
0x16c6   :  { %v13637_v45 = vpop.xlane.xlu0 %13636  ;;  %13698 = vmax.xlane.f32.xlu1 %v20178_v52  ;;  %13948 = vadd.xlane.f32.xlu0 %v18576_v36  ;;  %v13494_v47 = vpop.f32.mrb[209].mxu0  ;;  %v13503_v38 = vadd.f32 %v16210_v37, %v19762_v42 }
0x16c7   :  { %v16211_v17 = vpop.f32.mrb[210].mxu0  ;;  %v18578_v53 = vpop.eup %18577  ;;  %v13495_v28 = vadd.f32 %v19762_v42, %v13494_v47 }
0x16c8   :  { %v13639_v35 = vpop.xlane.xlu1 %13638  ;;  %v13497_v10 = vpop.f32.mrb[211].mxu0  ;;  %v13506_v43 = vadd.f32 %v16211_v17, %v19762_v42  ;;  %v20186_v36 = vsel %vm13527_vm0, %v13503_v38, -inf }
0x16c9   :  { %v18580_v31 = vpop.eup %18579  ;;  %v20202_v17 = vsel %vm13527_vm0, %v13495_v28, -inf }
0x16ca   :  { %13950 = vadd.xlane.f32.xlu1 %v18578_v53  ;;  %13944 = vadd.xlane.f32.xlu0 %v18580_v31  ;;  %v13633_v29 = vpop.xlane.xlu0 %13632  ;;  %v13498_v53 = vadd.f32 %v19762_v42, %v13497_v10  ;;  %v20198_v47 = vsel %vm13527_vm0, %v13506_v43, -inf  ;;  %v20205_v31 = vsub.f32 %v19890_v12, %v13637_v45 }
0x16cb   :  { %v18582_v0 = vpop.eup %18581  ;;  %v20189_v56 = vsub.f32 %v19901_v50, %v13633_v29 }
0x16cc   :  { %v13635_v2 = vpop.xlane.xlu1 %13634  ;;  %20641 = vst [vmem:[#allocation24_spill] sm:$0xff] %v20205_v31  ;;  %v20216_v38 = vsel %vm13527_vm0, %v13498_v53, -inf  ;;  %v13828_v28 = vmul.f32 1.442695, %v20205_v31 }
0x16cd   :  { %v20193_v37 = vsub.f32 %v19906_v11, %v13635_v2  ;;  %v13824_v50 = vmul.f32 1.442695, %v20189_v56  ;;  %v20211_v11 = vsub.f32 %v19896_v23, %v13639_v35 }
0x16ce   :  { %13946 = vadd.xlane.f32.xlu1 %v18582_v0  ;;  %13708 = vmax.xlane.f32.xlu0 %v20186_v36 }
0x16cf   :  { %20640 = vst [vmem:[#allocation23_spill] sm:$0xff] %v20193_v37  ;;  %v13826_v2 = vmul.f32 1.442695, %v20193_v37  ;;  %18583 = vpow2.f32 %v13824_v50  ;;  %v13830_v0 = vmul.f32 1.442695, %v20211_v11 }
0x16d1   :  { %18585 = vpow2.f32 %v13826_v2 }
0x16d2   :  { %13710 = vmax.xlane.f32.xlu1 %v20198_v47  ;;  %13704 = vmax.xlane.f32.xlu0 %v20202_v17  ;;  %18587 = vpow2.f32 %v13828_v28 }
0x16d3   :  { %18589 = vpow2.f32 %v13830_v0 }
0x16d5   :  { %v16214_v10 = vpop.f32.mrb[212].mxu0 }
0x16d6   :  { %v13519_v12 = vadd.f32 %v16214_v10, %v19762_v42  ;;  %v13645_v45 = vpop.xlane.xlu0 %13644  ;;  %13706 = vmax.xlane.f32.xlu1 %v20216_v38  ;;  %v13510_v29 = vpop.f32.mrb[213].mxu0 }
0x16d7   :  { %v20223_v23 = vsub.f32 %v19914_v9, %v13645_v45  ;;  %v16215_v35 = vpop.f32.mrb[214].mxu0  ;;  %v13511_v43 = vadd.f32 %v19762_v42, %v13510_v29 }
0x16d8   :  { %v13522_v53 = vadd.f32 %v16215_v35, %v19762_v42  ;;  %v13647_v37 = vpop.xlane.xlu1 %13646  ;;  %v13513_v31 = vpop.f32.mrb[215].mxu0  ;;  %v20229_v50 = vsel %vm13527_vm0, %v13519_v12, -inf }
0x16d9   :  { %v20232_v10 = vsub.f32 %v19920_v13, %v13647_v37  ;;  %13716 = vmax.xlane.f32.xlu0 %v20229_v50  ;;  %v13836_v9 = vmul.f32 1.442695, %v20223_v23  ;;  %v13514_v2 = vadd.f32 %v19762_v42, %v13513_v31  ;;  %v20248_v28 = vsel %vm13527_vm0, %v13511_v43, -inf  ;;  %v18584_v12 = vpop.eup %18583 }
0x16da   :  { %v13641_v45 = vpop.xlane.xlu0 %13640  ;;  %v20239_v29 = vsel %vm13527_vm0, %v13522_v53, -inf }
0x16db   :  { %v20242_v35 = vsub.f32 %v19925_v26, %v13641_v45  ;;  %13718 = vmax.xlane.f32.xlu1 %v20239_v29  ;;  %v13838_v13 = vmul.f32 1.442695, %v20232_v10  ;;  %18591 = vpow2.f32 %v13836_v9  ;;  %v20257_v26 = vsel %vm13527_vm0, %v13514_v2, -inf  ;;  %v18586_v43 = vpop.eup %18585 }
0x16dc   :  { %v13643_v37 = vpop.xlane.xlu1 %13642 }
0x16dd   :  { %20642 = vst [vmem:[#allocation25_spill] sm:$0xff] %v20242_v35  ;;  %v20251_v42 = vsub.f32 %v19930_v39, %v13643_v37  ;;  %13712 = vmax.xlane.f32.xlu0 %v20248_v28  ;;  %v13832_v31 = vmul.f32 1.442695, %v20242_v35  ;;  %18593 = vpow2.f32 %v13838_v13  ;;  %v18588_v39 = vpop.eup %18587 }
0x16de   :  { %v18590_v53 = vpop.eup %18589 }
0x16df   :  { %13714 = vmax.xlane.f32.xlu1 %v20257_v26  ;;  %v13834_v0 = vmul.f32 1.442695, %v20251_v42  ;;  %18595 = vpow2.f32 %v13832_v31 }
0x16e1   :  { %13952 = vadd.xlane.f32.xlu0 %v18584_v12  ;;  %18597 = vpow2.f32 %v13834_v0 }
0x16e3   :  { %13954 = vadd.xlane.f32.xlu1 %v18586_v43 }
0x16e5   :  { %13956 = vadd.xlane.f32.xlu0 %v18588_v39  ;;  %v18592_v2 = vpop.eup %18591 }
0x16e6   :  { %v13653_v9 = vpop.xlane.xlu0 %13652 }
0x16e7   :  { %v20262_v45 = vsub.f32 %v19938_v49, %v13653_v9  ;;  %13958 = vadd.xlane.f32.xlu1 %v18590_v53  ;;  %v18594_v12 = vpop.eup %18593 }
0x16e8   :  { %v13655_v37 = vpop.xlane.xlu1 %13654 }
0x16e9   :  { %v13844_v35 = vmul.f32 1.442695, %v20262_v45  ;;  %v20266_v13 = vsub.f32 %v19944_v41, %v13655_v37  ;;  %13964 = vadd.xlane.f32.xlu0 %v18592_v2  ;;  %v18596_v49 = vpop.eup %18595 }
0x16ea   :  { %v13649_v31 = vpop.xlane.xlu0 %13648 }
0x16eb   :  { %18599 = vpow2.f32 %v13844_v35  ;;  %v13846_v0 = vmul.f32 1.442695, %v20266_v13  ;;  %v20270_v43 = vsub.f32 %v19949_v44, %v13649_v31  ;;  %13966 = vadd.xlane.f32.xlu1 %v18594_v12  ;;  %v18598_v41 = vpop.eup %18597 }
0x16ec   :  { %v13651_v39 = vpop.xlane.xlu1 %13650 }
0x16ed   :  { %18601 = vpow2.f32 %v13846_v0  ;;  %v13840_v53 = vmul.f32 1.442695, %v20270_v43  ;;  %v20274_v9 = vsub.f32 %v19954_v63, %v13651_v39  ;;  %13960 = vadd.xlane.f32.xlu0 %v18596_v49 }
0x16ef   :  { %18603 = vpow2.f32 %v13840_v53  ;;  %v13842_v2 = vmul.f32 1.442695, %v20274_v9  ;;  %13962 = vadd.xlane.f32.xlu1 %v18598_v41 }
0x16f1   :  { %18605 = vpow2.f32 %v13842_v2 }
0x16f5   :  { %v18600_v35 = vpop.eup %18599 }
0x16f6   :  { %v13661_v37 = vpop.xlane.xlu0 %13660  ;;  %13972 = vadd.xlane.f32.xlu0 %v18600_v35 }
0x16f7   :  { %v18602_v44 = vpop.eup %18601  ;;  %v20278_v12 = vsub.f32 %v19962_v62, %v13661_v37 }
0x16f8   :  { %v13663_v31 = vpop.xlane.xlu1 %13662  ;;  %13974 = vadd.xlane.f32.xlu1 %v18602_v44 }
0x16f9   :  { %v18604_v0 = vpop.eup %18603  ;;  %v13852_v63 = vmul.f32 1.442695, %v20278_v12  ;;  %v20282_v49 = vsub.f32 %v19968_v1, %v13663_v31 }
0x16fa   :  { %v13657_v39 = vpop.xlane.xlu0 %13656  ;;  %13968 = vadd.xlane.f32.xlu0 %v18604_v0 }
0x16fb   :  { %v18606_v53 = vpop.eup %18605  ;;  %18607 = vpow2.f32 %v13852_v63  ;;  %v13854_v41 = vmul.f32 1.442695, %v20282_v49  ;;  %v20286_v2 = vsub.f32 %v19973_v8, %v13657_v39 }
0x16fc   :  { %v13659_v35 = vpop.xlane.xlu1 %13658  ;;  %13970 = vadd.xlane.f32.xlu1 %v18606_v53 }
0x16fd   :  { %18609 = vpow2.f32 %v13854_v41  ;;  %v13848_v62 = vmul.f32 1.442695, %v20286_v2  ;;  %v20290_v37 = vsub.f32 %v19978_v7, %v13659_v35 }
0x16ff   :  { %18611 = vpow2.f32 %v13848_v62  ;;  %v13850_v1 = vmul.f32 1.442695, %v20290_v37 }
0x1701   :  { %18613 = vpow2.f32 %v13850_v1 }
0x1705   :  { %v18608_v44 = vpop.eup %18607 }
0x1706   :  { %v13669_v31 = vpop.xlane.xlu0 %13668  ;;  %13980 = vadd.xlane.f32.xlu0 %v18608_v44 }
0x1707   :  { %v18610_v0 = vpop.eup %18609  ;;  %v20294_v63 = vsub.f32 %v19992_v27, %v13669_v31 }
0x1708   :  { %v13671_v8 = vpop.xlane.xlu1 %13670  ;;  %13982 = vadd.xlane.f32.xlu1 %v18610_v0 }
0x1709   :  { %v18612_v39 = vpop.eup %18611  ;;  %v13860_v53 = vmul.f32 1.442695, %v20294_v63  ;;  %v20298_v41 = vsub.f32 %v20000_v55, %v13671_v8 }
0x170a   :  { %v13665_v7 = vpop.xlane.xlu0 %13664  ;;  %13976 = vadd.xlane.f32.xlu0 %v18612_v39 }
0x170b   :  { %v18614_v35 = vpop.eup %18613  ;;  %18615 = vpow2.f32 %v13860_v53  ;;  %v13862_v62 = vmul.f32 1.442695, %v20298_v41  ;;  %v20302_v1 = vsub.f32 %v20011_v15, %v13665_v7 }
0x170c   :  { %v13667_v44 = vpop.xlane.xlu1 %13666  ;;  %13978 = vadd.xlane.f32.xlu1 %v18614_v35 }
0x170d   :  { %18617 = vpow2.f32 %v13862_v62  ;;  %v13856_v27 = vmul.f32 1.442695, %v20302_v1  ;;  %v20306_v31 = vsub.f32 %v20017_v48, %v13667_v44 }
0x170f   :  { %20643 = vst [vmem:[#allocation26_spill] sm:$0xff] %v20306_v31  ;;  %18619 = vpow2.f32 %v13856_v27  ;;  %v13858_v55 = vmul.f32 1.442695, %v20306_v31 }
0x1711   :  { %18621 = vpow2.f32 %v13858_v55 }
0x1713   :  { %v13917_v0 = vpop.xlane.xlu0 %13916 }
0x1714   :  { %18623 = vlog2.f32 %v13917_v0 }
0x1715   :  { %v18616_v8 = vpop.eup %18615 }
0x1716   :  { %13988 = vadd.xlane.f32.xlu0 %v18616_v8 }
0x1717   :  { %v18618_v39 = vpop.eup %18617  ;;  %v13919_v53 = vpop.xlane.xlu1 %13918 }
0x1718   :  { %v13913_v15 = vpop.xlane.xlu0 %13912  ;;  %18625 = vlog2.f32 %v13919_v53  ;;  %13990 = vadd.xlane.f32.xlu1 %v18618_v39 }
0x1719   :  { %v18620_v7 = vpop.eup %18619  ;;  %18627 = vlog2.f32 %v13913_v15 }
0x171a   :  { %13984 = vadd.xlane.f32.xlu0 %v18620_v7 }
0x171b   :  { %v18622_v35 = vpop.eup %18621  ;;  %v13915_v62 = vpop.xlane.xlu1 %13914 }
0x171c   :  { %v13677_v48 = vpop.xlane.xlu0 %13676  ;;  %18629 = vlog2.f32 %v13915_v62  ;;  %13986 = vadd.xlane.f32.xlu1 %v18622_v35 }
0x171d   :  { %v20310_v44 = vsub.f32 %v20041_v46, %v13677_v48 }
0x171e   :  { %v18624_v27 = vpop.eup %18623 }
0x171f   :  { %20644 = vst [vmem:[#allocation27_spill] sm:$0xff] %v20310_v44  ;;  %v13868_v55 = vmul.f32 1.442695, %v20310_v44  ;;  %v14045_v0 = vmul.f32 0.6931472, %v18624_v27  ;;  %v13679_v8 = vpop.xlane.xlu1 %13678 }
0x1720   :  { %v13673_v31 = vpop.xlane.xlu0 %13672  ;;  %v20314_v39 = vsub.f32 %v20048_v58, %v13679_v8 }
0x1721   :  { %18631 = vpow2.f32 %v13868_v55  ;;  %v20317_v53 = vsub.f32 %v20052_v18, %v13673_v31  ;;  %v14170_v15 = vsub.f32 %v19983_v57, %v14045_v0 }
0x1722   :  { %v18626_v7 = vpop.eup %18625  ;;  %v13870_v46 = vmul.f32 1.442695, %v20314_v39 }
0x1723   :  { %20645 = vst [vmem:[#allocation28_spill] sm:$0xff] %v20317_v53  ;;  %v13864_v35 = vmul.f32 1.442695, %v20317_v53  ;;  %v18628_v62 = vpop.eup %18627  ;;  %v14234_v48 = vsel %vm13527_vm0, %v14170_v15, 0.0  ;;  %v14047_v27 = vmul.f32 0.6931472, %v18626_v7  ;;  %v13675_v44 = vpop.xlane.xlu1 %13674 }
0x1724   :  { %v13925_v55 = vpop.xlane.xlu0 %13924  ;;  %14298 = vst [vmem:[#allocation9 + $0x10] sm:$0xff] %v14234_v48  ;;  %v14041_v58 = vmul.f32 0.6931472, %v18628_v62  ;;  %18633 = vpow2.f32 %v13870_v46  ;;  %v20325_v18 = vsub.f32 %v20058_v54, %v13675_v44 }
0x1725   :  { %v14171_v57 = vsub.f32 %v20003_v34, %v14047_v27  ;;  %18635 = vpow2.f32 %v13864_v35 }
0x1726   :  { %v18630_v31 = vpop.eup %18629  ;;  %v14168_v0 = vsub.f32 %v19987_v22, %v14041_v58  ;;  %v13866_v8 = vmul.f32 1.442695, %v20325_v18  ;;  %18637 = vlog2.f32 %v13925_v55 }
0x1727   :  { %v14235_v15 = vsel %vm13527_vm0, %v14171_v57, 0.0  ;;  %v14043_v7 = vmul.f32 0.6931472, %v18630_v31  ;;  %v13927_v53 = vpop.xlane.xlu1 %13926 }
0x1728   :  { %v13921_v48 = vpop.xlane.xlu0 %13920  ;;  %14299 = vst [vmem:[#allocation9 + $0x18] sm:$0xff] %v14235_v15  ;;  %v14232_v54 = vsel %vm13527_vm0, %v14168_v0, 0.0  ;;  %18639 = vpow2.f32 %v13866_v8 }
0x1729   :  { %14296 = vst [vmem:[#allocation9] sm:$0xff] %v14232_v54  ;;  %v14169_v34 = vsub.f32 %v20007_v60, %v14043_v7  ;;  %18641 = vlog2.f32 %v13927_v53 }
0x172a   :  { %18643 = vlog2.f32 %v13921_v48 }
0x172b   :  { %v18632_v44 = vpop.eup %18631  ;;  %v14233_v22 = vsel %vm13527_vm0, %v14169_v34, 0.0  ;;  %v13923_v46 = vpop.xlane.xlu1 %13922 }
0x172c   :  { %v13685_v35 = vpop.xlane.xlu0 %13684  ;;  %13996 = vadd.xlane.f32.xlu0 %v18632_v44  ;;  %14297 = vst [vmem:[#allocation9 + $0x8] sm:$0xff] %v14233_v22  ;;  %18645 = vlog2.f32 %v13923_v46 }
0x172d   :  { %v20338_v62 = vsub.f32 %v20081_v3, %v13685_v35 }
0x172e   :  { %v18634_v27 = vpop.eup %18633 }
0x172f   :  { %v13876_v55 = vmul.f32 1.442695, %v20338_v62  ;;  %v18636_v58 = vpop.eup %18635  ;;  %v13687_v57 = vpop.xlane.xlu1 %13686  ;;  %13998 = vadd.xlane.f32.xlu1 %v18634_v27 }
0x1730   :  { %v13681_v60 = vpop.xlane.xlu0 %13680  ;;  %v18638_v53 = vpop.eup %18637  ;;  %v20342_v31 = vsub.f32 %v20088_v14, %v13687_v57  ;;  %13992 = vadd.xlane.f32.xlu0 %v18636_v58 }
0x1731   :  { %18647 = vpow2.f32 %v13876_v55  ;;  %v20345_v0 = vsub.f32 %v20092_v32, %v13681_v60  ;;  %v14053_v8 = vmul.f32 0.6931472, %v18638_v53 }
0x1732   :  { %v18640_v15 = vpop.eup %18639  ;;  %v13878_v3 = vmul.f32 1.442695, %v20342_v31 }
0x1733   :  { %v13872_v7 = vmul.f32 1.442695, %v20345_v0  ;;  %v18642_v48 = vpop.eup %18641  ;;  %v14174_v54 = vsub.f32 %v20022_v61, %v14053_v8  ;;  %v13683_v34 = vpop.xlane.xlu1 %13682  ;;  %13994 = vadd.xlane.f32.xlu1 %v18640_v15 }
0x1734   :  { %v13933_v44 = vpop.xlane.xlu0 %13932  ;;  %v18644_v22 = vpop.eup %18643  ;;  %v14055_v46 = vmul.f32 0.6931472, %v18642_v48  ;;  %18649 = vpow2.f32 %v13878_v3  ;;  %v20351_v14 = vsub.f32 %v20098_v24, %v13683_v34 }
0x1735   :  { %v14238_v32 = vsel %vm13527_vm0, %v14174_v54, 0.0  ;;  %v14049_v35 = vmul.f32 0.6931472, %v18644_v22  ;;  %18651 = vpow2.f32 %v13872_v7 }
0x1736   :  { %v18646_v27 = vpop.eup %18645  ;;  %14302 = vst [vmem:[#allocation9 + $0x30] sm:$0xff] %v14238_v32  ;;  %v14175_v55 = vsub.f32 %v20027_v19, %v14055_v46  ;;  %v13874_v61 = vmul.f32 1.442695, %v20351_v14  ;;  %18653 = vlog2.f32 %v13933_v44 }
0x1737   :  { %v14172_v58 = vsub.f32 %v20031_v30, %v14049_v35  ;;  %v14051_v57 = vmul.f32 0.6931472, %v18646_v27  ;;  %v13935_v60 = vpop.xlane.xlu1 %13934 }
0x1738   :  { %v13929_v53 = vpop.xlane.xlu0 %13928  ;;  %v14239_v24 = vsel %vm13527_vm0, %v14175_v55, 0.0  ;;  %18655 = vpow2.f32 %v13874_v61 }
0x1739   :  { %14303 = vst [vmem:[#allocation9 + $0x38] sm:$0xff] %v14239_v24  ;;  %v14236_v8 = vsel %vm13527_vm0, %v14172_v58, 0.0  ;;  %v14173_v15 = vsub.f32 %v20037_v59, %v14051_v57  ;;  %18657 = vlog2.f32 %v13935_v60 }
0x173a   :  { %14300 = vst [vmem:[#allocation9 + $0x20] sm:$0xff] %v14236_v8  ;;  %18659 = vlog2.f32 %v13929_v53 }
0x173b   :  { %v18648_v19 = vpop.eup %18647  ;;  %v14237_v30 = vsel %vm13527_vm0, %v14173_v15, 0.0  ;;  %v13931_v3 = vpop.xlane.xlu1 %13930 }
0x173c   :  { %v13693_v7 = vpop.xlane.xlu0 %13692  ;;  %14004 = vadd.xlane.f32.xlu0 %v18648_v19  ;;  %14301 = vst [vmem:[#allocation9 + $0x28] sm:$0xff] %v14237_v30  ;;  %18661 = vlog2.f32 %v13931_v3  ;;  %v20646_v3 = vld [vmem:[#allocation13_spill] sm:$0xff] }
0x173d   :  { %v20366_v48 = vsub.f32 %v20121_v20, %v13693_v7 }
0x173e   :  { %v18650_v54 = vpop.eup %18649 }
0x173f   :  { %v13884_v34 = vmul.f32 1.442695, %v20366_v48  ;;  %v18652_v44 = vpop.eup %18651  ;;  %v13695_v59 = vpop.xlane.xlu1 %13694  ;;  %14006 = vadd.xlane.f32.xlu1 %v18650_v54 }
0x1740   :  { %v13689_v22 = vpop.xlane.xlu0 %13688  ;;  %v18654_v46 = vpop.eup %18653  ;;  %v20370_v32 = vsub.f32 %v20128_v33, %v13695_v59  ;;  %14000 = vadd.xlane.f32.xlu0 %v18652_v44 }
0x1741   :  { %18663 = vpow2.f32 %v13884_v34  ;;  %v20373_v35 = vsub.f32 %v20132_v25, %v13689_v22  ;;  %v14061_v27 = vmul.f32 0.6931472, %v18654_v46  ;;  %v20647_v22 = vld [vmem:[#allocation14_spill] sm:$0xff] }
0x1742   :  { %v18656_v55 = vpop.eup %18655  ;;  %v13886_v20 = vmul.f32 1.442695, %v20370_v32 }
0x1743   :  { %v13880_v61 = vmul.f32 1.442695, %v20373_v35  ;;  %v18658_v58 = vpop.eup %18657  ;;  %v14178_v57 = vsub.f32 %v20062_v5, %v14061_v27  ;;  %v13691_v60 = vpop.xlane.xlu1 %13690  ;;  %14002 = vadd.xlane.f32.xlu1 %v18656_v55 }
0x1744   :  { %v13941_v53 = vpop.xlane.xlu0 %13940  ;;  %v18660_v24 = vpop.eup %18659  ;;  %v14063_v8 = vmul.f32 0.6931472, %v18658_v58  ;;  %18665 = vpow2.f32 %v13886_v20  ;;  %v20379_v33 = vsub.f32 %v20138_v4, %v13691_v60 }
0x1745   :  { %v14242_v25 = vsel %vm13527_vm0, %v14178_v57, 0.0  ;;  %v14057_v15 = vmul.f32 0.6931472, %v18660_v24  ;;  %18667 = vpow2.f32 %v13880_v61 }
0x1746   :  { %v18662_v19 = vpop.eup %18661  ;;  %14306 = vst [vmem:[#allocation9 + $0x50] sm:$0xff] %v14242_v25  ;;  %v14179_v30 = vsub.f32 %v20067_v51, %v14063_v8  ;;  %v13882_v5 = vmul.f32 1.442695, %v20379_v33  ;;  %18669 = vlog2.f32 %v13941_v53 }
0x1747   :  { %v14176_v7 = vsub.f32 %v20646_v3, %v14057_v15  ;;  %v14059_v54 = vmul.f32 0.6931472, %v18662_v19  ;;  %v13943_v34 = vpop.xlane.xlu1 %13942 }
0x1748   :  { %v13937_v44 = vpop.xlane.xlu0 %13936  ;;  %v14243_v4 = vsel %vm13527_vm0, %v14179_v30, 0.0  ;;  %18671 = vpow2.f32 %v13882_v5 }
0x1749   :  { %14307 = vst [vmem:[#allocation9 + $0x58] sm:$0xff] %v14243_v4  ;;  %v14240_v59 = vsel %vm13527_vm0, %v14176_v7, 0.0  ;;  %v14177_v46 = vsub.f32 %v20647_v22, %v14059_v54  ;;  %18673 = vlog2.f32 %v13943_v34  ;;  %v20648_v7 = vld [vmem:[#allocation15_spill] sm:$0xff] }
0x174a   :  { %14304 = vst [vmem:[#allocation9 + $0x40] sm:$0xff] %v14240_v59  ;;  %18675 = vlog2.f32 %v13937_v44 }
0x174b   :  { %v18664_v51 = vpop.eup %18663  ;;  %v14241_v27 = vsel %vm13527_vm0, %v14177_v46, 0.0  ;;  %v13939_v55 = vpop.xlane.xlu1 %13938 }
0x174c   :  { %v13701_v20 = vpop.xlane.xlu0 %13700  ;;  %14012 = vadd.xlane.f32.xlu0 %v18664_v51  ;;  %14305 = vst [vmem:[#allocation9 + $0x48] sm:$0xff] %v14241_v27  ;;  %18677 = vlog2.f32 %v13939_v55  ;;  %v20649_v51 = vld [vmem:[#allocation16_spill] sm:$0xff] }
0x174d   :  { %v20394_v61 = vsub.f32 %v20161_v21, %v13701_v20  ;;  %v20650_v20 = vld [vmem:[#allocation17_spill] sm:$0xff] }
0x174e   :  { %v18666_v58 = vpop.eup %18665 }
0x174f   :  { %v13892_v57 = vmul.f32 1.442695, %v20394_v61  ;;  %v18668_v60 = vpop.eup %18667  ;;  %v13703_v53 = vpop.xlane.xlu1 %13702  ;;  %14014 = vadd.xlane.f32.xlu1 %v18666_v58 }
0x1750   :  { %v13697_v24 = vpop.xlane.xlu0 %13696  ;;  %v18670_v8 = vpop.eup %18669  ;;  %v20398_v25 = vsub.f32 %v20168_v16, %v13703_v53  ;;  %14008 = vadd.xlane.f32.xlu0 %v18668_v60 }
0x1751   :  { %18679 = vpow2.f32 %v13892_v57  ;;  %v20401_v15 = vsub.f32 %v20172_v6, %v13697_v24  ;;  %v14069_v19 = vmul.f32 0.6931472, %v18670_v8  ;;  %v20651_v8 = vld [vmem:[#allocation18_spill] sm:$0xff] }
0x1752   :  { %v18672_v30 = vpop.eup %18671  ;;  %v13894_v21 = vmul.f32 1.442695, %v20398_v25 }
0x1753   :  { %v13888_v5 = vmul.f32 1.442695, %v20401_v15  ;;  %v18674_v3 = vpop.eup %18673  ;;  %v14182_v54 = vsub.f32 %v20648_v7, %v14069_v19  ;;  %v13699_v34 = vpop.xlane.xlu1 %13698  ;;  %14010 = vadd.xlane.f32.xlu1 %v18672_v30 }
0x1754   :  { %v13949_v44 = vpop.xlane.xlu0 %13948  ;;  %v18676_v4 = vpop.eup %18675  ;;  %v14071_v59 = vmul.f32 0.6931472, %v18674_v3  ;;  %18681 = vpow2.f32 %v13894_v21  ;;  %v20407_v16 = vsub.f32 %v20178_v52, %v13699_v34 }
0x1755   :  { %v14246_v6 = vsel %vm13527_vm0, %v14182_v54, 0.0  ;;  %v14065_v22 = vmul.f32 0.6931472, %v18676_v4  ;;  %18683 = vpow2.f32 %v13888_v5 }
0x1756   :  { %v18678_v46 = vpop.eup %18677  ;;  %14310 = vst [vmem:[#allocation9 + $0x70] sm:$0xff] %v14246_v6  ;;  %v14183_v27 = vsub.f32 %v20649_v51, %v14071_v59  ;;  %v13890_v55 = vmul.f32 1.442695, %v20407_v16  ;;  %18685 = vlog2.f32 %v13949_v44 }
0x1757   :  { %v14180_v58 = vsub.f32 %v20650_v20, %v14065_v22  ;;  %v14067_v57 = vmul.f32 0.6931472, %v18678_v46  ;;  %v13951_v60 = vpop.xlane.xlu1 %13950 }
0x1758   :  { %v13945_v53 = vpop.xlane.xlu0 %13944  ;;  %v14247_v52 = vsel %vm13527_vm0, %v14183_v27, 0.0  ;;  %18687 = vpow2.f32 %v13890_v55 }
0x1759   :  { %14311 = vst [vmem:[#allocation9 + $0x78] sm:$0xff] %v14247_v52  ;;  %v14244_v24 = vsel %vm13527_vm0, %v14180_v58, 0.0  ;;  %v14181_v19 = vsub.f32 %v20651_v8, %v14067_v57  ;;  %18689 = vlog2.f32 %v13951_v60  ;;  %v20652_v58 = vld [vmem:[#allocation19_spill] sm:$0xff] }
0x175a   :  { %14308 = vst [vmem:[#allocation9 + $0x60] sm:$0xff] %v14244_v24  ;;  %18691 = vlog2.f32 %v13945_v53 }
0x175b   :  { %v18680_v30 = vpop.eup %18679  ;;  %v14245_v21 = vsel %vm13527_vm0, %v14181_v19, 0.0  ;;  %v13947_v5 = vpop.xlane.xlu1 %13946  ;;  %v20653_v19 = vld [vmem:[#allocation20_spill] sm:$0xff] }
0x175c   :  { %v13709_v3 = vpop.xlane.xlu0 %13708  ;;  %14020 = vadd.xlane.f32.xlu0 %v18680_v30  ;;  %14309 = vst [vmem:[#allocation9 + $0x68] sm:$0xff] %v14245_v21  ;;  %18693 = vlog2.f32 %v13947_v5 }
0x175d   :  { %v20422_v7 = vsub.f32 %v20186_v36, %v13709_v3  ;;  %v20654_v3 = vld [vmem:[#allocation21_spill] sm:$0xff] }
0x175e   :  { %v18682_v54 = vpop.eup %18681 }
0x175f   :  { %v13900_v34 = vmul.f32 1.442695, %v20422_v7  ;;  %v18684_v44 = vpop.eup %18683  ;;  %v13711_v4 = vpop.xlane.xlu1 %13710  ;;  %14022 = vadd.xlane.f32.xlu1 %v18682_v54 }
0x1760   :  { %v13705_v59 = vpop.xlane.xlu0 %13704  ;;  %v18686_v6 = vpop.eup %18685  ;;  %v20426_v22 = vsub.f32 %v20198_v47, %v13711_v4  ;;  %14016 = vadd.xlane.f32.xlu0 %v18684_v44 }
0x1761   :  { %18695 = vpow2.f32 %v13900_v34  ;;  %v20429_v46 = vsub.f32 %v20202_v17, %v13705_v59  ;;  %v14077_v51 = vmul.f32 0.6931472, %v18686_v6  ;;  %v20655_v6 = vld [vmem:[#allocation22_spill] sm:$0xff] }
0x1762   :  { %v18688_v27 = vpop.eup %18687  ;;  %v13902_v36 = vmul.f32 1.442695, %v20426_v22 }
0x1763   :  { %v13896_v55 = vmul.f32 1.442695, %v20429_v46  ;;  %v18690_v20 = vpop.eup %18689  ;;  %v14186_v57 = vsub.f32 %v20652_v58, %v14077_v51  ;;  %v13707_v60 = vpop.xlane.xlu1 %13706  ;;  %14018 = vadd.xlane.f32.xlu1 %v18688_v27 }
0x1764   :  { %v18692_v53 = vpop.eup %18691  ;;  %v14079_v52 = vmul.f32 0.6931472, %v18690_v20  ;;  %18697 = vpow2.f32 %v13902_v36  ;;  %v20435_v47 = vsub.f32 %v20216_v38, %v13707_v60 }
0x1765   :  { %v14250_v17 = vsel %vm13527_vm0, %v14186_v57, 0.0  ;;  %v14073_v24 = vmul.f32 0.6931472, %v18692_v53  ;;  %18699 = vpow2.f32 %v13896_v55 }
0x1766   :  { %v18694_v8 = vpop.eup %18693  ;;  %14314 = vst [vmem:[#allocation9 + $0x90] sm:$0xff] %v14250_v17  ;;  %v14187_v30 = vsub.f32 %v20653_v19, %v14079_v52  ;;  %v13898_v21 = vmul.f32 1.442695, %v20435_v47  ;;  %v13717_v5 = vpop.xlane.xlu0 %13716 }
0x1767   :  { %v14184_v54 = vsub.f32 %v20654_v3, %v14073_v24  ;;  %v14075_v34 = vmul.f32 0.6931472, %v18694_v8  ;;  %v20443_v44 = vsub.f32 %v20229_v50, %v13717_v5 }
0x1768   :  { %v14251_v38 = vsel %vm13527_vm0, %v14187_v30, 0.0  ;;  %18701 = vpow2.f32 %v13898_v21  ;;  %v13719_v4 = vpop.xlane.xlu1 %13718 }
0x1769   :  { %14315 = vst [vmem:[#allocation9 + $0x98] sm:$0xff] %v14251_v38  ;;  %v14248_v59 = vsel %vm13527_vm0, %v14184_v54, 0.0  ;;  %v14185_v51 = vsub.f32 %v20655_v6, %v14075_v34  ;;  %v13908_v36 = vmul.f32 1.442695, %v20443_v44  ;;  %v20457_v58 = vsub.f32 %v20239_v29, %v13719_v4 }
0x176a   :  { %14312 = vst [vmem:[#allocation9 + $0x80] sm:$0xff] %v14248_v59  ;;  %v13713_v55 = vpop.xlane.xlu0 %13712 }
0x176b   :  { %v18696_v27 = vpop.eup %18695  ;;  %v14249_v50 = vsel %vm13527_vm0, %v14185_v51, 0.0  ;;  %v20454_v20 = vsub.f32 %v20248_v28, %v13713_v55  ;;  %18703 = vpow2.f32 %v13908_v36  ;;  %v13910_v28 = vmul.f32 1.442695, %v20457_v58 }
0x176c   :  { %14028 = vadd.xlane.f32.xlu0 %v18696_v27  ;;  %14313 = vst [vmem:[#allocation9 + $0x88] sm:$0xff] %v14249_v50  ;;  %v13715_v57 = vpop.xlane.xlu1 %13714 }
0x176d   :  { %v13904_v60 = vmul.f32 1.442695, %v20454_v20  ;;  %v20461_v53 = vsub.f32 %v20257_v26, %v13715_v57 }
0x176e   :  { %v18698_v52 = vpop.eup %18697  ;;  %v13953_v17 = vpop.xlane.xlu0 %13952 }
0x176f   :  { %v18700_v24 = vpop.eup %18699  ;;  %18705 = vpow2.f32 %v13904_v60  ;;  %v13906_v8 = vmul.f32 1.442695, %v20461_v53  ;;  %14030 = vadd.xlane.f32.xlu1 %v18698_v52 }
0x1770   :  { %18707 = vlog2.f32 %v13953_v17  ;;  %14024 = vadd.xlane.f32.xlu0 %v18700_v24  ;;  %v13955_v29 = vpop.xlane.xlu1 %13954  ;;  %v20656_v17 = vld [vmem:[#allocation23_spill] sm:$0xff] }
0x1771   :  { %18709 = vpow2.f32 %v13906_v8  ;;  %v20657_v8 = vld [vmem:[#allocation24_spill] sm:$0xff] }
0x1772   :  { %v18702_v19 = vpop.eup %18701  ;;  %18711 = vlog2.f32 %v13955_v29  ;;  %v13957_v30 = vpop.xlane.xlu0 %13956 }
0x1773   :  { %18713 = vlog2.f32 %v13957_v30  ;;  %14026 = vadd.xlane.f32.xlu1 %v18702_v19 }
0x1774   :  { %18715 = vpow2.f32 %v13910_v28  ;;  %v13959_v26 = vpop.xlane.xlu1 %13958 }
0x1775   :  { %18717 = vlog2.f32 %v13959_v26  ;;  %v18704_v5 = vpop.eup %18703 }
0x1776   :  { %v13965_v21 = vpop.xlane.xlu0 %13964 }
0x1777   :  { %18719 = vlog2.f32 %v13965_v21 }
0x1778   :  { %v13967_v3 = vpop.xlane.xlu1 %13966 }
0x1779   :  { %v18706_v54 = vpop.eup %18705  ;;  %18721 = vlog2.f32 %v13967_v3 }
0x177a   :  { %v18708_v34 = vpop.eup %18707  ;;  %14032 = vadd.xlane.f32.xlu0 %v18706_v54  ;;  %v13961_v38 = vpop.xlane.xlu0 %13960 }
0x177b   :  { %v18710_v4 = vpop.eup %18709  ;;  %v14081_v59 = vmul.f32 0.6931472, %v18708_v34  ;;  %18723 = vlog2.f32 %v13961_v38 }
0x177c   :  { %v18712_v6 = vpop.eup %18711  ;;  %14034 = vadd.xlane.f32.xlu1 %v18710_v4  ;;  %v13963_v51 = vpop.xlane.xlu1 %13962 }
0x177d   :  { %v18714_v27 = vpop.eup %18713  ;;  %v14188_v36 = vsub.f32 %v20189_v56, %v14081_v59  ;;  %v14083_v55 = vmul.f32 0.6931472, %v18712_v6  ;;  %18725 = vlog2.f32 %v13963_v51 }
0x177e   :  { %v18716_v50 = vpop.eup %18715  ;;  %v14085_v57 = vmul.f32 0.6931472, %v18714_v27  ;;  %14036 = vadd.xlane.f32.xlu0 %v18704_v5 }
0x177f   :  { %v18718_v60 = vpop.eup %18717  ;;  %v14252_v52 = vsel %vm13527_vm0, %v14188_v36, 0.0  ;;  %v14189_v24 = vsub.f32 %v20656_v17, %v14083_v55 }
0x1780   :  { %14316 = vst [vmem:[#allocation9 + $0xa0] sm:$0xff] %v14252_v52  ;;  %v14190_v28 = vsub.f32 %v20657_v8, %v14085_v57  ;;  %v14087_v29 = vmul.f32 0.6931472, %v18718_v60  ;;  %14038 = vadd.xlane.f32.xlu1 %v18716_v50  ;;  %v20658_v50 = vld [vmem:[#allocation25_spill] sm:$0xff] }
0x1781   :  { %v18720_v19 = vpop.eup %18719  ;;  %v14253_v56 = vsel %vm13527_vm0, %v14189_v24, 0.0 }
0x1782   :  { %14317 = vst [vmem:[#allocation9 + $0xa8] sm:$0xff] %v14253_v56  ;;  %v14254_v30 = vsel %vm13527_vm0, %v14190_v28, 0.0  ;;  %v14191_v26 = vsub.f32 %v20211_v11, %v14087_v29  ;;  %v14093_v21 = vmul.f32 0.6931472, %v18720_v19 }
0x1783   :  { %v18722_v5 = vpop.eup %18721  ;;  %14318 = vst [vmem:[#allocation9 + $0xb0] sm:$0xff] %v14254_v30  ;;  %v13973_v3 = vpop.xlane.xlu0 %13972 }
0x1784   :  { %v14255_v54 = vsel %vm13527_vm0, %v14191_v26, 0.0  ;;  %v14194_v34 = vsub.f32 %v20223_v23, %v14093_v21  ;;  %v14095_v38 = vmul.f32 0.6931472, %v18722_v5  ;;  %18727 = vlog2.f32 %v13973_v3 }
0x1785   :  { %v18724_v4 = vpop.eup %18723  ;;  %14319 = vst [vmem:[#allocation9 + $0xb8] sm:$0xff] %v14255_v54  ;;  %v13975_v59 = vpop.xlane.xlu1 %13974 }
0x1786   :  { %v14258_v6 = vsel %vm13527_vm0, %v14194_v34, 0.0  ;;  %v14195_v51 = vsub.f32 %v20232_v10, %v14095_v38  ;;  %v14089_v11 = vmul.f32 0.6931472, %v18724_v4  ;;  %18729 = vlog2.f32 %v13975_v59 }
0x1787   :  { %v18726_v27 = vpop.eup %18725  ;;  %14322 = vst [vmem:[#allocation9 + $0xd0] sm:$0xff] %v14258_v6  ;;  %v13969_v36 = vpop.xlane.xlu0 %13968 }
0x1788   :  { %v14259_v55 = vsel %vm13527_vm0, %v14195_v51, 0.0  ;;  %v14192_v23 = vsub.f32 %v20658_v50, %v14089_v11  ;;  %v14091_v57 = vmul.f32 0.6931472, %v18726_v27  ;;  %18731 = vlog2.f32 %v13969_v36 }
0x1789   :  { %14323 = vst [vmem:[#allocation9 + $0xd8] sm:$0xff] %v14259_v55  ;;  %v13971_v60 = vpop.xlane.xlu1 %13970 }
0x178a   :  { %v14256_v52 = vsel %vm13527_vm0, %v14192_v23, 0.0  ;;  %v14193_v17 = vsub.f32 %v20251_v42, %v14091_v57  ;;  %18733 = vlog2.f32 %v13971_v60 }
0x178b   :  { %14320 = vst [vmem:[#allocation9 + $0xc0] sm:$0xff] %v14256_v52 }
0x178c   :  { %v14257_v10 = vsel %vm13527_vm0, %v14193_v17, 0.0 }
0x178d   :  { %14321 = vst [vmem:[#allocation9 + $0xc8] sm:$0xff] %v14257_v10 }
0x178e   :  { %v18728_v24 = vpop.eup %18727 }
0x178f   :  { %v14101_v8 = vmul.f32 0.6931472, %v18728_v24 }
0x1790   :  { %v18730_v28 = vpop.eup %18729 }
0x1791   :  { %v14198_v29 = vsub.f32 %v20262_v45, %v14101_v8  ;;  %v14103_v19 = vmul.f32 0.6931472, %v18730_v28 }
0x1792   :  { %v18732_v56 = vpop.eup %18731 }
0x1793   :  { %v14262_v30 = vsel %vm13527_vm0, %v14198_v29, 0.0  ;;  %v14199_v26 = vsub.f32 %v20266_v13, %v14103_v19  ;;  %v14097_v21 = vmul.f32 0.6931472, %v18732_v56  ;;  %v13981_v42 = vpop.xlane.xlu0 %13980 }
0x1794   :  { %v18734_v5 = vpop.eup %18733  ;;  %14326 = vst [vmem:[#allocation9 + $0xf0] sm:$0xff] %v14262_v30  ;;  %18735 = vlog2.f32 %v13981_v42 }
0x1795   :  { %v14263_v3 = vsel %vm13527_vm0, %v14199_v26, 0.0  ;;  %v14196_v54 = vsub.f32 %v20270_v43, %v14097_v21  ;;  %v14099_v34 = vmul.f32 0.6931472, %v18734_v5  ;;  %v13983_v38 = vpop.xlane.xlu1 %13982 }
0x1796   :  { %14327 = vst [vmem:[#allocation9 + $0xf8] sm:$0xff] %v14263_v3  ;;  %18737 = vlog2.f32 %v13983_v38 }
0x1797   :  { %v14260_v45 = vsel %vm13527_vm0, %v14196_v54, 0.0  ;;  %v14197_v4 = vsub.f32 %v20274_v9, %v14099_v34  ;;  %v13977_v13 = vpop.xlane.xlu0 %13976 }
0x1798   :  { %14324 = vst [vmem:[#allocation9 + $0xe0] sm:$0xff] %v14260_v45  ;;  %18739 = vlog2.f32 %v13977_v13  ;;  %v20659_v45 = vld [vmem:[#allocation26_spill] sm:$0xff] }
0x1799   :  { %v14261_v59 = vsel %vm13527_vm0, %v14197_v4, 0.0  ;;  %v13979_v6 = vpop.xlane.xlu1 %13978 }
0x179a   :  { %14325 = vst [vmem:[#allocation9 + $0xe8] sm:$0xff] %v14261_v59  ;;  %18741 = vlog2.f32 %v13979_v6 }
0x179e   :  { %v18736_v51 = vpop.eup %18735 }
0x179f   :  { %v14109_v43 = vmul.f32 0.6931472, %v18736_v51 }
0x17a0   :  { %v18738_v11 = vpop.eup %18737 }
0x17a1   :  { %v14202_v27 = vsub.f32 %v20278_v12, %v14109_v43  ;;  %v14111_v36 = vmul.f32 0.6931472, %v18738_v11  ;;  %v20660_v11 = vld [vmem:[#allocation27_spill] sm:$0xff] }
0x17a2   :  { %v18740_v55 = vpop.eup %18739 }
0x17a3   :  { %v14266_v50 = vsel %vm13527_vm0, %v14202_v27, 0.0  ;;  %v14203_v9 = vsub.f32 %v20282_v49, %v14111_v36  ;;  %v14105_v23 = vmul.f32 0.6931472, %v18740_v55  ;;  %v13989_v57 = vpop.xlane.xlu0 %13988 }
0x17a4   :  { %v18742_v60 = vpop.eup %18741  ;;  %14330 = vst [vmem:[#allocation9 + $0x110] sm:$0xff] %v14266_v50  ;;  %18743 = vlog2.f32 %v13989_v57 }
0x17a5   :  { %v14267_v52 = vsel %vm13527_vm0, %v14203_v9, 0.0  ;;  %v14200_v17 = vsub.f32 %v20286_v2, %v14105_v23  ;;  %v14107_v10 = vmul.f32 0.6931472, %v18742_v60  ;;  %v13991_v24 = vpop.xlane.xlu1 %13990 }
0x17a6   :  { %14331 = vst [vmem:[#allocation9 + $0x118] sm:$0xff] %v14267_v52  ;;  %18745 = vlog2.f32 %v13991_v24 }
0x17a7   :  { %v14264_v12 = vsel %vm13527_vm0, %v14200_v17, 0.0  ;;  %v14201_v8 = vsub.f32 %v20290_v37, %v14107_v10  ;;  %v13985_v49 = vpop.xlane.xlu0 %13984  ;;  %v20661_v17 = vld [vmem:[#allocation28_spill] sm:$0xff] }
0x17a8   :  { %14328 = vst [vmem:[#allocation9 + $0x100] sm:$0xff] %v14264_v12  ;;  %18747 = vlog2.f32 %v13985_v49 }
0x17a9   :  { %v14265_v28 = vsel %vm13527_vm0, %v14201_v8, 0.0  ;;  %v13987_v29 = vpop.xlane.xlu1 %13986 }
0x17aa   :  { %14329 = vst [vmem:[#allocation9 + $0x108] sm:$0xff] %v14265_v28  ;;  %18749 = vlog2.f32 %v13987_v29 }
0x17ae   :  { %v18744_v19 = vpop.eup %18743 }
0x17af   :  { %v14117_v2 = vmul.f32 0.6931472, %v18744_v19 }
0x17b0   :  { %v18746_v56 = vpop.eup %18745 }
0x17b1   :  { %v14206_v30 = vsub.f32 %v20294_v63, %v14117_v2  ;;  %v14119_v26 = vmul.f32 0.6931472, %v18746_v56 }
0x17b2   :  { %v18748_v21 = vpop.eup %18747 }
0x17b3   :  { %v14270_v42 = vsel %vm13527_vm0, %v14206_v30, 0.0  ;;  %v14207_v37 = vsub.f32 %v20298_v41, %v14119_v26  ;;  %v14113_v5 = vmul.f32 0.6931472, %v18748_v21 }
0x17b4   :  { %v18750_v3 = vpop.eup %18749  ;;  %14334 = vst [vmem:[#allocation9 + $0x130] sm:$0xff] %v14270_v42 }
0x17b5   :  { %v14271_v54 = vsel %vm13527_vm0, %v14207_v37, 0.0  ;;  %v14204_v34 = vsub.f32 %v20302_v1, %v14113_v5  ;;  %v14115_v38 = vmul.f32 0.6931472, %v18750_v3 }
0x17b6   :  { %14335 = vst [vmem:[#allocation9 + $0x138] sm:$0xff] %v14271_v54 }
0x17b7   :  { %v14268_v63 = vsel %vm13527_vm0, %v14204_v34, 0.0  ;;  %v14205_v4 = vsub.f32 %v20659_v45, %v14115_v38 }
0x17b8   :  { %14332 = vst [vmem:[#allocation9 + $0x120] sm:$0xff] %v14268_v63 }
0x17b9   :  { %v13997_v13 = vpop.xlane.xlu0 %13996  ;;  %v14269_v41 = vsel %vm13527_vm0, %v14205_v4, 0.0 }
0x17ba   :  { %18751 = vlog2.f32 %v13997_v13  ;;  %14333 = vst [vmem:[#allocation9 + $0x128] sm:$0xff] %v14269_v41 }
0x17bc   :  { %v13999_v59 = vpop.xlane.xlu1 %13998 }
0x17bd   :  { %18753 = vlog2.f32 %v13999_v59  ;;  %v13993_v6 = vpop.xlane.xlu0 %13992 }
0x17be   :  { %18755 = vlog2.f32 %v13993_v6 }
0x17c0   :  { %v13995_v51 = vpop.xlane.xlu1 %13994 }
0x17c1   :  { %18757 = vlog2.f32 %v13995_v51 }
0x17c4   :  { %v18752_v1 = vpop.eup %18751 }
0x17c5   :  { %v14125_v43 = vmul.f32 0.6931472, %v18752_v1 }
0x17c7   :  { %v14210_v27 = vsub.f32 %v20660_v11, %v14125_v43  ;;  %v18754_v36 = vpop.eup %18753 }
0x17c8   :  { %v18756_v55 = vpop.eup %18755  ;;  %v14127_v9 = vmul.f32 0.6931472, %v18754_v36 }
0x17c9   :  { %v14274_v50 = vsel %vm13527_vm0, %v14210_v27, 0.0  ;;  %v14005_v23 = vpop.xlane.xlu0 %14004  ;;  %v14121_v57 = vmul.f32 0.6931472, %v18756_v55 }
0x17ca   :  { %14338 = vst [vmem:[#allocation9 + $0x150] sm:$0xff] %v14274_v50  ;;  %18759 = vlog2.f32 %v14005_v23  ;;  %v14211_v60 = vsub.f32 %v20314_v39, %v14127_v9 }
0x17cb   :  { %v18758_v52 = vpop.eup %18757  ;;  %v14208_v10 = vsub.f32 %v20661_v17, %v14121_v57 }
0x17cc   :  { %v14275_v24 = vsel %vm13527_vm0, %v14211_v60, 0.0  ;;  %v14123_v12 = vmul.f32 0.6931472, %v18758_v52  ;;  %v14007_v8 = vpop.xlane.xlu1 %14006 }
0x17cd   :  { %14339 = vst [vmem:[#allocation9 + $0x158] sm:$0xff] %v14275_v24  ;;  %v14272_v49 = vsel %vm13527_vm0, %v14208_v10, 0.0  ;;  %18761 = vlog2.f32 %v14007_v8  ;;  %v14001_v28 = vpop.xlane.xlu0 %14000 }
0x17ce   :  { %14336 = vst [vmem:[#allocation9 + $0x140] sm:$0xff] %v14272_v49  ;;  %v14209_v29 = vsub.f32 %v20325_v18, %v14123_v12  ;;  %18763 = vlog2.f32 %v14001_v28 }
0x17d0   :  { %v14273_v39 = vsel %vm13527_vm0, %v14209_v29, 0.0  ;;  %v14003_v19 = vpop.xlane.xlu1 %14002 }
0x17d1   :  { %14337 = vst [vmem:[#allocation9 + $0x148] sm:$0xff] %v14273_v39  ;;  %18765 = vlog2.f32 %v14003_v19 }
0x17d4   :  { %v18760_v2 = vpop.eup %18759 }
0x17d5   :  { %v14133_v56 = vmul.f32 0.6931472, %v18760_v2 }
0x17d7   :  { %v14214_v30 = vsub.f32 %v20338_v62, %v14133_v56  ;;  %v18762_v26 = vpop.eup %18761 }
0x17d8   :  { %v18764_v21 = vpop.eup %18763  ;;  %v14135_v37 = vmul.f32 0.6931472, %v18762_v26 }
0x17d9   :  { %v14278_v42 = vsel %vm13527_vm0, %v14214_v30, 0.0  ;;  %v14013_v5 = vpop.xlane.xlu0 %14012  ;;  %v14129_v18 = vmul.f32 0.6931472, %v18764_v21 }
0x17da   :  { %14342 = vst [vmem:[#allocation9 + $0x170] sm:$0xff] %v14278_v42  ;;  %18767 = vlog2.f32 %v14013_v5  ;;  %v14215_v3 = vsub.f32 %v20342_v31, %v14135_v37 }
0x17db   :  { %v18766_v54 = vpop.eup %18765  ;;  %v14212_v34 = vsub.f32 %v20345_v0, %v14129_v18 }
0x17dc   :  { %v14279_v38 = vsel %vm13527_vm0, %v14215_v3, 0.0  ;;  %v14131_v63 = vmul.f32 0.6931472, %v18766_v54  ;;  %v14015_v62 = vpop.xlane.xlu1 %14014 }
0x17dd   :  { %14343 = vst [vmem:[#allocation9 + $0x178] sm:$0xff] %v14279_v38  ;;  %v14276_v45 = vsel %vm13527_vm0, %v14212_v34, 0.0  ;;  %18769 = vlog2.f32 %v14015_v62  ;;  %v14009_v4 = vpop.xlane.xlu0 %14008 }
0x17de   :  { %14340 = vst [vmem:[#allocation9 + $0x160] sm:$0xff] %v14276_v45  ;;  %v14213_v13 = vsub.f32 %v20351_v14, %v14131_v63  ;;  %18771 = vlog2.f32 %v14009_v4 }
0x17e0   :  { %v14277_v31 = vsel %vm13527_vm0, %v14213_v13, 0.0  ;;  %v14011_v41 = vpop.xlane.xlu1 %14010 }
0x17e1   :  { %14341 = vst [vmem:[#allocation9 + $0x168] sm:$0xff] %v14277_v31  ;;  %18773 = vlog2.f32 %v14011_v41 }
0x17e4   :  { %v18768_v0 = vpop.eup %18767 }
0x17e5   :  { %v14141_v59 = vmul.f32 0.6931472, %v18768_v0 }
0x17e7   :  { %v14218_v6 = vsub.f32 %v20366_v48, %v14141_v59  ;;  %v18770_v51 = vpop.eup %18769 }
0x17e8   :  { %v18772_v1 = vpop.eup %18771  ;;  %v14143_v11 = vmul.f32 0.6931472, %v18770_v51 }
0x17e9   :  { %v14282_v43 = vsel %vm13527_vm0, %v14218_v6, 0.0  ;;  %v14021_v27 = vpop.xlane.xlu0 %14020  ;;  %v14137_v14 = vmul.f32 0.6931472, %v18772_v1 }
0x17ea   :  { %14346 = vst [vmem:[#allocation9 + $0x190] sm:$0xff] %v14282_v43  ;;  %18775 = vlog2.f32 %v14021_v27  ;;  %v14219_v36 = vsub.f32 %v20370_v32, %v14143_v11 }
0x17eb   :  { %v18774_v55 = vpop.eup %18773  ;;  %v14216_v50 = vsub.f32 %v20373_v35, %v14137_v14 }
0x17ec   :  { %v14283_v9 = vsel %vm13527_vm0, %v14219_v36, 0.0  ;;  %v14139_v23 = vmul.f32 0.6931472, %v18774_v55  ;;  %v14023_v48 = vpop.xlane.xlu1 %14022 }
0x17ed   :  { %14347 = vst [vmem:[#allocation9 + $0x198] sm:$0xff] %v14283_v9  ;;  %v14280_v57 = vsel %vm13527_vm0, %v14216_v50, 0.0  ;;  %18777 = vlog2.f32 %v14023_v48  ;;  %v14017_v60 = vpop.xlane.xlu0 %14016 }
0x17ee   :  { %14344 = vst [vmem:[#allocation9 + $0x180] sm:$0xff] %v14280_v57  ;;  %v14217_v52 = vsub.f32 %v20379_v33, %v14139_v23  ;;  %18779 = vlog2.f32 %v14017_v60 }
0x17f0   :  { %v14281_v32 = vsel %vm13527_vm0, %v14217_v52, 0.0  ;;  %v14019_v17 = vpop.xlane.xlu1 %14018 }
0x17f1   :  { %14345 = vst [vmem:[#allocation9 + $0x188] sm:$0xff] %v14281_v32  ;;  %18781 = vlog2.f32 %v14019_v17 }
0x17f4   :  { %v18776_v35 = vpop.eup %18775 }
0x17f5   :  { %v14149_v10 = vmul.f32 0.6931472, %v18776_v35 }
0x17f7   :  { %v14222_v24 = vsub.f32 %v20394_v61, %v14149_v10  ;;  %v18778_v12 = vpop.eup %18777 }
0x17f8   :  { %v18780_v8 = vpop.eup %18779  ;;  %v14151_v28 = vmul.f32 0.6931472, %v18778_v12 }
0x17f9   :  { %v14286_v49 = vsel %vm13527_vm0, %v14222_v24, 0.0  ;;  %v14029_v29 = vpop.xlane.xlu0 %14028  ;;  %v14145_v33 = vmul.f32 0.6931472, %v18780_v8 }
0x17fa   :  { %14350 = vst [vmem:[#allocation9 + $0x1b0] sm:$0xff] %v14286_v49  ;;  %18783 = vlog2.f32 %v14029_v29  ;;  %v14223_v39 = vsub.f32 %v20398_v25, %v14151_v28 }
0x17fb   :  { %v18782_v19 = vpop.eup %18781  ;;  %v14220_v2 = vsub.f32 %v20401_v15, %v14145_v33 }
0x17fc   :  { %v14287_v56 = vsel %vm13527_vm0, %v14223_v39, 0.0  ;;  %v14147_v30 = vmul.f32 0.6931472, %v18782_v19  ;;  %v14031_v61 = vpop.xlane.xlu1 %14030 }
0x17fd   :  { %14351 = vst [vmem:[#allocation9 + $0x1b8] sm:$0xff] %v14287_v56  ;;  %v14284_v26 = vsel %vm13527_vm0, %v14220_v2, 0.0  ;;  %18785 = vlog2.f32 %v14031_v61  ;;  %v14025_v21 = vpop.xlane.xlu0 %14024 }
0x17fe   :  { %14348 = vst [vmem:[#allocation9 + $0x1a0] sm:$0xff] %v14284_v26  ;;  %v14221_v42 = vsub.f32 %v20407_v16, %v14147_v30  ;;  %18787 = vlog2.f32 %v14025_v21 }
0x1800   :  { %v14285_v25 = vsel %vm13527_vm0, %v14221_v42, 0.0  ;;  %v14027_v37 = vpop.xlane.xlu1 %14026 }
0x1801   :  { %14349 = vst [vmem:[#allocation9 + $0x1a8] sm:$0xff] %v14285_v25  ;;  %18789 = vlog2.f32 %v14027_v37 }
0x1804   :  { %v18784_v15 = vpop.eup %18783 }
0x1805   :  { %v14157_v5 = vmul.f32 0.6931472, %v18784_v15 }
0x1807   :  { %v14226_v18 = vsub.f32 %v20422_v7, %v14157_v5  ;;  %v18786_v3 = vpop.eup %18785  ;;  %v14033_v54 = vpop.xlane.xlu0 %14032 }
0x1808   :  { %v18788_v34 = vpop.eup %18787  ;;  %v14159_v63 = vmul.f32 0.6931472, %v18786_v3  ;;  %18791 = vlog2.f32 %v14033_v54 }
0x1809   :  { %v14290_v38 = vsel %vm13527_vm0, %v14226_v18, 0.0  ;;  %v14153_v16 = vmul.f32 0.6931472, %v18788_v34  ;;  %v14035_v62 = vpop.xlane.xlu1 %14034 }
0x180a   :  { %14354 = vst [vmem:[#allocation9 + $0x1d0] sm:$0xff] %v14290_v38  ;;  %v14227_v45 = vsub.f32 %v20426_v22, %v14159_v63  ;;  %18793 = vlog2.f32 %v14035_v62 }
0x180b   :  { %v18790_v4 = vpop.eup %18789  ;;  %v14224_v13 = vsub.f32 %v20429_v46, %v14153_v16  ;;  %v14037_v31 = vpop.xlane.xlu0 %14036 }
0x180c   :  { %v14291_v7 = vsel %vm13527_vm0, %v14227_v45, 0.0  ;;  %v14155_v41 = vmul.f32 0.6931472, %v18790_v4  ;;  %18795 = vlog2.f32 %v14037_v31 }
0x180d   :  { %14355 = vst [vmem:[#allocation9 + $0x1d8] sm:$0xff] %v14291_v7  ;;  %v14288_v0 = vsel %vm13527_vm0, %v14224_v13, 0.0  ;;  %v14039_v59 = vpop.xlane.xlu1 %14038 }
0x180e   :  { %14352 = vst [vmem:[#allocation9 + $0x1c0] sm:$0xff] %v14288_v0  ;;  %v14225_v6 = vsub.f32 %v20435_v47, %v14155_v41  ;;  %18797 = vlog2.f32 %v14039_v59 }
0x1810   :  { %v14289_v22 = vsel %vm13527_vm0, %v14225_v6, 0.0 }
0x1811   :  { %14353 = vst [vmem:[#allocation9 + $0x1c8] sm:$0xff] %v14289_v22 }
0x1812   :  { %v18792_v46 = vpop.eup %18791 }
0x1813   :  { %v14161_v51 = vmul.f32 0.6931472, %v18792_v46 }
0x1814   :  { %v18794_v1 = vpop.eup %18793 }
0x1815   :  { %v14228_v43 = vsub.f32 %v20454_v20, %v14161_v51  ;;  %v14163_v11 = vmul.f32 0.6931472, %v18794_v1 }
0x1816   :  { %v18796_v27 = vpop.eup %18795 }
0x1817   :  { %v14292_v14 = vsel %vm13527_vm0, %v14228_v43, 0.0  ;;  %v14229_v36 = vsub.f32 %v20461_v53, %v14163_v11  ;;  %v14165_v55 = vmul.f32 0.6931472, %v18796_v27 }
0x1818   :  { %v18798_v50 = vpop.eup %18797  ;;  %14356 = vst [vmem:[#allocation9 + $0x1e0] sm:$0xff] %v14292_v14 }
0x1819   :  { %v14293_v47 = vsel %vm13527_vm0, %v14229_v36, 0.0  ;;  %v14230_v9 = vsub.f32 %v20443_v44, %v14165_v55  ;;  %v14167_v23 = vmul.f32 0.6931472, %v18798_v50 }
0x181a   :  { %14357 = vst [vmem:[#allocation9 + $0x1e8] sm:$0xff] %v14293_v47 }
0x181b   :  { %v14294_v20 = vsel %vm13527_vm0, %v14230_v9, 0.0  ;;  %v14231_v48 = vsub.f32 %v20457_v58, %v14167_v23 }
0x181c   :  { %14358 = vst [vmem:[#allocation9 + $0x1f0] sm:$0xff] %v14294_v20 }
0x181d   :  { %v14295_v53 = vsel %vm13527_vm0, %v14231_v48, 0.0 }
0x181e   :  { %14359 = vst [vmem:[#allocation9 + $0x1f8] sm:$0xff] %v14295_v53 }
0x181f   :  { %18876 = shalt.err (!%p18873_p0)
}
0x1820   :  { %s18877_s17 = scalar_lea.hbm %s20613_s4, 8192 }
0x1821   :  { %p18878_p1 = scmp.ne.s32.totalorder %s20613_s4, %s18877_s17  ;;  %p18881_p2 = scmp.lt.u32.totalorder %s18877_s17, %s20613_s4 }
0x1823   :  { %p18883_p3 = pnand %p18881_p2, %p18878_p1 }
0x1825   :  { %18886 = shalt.err (!%p18883_p3)
}
0x1826   :  { %s18902_s22 = smov 128   ;;  %s18903_s23 = smov 8  }
0x1827   :  { %14371 = dma.vmem_to_hbm [thread:$0]  %s14366_s13, 8192, %s20613_s4, [#allocation5], %s18902_s22, %s18902_s22, %s18903_s23  }
0x1828   :  { %18891 = dma.done.wait [#allocation5], 8192  }
0x1829   :  { %18892 = vsyncadd [#allocation5], 4294959104 }
0x182a   :  { %14375 = vsyncpa [#allocation4], 1 }
0x182b   :  { %14376 = vsyncpa [#allocation7], 1 }
0x182c   :  { %14377 = vsyncpa [#allocation5], 1 }

</bundles_post_ra>
